<compile_context>
chip_gen: v5e
topology: v5e:2x2
jax: 0.10.0
libtpu: 0.0.40
codegen_flags: <defaults>
</compile_context>

<pallas_src>
import math
import jax
import jax.numpy as jnp
from jax import lax
from jax.experimental import pallas as pl
from jax.experimental.pallas import tpu as pltpu

LN_EPS = 1e-5
BN_EPS = 1e-5
EPSILON = 1.0  # LMSPS `eps`; nonzero -> final norm-clipping branch is taken

# Weights that are stored in bf16 (everything that feeds the MXU).
MATMUL_WEIGHT_KEYS = [
    "w1f", "w2f", "w1l", "w2l", "wc", "wres",
    "wlr1", "wlr2", "wlf1", "wlf2", "wlf3",
]


# ----------------------------------------------------------------------------
# Fused LMSPS forward kernel (one row-block of nodes per grid step)
# ----------------------------------------------------------------------------
def lmsps_kernel(
    x_ref, lx_ref, tgt_ref, lbl_ref,
    w1f, b1f, g1f, be1f, w2f, b2f, g2f, be2f,
    w1l, b1l, g1l, be1l, w2l, b2l, g2l, be2l,
    wcf, wcl, bc, wres,
    wlr1, blr1, wlr2, bn_s, bn_b,
    wlf1, blf1, wlf2, blf2, wlf3, blf3,
    alphas, out_ref,
):
    f32 = jnp.float32

    def dot(a, w_ref):
        # bf16 weights, f32 activations, f32 accumulation on the MXU.
        return jnp.dot(a, w_ref[...].astype(f32), preferred_element_type=f32)

    def prelu(v, a):
        return jnp.where(v >= 0, v, a * v)

    def layernorm(h, g_ref, b_ref):
        # nn.LayerNorm([G, H]) == per-row LN over the flattened G*H axis.
        # Single pass: sum and sum-of-squares together; 1/(G*H) is static.
        n = h.shape[1]
        inv_n = 1.0 / float(n)
        s = jnp.sum(h, axis=1, keepdims=True)
        s2 = jnp.sum(h * h, axis=1, keepdims=True)
        mu = s * inv_n
        var = s2 * inv_n - mu * mu
        return (h - mu) * lax.rsqrt(var + LN_EPS) * g_ref[...] + b_ref[...]

    # PReLU slopes: 8 SMEM scalar loads, hoisted to kernel entry.
    a0, a1, a2, a3 = alphas[0], alphas[1], alphas[2], alphas[3]
    a4, a5, a6, a7 = alphas[4], alphas[5], alphas[6], alphas[7]

    # ---- feat_project_layers (block-diag grouped conv -> LN -> PReLU) x2 ----
    h = dot(x_ref[...], w1f) + b1f[...]
    h = prelu(layernorm(h, g1f, be1f), a0)
    h = dot(h, w2f) + b2f[...]
    h = prelu(layernorm(h, g2f, be2f), a1)

    # ---- label_feat_project_layers -----------------------------------------
    hl = dot(lx_ref[...], w1l) + b1l[...]
    hl = prelu(layernorm(hl, g1l, be1l), a2)
    hl = dot(hl, w2l) + b2l[...]
    hl = prelu(layernorm(hl, g2l, be2l), a3)

    # ---- concat_project_layer: cat(h, hl).reshape(B,-1) @ Wc + bc -----------
    # == h @ Wc[:M*H] + hl @ Wc[M*H:] + bc  (two dense, deep-K matmuls).
    z = dot(h, wcf) + dot(hl, wcl) + bc[...]

    # ---- residual: z + res_fc(tgt_feat), then self.prelu --------------------
    z = z + dot(tgt_ref[...], wres)
    z = prelu(z, a4)

    # ---- lr_output: Linear+PReLU, Linear(no bias), BatchNorm1d (eval) -------
    z = prelu(dot(z, wlr1) + blr1[...], a5)
    z = dot(z, wlr2) * bn_s[...] + bn_b[...]

    # ---- label_residual: z + label_fc(label_emb) ----------------------------
    y = prelu(dot(lbl_ref[...], wlf1) + blf1[...], a6)
    y = prelu(dot(y, wlf2) + blf2[...], a7)
    y = dot(y, wlf3) + blf3[...]
    z = z + y

    # ---- epsilon branch: z / max(||z||_2 (dim=1), eps) ----------------------
    # Padded output columns are exactly zero, so the padded-row norm is exact.
    # 1 / max(sqrt(ss), eps) == (ss > eps^2) ? rsqrt(ss) : 1/eps  — EUP rsqrt,
    # no sqrt+divide pair on the VPU.
    ss = jnp.sum(z * z, axis=1, keepdims=True)
    scale = jnp.where(ss > (EPSILON * EPSILON), lax.rsqrt(ss), 1.0 / EPSILON)
    z = z * scale

    out_ref[...] = z.astype(out_ref.dtype)


# ----------------------------------------------------------------------------
# Host wrapper: layout packing + pallas_call
# ----------------------------------------------------------------------------
def _block_diag(w):
    # (G, Din, Dout) -> (G*Din, G*Dout) block-diagonal (host-side, one-time).
    G, din, dout = w.shape
    out = jnp.zeros((G * din, G * dout), w.dtype)
    for g in range(G):
        out = out.at[g * din:(g + 1) * din, g * dout:(g + 1) * dout].set(w[g])
    return out


def _pad_cols(a, cols):
    pad = cols - a.shape[-1]
    if pad == 0:
        return a
    return jnp.pad(a, [(0, 0)] * (a.ndim - 1) + [(0, pad)])


def _pad_rows(a, rows):
    pad = rows - a.shape[0]
    if pad == 0:
        return a
    return jnp.pad(a, [(0, pad)] + [(0, 0)] * (a.ndim - 1))


def lmsps_pallas(x_stack, lx_stack, tgt, label_emb, params, *, tile_b=256):
    B, M, F = x_stack.shape
    _, L, C = lx_stack.shape
    H = params["wlr1"].shape[0]
    nclass = params["wlr2"].shape[1]
    Cp = 128 * pl.cdiv(nclass, 128)          # lane-dense padded output width
    MH = M * H

    # Pad the node dimension to a tile_b multiple (padded rows discarded).
    Bp = tile_b * pl.cdiv(B, tile_b)

    # ---- host-side layout packing -------------------------------------------
    flat = lambda v: v.reshape(1, -1)                       # (G,H) -> (1,G*H)

    # Fold BatchNorm1d eval running stats + affine into scale/bias vectors.
    bn_scale = (params["bn_gamma"] / jnp.sqrt(params["bn_var"] + BN_EPS)).reshape(1, -1)
    bn_bias = (params["bn_beta"] - params["bn_mean"] * bn_scale[0]).reshape(1, -1)

    wc = params["wc"]                                        # ((M+L)*H, H)
    packed = [
        _block_diag(params["w1f"]), flat(params["b1f"]), flat(params["g1f"]), flat(params["be1f"]),
        _block_diag(params["w2f"]), flat(params["b2f"]), flat(params["g2f"]), flat(params["be2f"]),
        _block_diag(params["w1l"]), flat(params["b1l"]), flat(params["g1l"]), flat(params["be1l"]),
        _block_diag(params["w2l"]), flat(params["b2l"]), flat(params["g2l"]), flat(params["be2l"]),
        wc[:MH], wc[MH:], params["bc"],
        params["wres"],
        params["wlr1"], params["blr1"], _pad_cols(params["wlr2"], Cp),
        _pad_cols(bn_scale, Cp), _pad_cols(bn_bias, Cp),
        params["wlf1"], params["blf1"], params["wlf2"], params["blf2"],
        _pad_cols(params["wlf3"], Cp), _pad_cols(params["blf3"], Cp),
    ]

    # Flatten 3-D inputs to 2-D lane-dense tiles and pad the row dimension.
    x2d = _pad_rows(x_stack.reshape(B, M * F), Bp)
    lx2d = _pad_rows(lx_stack.reshape(B, L * C), Bp)
    tgt2d = _pad_rows(tgt, Bp)
    lbl2d = _pad_rows(label_emb, Bp)

    def row_spec(cols):
        return pl.BlockSpec((tile_b, cols), lambda i: (i, 0))

    def full2d(a):
        return pl.BlockSpec(a.shape, lambda i: (0, 0))

    in_specs = (
        [row_spec(M * F), row_spec(L * C), row_spec(F), row_spec(C)]
        + [full2d(a) for a in packed]
        + [pl.BlockSpec(memory_space=pltpu.MemorySpace.SMEM)]   # PReLU alphas
    )
    out_spec = pl.BlockSpec((tile_b, Cp), lambda i: (i, 0))

    out = pl.pallas_call(
        lmsps_kernel,
        out_shape=jax.ShapeDtypeStruct((Bp, Cp), jnp.float32),
        grid=(Bp // tile_b,),
        in_specs=in_specs,
        out_specs=out_spec,
        compiler_params=pltpu.CompilerParams(
            dimension_semantics=("parallel",),       # shards batch over TCs on v7x
            vmem_limit_bytes=32 * 1024 * 1024,
        ),
    )(x2d, lx2d, tgt2d, lbl2d, *packed, params["alphas"])

    return out[:B, :nclass]


# ----------------------------------------------------------------------------
# Parameter init (matches LMSPS.reset_parameters: xavier_uniform(gain=relu),
# zero biases, LN gamma=1 / beta=0, PReLU alpha=0.25, BN default stats).
# data_size == nfeat for every key so `self.embedings` is None.
# ----------------------------------------------------------------------------
def _xavier(key, shape, gain=math.sqrt(2.0)):
    fan_in, fan_out = shape[-2], shape[-1]
    a = gain * math.sqrt(2.0 / float(fan_in + fan_out)) * math.sqrt(3.0)
    return jax.random.uniform(key, shape, jnp.float32, -a, a)


def init_params(key, *, nfeat, hidden, nclass, M, L):
    ks = iter(jax.random.split(key, 16))
    p = {}
    # feat_project_layers
    p["w1f"] = _xavier(next(ks), (M, nfeat, hidden))
    p["b1f"] = jnp.zeros((M, hidden), jnp.float32)
    p["g1f"] = jnp.ones((M, hidden), jnp.float32)
    p["be1f"] = jnp.zeros((M, hidden), jnp.float32)
    p["w2f"] = _xavier(next(ks), (M, hidden, hidden))
    p["b2f"] = jnp.zeros((M, hidden), jnp.float32)
    p["g2f"] = jnp.ones((M, hidden), jnp.float32)
    p["be2f"] = jnp.zeros((M, hidden), jnp.float32)
    # label_feat_project_layers
    p["w1l"] = _xavier(next(ks), (L, nclass, hidden))
    p["b1l"] = jnp.zeros((L, hidden), jnp.float32)
    p["g1l"] = jnp.ones((L, hidden), jnp.float32)
    p["be1l"] = jnp.zeros((L, hidden), jnp.float32)
    p["w2l"] = _xavier(next(ks), (L, hidden, hidden))
    p["b2l"] = jnp.zeros((L, hidden), jnp.float32)
    p["g2l"] = jnp.ones((L, hidden), jnp.float32)
    p["be2l"] = jnp.zeros((L, hidden), jnp.float32)
    # concat_project_layer: Linear((M+L)*H, H), stored (in, out)
    p["wc"] = _xavier(next(ks), ((M + L) * hidden, hidden))
    p["bc"] = jnp.zeros((1, hidden), jnp.float32)
    # res_fc (residual=True): Linear(nfeat, hidden, bias=False), stored (in, out)
    p["wres"] = _xavier(next(ks), (nfeat, hidden))
    # lr_output (n_layers_2 = 2): Linear(H,H)+PReLU+Drop, Linear(H,C,no bias), BN(C)
    p["wlr1"] = _xavier(next(ks), (hidden, hidden))
    p["blr1"] = jnp.zeros((1, hidden), jnp.float32)
    p["wlr2"] = _xavier(next(ks), (hidden, nclass))
    # BatchNorm1d(nclass) eval-mode running stats + affine (defaults here, but
    # trained values are supported by the kernel).
    p["bn_mean"] = jnp.zeros((nclass,), jnp.float32)
    p["bn_var"] = jnp.ones((nclass,), jnp.float32)
    p["bn_gamma"] = jnp.ones((nclass,), jnp.float32)
    p["bn_beta"] = jnp.zeros((nclass,), jnp.float32)
    # label_fc (n_layers_3 = 3): Lin(C,H)+PReLU+Drop, Lin(H,H)+PReLU+Drop, Lin(H,C)
    p["wlf1"] = _xavier(next(ks), (nclass, hidden))
    p["blf1"] = jnp.zeros((1, hidden), jnp.float32)
    p["wlf2"] = _xavier(next(ks), (hidden, hidden))
    p["blf2"] = jnp.zeros((1, hidden), jnp.float32)
    p["wlf3"] = _xavier(next(ks), (hidden, nclass))
    p["blf3"] = jnp.zeros((1, nclass), jnp.float32)
    # all nn.PReLU() parameters (default init 0.25), kept in SMEM
    p["alphas"] = jnp.full((8,), 0.25, jnp.float32)
    return p


# ----------------------------------------------------------------------------
# Pure-JAX reference (same eval-mode semantics, same weight values)
# ----------------------------------------------------------------------------
def lmsps_ref(x_stack, lx_stack, tgt, label_emb, p):
    f32 = jnp.float32

    def gmm(h, w, b):
        return jnp.einsum("bcm,cmn->bcn", h, w.astype(f32)) + b[None]

    def ln(h, g, b):
        mu = jnp.mean(h, axis=(1, 2), keepdims=True)
        v = jnp.mean((h - mu) ** 2, axis=(1, 2), keepdims=True)
        return (h - mu) / jnp.sqrt(v + LN_EPS) * g[None] + b[None]

    def prelu(v, a):
        return jnp.where(v >= 0, v, a * v)

    a = p["alphas"]
    h = prelu(ln(gmm(x_stack, p["w1f"], p["b1f"]), p["g1f"], p["be1f"]), a[0])
    h = prelu(ln(gmm(h, p["w2f"], p["b2f"]), p["g2f"], p["be2f"]), a[1])
    hl = prelu(ln(gmm(lx_stack, p["w1l"], p["b1l"]), p["g1l"], p["be1l"]), a[2])
    hl = prelu(ln(gmm(hl, p["w2l"], p["b2l"]), p["g2l"], p["be2l"]), a[3])
    cat = jnp.concatenate([h, hl], axis=1)
    B = cat.shape[0]
    z = cat.reshape(B, -1) @ p["wc"].astype(f32) + p["bc"]
    z = z + tgt @ p["wres"].astype(f32)
    z = prelu(z, a[4])
    z = prelu(z @ p["wlr1"].astype(f32) + p["blr1"], a[5])
    z = z @ p["wlr2"].astype(f32)
    z = (z - p["bn_mean"]) / jnp.sqrt(p["bn_var"] + BN_EPS) * p["bn_gamma"] + p["bn_beta"]
    y = prelu(label_emb @ p["wlf1"].astype(f32) + p["blf1"], a[6])
    y = prelu(y @ p["wlf2"].astype(f32) + p["blf2"], a[7])
    y = y @ p["wlf3"].astype(f32) + p["blf3"]
    z = z + y
    nrm = jnp.sqrt(jnp.sum(z * z, axis=1, keepdims=True))
    return z / jnp.maximum(nrm, EPSILON)


# ----------------------------------------------------------------------------
if __name__ == "__main__":
    # Small synthetic config: nfeat=16, hidden=32, nclass=8,
    # num_meta (feature metapaths) = 3, num_label_meta = 2, B = 512 nodes.
    # tgt_key is in `path`, so feats_dict is kept whole; x_stack is
    # torch.stack(list(feats_dict.values()), dim=1) with the tgt feature first.
    B, nfeat, hidden, nclass = 512, 16, 32, 8
    M, L = 3, 2

    key = jax.random.PRNGKey(0)
    kx, klx, klbl, kp = jax.random.split(key, 4)

    x_stack = jax.random.normal(kx, (B, M, nfeat), jnp.float32)
    tgt_feat = x_stack[:, 0, :]                          # feats_dict[tgt_key]
    lx_stack = jax.random.normal(klx, (B, L, nclass), jnp.float32)
    label_emb = jax.random.normal(klbl, (B, nclass), jnp.float32)

    params = init_params(kp, nfeat=nfeat, hidden=hidden, nclass=nclass, M=M, L=L)
    # Store MXU-feeding weights in bf16 (half VMEM/HBM traffic); both the
    # kernel and the reference consume the same bf16 values with f32 compute.
    for k in MATMUL_WEIGHT_KEYS:
        params[k] = params[k].astype(jnp.bfloat16)

    out = lmsps_pallas(x_stack, lx_stack, tgt_feat, label_emb, params, tile_b=256)
    out = jax.block_until_ready(out)

    ref = lmsps_ref(x_stack, lx_stack, tgt_feat, label_emb, params)
    max_err = float(jnp.max(jnp.abs(out - ref)))
    assert out.shape == (B, nclass), out.shape
    assert max_err < 5e-3, f"max abs error {max_err}"
    print("KERNEL_OK")
</pallas_src>

<mosaic_0001>
module attributes {stable_mosaic.version = 11 : i64} {
  func.func @lmsps_kernel(%arg0: i32, %arg1: memref<256x48xf32, #tpu.memory_space<vmem>>, %arg2: memref<256x16xf32, #tpu.memory_space<vmem>>, %arg3: memref<256x16xf32, #tpu.memory_space<vmem>>, %arg4: memref<256x8xf32, #tpu.memory_space<vmem>>, %arg5: memref<48x96xbf16, #tpu.memory_space<vmem>>, %arg6: memref<1x96xf32, #tpu.memory_space<vmem>>, %arg7: memref<1x96xf32, #tpu.memory_space<vmem>>, %arg8: memref<1x96xf32, #tpu.memory_space<vmem>>, %arg9: memref<96x96xbf16, #tpu.memory_space<vmem>>, %arg10: memref<1x96xf32, #tpu.memory_space<vmem>>, %arg11: memref<1x96xf32, #tpu.memory_space<vmem>>, %arg12: memref<1x96xf32, #tpu.memory_space<vmem>>, %arg13: memref<16x64xbf16, #tpu.memory_space<vmem>>, %arg14: memref<1x64xf32, #tpu.memory_space<vmem>>, %arg15: memref<1x64xf32, #tpu.memory_space<vmem>>, %arg16: memref<1x64xf32, #tpu.memory_space<vmem>>, %arg17: memref<64x64xbf16, #tpu.memory_space<vmem>>, %arg18: memref<1x64xf32, #tpu.memory_space<vmem>>, %arg19: memref<1x64xf32, #tpu.memory_space<vmem>>, %arg20: memref<1x64xf32, #tpu.memory_space<vmem>>, %arg21: memref<96x32xbf16, #tpu.memory_space<vmem>>, %arg22: memref<64x32xbf16, #tpu.memory_space<vmem>>, %arg23: memref<1x32xf32, #tpu.memory_space<vmem>>, %arg24: memref<16x32xbf16, #tpu.memory_space<vmem>>, %arg25: memref<32x32xbf16, #tpu.memory_space<vmem>>, %arg26: memref<1x32xf32, #tpu.memory_space<vmem>>, %arg27: memref<32x128xbf16, #tpu.memory_space<vmem>>, %arg28: memref<1x128xf32, #tpu.memory_space<vmem>>, %arg29: memref<1x128xf32, #tpu.memory_space<vmem>>, %arg30: memref<8x32xbf16, #tpu.memory_space<vmem>>, %arg31: memref<1x32xf32, #tpu.memory_space<vmem>>, %arg32: memref<32x32xbf16, #tpu.memory_space<vmem>>, %arg33: memref<1x32xf32, #tpu.memory_space<vmem>>, %arg34: memref<32x128xbf16, #tpu.memory_space<vmem>>, %arg35: memref<1x128xf32, #tpu.memory_space<vmem>>, %arg36: memref<8xf32, #tpu.memory_space<smem>>, %arg37: memref<256x128xf32, #tpu.memory_space<vmem>>) attributes {dimension_semantics = [#tpu.dimension_semantics<parallel>], iteration_bounds = array<i64: 2>, scalar_prefetch = 0 : i64, scratch_operands = 0 : i64, tpu.core_type = #tpu.core_type<tc>, window_params = [{transform_indices = @transform_0, window_bounds = array<i64: 256, 48>}, {transform_indices = @transform_1, window_bounds = array<i64: 256, 16>}, {transform_indices = @transform_2, window_bounds = array<i64: 256, 16>}, {transform_indices = @transform_3, window_bounds = array<i64: 256, 8>}, {pipeline_mode = #tpu.pipeline_mode<synchronous>, transform_indices = @transform_4, window_bounds = array<i64: 48, 96>}, {pipeline_mode = #tpu.pipeline_mode<synchronous>, transform_indices = @transform_5, window_bounds = array<i64: 1, 96>}, {pipeline_mode = #tpu.pipeline_mode<synchronous>, transform_indices = @transform_6, window_bounds = array<i64: 1, 96>}, {pipeline_mode = #tpu.pipeline_mode<synchronous>, transform_indices = @transform_7, window_bounds = array<i64: 1, 96>}, {pipeline_mode = #tpu.pipeline_mode<synchronous>, transform_indices = @transform_8, window_bounds = array<i64: 96, 96>}, {pipeline_mode = #tpu.pipeline_mode<synchronous>, transform_indices = @transform_9, window_bounds = array<i64: 1, 96>}, {pipeline_mode = #tpu.pipeline_mode<synchronous>, transform_indices = @transform_10, window_bounds = array<i64: 1, 96>}, {pipeline_mode = #tpu.pipeline_mode<synchronous>, transform_indices = @transform_11, window_bounds = array<i64: 1, 96>}, {pipeline_mode = #tpu.pipeline_mode<synchronous>, transform_indices = @transform_12, window_bounds = array<i64: 16, 64>}, {pipeline_mode = #tpu.pipeline_mode<synchronous>, transform_indices = @transform_13, window_bounds = array<i64: 1, 64>}, {pipeline_mode = #tpu.pipeline_mode<synchronous>, transform_indices = @transform_14, window_bounds = array<i64: 1, 64>}, {pipeline_mode = #tpu.pipeline_mode<synchronous>, transform_indices = @transform_15, window_bounds = array<i64: 1, 64>}, {pipeline_mode = #tpu.pipeline_mode<synchronous>, transform_indices = @transform_16, window_bounds = array<i64: 64, 64>}, {pipeline_mode = #tpu.pipeline_mode<synchronous>, transform_indices = @transform_17, window_bounds = array<i64: 1, 64>}, {pipeline_mode = #tpu.pipeline_mode<synchronous>, transform_indices = @transform_18, window_bounds = array<i64: 1, 64>}, {pipeline_mode = #tpu.pipeline_mode<synchronous>, transform_indices = @transform_19, window_bounds = array<i64: 1, 64>}, {pipeline_mode = #tpu.pipeline_mode<synchronous>, transform_indices = @transform_20, window_bounds = array<i64: 96, 32>}, {pipeline_mode = #tpu.pipeline_mode<synchronous>, transform_indices = @transform_21, window_bounds = array<i64: 64, 32>}, {pipeline_mode = #tpu.pipeline_mode<synchronous>, transform_indices = @transform_22, window_bounds = array<i64: 1, 32>}, {pipeline_mode = #tpu.pipeline_mode<synchronous>, transform_indices = @transform_23, window_bounds = array<i64: 16, 32>}, {pipeline_mode = #tpu.pipeline_mode<synchronous>, transform_indices = @transform_24, window_bounds = array<i64: 32, 32>}, {pipeline_mode = #tpu.pipeline_mode<synchronous>, transform_indices = @transform_25, window_bounds = array<i64: 1, 32>}, {pipeline_mode = #tpu.pipeline_mode<synchronous>, transform_indices = @transform_26, window_bounds = array<i64: 32, 128>}, {pipeline_mode = #tpu.pipeline_mode<synchronous>, transform_indices = @transform_27, window_bounds = array<i64: 1, 128>}, {pipeline_mode = #tpu.pipeline_mode<synchronous>, transform_indices = @transform_28, window_bounds = array<i64: 1, 128>}, {pipeline_mode = #tpu.pipeline_mode<synchronous>, transform_indices = @transform_29, window_bounds = array<i64: 8, 32>}, {pipeline_mode = #tpu.pipeline_mode<synchronous>, transform_indices = @transform_30, window_bounds = array<i64: 1, 32>}, {pipeline_mode = #tpu.pipeline_mode<synchronous>, transform_indices = @transform_31, window_bounds = array<i64: 32, 32>}, {pipeline_mode = #tpu.pipeline_mode<synchronous>, transform_indices = @transform_32, window_bounds = array<i64: 1, 32>}, {pipeline_mode = #tpu.pipeline_mode<synchronous>, transform_indices = @transform_33, window_bounds = array<i64: 32, 128>}, {pipeline_mode = #tpu.pipeline_mode<synchronous>, transform_indices = @transform_34, window_bounds = array<i64: 1, 128>}, {transform_indices = @transform_35, window_bounds = array<i64: 8>}, {transform_indices = @transform_36, window_bounds = array<i64: 256, 128>}]} {
    %c0 = arith.constant 0 : index
    %0 = memref.load %arg36[%c0] : memref<8xf32, #tpu.memory_space<smem>>
    %c1 = arith.constant 1 : index
    %1 = memref.load %arg36[%c1] : memref<8xf32, #tpu.memory_space<smem>>
    %c2 = arith.constant 2 : index
    %2 = memref.load %arg36[%c2] : memref<8xf32, #tpu.memory_space<smem>>
    %c3 = arith.constant 3 : index
    %3 = memref.load %arg36[%c3] : memref<8xf32, #tpu.memory_space<smem>>
    %c4 = arith.constant 4 : index
    %4 = memref.load %arg36[%c4] : memref<8xf32, #tpu.memory_space<smem>>
    %c5 = arith.constant 5 : index
    %5 = memref.load %arg36[%c5] : memref<8xf32, #tpu.memory_space<smem>>
    %c6 = arith.constant 6 : index
    %6 = memref.load %arg36[%c6] : memref<8xf32, #tpu.memory_space<smem>>
    %c7 = arith.constant 7 : index
    %7 = memref.load %arg36[%c7] : memref<8xf32, #tpu.memory_space<smem>>
    %c0_0 = arith.constant 0 : index
    %c0_1 = arith.constant 0 : index
    %8 = vector.load %arg1[%c0_0, %c0_1] : memref<256x48xf32, #tpu.memory_space<vmem>>, vector<256x48xf32>
    %c0_2 = arith.constant 0 : index
    %c0_3 = arith.constant 0 : index
    %9 = vector.load %arg5[%c0_2, %c0_3] : memref<48x96xbf16, #tpu.memory_space<vmem>>, vector<48x96xbf16>
    %10 = arith.extf %9 : vector<48x96xbf16> to vector<48x96xf32>
    %cst = arith.constant dense<0.000000e+00> : vector<256x96xf32>
    %11 = tpu.matmul %8, %10, %cst {dimension_numbers = #tpu.dot_dimension_numbers<[1], [0], [0], [1], [0, 0, 1, 1], [], []>} : vector<256x48xf32>, vector<48x96xf32>, vector<256x96xf32> -> vector<256x96xf32>
    %c0_4 = arith.constant 0 : index
    %c0_5 = arith.constant 0 : index
    %12 = vector.load %arg6[%c0_4, %c0_5] : memref<1x96xf32, #tpu.memory_space<vmem>>, vector<1x96xf32>
    %13 = vector.broadcast %12 : vector<1x96xf32> to vector<256x96xf32>
    %14 = arith.addf %11, %13 : vector<256x96xf32>
    %cst_6 = arith.constant dense<0.000000e+00> : vector<256xf32>
    %15 = vector.multi_reduction <add>, %14, %cst_6 [1] : vector<256x96xf32> to vector<256xf32>
    %16 = vector.shape_cast %15 : vector<256xf32> to vector<256x1xf32>
    %17 = arith.mulf %14, %14 : vector<256x96xf32>
    %cst_7 = arith.constant dense<0.000000e+00> : vector<256xf32>
    %18 = vector.multi_reduction <add>, %17, %cst_7 [1] : vector<256x96xf32> to vector<256xf32>
    %19 = vector.shape_cast %18 : vector<256xf32> to vector<256x1xf32>
    %cst_8 = arith.constant 0.010416667 : f32
    %20 = vector.broadcast %cst_8 : f32 to vector<256x1xf32>
    %21 = arith.mulf %16, %20 : vector<256x1xf32>
    %cst_9 = arith.constant 0.010416667 : f32
    %22 = vector.broadcast %cst_9 : f32 to vector<256x1xf32>
    %23 = arith.mulf %19, %22 : vector<256x1xf32>
    %24 = arith.mulf %21, %21 : vector<256x1xf32>
    %25 = arith.subf %23, %24 : vector<256x1xf32>
    %26 = vector.broadcast %21 : vector<256x1xf32> to vector<256x96xf32>
    %27 = arith.subf %14, %26 : vector<256x96xf32>
    %cst_10 = arith.constant 9.99999974E-6 : f32
    %28 = vector.broadcast %cst_10 : f32 to vector<256x1xf32>
    %29 = arith.addf %25, %28 : vector<256x1xf32>
    %30 = math.rsqrt %29 : vector<256x1xf32>
    %31 = vector.broadcast %30 : vector<256x1xf32> to vector<256x96xf32>
    %32 = arith.mulf %27, %31 : vector<256x96xf32>
    %c0_11 = arith.constant 0 : index
    %c0_12 = arith.constant 0 : index
    %33 = vector.load %arg7[%c0_11, %c0_12] : memref<1x96xf32, #tpu.memory_space<vmem>>, vector<1x96xf32>
    %34 = vector.broadcast %33 : vector<1x96xf32> to vector<256x96xf32>
    %35 = arith.mulf %32, %34 : vector<256x96xf32>
    %c0_13 = arith.constant 0 : index
    %c0_14 = arith.constant 0 : index
    %36 = vector.load %arg8[%c0_13, %c0_14] : memref<1x96xf32, #tpu.memory_space<vmem>>, vector<1x96xf32>
    %37 = vector.broadcast %36 : vector<1x96xf32> to vector<256x96xf32>
    %38 = arith.addf %35, %37 : vector<256x96xf32>
    %cst_15 = arith.constant 0.000000e+00 : f32
    %39 = vector.broadcast %cst_15 : f32 to vector<256x96xf32>
    %40 = arith.cmpf oge, %38, %39 : vector<256x96xf32>
    %41 = vector.broadcast %0 : f32 to vector<256x96xf32>
    %42 = arith.mulf %41, %38 : vector<256x96xf32>
    %43 = arith.select %40, %38, %42 : vector<256x96xi1>, vector<256x96xf32>
    %c0_16 = arith.constant 0 : index
    %c0_17 = arith.constant 0 : index
    %44 = vector.load %arg9[%c0_16, %c0_17] : memref<96x96xbf16, #tpu.memory_space<vmem>>, vector<96x96xbf16>
    %45 = arith.extf %44 : vector<96x96xbf16> to vector<96x96xf32>
    %cst_18 = arith.constant dense<0.000000e+00> : vector<256x96xf32>
    %46 = tpu.matmul %43, %45, %cst_18 {dimension_numbers = #tpu.dot_dimension_numbers<[1], [0], [0], [1], [0, 0, 1, 1], [], []>} : vector<256x96xf32>, vector<96x96xf32>, vector<256x96xf32> -> vector<256x96xf32>
    %c0_19 = arith.constant 0 : index
    %c0_20 = arith.constant 0 : index
    %47 = vector.load %arg10[%c0_19, %c0_20] : memref<1x96xf32, #tpu.memory_space<vmem>>, vector<1x96xf32>
    %48 = vector.broadcast %47 : vector<1x96xf32> to vector<256x96xf32>
    %49 = arith.addf %46, %48 : vector<256x96xf32>
    %cst_21 = arith.constant dense<0.000000e+00> : vector<256xf32>
    %50 = vector.multi_reduction <add>, %49, %cst_21 [1] : vector<256x96xf32> to vector<256xf32>
    %51 = vector.shape_cast %50 : vector<256xf32> to vector<256x1xf32>
    %52 = arith.mulf %49, %49 : vector<256x96xf32>
    %cst_22 = arith.constant dense<0.000000e+00> : vector<256xf32>
    %53 = vector.multi_reduction <add>, %52, %cst_22 [1] : vector<256x96xf32> to vector<256xf32>
    %54 = vector.shape_cast %53 : vector<256xf32> to vector<256x1xf32>
    %cst_23 = arith.constant 0.010416667 : f32
    %55 = vector.broadcast %cst_23 : f32 to vector<256x1xf32>
    %56 = arith.mulf %51, %55 : vector<256x1xf32>
    %cst_24 = arith.constant 0.010416667 : f32
    %57 = vector.broadcast %cst_24 : f32 to vector<256x1xf32>
    %58 = arith.mulf %54, %57 : vector<256x1xf32>
    %59 = arith.mulf %56, %56 : vector<256x1xf32>
    %60 = arith.subf %58, %59 : vector<256x1xf32>
    %61 = vector.broadcast %56 : vector<256x1xf32> to vector<256x96xf32>
    %62 = arith.subf %49, %61 : vector<256x96xf32>
    %cst_25 = arith.constant 9.99999974E-6 : f32
    %63 = vector.broadcast %cst_25 : f32 to vector<256x1xf32>
    %64 = arith.addf %60, %63 : vector<256x1xf32>
    %65 = math.rsqrt %64 : vector<256x1xf32>
    %66 = vector.broadcast %65 : vector<256x1xf32> to vector<256x96xf32>
    %67 = arith.mulf %62, %66 : vector<256x96xf32>
    %c0_26 = arith.constant 0 : index
    %c0_27 = arith.constant 0 : index
    %68 = vector.load %arg11[%c0_26, %c0_27] : memref<1x96xf32, #tpu.memory_space<vmem>>, vector<1x96xf32>
    %69 = vector.broadcast %68 : vector<1x96xf32> to vector<256x96xf32>
    %70 = arith.mulf %67, %69 : vector<256x96xf32>
    %c0_28 = arith.constant 0 : index
    %c0_29 = arith.constant 0 : index
    %71 = vector.load %arg12[%c0_28, %c0_29] : memref<1x96xf32, #tpu.memory_space<vmem>>, vector<1x96xf32>
    %72 = vector.broadcast %71 : vector<1x96xf32> to vector<256x96xf32>
    %73 = arith.addf %70, %72 : vector<256x96xf32>
    %cst_30 = arith.constant 0.000000e+00 : f32
    %74 = vector.broadcast %cst_30 : f32 to vector<256x96xf32>
    %75 = arith.cmpf oge, %73, %74 : vector<256x96xf32>
    %76 = vector.broadcast %1 : f32 to vector<256x96xf32>
    %77 = arith.mulf %76, %73 : vector<256x96xf32>
    %78 = arith.select %75, %73, %77 : vector<256x96xi1>, vector<256x96xf32>
    %c0_31 = arith.constant 0 : index
    %c0_32 = arith.constant 0 : index
    %79 = vector.load %arg2[%c0_31, %c0_32] : memref<256x16xf32, #tpu.memory_space<vmem>>, vector<256x16xf32>
    %c0_33 = arith.constant 0 : index
    %c0_34 = arith.constant 0 : index
    %80 = vector.load %arg13[%c0_33, %c0_34] : memref<16x64xbf16, #tpu.memory_space<vmem>>, vector<16x64xbf16>
    %81 = arith.extf %80 : vector<16x64xbf16> to vector<16x64xf32>
    %cst_35 = arith.constant dense<0.000000e+00> : vector<256x64xf32>
    %82 = tpu.matmul %79, %81, %cst_35 {dimension_numbers = #tpu.dot_dimension_numbers<[1], [0], [0], [1], [0, 0, 1, 1], [], []>} : vector<256x16xf32>, vector<16x64xf32>, vector<256x64xf32> -> vector<256x64xf32>
    %c0_36 = arith.constant 0 : index
    %c0_37 = arith.constant 0 : index
    %83 = vector.load %arg14[%c0_36, %c0_37] : memref<1x64xf32, #tpu.memory_space<vmem>>, vector<1x64xf32>
    %84 = vector.broadcast %83 : vector<1x64xf32> to vector<256x64xf32>
    %85 = arith.addf %82, %84 : vector<256x64xf32>
    %cst_38 = arith.constant dense<0.000000e+00> : vector<256xf32>
    %86 = vector.multi_reduction <add>, %85, %cst_38 [1] : vector<256x64xf32> to vector<256xf32>
    %87 = vector.shape_cast %86 : vector<256xf32> to vector<256x1xf32>
    %88 = arith.mulf %85, %85 : vector<256x64xf32>
    %cst_39 = arith.constant dense<0.000000e+00> : vector<256xf32>
    %89 = vector.multi_reduction <add>, %88, %cst_39 [1] : vector<256x64xf32> to vector<256xf32>
    %90 = vector.shape_cast %89 : vector<256xf32> to vector<256x1xf32>
    %cst_40 = arith.constant 1.562500e-02 : f32
    %91 = vector.broadcast %cst_40 : f32 to vector<256x1xf32>
    %92 = arith.mulf %87, %91 : vector<256x1xf32>
    %cst_41 = arith.constant 1.562500e-02 : f32
    %93 = vector.broadcast %cst_41 : f32 to vector<256x1xf32>
    %94 = arith.mulf %90, %93 : vector<256x1xf32>
    %95 = arith.mulf %92, %92 : vector<256x1xf32>
    %96 = arith.subf %94, %95 : vector<256x1xf32>
    %97 = vector.broadcast %92 : vector<256x1xf32> to vector<256x64xf32>
    %98 = arith.subf %85, %97 : vector<256x64xf32>
    %cst_42 = arith.constant 9.99999974E-6 : f32
    %99 = vector.broadcast %cst_42 : f32 to vector<256x1xf32>
    %100 = arith.addf %96, %99 : vector<256x1xf32>
    %101 = math.rsqrt %100 : vector<256x1xf32>
    %102 = vector.broadcast %101 : vector<256x1xf32> to vector<256x64xf32>
    %103 = arith.mulf %98, %102 : vector<256x64xf32>
    %c0_43 = arith.constant 0 : index
    %c0_44 = arith.constant 0 : index
    %104 = vector.load %arg15[%c0_43, %c0_44] : memref<1x64xf32, #tpu.memory_space<vmem>>, vector<1x64xf32>
    %105 = vector.broadcast %104 : vector<1x64xf32> to vector<256x64xf32>
    %106 = arith.mulf %103, %105 : vector<256x64xf32>
    %c0_45 = arith.constant 0 : index
    %c0_46 = arith.constant 0 : index
    %107 = vector.load %arg16[%c0_45, %c0_46] : memref<1x64xf32, #tpu.memory_space<vmem>>, vector<1x64xf32>
    %108 = vector.broadcast %107 : vector<1x64xf32> to vector<256x64xf32>
    %109 = arith.addf %106, %108 : vector<256x64xf32>
    %cst_47 = arith.constant 0.000000e+00 : f32
    %110 = vector.broadcast %cst_47 : f32 to vector<256x64xf32>
    %111 = arith.cmpf oge, %109, %110 : vector<256x64xf32>
    %112 = vector.broadcast %2 : f32 to vector<256x64xf32>
    %113 = arith.mulf %112, %109 : vector<256x64xf32>
    %114 = arith.select %111, %109, %113 : vector<256x64xi1>, vector<256x64xf32>
    %c0_48 = arith.constant 0 : index
    %c0_49 = arith.constant 0 : index
    %115 = vector.load %arg17[%c0_48, %c0_49] : memref<64x64xbf16, #tpu.memory_space<vmem>>, vector<64x64xbf16>
    %116 = arith.extf %115 : vector<64x64xbf16> to vector<64x64xf32>
    %cst_50 = arith.constant dense<0.000000e+00> : vector<256x64xf32>
    %117 = tpu.matmul %114, %116, %cst_50 {dimension_numbers = #tpu.dot_dimension_numbers<[1], [0], [0], [1], [0, 0, 1, 1], [], []>} : vector<256x64xf32>, vector<64x64xf32>, vector<256x64xf32> -> vector<256x64xf32>
    %c0_51 = arith.constant 0 : index
    %c0_52 = arith.constant 0 : index
    %118 = vector.load %arg18[%c0_51, %c0_52] : memref<1x64xf32, #tpu.memory_space<vmem>>, vector<1x64xf32>
    %119 = vector.broadcast %118 : vector<1x64xf32> to vector<256x64xf32>
    %120 = arith.addf %117, %119 : vector<256x64xf32>
    %cst_53 = arith.constant dense<0.000000e+00> : vector<256xf32>
    %121 = vector.multi_reduction <add>, %120, %cst_53 [1] : vector<256x64xf32> to vector<256xf32>
    %122 = vector.shape_cast %121 : vector<256xf32> to vector<256x1xf32>
    %123 = arith.mulf %120, %120 : vector<256x64xf32>
    %cst_54 = arith.constant dense<0.000000e+00> : vector<256xf32>
    %124 = vector.multi_reduction <add>, %123, %cst_54 [1] : vector<256x64xf32> to vector<256xf32>
    %125 = vector.shape_cast %124 : vector<256xf32> to vector<256x1xf32>
    %cst_55 = arith.constant 1.562500e-02 : f32
    %126 = vector.broadcast %cst_55 : f32 to vector<256x1xf32>
    %127 = arith.mulf %122, %126 : vector<256x1xf32>
    %cst_56 = arith.constant 1.562500e-02 : f32
    %128 = vector.broadcast %cst_56 : f32 to vector<256x1xf32>
    %129 = arith.mulf %125, %128 : vector<256x1xf32>
    %130 = arith.mulf %127, %127 : vector<256x1xf32>
    %131 = arith.subf %129, %130 : vector<256x1xf32>
    %132 = vector.broadcast %127 : vector<256x1xf32> to vector<256x64xf32>
    %133 = arith.subf %120, %132 : vector<256x64xf32>
    %cst_57 = arith.constant 9.99999974E-6 : f32
    %134 = vector.broadcast %cst_57 : f32 to vector<256x1xf32>
    %135 = arith.addf %131, %134 : vector<256x1xf32>
    %136 = math.rsqrt %135 : vector<256x1xf32>
    %137 = vector.broadcast %136 : vector<256x1xf32> to vector<256x64xf32>
    %138 = arith.mulf %133, %137 : vector<256x64xf32>
    %c0_58 = arith.constant 0 : index
    %c0_59 = arith.constant 0 : index
    %139 = vector.load %arg19[%c0_58, %c0_59] : memref<1x64xf32, #tpu.memory_space<vmem>>, vector<1x64xf32>
    %140 = vector.broadcast %139 : vector<1x64xf32> to vector<256x64xf32>
    %141 = arith.mulf %138, %140 : vector<256x64xf32>
    %c0_60 = arith.constant 0 : index
    %c0_61 = arith.constant 0 : index
    %142 = vector.load %arg20[%c0_60, %c0_61] : memref<1x64xf32, #tpu.memory_space<vmem>>, vector<1x64xf32>
    %143 = vector.broadcast %142 : vector<1x64xf32> to vector<256x64xf32>
    %144 = arith.addf %141, %143 : vector<256x64xf32>
    %cst_62 = arith.constant 0.000000e+00 : f32
    %145 = vector.broadcast %cst_62 : f32 to vector<256x64xf32>
    %146 = arith.cmpf oge, %144, %145 : vector<256x64xf32>
    %147 = vector.broadcast %3 : f32 to vector<256x64xf32>
    %148 = arith.mulf %147, %144 : vector<256x64xf32>
    %149 = arith.select %146, %144, %148 : vector<256x64xi1>, vector<256x64xf32>
    %c0_63 = arith.constant 0 : index
    %c0_64 = arith.constant 0 : index
    %150 = vector.load %arg21[%c0_63, %c0_64] : memref<96x32xbf16, #tpu.memory_space<vmem>>, vector<96x32xbf16>
    %151 = arith.extf %150 : vector<96x32xbf16> to vector<96x32xf32>
    %cst_65 = arith.constant dense<0.000000e+00> : vector<256x32xf32>
    %152 = tpu.matmul %78, %151, %cst_65 {dimension_numbers = #tpu.dot_dimension_numbers<[1], [0], [0], [1], [0, 0, 1, 1], [], []>} : vector<256x96xf32>, vector<96x32xf32>, vector<256x32xf32> -> vector<256x32xf32>
    %c0_66 = arith.constant 0 : index
    %c0_67 = arith.constant 0 : index
    %153 = vector.load %arg22[%c0_66, %c0_67] : memref<64x32xbf16, #tpu.memory_space<vmem>>, vector<64x32xbf16>
    %154 = arith.extf %153 : vector<64x32xbf16> to vector<64x32xf32>
    %cst_68 = arith.constant dense<0.000000e+00> : vector<256x32xf32>
    %155 = tpu.matmul %149, %154, %cst_68 {dimension_numbers = #tpu.dot_dimension_numbers<[1], [0], [0], [1], [0, 0, 1, 1], [], []>} : vector<256x64xf32>, vector<64x32xf32>, vector<256x32xf32> -> vector<256x32xf32>
    %156 = arith.addf %152, %155 : vector<256x32xf32>
    %c0_69 = arith.constant 0 : index
    %c0_70 = arith.constant 0 : index
    %157 = vector.load %arg23[%c0_69, %c0_70] : memref<1x32xf32, #tpu.memory_space<vmem>>, vector<1x32xf32>
    %158 = vector.broadcast %157 : vector<1x32xf32> to vector<256x32xf32>
    %159 = arith.addf %156, %158 : vector<256x32xf32>
    %c0_71 = arith.constant 0 : index
    %c0_72 = arith.constant 0 : index
    %160 = vector.load %arg3[%c0_71, %c0_72] : memref<256x16xf32, #tpu.memory_space<vmem>>, vector<256x16xf32>
    %c0_73 = arith.constant 0 : index
    %c0_74 = arith.constant 0 : index
    %161 = vector.load %arg24[%c0_73, %c0_74] : memref<16x32xbf16, #tpu.memory_space<vmem>>, vector<16x32xbf16>
    %162 = arith.extf %161 : vector<16x32xbf16> to vector<16x32xf32>
    %cst_75 = arith.constant dense<0.000000e+00> : vector<256x32xf32>
    %163 = tpu.matmul %160, %162, %cst_75 {dimension_numbers = #tpu.dot_dimension_numbers<[1], [0], [0], [1], [0, 0, 1, 1], [], []>} : vector<256x16xf32>, vector<16x32xf32>, vector<256x32xf32> -> vector<256x32xf32>
    %164 = arith.addf %159, %163 : vector<256x32xf32>
    %cst_76 = arith.constant 0.000000e+00 : f32
    %165 = vector.broadcast %cst_76 : f32 to vector<256x32xf32>
    %166 = arith.cmpf oge, %164, %165 : vector<256x32xf32>
    %167 = vector.broadcast %4 : f32 to vector<256x32xf32>
    %168 = arith.mulf %167, %164 : vector<256x32xf32>
    %169 = arith.select %166, %164, %168 : vector<256x32xi1>, vector<256x32xf32>
    %c0_77 = arith.constant 0 : index
    %c0_78 = arith.constant 0 : index
    %170 = vector.load %arg25[%c0_77, %c0_78] : memref<32x32xbf16, #tpu.memory_space<vmem>>, vector<32x32xbf16>
    %171 = arith.extf %170 : vector<32x32xbf16> to vector<32x32xf32>
    %cst_79 = arith.constant dense<0.000000e+00> : vector<256x32xf32>
    %172 = tpu.matmul %169, %171, %cst_79 {dimension_numbers = #tpu.dot_dimension_numbers<[1], [0], [0], [1], [0, 0, 1, 1], [], []>} : vector<256x32xf32>, vector<32x32xf32>, vector<256x32xf32> -> vector<256x32xf32>
    %c0_80 = arith.constant 0 : index
    %c0_81 = arith.constant 0 : index
    %173 = vector.load %arg26[%c0_80, %c0_81] : memref<1x32xf32, #tpu.memory_space<vmem>>, vector<1x32xf32>
    %174 = vector.broadcast %173 : vector<1x32xf32> to vector<256x32xf32>
    %175 = arith.addf %172, %174 : vector<256x32xf32>
    %cst_82 = arith.constant 0.000000e+00 : f32
    %176 = vector.broadcast %cst_82 : f32 to vector<256x32xf32>
    %177 = arith.cmpf oge, %175, %176 : vector<256x32xf32>
    %178 = vector.broadcast %5 : f32 to vector<256x32xf32>
    %179 = arith.mulf %178, %175 : vector<256x32xf32>
    %180 = arith.select %177, %175, %179 : vector<256x32xi1>, vector<256x32xf32>
    %c0_83 = arith.constant 0 : index
    %c0_84 = arith.constant 0 : index
    %181 = vector.load %arg27[%c0_83, %c0_84] : memref<32x128xbf16, #tpu.memory_space<vmem>>, vector<32x128xbf16>
    %182 = arith.extf %181 : vector<32x128xbf16> to vector<32x128xf32>
    %cst_85 = arith.constant dense<0.000000e+00> : vector<256x128xf32>
    %183 = tpu.matmul %180, %182, %cst_85 {dimension_numbers = #tpu.dot_dimension_numbers<[1], [0], [0], [1], [0, 0, 1, 1], [], []>} : vector<256x32xf32>, vector<32x128xf32>, vector<256x128xf32> -> vector<256x128xf32>
    %c0_86 = arith.constant 0 : index
    %c0_87 = arith.constant 0 : index
    %184 = vector.load %arg28[%c0_86, %c0_87] : memref<1x128xf32, #tpu.memory_space<vmem>>, vector<1x128xf32>
    %185 = vector.broadcast %184 : vector<1x128xf32> to vector<256x128xf32>
    %186 = arith.mulf %183, %185 : vector<256x128xf32>
    %c0_88 = arith.constant 0 : index
    %c0_89 = arith.constant 0 : index
    %187 = vector.load %arg29[%c0_88, %c0_89] : memref<1x128xf32, #tpu.memory_space<vmem>>, vector<1x128xf32>
    %188 = vector.broadcast %187 : vector<1x128xf32> to vector<256x128xf32>
    %189 = arith.addf %186, %188 : vector<256x128xf32>
    %c0_90 = arith.constant 0 : index
    %c0_91 = arith.constant 0 : index
    %190 = vector.load %arg4[%c0_90, %c0_91] : memref<256x8xf32, #tpu.memory_space<vmem>>, vector<256x8xf32>
    %c0_92 = arith.constant 0 : index
    %c0_93 = arith.constant 0 : index
    %191 = vector.load %arg30[%c0_92, %c0_93] : memref<8x32xbf16, #tpu.memory_space<vmem>>, vector<8x32xbf16>
    %192 = arith.extf %191 : vector<8x32xbf16> to vector<8x32xf32>
    %cst_94 = arith.constant dense<0.000000e+00> : vector<256x32xf32>
    %193 = tpu.matmul %190, %192, %cst_94 {dimension_numbers = #tpu.dot_dimension_numbers<[1], [0], [0], [1], [0, 0, 1, 1], [], []>} : vector<256x8xf32>, vector<8x32xf32>, vector<256x32xf32> -> vector<256x32xf32>
    %c0_95 = arith.constant 0 : index
    %c0_96 = arith.constant 0 : index
    %194 = vector.load %arg31[%c0_95, %c0_96] : memref<1x32xf32, #tpu.memory_space<vmem>>, vector<1x32xf32>
    %195 = vector.broadcast %194 : vector<1x32xf32> to vector<256x32xf32>
    %196 = arith.addf %193, %195 : vector<256x32xf32>
    %cst_97 = arith.constant 0.000000e+00 : f32
    %197 = vector.broadcast %cst_97 : f32 to vector<256x32xf32>
    %198 = arith.cmpf oge, %196, %197 : vector<256x32xf32>
    %199 = vector.broadcast %6 : f32 to vector<256x32xf32>
    %200 = arith.mulf %199, %196 : vector<256x32xf32>
    %201 = arith.select %198, %196, %200 : vector<256x32xi1>, vector<256x32xf32>
    %c0_98 = arith.constant 0 : index
    %c0_99 = arith.constant 0 : index
    %202 = vector.load %arg32[%c0_98, %c0_99] : memref<32x32xbf16, #tpu.memory_space<vmem>>, vector<32x32xbf16>
    %203 = arith.extf %202 : vector<32x32xbf16> to vector<32x32xf32>
    %cst_100 = arith.constant dense<0.000000e+00> : vector<256x32xf32>
    %204 = tpu.matmul %201, %203, %cst_100 {dimension_numbers = #tpu.dot_dimension_numbers<[1], [0], [0], [1], [0, 0, 1, 1], [], []>} : vector<256x32xf32>, vector<32x32xf32>, vector<256x32xf32> -> vector<256x32xf32>
    %c0_101 = arith.constant 0 : index
    %c0_102 = arith.constant 0 : index
    %205 = vector.load %arg33[%c0_101, %c0_102] : memref<1x32xf32, #tpu.memory_space<vmem>>, vector<1x32xf32>
    %206 = vector.broadcast %205 : vector<1x32xf32> to vector<256x32xf32>
    %207 = arith.addf %204, %206 : vector<256x32xf32>
    %cst_103 = arith.constant 0.000000e+00 : f32
    %208 = vector.broadcast %cst_103 : f32 to vector<256x32xf32>
    %209 = arith.cmpf oge, %207, %208 : vector<256x32xf32>
    %210 = vector.broadcast %7 : f32 to vector<256x32xf32>
    %211 = arith.mulf %210, %207 : vector<256x32xf32>
    %212 = arith.select %209, %207, %211 : vector<256x32xi1>, vector<256x32xf32>
    %c0_104 = arith.constant 0 : index
    %c0_105 = arith.constant 0 : index
    %213 = vector.load %arg34[%c0_104, %c0_105] : memref<32x128xbf16, #tpu.memory_space<vmem>>, vector<32x128xbf16>
    %214 = arith.extf %213 : vector<32x128xbf16> to vector<32x128xf32>
    %cst_106 = arith.constant dense<0.000000e+00> : vector<256x128xf32>
    %215 = tpu.matmul %212, %214, %cst_106 {dimension_numbers = #tpu.dot_dimension_numbers<[1], [0], [0], [1], [0, 0, 1, 1], [], []>} : vector<256x32xf32>, vector<32x128xf32>, vector<256x128xf32> -> vector<256x128xf32>
    %c0_107 = arith.constant 0 : index
    %c0_108 = arith.constant 0 : index
    %216 = vector.load %arg35[%c0_107, %c0_108] : memref<1x128xf32, #tpu.memory_space<vmem>>, vector<1x128xf32>
    %217 = vector.broadcast %216 : vector<1x128xf32> to vector<256x128xf32>
    %218 = arith.addf %215, %217 : vector<256x128xf32>
    %219 = arith.addf %189, %218 : vector<256x128xf32>
    %220 = arith.mulf %219, %219 : vector<256x128xf32>
    %cst_109 = arith.constant dense<0.000000e+00> : vector<256xf32>
    %221 = vector.multi_reduction <add>, %220, %cst_109 [1] : vector<256x128xf32> to vector<256xf32>
    %222 = vector.shape_cast %221 : vector<256xf32> to vector<256x1xf32>
    %cst_110 = arith.constant 1.000000e+00 : f32
    %223 = vector.broadcast %cst_110 : f32 to vector<256x1xf32>
    %224 = arith.cmpf ogt, %222, %223 : vector<256x1xf32>
    %225 = math.rsqrt %222 : vector<256x1xf32>
    %cst_111 = arith.constant 1.000000e+00 : f32
    %226 = vector.broadcast %cst_111 : f32 to vector<256x1xf32>
    %227 = arith.select %224, %225, %226 : vector<256x1xi1>, vector<256x1xf32>
    %228 = vector.broadcast %227 : vector<256x1xf32> to vector<256x128xf32>
    %229 = arith.mulf %219, %228 : vector<256x128xf32>
    %c0_112 = arith.constant 0 : index
    %c0_113 = arith.constant 0 : index
    %230 = vector.load %arg37[%c0_112, %c0_113] : memref<256x128xf32, #tpu.memory_space<vmem>>, vector<256x128xf32>
    tpu.vector_store %arg37[%c0_112, %c0_113], %229 {strides = array<i32>} : memref<256x128xf32, #tpu.memory_space<vmem>>, vector<256x128xf32>,
    return
  }
  func.func @transform_0(%arg0: i32) -> (i32, i32) {
    %c0_i32 = arith.constant 0 : i32
    %c0_i32_0 = arith.constant 0 : i32
    return %arg0, %c0_i32 : i32, i32
  }
  func.func @transform_1(%arg0: i32) -> (i32, i32) {
    %c0_i32 = arith.constant 0 : i32
    %c0_i32_0 = arith.constant 0 : i32
    return %arg0, %c0_i32 : i32, i32
  }
  func.func @transform_2(%arg0: i32) -> (i32, i32) {
    %c0_i32 = arith.constant 0 : i32
    %c0_i32_0 = arith.constant 0 : i32
    return %arg0, %c0_i32 : i32, i32
  }
  func.func @transform_3(%arg0: i32) -> (i32, i32) {
    %c0_i32 = arith.constant 0 : i32
    %c0_i32_0 = arith.constant 0 : i32
    return %arg0, %c0_i32 : i32, i32
  }
  func.func @transform_4(%arg0: i32) -> (i32, i32) {
    %c0_i32 = arith.constant 0 : i32
    %c0_i32_0 = arith.constant 0 : i32
    %c0_i32_1 = arith.constant 0 : i32
    return %c0_i32, %c0_i32_0 : i32, i32
  }
  func.func @transform_5(%arg0: i32) -> (i32, i32) {
    %c0_i32 = arith.constant 0 : i32
    %c0_i32_0 = arith.constant 0 : i32
    %c0_i32_1 = arith.constant 0 : i32
    return %c0_i32, %c0_i32_0 : i32, i32
  }
  func.func @transform_6(%arg0: i32) -> (i32, i32) {
    %c0_i32 = arith.constant 0 : i32
    %c0_i32_0 = arith.constant 0 : i32
    %c0_i32_1 = arith.constant 0 : i32
    return %c0_i32, %c0_i32_0 : i32, i32
  }
  func.func @transform_7(%arg0: i32) -> (i32, i32) {
    %c0_i32 = arith.constant 0 : i32
    %c0_i32_0 = arith.constant 0 : i32
    %c0_i32_1 = arith.constant 0 : i32
    return %c0_i32, %c0_i32_0 : i32, i32
  }
  func.func @transform_8(%arg0: i32) -> (i32, i32) {
    %c0_i32 = arith.constant 0 : i32
    %c0_i32_0 = arith.constant 0 : i32
    %c0_i32_1 = arith.constant 0 : i32
    return %c0_i32, %c0_i32_0 : i32, i32
  }
  func.func @transform_9(%arg0: i32) -> (i32, i32) {
    %c0_i32 = arith.constant 0 : i32
    %c0_i32_0 = arith.constant 0 : i32
    %c0_i32_1 = arith.constant 0 : i32
    return %c0_i32, %c0_i32_0 : i32, i32
  }
  func.func @transform_10(%arg0: i32) -> (i32, i32) {
    %c0_i32 = arith.constant 0 : i32
    %c0_i32_0 = arith.constant 0 : i32
    %c0_i32_1 = arith.constant 0 : i32
    return %c0_i32, %c0_i32_0 : i32, i32
  }
  func.func @transform_11(%arg0: i32) -> (i32, i32) {
    %c0_i32 = arith.constant 0 : i32
    %c0_i32_0 = arith.constant 0 : i32
    %c0_i32_1 = arith.constant 0 : i32
    return %c0_i32, %c0_i32_0 : i32, i32
  }
  func.func @transform_12(%arg0: i32) -> (i32, i32) {
    %c0_i32 = arith.constant 0 : i32
    %c0_i32_0 = arith.constant 0 : i32
    %c0_i32_1 = arith.constant 0 : i32
    return %c0_i32, %c0_i32_0 : i32, i32
  }
  func.func @transform_13(%arg0: i32) -> (i32, i32) {
    %c0_i32 = arith.constant 0 : i32
    %c0_i32_0 = arith.constant 0 : i32
    %c0_i32_1 = arith.constant 0 : i32
    return %c0_i32, %c0_i32_0 : i32, i32
  }
  func.func @transform_14(%arg0: i32) -> (i32, i32) {
    %c0_i32 = arith.constant 0 : i32
    %c0_i32_0 = arith.constant 0 : i32
    %c0_i32_1 = arith.constant 0 : i32
    return %c0_i32, %c0_i32_0 : i32, i32
  }
  func.func @transform_15(%arg0: i32) -> (i32, i32) {
    %c0_i32 = arith.constant 0 : i32
    %c0_i32_0 = arith.constant 0 : i32
    %c0_i32_1 = arith.constant 0 : i32
    return %c0_i32, %c0_i32_0 : i32, i32
  }
  func.func @transform_16(%arg0: i32) -> (i32, i32) {
    %c0_i32 = arith.constant 0 : i32
    %c0_i32_0 = arith.constant 0 : i32
    %c0_i32_1 = arith.constant 0 : i32
    return %c0_i32, %c0_i32_0 : i32, i32
  }
  func.func @transform_17(%arg0: i32) -> (i32, i32) {
    %c0_i32 = arith.constant 0 : i32
    %c0_i32_0 = arith.constant 0 : i32
    %c0_i32_1 = arith.constant 0 : i32
    return %c0_i32, %c0_i32_0 : i32, i32
  }
  func.func @transform_18(%arg0: i32) -> (i32, i32) {
    %c0_i32 = arith.constant 0 : i32
    %c0_i32_0 = arith.constant 0 : i32
    %c0_i32_1 = arith.constant 0 : i32
    return %c0_i32, %c0_i32_0 : i32, i32
  }
  func.func @transform_19(%arg0: i32) -> (i32, i32) {
    %c0_i32 = arith.constant 0 : i32
    %c0_i32_0 = arith.constant 0 : i32
    %c0_i32_1 = arith.constant 0 : i32
    return %c0_i32, %c0_i32_0 : i32, i32
  }
  func.func @transform_20(%arg0: i32) -> (i32, i32) {
    %c0_i32 = arith.constant 0 : i32
    %c0_i32_0 = arith.constant 0 : i32
    %c0_i32_1 = arith.constant 0 : i32
    return %c0_i32, %c0_i32_0 : i32, i32
  }
  func.func @transform_21(%arg0: i32) -> (i32, i32) {
    %c0_i32 = arith.constant 0 : i32
    %c0_i32_0 = arith.constant 0 : i32
    %c0_i32_1 = arith.constant 0 : i32
    return %c0_i32, %c0_i32_0 : i32, i32
  }
  func.func @transform_22(%arg0: i32) -> (i32, i32) {
    %c0_i32 = arith.constant 0 : i32
    %c0_i32_0 = arith.constant 0 : i32
    %c0_i32_1 = arith.constant 0 : i32
    return %c0_i32, %c0_i32_0 : i32, i32
  }
  func.func @transform_23(%arg0: i32) -> (i32, i32) {
    %c0_i32 = arith.constant 0 : i32
    %c0_i32_0 = arith.constant 0 : i32
    %c0_i32_1 = arith.constant 0 : i32
    return %c0_i32, %c0_i32_0 : i32, i32
  }
  func.func @transform_24(%arg0: i32) -> (i32, i32) {
    %c0_i32 = arith.constant 0 : i32
    %c0_i32_0 = arith.constant 0 : i32
    %c0_i32_1 = arith.constant 0 : i32
    return %c0_i32, %c0_i32_0 : i32, i32
  }
  func.func @transform_25(%arg0: i32) -> (i32, i32) {
    %c0_i32 = arith.constant 0 : i32
    %c0_i32_0 = arith.constant 0 : i32
    %c0_i32_1 = arith.constant 0 : i32
    return %c0_i32, %c0_i32_0 : i32, i32
  }
  func.func @transform_26(%arg0: i32) -> (i32, i32) {
    %c0_i32 = arith.constant 0 : i32
    %c0_i32_0 = arith.constant 0 : i32
    %c0_i32_1 = arith.constant 0 : i32
    return %c0_i32, %c0_i32_0 : i32, i32
  }
  func.func @transform_27(%arg0: i32) -> (i32, i32) {
    %c0_i32 = arith.constant 0 : i32
    %c0_i32_0 = arith.constant 0 : i32
    %c0_i32_1 = arith.constant 0 : i32
    return %c0_i32, %c0_i32_0 : i32, i32
  }
  func.func @transform_28(%arg0: i32) -> (i32, i32) {
    %c0_i32 = arith.constant 0 : i32
    %c0_i32_0 = arith.constant 0 : i32
    %c0_i32_1 = arith.constant 0 : i32
    return %c0_i32, %c0_i32_0 : i32, i32
  }
  func.func @transform_29(%arg0: i32) -> (i32, i32) {
    %c0_i32 = arith.constant 0 : i32
    %c0_i32_0 = arith.constant 0 : i32
    %c0_i32_1 = arith.constant 0 : i32
    return %c0_i32, %c0_i32_0 : i32, i32
  }
  func.func @transform_30(%arg0: i32) -> (i32, i32) {
    %c0_i32 = arith.constant 0 : i32
    %c0_i32_0 = arith.constant 0 : i32
    %c0_i32_1 = arith.constant 0 : i32
    return %c0_i32, %c0_i32_0 : i32, i32
  }
  func.func @transform_31(%arg0: i32) -> (i32, i32) {
    %c0_i32 = arith.constant 0 : i32
    %c0_i32_0 = arith.constant 0 : i32
    %c0_i32_1 = arith.constant 0 : i32
    return %c0_i32, %c0_i32_0 : i32, i32
  }
  func.func @transform_32(%arg0: i32) -> (i32, i32) {
    %c0_i32 = arith.constant 0 : i32
    %c0_i32_0 = arith.constant 0 : i32
    %c0_i32_1 = arith.constant 0 : i32
    return %c0_i32, %c0_i32_0 : i32, i32
  }
  func.func @transform_33(%arg0: i32) -> (i32, i32) {
    %c0_i32 = arith.constant 0 : i32
    %c0_i32_0 = arith.constant 0 : i32
    %c0_i32_1 = arith.constant 0 : i32
    return %c0_i32, %c0_i32_0 : i32, i32
  }
  func.func @transform_34(%arg0: i32) -> (i32, i32) {
    %c0_i32 = arith.constant 0 : i32
    %c0_i32_0 = arith.constant 0 : i32
    %c0_i32_1 = arith.constant 0 : i32
    return %c0_i32, %c0_i32_0 : i32, i32
  }
  func.func @transform_35(%arg0: i32) -> i32 {
    %c0_i32 = arith.constant 0 : i32
    %c0_i32_0 = arith.constant 0 : i32
    return %c0_i32 : i32
  }
  func.func @transform_36(%arg0: i32) -> (i32, i32) {
    %c0_i32 = arith.constant 0 : i32
    %c0_i32_0 = arith.constant 0 : i32
    return %arg0, %c0_i32 : i32, i32
  }
}

</mosaic_0001>

<bundles_post_ra>
// kernel: tpu_custom_call.1
= control target key start
LH: loop header
LB: loop body
LE: loop exit
PB: predicated region body
PF: predicated region fallthrough
CT: control target
= control target key end

     0   :  { %s10137_s6 = smov 1   ;;  %s10138_s10 = smov 2   ;;  %s17188_s0 = inlined_call_operand.smem [shape: u32[37], index: -1, kind: input, shape index: {}] }
   0x1   :  { %s10184_s5 = sld [smem:[%s17188_s0]]   ;;  %s10139_s14 = smov 3  }
   0x2   :  { %s10189_s9 = sld [smem:[%s17188_s0 + %s10137_s6]]   ;;  %s10140_s18 = smov 4  }
   0x3   :  { %s10194_s13 = sld [smem:[%s17188_s0 + %s10138_s10]]   ;;  %s10141_s22 = smov 5  }
   0x4   :  { %s10199_s17 = sld [smem:[%s17188_s0 + %s10139_s14]]   ;;  %s10142_s26 = smov 6  }
   0x5   :  { %s10204_s21 = sld [smem:[%s17188_s0 + %s10140_s18]]   ;;  %s10143_s30 = smov 7  }
   0x6   :  { %s10209_s25 = sld [smem:[%s17188_s0 + %s10141_s22]]   ;;  %s10144_s4 = smov 8  }
   0x7   :  { %17380 = sst [smem:[#allocation8_spill]] %s10184_s5  ;;  %s10145_s10 = smov 9  }
   0x8   :  { %17381 = sst [smem:[#allocation9_spill]] %s10189_s9  ;;  %s10146_s15 = smov 10  }
   0x9   :  { %17382 = sst [smem:[#allocation10_spill]] %s10194_s13  ;;  %s10147_s20 = smov 11  }
   0xa   :  { %17383 = sst [smem:[#allocation11_spill]] %s10199_s17  ;;  %s10149_s1 = smov 13  }
   0xb   :  { %s10214_s29 = sld [smem:[%s17188_s0 + %s10142_s26]]   ;;  %s10148_s26 = smov 12  }
   0xc   :  { %s10219_s3 = sld [smem:[%s17188_s0 + %s10143_s30]]   ;;  %s10150_s7 = smov 14  }
   0xd   :  { %s10224_s8 = sld [smem:[%s17188_s0 + %s10144_s4]]   ;;  %s10152_s22 = smov 16  }
   0xe   :  { %s10229_s14 = sld [smem:[%s17188_s0 + %s10145_s10]]   ;;  %s10153_s28 = smov 17  }
   0xf   :  { %s10234_s19 = sld [smem:[%s17188_s0 + %s10146_s15]]   ;;  %s10151_s15 = smov 15  }
  0x10   :  { %s10239_s24 = sld [smem:[%s17188_s0 + %s10147_s20]]  }
  0x11   :  { %s10244_s30 = sld [smem:[%s17188_s0 + %s10148_s26]]  }
  0x12   :  { %17384 = sst [smem:[#allocation12_spill]] %s10219_s3 }
  0x13   :  { %17385 = sst [smem:[#allocation13_spill]] %s10224_s8 }
  0x14   :  { %s10249_s6 = sld [smem:[%s17188_s0 + %s10149_s1]]  }
  0x15   :  { %17386 = sst [smem:[#allocation14_spill]] %s10234_s19 }
  0x16   :  { %17387 = sst [smem:[#allocation15_spill]] %s10239_s24 }
  0x17   :  { %s10254_s12 = sld [smem:[%s17188_s0 + %s10150_s7]]   ;;  %s10154_s7 = smov 18  }
  0x18   :  { %s10259_s20 = sld [smem:[%s17188_s0 + %s10151_s15]]   ;;  %s10155_s15 = smov 19  }
  0x19   :  { %s10264_s27 = sld [smem:[%s17188_s0 + %s10152_s22]]   ;;  %s10156_s22 = smov 20  }
  0x1a   :  { %17388 = sst [smem:[#allocation16_spill]] %s10249_s6 }
  0x1b   :  { %s10269_s4 = sld [smem:[%s17188_s0 + %s10153_s28]]   ;;  %s10157_s28 = smov 21  }
  0x1c   :  { %s10274_s17 = sld [smem:[%s17188_s0 + %s10154_s7]]   ;;  %s10158_s7 = smov 22  }
  0x1d   :  { %17389 = sst [smem:[#allocation17_spill]] %s10254_s12 }
  0x1e   :  { %s10279_s13 = sld [smem:[%s17188_s0 + %s10155_s15]]   ;;  %s10159_s15 = smov 23  }
  0x1f   :  { %s10284_s24 = sld [smem:[%s17188_s0 + %s10156_s22]]   ;;  %s10160_s22 = smov 24  }
  0x20   :  { %s10289_s19 = sld [smem:[%s17188_s0 + %s10157_s28]]   ;;  %s10161_s28 = smov 25  }
  0x21   :  { %17390 = sst [smem:[#allocation18_spill]] %s10269_s4 }
  0x22   :  { %17391 = sst [smem:[#allocation19_spill]] %s10274_s17 }
  0x23   :  { %s10294_s17 = sld [smem:[%s17188_s0 + %s10158_s7]]   ;;  %s10162_s7 = smov 26  }
  0x24   :  { %17392 = sst [smem:[#allocation20_spill]] %s10279_s13 }
  0x25   :  { %s10299_s13 = sld [smem:[%s17188_s0 + %s10159_s15]]   ;;  %s10163_s15 = smov 27  }
  0x26   :  { %17393 = sst [smem:[#allocation21_spill]] %s10289_s19 }
  0x27   :  { %s10304_s4 = sld [smem:[%s17188_s0 + %s10160_s22]]   ;;  %s10164_s22 = smov 28  }
  0x28   :  { %s10309_s19 = sld [smem:[%s17188_s0 + %s10161_s28]]   ;;  %s10165_s28 = smov 29  }
  0x29   :  { %17394 = sst [smem:[#allocation22_spill]] %s10294_s17 }
  0x2a   :  { %s10314_s17 = sld [smem:[%s17188_s0 + %s10162_s7]]   ;;  %s10166_s7 = smov 30  }
  0x2b   :  { %17395 = sst [smem:[#allocation23_spill]] %s10299_s13 }
  0x2c   :  { %s10319_s13 = sld [smem:[%s17188_s0 + %s10163_s15]]   ;;  %s10167_s15 = smov 31  }
  0x2d   :  { %17396 = sst [smem:[#allocation24_spill]] %s10304_s4 }
  0x2e   :  { %17397 = sst [smem:[#allocation25_spill]] %s10309_s19 }
  0x2f   :  { %s10324_s4 = sld [smem:[%s17188_s0 + %s10164_s22]]   ;;  %s10168_s22 = smov 32  }
  0x30   :  { %17398 = sst [smem:[#allocation26_spill]] %s10314_s17 }
  0x31   :  { %s10329_s19 = sld [smem:[%s17188_s0 + %s10165_s28]]   ;;  %s10169_s28 = smov 33  }
  0x32   :  { %17399 = sst [smem:[#allocation27_spill]] %s10319_s13 }
  0x33   :  { %s10334_s17 = sld [smem:[%s17188_s0 + %s10166_s7]]   ;;  %s10170_s7 = smov 34  }
  0x34   :  { %s10339_s13 = sld [smem:[%s17188_s0 + %s10167_s15]]   ;;  %s10171_s15 = smov 35  }
  0x35   :  { %17400 = sst [smem:[#allocation28_spill]] %s10324_s4 }
  0x36   :  { %s10344_s4 = sld [smem:[%s17188_s0 + %s10168_s22]]   ;;  %s10172_s22 = smov 36  }
  0x37   :  { %17401 = sst [smem:[#allocation29_spill]] %s10329_s19 }
  0x38   :  { %s10349_s19 = sld [smem:[%s17188_s0 + %s10169_s28]]  }
  0x39   :  { %17402 = sst [smem:[#allocation30_spill]] %s10334_s17 }
  0x3a   :  { %17403 = sst [smem:[#allocation31_spill]] %s10339_s13 }
  0x3b   :  { %s10354_s17 = sld [smem:[%s17188_s0 + %s10170_s7]]  }
  0x3c   :  { %17404 = sst [smem:[#allocation32_spill]] %s10344_s4 }
  0x3d   :  { %s10359_s13 = sld [smem:[%s17188_s0 + %s10171_s15]]  }
  0x3e   :  { %s10364_s4 = sld [smem:[%s17188_s0 + %s10172_s22]]  }
  0x3f   :  { %78 = vsyncpa [#allocation4], 0 }
  0x40   :  { %79 = vsyncpa [#allocation3], 0 }
  0x41   :  { %81 = vsyncpa [#allocation3 + $0x1], 0  ;;  %s10366_s28 = smov 0   ;;  %s10368_s1 = smov 0  }
  0x42   :  { %s10370_s2 = smov 0   ;;  %s10372_s7 = smov 0  }
  0x43 LB: > { %s17405_s12 = sld [smem:[#allocation17_spill]]  ;;  %s10387_s0 = sadd.s32 4294967295, %s10135_s7   ;;  %s10135_s7 = sphi %s10372_s7, %s17895_s7   ;;  %s10131_s2 = sphi %s10370_s2, %s17897_s2   ;;  %s10127_s1 = sphi %s10368_s1, %s17899_s1   ;;  %s10123_s28 = sphi %s10366_s28, %s17898_s28  }
  0x44   : > { %s17406_s8 = sld [smem:[#allocation13_spill]]  ;;  %s9010_s10 = sadd.s32 4294967294, %s10135_s7  }
  0x45   : > { %s17407_s6 = sld [smem:[#allocation16_spill]]  ;;  %s10391_s11 = sadd.s32 1, %s10135_s7  }
  0x46   : > { %s17408_s3 = sld [smem:[#allocation12_spill]]  ;;  %s870_s15 = sadd.s32 1, %s10131_s2 }
  0x47   : > { %17409 = sst [smem:[#allocation33_spill]] %s10131_s2  ;;  %s867_s16 = ssub.s32 %s10135_s7, %s10391_s11 }
  0x48   : > { %17410 = sst [smem:[#allocation34_spill]] %s10391_s11  ;;  %p880_p0 = scmp.ne.s32.totalorder %s10131_s2, %s10127_s1 }
  0x49   : > { %p868_p1 = scmp.eq.s32.totalorder %s867_s16, 0  ;;  %p881_p2 = scmp.eq.s32.totalorder %s10387_s0, 1 }
  0x4a   : > { %p886_p3 = scmp.ne.s32.totalorder %s10127_s1, %s10123_s28  ;;  %p887_p4 = scmp.eq.s32.totalorder %s9010_s10, 1 }
  0x4b   : > { %s10402_s18 = scalar_select %p868_p1, %s10131_s2, %s870_s15  }
  0x4c   : > { %p10404_p5 = por %p881_p2, %p880_p0  ;;  %p10408_p6 = por %p887_p4, %p886_p3 }
  0x4d   : > { %17411 = sst [smem:[#allocation35_spill]] %s10402_s18  ;;  %p9011_p7 = scmp.ge.s32.totalorder %s10135_s7, 1 }
  0x4e   : > { %p894_p8 = scmp.lt.s32.totalorder %s10135_s7, 3  ;;  %p9594_p9 = scmp.eq.s32.totalorder %s10387_s0, 0 }
  0x4f   : > { %s999_s10 = sshll.u32 %s10359_s13, 4  ;;  %s10061_s2 = scalar_lea.vmem %s10359_s13, 1  ;;  %s1000_s10 = int_to_ptr.vmem [resolvable:$true] %s999_s10 }
  0x50   : > { %p10415_p10 = pnand %p9011_p7, %p894_p8  ;;  %s10054_s16 = sshra.s32 %s1000_s10, 4  ;;  %s10055_s16 = int_to_ptr.vmem [resolvable:$true] %s10054_s16 }
  0x51   : > { %s10056_s18 = scalar_lea.vmem %s10055_s16, 1  ;;  %p10062_p3 = scmp.lt.s32.totalorder %s10055_s16, %s10359_s13 }
  0x52   : > { %p9586_p11 = pneg %p10415_p10  ;;  %p10057_p13 = scmp.ne.s32.totalorder %s10055_s16, %s10056_s18 }
  0x53   : > { %p10063_p4 = scmp.lt.s32.totalorder %s10061_s2, %s10056_s18 }
  0x54   : > { %p10424_p12 = pnand %p9594_p9, %p9586_p11 }
  0x55   : > { %p10064_p7 = por %p10063_p4, %p10062_p3 }
  0x56   : > { %p10058_p0 = pneg %p10424_p12 }
  0x58   : > { %p10059_p1 = pnand %p10058_p0, %p10057_p13 }
  0x5a   : > { %p10060_p2 = pneg %p10059_p1 }
  0x5c   : > { %p10065_p8 = pnand %p10064_p7, %p10060_p2 }
  0x5e   : > { %10068 = shalt.err (!%p10065_p8)
}
  0x5f   : > { %s10173_s11 = smov [#allocation2]   ;;  %1048 = sbr.rel (%p10415_p10) target bundleno = 1937 (0x791), region = 164 }
  0x60   : > { %9589 = dma.vmem_to_smem (!%p10424_p12), %s1000_s10, 16, %s10173_s11, [#allocation4]  }
  0x64   : > { %10114 = dma.done.wait (%p9594_p9), [#allocation4], 16  }
  0x65   : > { %10116 = vsyncadd (%p9594_p9), [#allocation4], 4294967280 }
  0x66   : > { %1055 = sfence }
  0x67   : > { %v9555_v0 = vld [vmem:[%s10204_s21 + $0x10] sm:$0xff]   ;;  %v9554_v1 = vld [vmem:[%s10204_s21 + $0x8] sm:$0xff]   ;;  %s9017_s2 = sshll.u32 %s10387_s0, 5  ;;  %s17416_s9 = sld [smem:[#allocation9_spill]]  ;;  %v9459_v4 = vld [vmem:[%s10244_s30] sm:$0xff]   ;;  %vm3598_vm0 = vcmask 130048  }
  0x68   : > { %v9433_v2 = vunpack.c.h.bf16 %v9555_v0  ;;  %v9432_v3 = vunpack.c.l.bf16 %v9555_v0  ;;  %p1156_p10 = scmp.lt.s32.totalorder %s9017_s2, 63  ;;  %v9461_v5 = vunpack.c.h.bf16 %v9459_v4  ;;  %s17417_s5 = sld [smem:[#allocation8_spill]]  ;;  %v9460_v6 = vunpack.c.l.bf16 %v9459_v4  ;;  %v9423_v8 = vld [vmem:[%s10204_s21] sm:$0xff]  }
  0x69   : > { %v9429_v7 = vunpack.c.h.bf16 %v9554_v1  ;;  %v9428_v9 = vunpack.c.l.bf16 %v9554_v1  ;;  %v9425_v10 = vunpack.c.h.bf16 %v9423_v8  ;;  %v9424_v12 = vunpack.c.l.bf16 %v9423_v8  ;;  %v10520_v44 = vld [vmem:[%s10209_s25] ss:$0 sm:$0xff]  ;;  %s10821_s10 = sld [smem:[#allocation2 + $0x2]] }
  0x6a   : > { %1343 = vmatpush.msra.mxu0 %v9433_v2  ;;  %s17901_s2 = smov (!%p1156_p10, %s9017_s2), 63  ;;  %3709 = vmatpush.msra.mxu2 %v9461_v5  ;;  %vm1236_vm1 = vcmask 392192   ;;  %v10523_v45 = vld [vmem:[%s17407_s6] ss:$0 sm:$0xff]  ;;  %vm1446_vm2 = vcmask 785408   ;;  %vm3808_vm3 = vcmask 523264  }
  0x6b   : > { %s10445_s11 = sshll.u32 %s17901_s2, 3  ;;  %s10971_s15 = sld [smem:[#allocation2]] }
  0x6c   : > { %1344 = vmatpush.msra.mxu0 %v9432_v3  ;;  %3710 = vmatpush.msra.mxu2 %v9460_v6  ;;  %s17515_s16 = sld [smem:[#allocation18_spill]] }
  0x6d   : > { %s10449_s18 = scalar_lea.vmem %s17416_s9, %s10445_s11  ;;  %s17604_s2 = sld [smem:[#allocation21_spill]] }
  0x6e   : > { %1345 = vmatpush.msra.mxu0 %v9429_v7  ;;  %v3558_v11 = vld [vmem:[%s10449_s18] sm:$0xff]  ;;  %s10454_s26 = scalar_lea.vmem %s17417_s5, %s10445_s11  ;;  %v3559_v14 = vld [vmem:[%s10449_s18 + $0x8] sm:$0xff]  ;;  %v3560_v16 = vld [vmem:[%s10449_s18 + $0x10] sm:$0xff]  ;;  %s17834_s9 = sld [smem:[#allocation22_spill]] }
  0x6f   : > { %9096 = vmatmul.msk.f32.vlgmr.msra.gmra.mxu2 %vm3598_vm0, %v3558_v11  ;;  %v1188_v13 = vld [vmem:[%s10454_s26] sm:$0xff]  ;;  %v1189_v15 = vld [vmem:[%s10454_s26 + $0x8] sm:$0xff]  ;;  %v1190_v17 = vld [vmem:[%s10454_s26 + $0x10] sm:$0xff] }
  0x70   : > { %1346 = vmatpush.msra.mxu0 %v9428_v9  ;;  %v3561_v18 = vld [vmem:[%s10449_s18 + $0x18] sm:$0xff]  ;;  %v3562_v20 = vld [vmem:[%s10449_s18 + $0x20] sm:$0xff]  ;;  %v3563_v22 = vld [vmem:[%s10449_s18 + $0x28] sm:$0xff] }
  0x71   : > { %v1191_v19 = vld [vmem:[%s10454_s26 + $0x18] sm:$0xff]  ;;  %v1192_v21 = vld [vmem:[%s10454_s26 + $0x20] sm:$0xff]  ;;  %v1193_v23 = vld [vmem:[%s10454_s26 + $0x28] sm:$0xff] }
  0x72   : > { %1347 = vmatpush.msra.mxu0 %v9425_v10  ;;  %v3564_v24 = vld [vmem:[%s10449_s18 + $0x30] sm:$0xff]  ;;  %v3565_v26 = vld [vmem:[%s10449_s18 + $0x38] sm:$0xff]  ;;  %v3566_v28 = vld [vmem:[%s10449_s18 + $0x40] sm:$0xff] }
  0x73   : > { %v1194_v25 = vld [vmem:[%s10454_s26 + $0x30] sm:$0xff]  ;;  %v1195_v27 = vld [vmem:[%s10454_s26 + $0x38] sm:$0xff]  ;;  %v1196_v29 = vld [vmem:[%s10454_s26 + $0x40] sm:$0xff] }
  0x74   : > { %1348 = vmatpush.msra.mxu0 %v9424_v12  ;;  %v3567_v30 = vld [vmem:[%s10449_s18 + $0x48] sm:$0xff]  ;;  %v3568_v32 = vld [vmem:[%s10449_s18 + $0x50] sm:$0xff]  ;;  %v3569_v34 = vld [vmem:[%s10449_s18 + $0x58] sm:$0xff] }
  0x75   : > { %9032 = vmatmul.msk.f32.vlgmr.msra.gmra.mxu0 %vm1236_vm1, %v1188_v13  ;;  %v1197_v31 = vld [vmem:[%s10454_s26 + $0x48] sm:$0xff]  ;;  %v1198_v33 = vld [vmem:[%s10454_s26 + $0x50] sm:$0xff]  ;;  %v1199_v35 = vld [vmem:[%s10454_s26 + $0x58] sm:$0xff] }
  0x76   : > { %v3570_v36 = vld [vmem:[%s10449_s18 + $0x60] sm:$0xff]  ;;  %v1201_v38 = vld [vmem:[%s10454_s26 + $0x68] sm:$0xff]  ;;  %v1202_v40 = vld [vmem:[%s10454_s26 + $0x70] sm:$0xff] }
  0x77   : > { %9097 = vmatmul.msk.f32.gmra.mxu2 %vm3598_vm0, %v3559_v14  ;;  %v1200_v37 = vld [vmem:[%s10454_s26 + $0x60] sm:$0xff]  ;;  %v3571_v39 = vld [vmem:[%s10449_s18 + $0x68] sm:$0xff]  ;;  %v3572_v41 = vld [vmem:[%s10449_s18 + $0x70] sm:$0xff] }
  0x78   : > { %v3573_v42 = vld [vmem:[%s10449_s18 + $0x78] sm:$0xff]  ;;  %v3574_v46 = vld [vmem:[%s10449_s18 + $0x80] sm:$0xff]  ;;  %v3575_v55 = vld [vmem:[%s10449_s18 + $0x88] sm:$0xff] }
  0x79   : > { %v1203_v43 = vld [vmem:[%s10454_s26 + $0x78] sm:$0xff]  ;;  %v1204_v49 = vld [vmem:[%s10454_s26 + $0x80] sm:$0xff]  ;;  %v1205_v58 = vld [vmem:[%s10454_s26 + $0x88] sm:$0xff] }
  0x7a   : > { %v3576_v63 = vld [vmem:[%s10449_s18 + $0x90] sm:$0xff]  ;;  %v3577_v10 = vld [vmem:[%s10449_s18 + $0x98] sm:$0xff] }
  0x7b   : > { %v1206_v2 = vld [vmem:[%s10454_s26 + $0x90] sm:$0xff]  ;;  %v1207_v12 = vld [vmem:[%s10454_s26 + $0x98] sm:$0xff] }
  0x7d   : > { %9033 = vmatmul.msk.f32.gmra.mxu0 %vm1236_vm1, %v1189_v15 }
  0x7f   : > { %9098 = vmatmul.msk.f32.gmra.mxu2 %vm3598_vm0, %v3560_v16 }
  0x85   : > { %9034 = vmatmul.msk.f32.gmra.mxu0 %vm1236_vm1, %v1190_v17 }
  0x87   : > { %9099 = vmatmul.msk.f32.gmra.mxu2 %vm3598_vm0, %v3561_v18 }
  0x8d   : > { %9035 = vmatmul.msk.f32.gmra.mxu0 %vm1236_vm1, %v1191_v19 }
  0x8f   : > { %9100 = vmatmul.msk.f32.gmra.mxu2 %vm3598_vm0, %v3562_v20 }
  0x95   : > { %9036 = vmatmul.msk.f32.gmra.mxu0 %vm1236_vm1, %v1192_v21  ;;  %v3578_v21 = vld [vmem:[%s10449_s18 + $0xa0] sm:$0xff] }
  0x97   : > { %9101 = vmatmul.msk.f32.gmra.mxu2 %vm3598_vm0, %v3563_v22  ;;  %v1208_v22 = vld [vmem:[%s10454_s26 + $0xa0] sm:$0xff] }
  0x9d   : > { %9037 = vmatmul.msk.f32.gmra.mxu0 %vm1236_vm1, %v1193_v23 }
  0x9f   : > { %9102 = vmatmul.msk.f32.gmra.mxu2 %vm3598_vm0, %v3564_v24 }
  0xa5   : > { %9038 = vmatmul.msk.f32.gmra.mxu0 %vm1236_vm1, %v1194_v25 }
  0xa7   : > { %9103 = vmatmul.msk.f32.gmra.mxu2 %vm3598_vm0, %v3565_v26 }
  0xad   : > { %9039 = vmatmul.msk.f32.gmra.mxu0 %vm1236_vm1, %v1195_v27 }
  0xaf   : > { %9104 = vmatmul.msk.f32.gmra.mxu2 %vm3598_vm0, %v3566_v28 }
  0xb5   : > { %9040 = vmatmul.msk.f32.gmra.mxu0 %vm1236_vm1, %v1196_v29 }
  0xb7   : > { %9105 = vmatmul.msk.f32.gmra.mxu2 %vm3598_vm0, %v3567_v30  ;;  %v3579_v30 = vld [vmem:[%s10449_s18 + $0xa8] sm:$0xff] }
  0xbd   : > { %9041 = vmatmul.msk.f32.gmra.mxu0 %vm1236_vm1, %v1197_v31 }
  0xbf   : > { %9106 = vmatmul.msk.f32.gmra.mxu2 %vm3598_vm0, %v3568_v32  ;;  %v1209_v32 = vld [vmem:[%s10454_s26 + $0xa8] sm:$0xff] }
  0xc5   : > { %9042 = vmatmul.msk.f32.gmra.mxu0 %vm1236_vm1, %v1198_v33 }
  0xc7   : > { %9107 = vmatmul.msk.f32.gmra.mxu2 %vm3598_vm0, %v3569_v34 }
  0xcd   : > { %9043 = vmatmul.msk.f32.gmra.mxu0 %vm1236_vm1, %v1199_v35 }
  0xcf   : > { %9108 = vmatmul.msk.f32.gmra.mxu2 %vm3598_vm0, %v3570_v36 }
  0xd5   : > { %9044 = vmatmul.msk.f32.gmra.mxu0 %vm1236_vm1, %v1200_v37 }
  0xd7   : > { %9109 = vmatmul.msk.f32.gmra.mxu2 %vm3598_vm0, %v3571_v39 }
  0xdd   : > { %9045 = vmatmul.msk.f32.gmra.mxu0 %vm1236_vm1, %v1201_v38 }
  0xdf   : > { %9110 = vmatmul.msk.f32.gmra.mxu2 %vm3598_vm0, %v3572_v41  ;;  %v1210_v41 = vld [vmem:[%s10454_s26 + $0xb0] sm:$0xff] }
  0xe5   : > { %9046 = vmatmul.msk.f32.gmra.mxu0 %vm1236_vm1, %v1202_v40  ;;  %v3580_v40 = vld [vmem:[%s10449_s18 + $0xb0] sm:$0xff] }
  0xe7   : > { %9111 = vmatmul.msk.f32.gmra.mxu2 %vm3598_vm0, %v3573_v42 }
  0xed   : > { %9047 = vmatmul.msk.f32.gmra.mxu0 %vm1236_vm1, %v1203_v43 }
  0xef   : > { %9112 = vmatmul.msk.f32.gmra.mxu2 %vm3598_vm0, %v3574_v46 }
  0xf2   : > { %v1350_v47 = vpop.f32.mrf.mxu0  ;;  %v3712_v48 = vpop.f32.mrf.mxu2 }
  0xf3   : > { %v10528_v50 = vadd.f32 %v10520_v44, %v1350_v47  ;;  %v10531_v51 = vadd.f32 %v10523_v45, %v3712_v48 }
  0xf5   : > { %v1447_v52 = vsel %vm1446_vm2, %v10528_v50, 0.0  ;;  %v3905_v53 = vmul.f32 %v10531_v51, %v10531_v51  ;;  %9048 = vmatmul.msk.f32.gmra.mxu0 %vm1236_vm1, %v1204_v49  ;;  %v3809_v60 = vsel %vm3808_vm3, %v10531_v51, 0.0  ;;  %v1543_v1 = vmul.f32 %v10528_v50, %v10528_v50 }
  0xf6   : > { %1448 = vadd.xlane.f32.xlu0 %v1447_v52  ;;  %v3581_v52 = vld [vmem:[%s10449_s18 + $0xb8] sm:$0xff] }
  0xf7   : > { %v3937_v54 = vsel %vm3808_vm3, %v3905_v53, 0.0  ;;  %9113 = vmatmul.msk.f32.gmra.mxu2 %vm3598_vm0, %v3575_v55  ;;  %v1575_v7 = vsel %vm1446_vm2, %v1543_v1, 0.0  ;;  %v1211_v55 = vld [vmem:[%s10454_s26 + $0xb8] sm:$0xff] }
  0xf8   : > { %3938 = vadd.xlane.f32.xlu2 %v3937_v54 }
  0xfa   : > { %v1353_v56 = vpop.f32.mrf.mxu0  ;;  %v3715_v57 = vpop.f32.mrf.mxu2 }
  0xfb   : > { %v10543_v59 = vadd.f32 %v10520_v44, %v1353_v56  ;;  %v10552_v62 = vadd.f32 %v10523_v45, %v3715_v57 }
  0xfd   : > { %v1450_v61 = vsel %vm1446_vm2, %v10543_v59, 0.0  ;;  %9049 = vmatmul.msk.f32.gmra.mxu0 %vm1236_vm1, %v1205_v58  ;;  %v3812_v4 = vsel %vm3808_vm3, %v10552_v62, 0.0  ;;  %v1544_v9 = vmul.f32 %v10543_v59, %v10543_v59  ;;  %v3906_v11 = vmul.f32 %v10552_v62, %v10552_v62 }
  0xfe   : > { %1451 = vadd.xlane.f32.xlu1 %v1450_v61  ;;  %3810 = vadd.xlane.f32.xlu0 %v3809_v60 }
  0xff   : > { %9114 = vmatmul.msk.f32.gmra.mxu2 %vm3598_vm0, %v3576_v63  ;;  %v1578_v14 = vsel %vm1446_vm2, %v1544_v9, 0.0  ;;  %v3940_v16 = vsel %vm3808_vm3, %v3906_v11, 0.0  ;;  %v1212_v11 = vld [vmem:[%s10454_s26 + $0xc0] sm:$0xff] }
 0x102   : > { %v1356_v0 = vpop.f32.mrf.mxu0  ;;  %v3718_v5 = vpop.f32.mrf.mxu2 }
 0x103   : > { %v10559_v3 = vadd.f32 %v10520_v44, %v1356_v0  ;;  %v10569_v8 = vadd.f32 %v10523_v45, %v3718_v5 }
 0x105   : > { %v1453_v6 = vsel %vm1446_vm2, %v10559_v3, 0.0  ;;  %9050 = vmatmul.msk.f32.gmra.mxu0 %vm1236_vm1, %v1206_v2  ;;  %v3815_v13 = vsel %vm3808_vm3, %v10569_v8, 0.0  ;;  %v1545_v17 = vmul.f32 %v10559_v3, %v10559_v3  ;;  %v3907_v18 = vmul.f32 %v10569_v8, %v10569_v8 }
 0x106   : > { %1454 = vadd.xlane.f32.xlu2 %v1453_v6  ;;  %3813 = vadd.xlane.f32.xlu1 %v3812_v4 }
 0x107   : > { %1576 = vadd.xlane.f32.xlu0 %v1575_v7  ;;  %9115 = vmatmul.msk.f32.gmra.mxu2 %vm3598_vm0, %v3577_v10  ;;  %v1581_v23 = vsel %vm1446_vm2, %v1545_v17, 0.0  ;;  %v3943_v24 = vsel %vm3808_vm3, %v3907_v18, 0.0  ;;  %v3582_v10 = vld [vmem:[%s10449_s18 + $0xc0] sm:$0xff] }
 0x10a   : > { %v1359_v15 = vpop.f32.mrf.mxu0  ;;  %v3721_v20 = vpop.f32.mrf.mxu2 }
 0x10b   : > { %v10588_v19 = vadd.f32 %v10520_v44, %v1359_v15  ;;  %v10595_v25 = vadd.f32 %v10523_v45, %v3721_v20  ;;  %v1213_v20 = vld [vmem:[%s10454_s26 + $0xc8] sm:$0xff] }
 0x10d   : > { %9051 = vmatmul.msk.f32.gmra.mxu0 %vm1236_vm1, %v1207_v12  ;;  %v1456_v26 = vsel %vm1446_vm2, %v10588_v19, 0.0  ;;  %v3908_v27 = vmul.f32 %v10595_v25, %v10595_v25  ;;  %v1546_v28 = vmul.f32 %v10588_v19, %v10588_v19  ;;  %v3818_v35 = vsel %vm3808_vm3, %v10595_v25, 0.0 }
 0x10e   : > { %3816 = vadd.xlane.f32.xlu2 %v3815_v13  ;;  %1579 = vadd.xlane.f32.xlu1 %v1578_v14 }
 0x10f   : > { %3941 = vadd.xlane.f32.xlu0 %v3940_v16  ;;  %9116 = vmatmul.msk.f32.gmra.mxu2 %vm3598_vm0, %v3578_v21  ;;  %v3946_v33 = vsel %vm3808_vm3, %v3908_v27, 0.0  ;;  %v1584_v34 = vsel %vm1446_vm2, %v1546_v28, 0.0  ;;  %v3583_v21 = vld [vmem:[%s10449_s18 + $0xc8] sm:$0xff] }
 0x112   : > { %v1362_v29 = vpop.f32.mrf.mxu0  ;;  %v3724_v31 = vpop.f32.mrf.mxu2 }
 0x113   : > { %v10612_v36 = vadd.f32 %v10520_v44, %v1362_v29  ;;  %v10617_v37 = vadd.f32 %v10523_v45, %v3724_v31 }
 0x115   : > { %9052 = vmatmul.msk.f32.gmra.mxu0 %vm1236_vm1, %v1208_v22  ;;  %v1547_v38 = vmul.f32 %v10612_v36, %v10612_v36  ;;  %v1459_v42 = vsel %vm1446_vm2, %v10612_v36, 0.0  ;;  %v3821_v43 = vsel %vm3808_vm3, %v10617_v37, 0.0  ;;  %v3909_v53 = vmul.f32 %v10617_v37, %v10617_v37 }
 0x116   : > { %1582 = vadd.xlane.f32.xlu2 %v1581_v23  ;;  %3944 = vadd.xlane.f32.xlu1 %v3943_v24 }
 0x117   : > { %1457 = vadd.xlane.f32.xlu0 %v1456_v26  ;;  %9117 = vmatmul.msk.f32.gmra.mxu2 %vm3598_vm0, %v3579_v30  ;;  %v1587_v46 = vsel %vm1446_vm2, %v1547_v38, 0.0  ;;  %v3949_v58 = vsel %vm3808_vm3, %v3909_v53, 0.0  ;;  %v3584_v38 = vld [vmem:[%s10449_s18 + $0xd0] sm:$0xff] }
 0x11a   : > { %v1365_v39 = vpop.f32.mrf.mxu0  ;;  %v3727_v47 = vpop.f32.mrf.mxu2 }
 0x11b   : > { %v10631_v48 = vadd.f32 %v10520_v44, %v1365_v39  ;;  %v10634_v49 = vadd.f32 %v10523_v45, %v3727_v47 }
 0x11d   : > { %9053 = vmatmul.msk.f32.gmra.mxu0 %vm1236_vm1, %v1209_v32  ;;  %v3824_v56 = vsel %vm3808_vm3, %v10634_v49, 0.0  ;;  %v1462_v57 = vsel %vm1446_vm2, %v10631_v48, 0.0  ;;  %v3910_v60 = vmul.f32 %v10634_v49, %v10634_v49  ;;  %v1548_v0 = vmul.f32 %v10631_v48, %v10631_v48 }
 0x11e   : > { %3947 = vadd.xlane.f32.xlu2 %v3946_v33  ;;  %1585 = vadd.xlane.f32.xlu1 %v1584_v34 }
 0x11f   : > { %3819 = vadd.xlane.f32.xlu0 %v3818_v35  ;;  %9118 = vmatmul.msk.f32.gmra.mxu2 %vm3598_vm0, %v3580_v40  ;;  %v3952_v2 = vsel %vm3808_vm3, %v3910_v60, 0.0  ;;  %v1590_v6 = vsel %vm1446_vm2, %v1548_v0, 0.0  ;;  %v1214_v35 = vld [vmem:[%s10454_s26 + $0xd0] sm:$0xff] }
 0x122   : > { %v1368_v54 = vpop.f32.mrf.mxu0  ;;  %v3730_v63 = vpop.f32.mrf.mxu2 }
 0x123   : > { %v10650_v61 = vadd.f32 %v10520_v44, %v1368_v54  ;;  %v10656_v4 = vadd.f32 %v10523_v45, %v3730_v63 }
 0x125   : > { %9054 = vmatmul.msk.f32.gmra.mxu0 %vm1236_vm1, %v1210_v41  ;;  %v1465_v5 = vsel %vm1446_vm2, %v10650_v61, 0.0  ;;  %v3911_v7 = vmul.f32 %v10656_v4, %v10656_v4  ;;  %v1549_v9 = vmul.f32 %v10650_v61, %v10650_v61  ;;  %v3827_v16 = vsel %vm3808_vm3, %v10656_v4, 0.0 }
 0x126   : > { %1460 = vadd.xlane.f32.xlu2 %v1459_v42  ;;  %3822 = vadd.xlane.f32.xlu1 %v3821_v43 }
 0x127   : > { %1588 = vadd.xlane.f32.xlu0 %v1587_v46  ;;  %9119 = vmatmul.msk.f32.gmra.mxu2 %vm3598_vm0, %v3581_v52  ;;  %v3955_v14 = vsel %vm3808_vm3, %v3911_v7, 0.0  ;;  %v1593_v15 = vsel %vm1446_vm2, %v1549_v9, 0.0 }
 0x12a   : > { %v1371_v1 = vpop.f32.mrf.mxu0  ;;  %v3733_v12 = vpop.f32.mrf.mxu2 }
 0x12b   : > { %v10674_v17 = vadd.f32 %v10520_v44, %v1371_v1  ;;  %v10677_v18 = vadd.f32 %v10523_v45, %v3733_v12  ;;  %v1215_v1 = vld [vmem:[%s10454_s26 + $0xd8] sm:$0xff] }
 0x12d   : > { %9055 = vmatmul.msk.f32.gmra.mxu0 %vm1236_vm1, %v1211_v55  ;;  %v1550_v22 = vmul.f32 %v10674_v17, %v10674_v17  ;;  %v1468_v24 = vsel %vm1446_vm2, %v10674_v17, 0.0  ;;  %v3830_v26 = vsel %vm3808_vm3, %v10677_v18, 0.0  ;;  %v3912_v31 = vmul.f32 %v10677_v18, %v10677_v18 }
 0x12e   : > { %3825 = vadd.xlane.f32.xlu2 %v3824_v56  ;;  %1463 = vadd.xlane.f32.xlu1 %v1462_v57 }
 0x12f   : > { %3950 = vadd.xlane.f32.xlu0 %v3949_v58  ;;  %9120 = vmatmul.msk.f32.gmra.mxu2 %vm3598_vm0, %v3582_v10  ;;  %v1596_v28 = vsel %vm1446_vm2, %v1550_v22, 0.0  ;;  %v3958_v40 = vsel %vm3808_vm3, %v3912_v31, 0.0  ;;  %v9560_v10 = vld [vmem:[%s17406_s8 + $0x28] sm:$0xff]  }
 0x132   : > { %v1374_v13 = vpop.f32.mrf.mxu0  ;;  %v3736_v27 = vpop.f32.mrf.mxu2 }
 0x133   : > { %v10691_v29 = vadd.f32 %v10520_v44, %v1374_v13  ;;  %v10694_v30 = vadd.f32 %v10523_v45, %v3736_v27  ;;  %v9457_v13 = vunpack.c.h.bf16 %v9560_v10 }
 0x135   : > { %9056 = vmatmul.msk.f32.gmra.mxu0 %vm1236_vm1, %v1212_v11  ;;  %17418 = vst [vmem:[#allocation36_spill] sm:$0xff] %v10691_v29  ;;  %v3833_v32 = vsel %vm3808_vm3, %v10694_v30, 0.0  ;;  %v1471_v33 = vsel %vm1446_vm2, %v10691_v29, 0.0  ;;  %v3913_v41 = vmul.f32 %v10694_v30, %v10694_v30  ;;  %v1551_v43 = vmul.f32 %v10691_v29, %v10691_v29  ;;  %2512 = vmatpush.msra.mxu1 %v9457_v13 }
 0x136   : > { %1591 = vadd.xlane.f32.xlu2 %v1590_v6  ;;  %3953 = vadd.xlane.f32.xlu1 %v3952_v2 }
 0x137   : > { %1466 = vadd.xlane.f32.xlu0 %v1465_v5  ;;  %9121 = vmatmul.msk.f32.gmra.mxu2 %vm3598_vm0, %v3583_v21  ;;  %v3961_v46 = vsel %vm3808_vm3, %v3913_v41, 0.0  ;;  %v1599_v53 = vsel %vm1446_vm2, %v1551_v43, 0.0  ;;  %v3585_v5 = vld [vmem:[%s10449_s18 + $0xd8] sm:$0xff]  ;;  %v9559_v21 = vld [vmem:[%s17406_s8 + $0x20] sm:$0xff]  }
 0x13a   : > { %v1377_v23 = vpop.f32.mrf.mxu0  ;;  %v3739_v39 = vpop.f32.mrf.mxu2 }
 0x13b   : > { %v10710_v42 = vadd.f32 %v10523_v45, %v3739_v39  ;;  %v10718_v52 = vadd.f32 %v10520_v44, %v1377_v23 }
 0x13d   : > { %9057 = vmatmul.msk.f32.gmra.mxu0 %vm1236_vm1, %v1213_v20  ;;  %17419 = vst [vmem:[#allocation37_spill] sm:$0xff] %v10710_v42  ;;  %v3836_v47 = vsel %vm3808_vm3, %v10710_v42, 0.0  ;;  %v3914_v55 = vmul.f32 %v10710_v42, %v10710_v42  ;;  %v1552_v56 = vmul.f32 %v10718_v52, %v10718_v52  ;;  %v1474_v60 = vsel %vm1446_vm2, %v10718_v52, 0.0 }
 0x13e   : > { %3956 = vadd.xlane.f32.xlu2 %v3955_v14  ;;  %1594 = vadd.xlane.f32.xlu1 %v1593_v15  ;;  %17420 = vst [vmem:[#allocation38_spill] sm:$0xff] %v10718_v52  ;;  %v9563_v15 = vld [vmem:[%s10264_s27 + $0x18] sm:$0xff]  }
 0x13f   : > { %3828 = vadd.xlane.f32.xlu0 %v3827_v16  ;;  %9122 = vmatmul.msk.f32.gmra.mxu2 %vm3598_vm0, %v3584_v38  ;;  %v3964_v58 = vsel %vm3808_vm3, %v3914_v55, 0.0  ;;  %v1602_v63 = vsel %vm1446_vm2, %v1552_v56, 0.0  ;;  %v9456_v16 = vunpack.c.l.bf16 %v9560_v10  ;;  %v9477_v20 = vunpack.c.h.bf16 %v9563_v15  ;;  %v9558_v38 = vld [vmem:[%s17406_s8 + $0x18] sm:$0xff]  }
 0x140   : > { %v9449_v41 = vunpack.c.h.bf16 %v9558_v38  ;;  %v9448_v55 = vunpack.c.l.bf16 %v9558_v38  ;;  %v1217_v38 = vld [vmem:[%s10454_s26 + $0xe8] sm:$0xff] }
 0x141   : > { %2513 = vmatpush.msra.mxu1 %v9456_v16  ;;  %4870 = vmatpush.msra.mxu3 %v9477_v20  ;;  %v9556_v20 = vld [vmem:[%s17406_s8 + $0x8] sm:$0xff]  }
 0x142   : > { %v1380_v34 = vpop.f32.mrf.mxu0  ;;  %v3742_v57 = vpop.f32.mrf.mxu2 }
 0x143   : > { %v10730_v0 = vadd.f32 %v10523_v45, %v3742_v57  ;;  %v10734_v2 = vadd.f32 %v10520_v44, %v1380_v34  ;;  %v9557_v57 = vld [vmem:[%s17406_s8 + $0x10] sm:$0xff]  }
 0x145   : > { %9058 = vmatmul.msk.f32.gmra.mxu0 %vm1236_vm1, %v1214_v35  ;;  %17421 = vst [vmem:[#allocation39_spill] sm:$0xff] %v10730_v0  ;;  %v3915_v6 = vmul.f32 %v10730_v0, %v10730_v0  ;;  %v1477_v11 = vsel %vm1446_vm2, %v10734_v2, 0.0  ;;  %v3839_v12 = vsel %vm3808_vm3, %v10730_v0, 0.0  ;;  %v1553_v23 = vmul.f32 %v10734_v2, %v10734_v2 }
 0x146   : > { %1469 = vadd.xlane.f32.xlu2 %v1468_v24  ;;  %3831 = vadd.xlane.f32.xlu1 %v3830_v26  ;;  %17422 = vst [vmem:[#allocation40_spill] sm:$0xff] %v10734_v2  ;;  %v9453_v24 = vunpack.c.h.bf16 %v9559_v21  ;;  %v9476_v26 = vunpack.c.l.bf16 %v9563_v15 }
 0x147   : > { %1597 = vadd.xlane.f32.xlu0 %v1596_v28  ;;  %9123 = vmatmul.msk.f32.gmra.mxu2 %vm3598_vm0, %v3585_v5  ;;  %v3967_v14 = vsel %vm3808_vm3, %v3915_v6, 0.0  ;;  %v9562_v28 = vld [vmem:[%s10264_s27 + $0x10] sm:$0xff]  }
 0x148   : > { %2514 = vmatpush.msra.mxu1 %v9453_v24  ;;  %4871 = vmatpush.msra.mxu3 %v9476_v26  ;;  %v9472_v43 = vunpack.c.l.bf16 %v9562_v28  ;;  %v9441_v24 = vunpack.c.h.bf16 %v9556_v20 }
 0x14a   : > { %v1383_v54 = vpop.f32.mrf.mxu0  ;;  %v3745_v7 = vpop.f32.mrf.mxu2 }
 0x14b   : > { %v10752_v22 = vadd.f32 %v10523_v45, %v3745_v7  ;;  %v10757_v27 = vadd.f32 %v10520_v44, %v1383_v54  ;;  %v3586_v54 = vld [vmem:[%s10449_s18 + $0xe0] sm:$0xff] }
 0x14c   : > { %v9463_v7 = vld [vmem:[%s10264_s27] sm:$0xff]  }
 0x14d   : > { %9059 = vmatmul.msk.f32.gmra.mxu0 %vm1236_vm1, %v1215_v1  ;;  %17423 = vst [vmem:[#allocation41_spill] sm:$0xff] %v10752_v22  ;;  %v3842_v39 = vsel %vm3808_vm3, %v10752_v22, 0.0  ;;  %v9445_v1 = vunpack.c.h.bf16 %v9557_v57  ;;  %v9465_v13 = vunpack.c.h.bf16 %v9463_v7 }
 0x14e   : > { %3834 = vadd.xlane.f32.xlu2 %v3833_v32  ;;  %1472 = vadd.xlane.f32.xlu1 %v1471_v33  ;;  %17424 = vst [vmem:[#allocation42_spill] sm:$0xff] %v10757_v27  ;;  %v9452_v32 = vunpack.c.l.bf16 %v9559_v21  ;;  %v9473_v33 = vunpack.c.h.bf16 %v9562_v28 }
 0x14f   : > { %3959 = vadd.xlane.f32.xlu0 %v3958_v40  ;;  %v1605_v40 = vsel %vm1446_vm2, %v1553_v23, 0.0  ;;  %9124 = vmatmul.msk.f32.gmra.mxu2 %vm3598_vm0, %v3586_v54 }
 0x150   : > { %2515 = vmatpush.msra.mxu1 %v9452_v32  ;;  %4872 = vmatpush.msra.mxu3 %v9473_v33 }
 0x152   : > { %v10740_v9 = vpop.f32.mrf.mxu0  ;;  %v3748_v34 = vpop.f32.mrf.mxu2  ;;  %2516 = vmatpush.msra.mxu1 %v9449_v41  ;;  %4873 = vmatpush.msra.mxu3 %v9472_v43  ;;  %v9440_v41 = vunpack.c.l.bf16 %v9556_v20 }
 0x153   : > { %v10779_v6 = vadd.f32 %v10523_v45, %v3748_v34  ;;  %v10791_v26 = vadd.f32 %v10520_v44, %v10740_v9  ;;  %v9464_v34 = vunpack.c.l.bf16 %v9463_v7  ;;  %v3587_v9 = vld [vmem:[%s10449_s18 + $0xe8] sm:$0xff] }
 0x154   : > { %2517 = vmatpush.msra.mxu1 %v9448_v55 }
 0x155   : > { %17425 = vst [vmem:[#allocation43_spill] sm:$0xff] %v10779_v6  ;;  %v3845_v32 = vsel %vm3808_vm3, %v10779_v6, 0.0 }
 0x156   : > { %1600 = vadd.xlane.f32.xlu2 %v1599_v53  ;;  %3962 = vadd.xlane.f32.xlu1 %v3961_v46  ;;  %v1480_v46 = vsel %vm1446_vm2, %v10757_v27, 0.0  ;;  %v1216_v53 = vld [vmem:[%s10454_s26 + $0xe0] sm:$0xff]  ;;  %17426 = vst [vmem:[#allocation44_spill] sm:$0xff] %v10791_v26 }
 0x157   : > { %3837 = vadd.xlane.f32.xlu0 %v3836_v47  ;;  %v9561_v47 = vld [vmem:[%s10264_s27 + $0x8] sm:$0xff]   ;;  %9060 = vmatmul.msk.f32.gmra.mxu0 %vm1236_vm1, %v1216_v53  ;;  %v1555_v53 = vmul.f32 %v10791_v26, %v10791_v26 }
 0x158   : > { %v9469_v56 = vunpack.c.h.bf16 %v9561_v47  ;;  %v9468_v5 = vunpack.c.l.bf16 %v9561_v47  ;;  %2518 = vmatpush.msra.mxu1 %v9445_v1  ;;  %9125 = vmatmul.msk.f32.gmra.mxu2 %vm3598_vm0, %v3587_v9 }
 0x159   : > { %v1611_v7 = vsel %vm1446_vm2, %v1555_v53, 0.0 }
 0x15a   : > { %v10762_v35 = vpop.f32.mrf.mxu0  ;;  %4874 = vmatpush.msra.mxu3 %v9469_v56  ;;  %v3751_v16 = vpop.f32.mrf.mxu2 }
 0x15b   : > { %v10818_v1 = vadd.f32 %v10523_v45, %v3751_v16 }
 0x15c   : > { %4875 = vmatpush.msra.mxu3 %v9468_v5 }
 0x15d   : > { %17427 = vst [vmem:[#allocation45_spill] sm:$0xff] %v10818_v1 }
 0x15e   : > { %3965 = vadd.xlane.f32.xlu2 %v3964_v58  ;;  %1475 = vadd.xlane.f32.xlu1 %v1474_v60  ;;  %v1554_v60 = vmul.f32 %v10757_v27, %v10757_v27 }
 0x15f   : > { %1603 = vadd.xlane.f32.xlu0 %v1602_v63  ;;  %v3916_v63 = vmul.f32 %v10752_v22, %v10752_v22  ;;  %4876 = vmatpush.msra.mxu3 %v9465_v13 }
 0x160   : > { %v1608_v21 = vsel %vm1446_vm2, %v1554_v60, 0.0  ;;  %9061 = vmatmul.msk.f32.gmra.mxu0 %vm1236_vm1, %v1217_v38 }
 0x161   : > { %v3970_v23 = vsel %vm3808_vm3, %v3916_v63, 0.0  ;;  %4877 = vmatpush.msra.mxu3 %v9464_v34 }
 0x162   : > { %v1392_v33 = vpop.f32.mrf.mxu0 }
 0x166   : > { %1478 = vadd.xlane.f32.xlu2 %v1477_v11  ;;  %3840 = vadd.xlane.f32.xlu1 %v3839_v12  ;;  %v9444_v12 = vunpack.c.l.bf16 %v9557_v57 }
 0x167   : > { %3968 = vadd.xlane.f32.xlu0 %v3967_v14 }
 0x168   : > { %2519 = vmatpush.msra.mxu1 %v9444_v12 }
 0x169   : > { %v10760_v31 = vpop.xlane.xlu0 %1448 }
 0x16a   : > { %v10802_v43 = vmul.f32 0.010416667, %v10760_v31  ;;  %2520 = vmatpush.msra.mxu1 %v9441_v24  ;;  %v10829_v20 = vpop.f32.mrf.mxu0 }
 0x16b   : > { %v3939_v58 = vpop.xlane.xlu2 %3938 }
 0x16c   : > { %v4065_v14 = vmul.f32 0.015625, %v3939_v58  ;;  %2521 = vmatpush.msra.mxu1 %v9440_v41  ;;  %v1483_v58 = vsel %vm1446_vm2, %v10791_v26, 0.0  ;;  %v1735_v60 = vmul.f32 %v10802_v43, %v10802_v43  ;;  %v3848_v41 = vsel %vm3808_vm3, %v10818_v1, 0.0 }
 0x16e   : > { %3843 = vadd.xlane.f32.xlu2 %v3842_v39  ;;  %1606 = vadd.xlane.f32.xlu1 %v1605_v40  ;;  %v3917_v40 = vmul.f32 %v10779_v6, %v10779_v6 }
 0x16f   : > { %1481 = vadd.xlane.f32.xlu0 %v1480_v46  ;;  %v9435_v46 = vld [vmem:[%s17406_s8] sm:$0xff]  }
 0x170   : > { %v9437_v54 = vunpack.c.h.bf16 %v9435_v46  ;;  %v3973_v57 = vsel %vm3808_vm3, %v3917_v40, 0.0  ;;  %v9436_v5 = vunpack.c.l.bf16 %v9435_v46 }
 0x171   : > { %v1452_v10 = vpop.xlane.xlu1 %1451  ;;  %v3811_v11 = vpop.xlane.xlu0 %3810 }
 0x172   : > { %v10784_v15 = vmul.f32 0.015625, %v3811_v11  ;;  %2522 = vmatpush.msra.mxu1 %v9437_v54  ;;  %v3754_v11 = vpop.f32.mrf.mxu2  ;;  %v10823_v13 = vmul.f32 0.010416667, %v1452_v10  ;;  %v10838_v10 = vadd.f32 %v10520_v44, %v1392_v33 }
 0x174   : > { %v4097_v28 = vmul.f32 %v10784_v15, %v10784_v15  ;;  %2523 = vmatpush.msra.mxu1 %v9436_v5  ;;  %17429 = vst [vmem:[#allocation47_spill] sm:$0xff] %v10838_v10 }
 0x176   : > { %v4129_v39 = vsub.f32 %v4065_v14, %v4097_v28  ;;  %1609 = vadd.xlane.f32.xlu2 %v1608_v21  ;;  %3971 = vadd.xlane.f32.xlu1 %v3970_v23  ;;  %v10827_v14 = vadd.f32 %v10520_v44, %v10762_v35  ;;  %v3918_v23 = vmul.f32 %v10818_v1, %v10818_v1 }
 0x177   : > { %3846 = vadd.xlane.f32.xlu0 %v3845_v32  ;;  %v10841_v28 = vadd.f32 %v10523_v45, %v3754_v11  ;;  %v10864_v11 = vstv %s10821_s10  ;;  %s13624_s10 = sld [smem:[#allocation2 + $0x1]] }
 0x178   : > { %v10805_v47 = vadd.f32 1e-05, %v4129_v39  ;;  %17428 = vst [vmem:[#allocation46_spill] sm:$0xff] %v10827_v14  ;;  %v1556_v38 = vmul.f32 %v10827_v14, %v10827_v14  ;;  %v1736_v39 = vmul.f32 %v10823_v13, %v10823_v13  ;;  %v1486_v33 = vsel %vm1446_vm2, %v10827_v14, 0.0 }
 0x179   : > { %v1455_v55 = vpop.xlane.xlu2 %1454  ;;  %v3814_v56 = vpop.xlane.xlu1 %3813  ;;  %17430 = vst [vmem:[#allocation48_spill] sm:$0xff] %v10841_v28 }
 0x17a   : > { %9687 = vrsqrt.f32 %v10805_v47  ;;  %v1577_v31 = vpop.xlane.xlu0 %1576  ;;  %v10831_v16 = vmul.f32 0.015625, %v3814_v56  ;;  %v3976_v56 = vsel %vm3808_vm3, %v3918_v23, 0.0  ;;  %vm4231_vm5 = vweird.f32 %v10805_v47 }
 0x17b   : > { %v1703_v63 = vmul.f32 0.010416667, %v1577_v31 }
 0x17c   : > { %v4098_v53 = vmul.f32 %v10831_v16, %v10831_v16 }
 0x17d   : > { %v1767_v12 = vsub.f32 %v1703_v63, %v1735_v60  ;;  %v1489_v60 = vsel %vm1446_vm2, %v10838_v10, 0.0 }
 0x17e   : > { %3974 = vadd.xlane.f32.xlu2 %v3973_v57  ;;  %1484 = vadd.xlane.f32.xlu1 %v1483_v58  ;;  %v3851_v58 = vsel %vm3808_vm3, %v10841_v28, 0.0 }
 0x17f   : > { %v10833_v21 = vadd.f32 1e-05, %v1767_v12  ;;  %1612 = vadd.xlane.f32.xlu0 %v1611_v7  ;;  %v1614_v7 = vsel %vm1446_vm2, %v1556_v38, 0.0  ;;  %v10866_v12 = vmul.f32 0.010416667, %v1455_v55  ;;  %v3919_v55 = vmul.f32 %v10841_v28, %v10841_v28 }
 0x180   : > { %v9688_v24 = vpop.eup %9687 }
 0x181   : > { %v4226_v35 = vmul.f32 %v9688_v24, %v10805_v47  ;;  %9689 = vrsqrt.f32 %v10833_v21  ;;  %v3817_v32 = vpop.xlane.xlu2 %3816  ;;  %v1580_v34 = vpop.xlane.xlu1 %1579  ;;  %vm4232_vm4 = vweird.f32 %v9688_v24  ;;  %v10905_v14 = vsel %vm3808_vm3, %v3919_v55, 0.0 }
 0x182   : > { %v1704_v40 = vmul.f32 0.010416667, %v1580_v34  ;;  %v3942_v9 = vpop.xlane.xlu0 %3941  ;;  %v3757_v34 = vpop.f32.mrf.mxu2  ;;  %vm4233_vm6 = vmor %vm4231_vm5, %vm4232_vm4  ;;  %vm1869_vm8 = vweird.f32 %v10833_v21 }
 0x183   : > { %v4227_v46 = vmul.f32 %v9688_v24, %v4226_v35  ;;  %v4066_v54 = vmul.f32 0.015625, %v3942_v9  ;;  %v10868_v35 = vmul.f32 0.015625, %v3817_v32  ;;  %v1737_v32 = vmul.f32 %v10866_v12, %v10866_v12 }
 0x184   : > { %v1768_v57 = vsub.f32 %v1704_v40, %v1736_v39  ;;  %v1557_v39 = vmul.f32 %v10838_v10, %v10838_v10 }
 0x185   : > { %v4228_v63 = vmul.f32 0.5, %v4227_v46  ;;  %v4130_v5 = vsub.f32 %v4066_v54, %v4098_v53  ;;  %v1398_v46 = vpop.f32.mrf.mxu0 }
 0x186   : > { %v10870_v23 = vadd.f32 1e-05, %v1768_v57  ;;  %1487 = vadd.xlane.f32.xlu2 %v1486_v33  ;;  %3849 = vadd.xlane.f32.xlu1 %v3848_v41  ;;  %v4099_v41 = vmul.f32 %v10868_v35, %v10868_v35  ;;  %v10890_v57 = vadd.f32 %v10523_v45, %v3757_v34  ;;  %v10902_v34 = vsel %vm1446_vm2, %v1557_v39, 0.0 }
 0x187   : > { %v10874_v40 = vpop.eup %9689  ;;  %v4229_v9 = vsub.f32 1.5, %v4228_v63  ;;  %v10876_v38 = vadd.f32 1e-05, %v4130_v5  ;;  %3977 = vadd.xlane.f32.xlu0 %v3976_v56  ;;  %v10893_v63 = vld [vmem:[%s17405_s12] ss:$0 sm:$0xff]  ;;  %v4161_v5 = vsub.f32 %v10531_v51, %v10784_v15 }
 0x188   : > { %v1864_v33 = vmul.f32 %v10874_v40, %v10833_v21  ;;  %9691 = vrsqrt.f32 %v10870_v23  ;;  %17431 = vst [vmem:[#allocation49_spill] sm:$0xff] %v10890_v57  ;;  %v3854_v39 = vsel %vm3808_vm3, %v10890_v57, 0.0  ;;  %vm1870_vm7 = vweird.f32 %v10874_v40 }
 0x189   : > { %v4230_v53 = vmul.f32 %v9688_v24, %v4229_v9  ;;  %9693 = vrsqrt.f32 %v10876_v38  ;;  %v1583_v54 = vpop.xlane.xlu2 %1582  ;;  %v3945_v56 = vpop.xlane.xlu1 %3944  ;;  %vm10955_vm9 = vmor %vm1869_vm8, %vm1870_vm7  ;;  %vm1879_vm12 = vweird.f32 %v10870_v23  ;;  %vm4241_vm15 = vweird.f32 %v10876_v38 }
 0x18a   : > { %v1865_v31 = vmul.f32 %v10874_v40, %v1864_v33  ;;  %v1705_v9 = vmul.f32 0.010416667, %v1583_v54  ;;  %v4067_v10 = vmul.f32 0.015625, %v3945_v56  ;;  %v1458_v47 = vpop.xlane.xlu0 %1457  ;;  %v10911_v54 = vadd.f32 %v10520_v44, %v10829_v20  ;;  %v1218_v20 = vld [vmem:[%s10454_s26 + $0xf0] sm:$0xff] }
 0x18b   : > { %v4234_v1 = vsel %vm4233_vm6, %v9688_v24, %v4230_v53  ;;  %v10913_v56 = vmul.f32 0.010416667, %v1458_v47  ;;  %v10916_v24 = vld [vmem:[%s10259_s20] ss:$0 sm:$0xff]  ;;  %9062 = vmatmul.msk.f32.gmra.mxu0 %vm1236_vm1, %v1218_v20  ;;  %v3760_v47 = vpop.f32.mrf.mxu2  ;;  %v3920_v53 = vmul.f32 %v10890_v57, %v10890_v57 }
 0x18c   : > { %v4545_v26 = vmul.f32 %v4234_v1, %v4161_v5  ;;  %v1866_v51 = vmul.f32 0.5, %v1865_v31  ;;  %v1769_v15 = vsub.f32 %v1705_v9, %v1737_v32  ;;  %v4131_v6 = vsub.f32 %v4067_v10, %v4099_v41  ;;  %17432 = vst [vmem:[#allocation50_spill] sm:$0xff] %v10911_v54 }
 0x18d   : > { %v1738_v9 = vmul.f32 %v10913_v56, %v10913_v56 }
 0x18e   : > { %v10920_v1 = vpop.eup %9691  ;;  %v4581_v31 = vmul.f32 %v10893_v63, %v4545_v26  ;;  %v1867_v10 = vsub.f32 1.5, %v1866_v51  ;;  %v10923_v55 = vadd.f32 1e-05, %v1769_v15  ;;  %v10925_v32 = vadd.f32 1e-05, %v4131_v6  ;;  %3852 = vadd.xlane.f32.xlu2 %v3851_v58  ;;  %1615 = vadd.xlane.f32.xlu1 %v1614_v7  ;;  %v3588_v6 = vld [vmem:[%s10449_s18 + $0xf0] sm:$0xff] }
 0x18f   : > { %v10928_v41 = vpop.eup %9693  ;;  %v1874_v5 = vmul.f32 %v10920_v1, %v10870_v23  ;;  %1490 = vadd.xlane.f32.xlu0 %v1489_v60  ;;  %v10936_v26 = vadd.f32 %v10520_v44, %v1398_v46  ;;  %9126 = vmatmul.msk.f32.gmra.mxu2 %vm3598_vm0, %v3588_v6  ;;  %v10951_v15 = vadd.f32 %v10523_v45, %v3760_v47  ;;  %vm1880_vm11 = vweird.f32 %v10920_v1 }
 0x190   : > { %v1868_v58 = vmul.f32 %v10874_v40, %v1867_v10  ;;  %v4236_v7 = vmul.f32 %v10928_v41, %v10876_v38  ;;  %9695 = vrsqrt.f32 %v10923_v55  ;;  %v4617_v21 = vadd.f32 %v10916_v24, %v4581_v31  ;;  %vm11003_vm13 = vmor %vm1879_vm12, %vm1880_vm11 }
 0x191   : > { %17433 = vst [vmem:[#allocation51_spill] sm:$0xff] %v10936_v26  ;;  %v1875_v60 = vmul.f32 %v10920_v1, %v1874_v5  ;;  %9697 = vrsqrt.f32 %v10925_v32  ;;  %v3948_v46 = vpop.xlane.xlu2 %3947  ;;  %v1586_v51 = vpop.xlane.xlu1 %1585  ;;  %vm4242_vm14 = vweird.f32 %v10928_v41  ;;  %vm1889_vm6 = vweird.f32 %v10923_v55 }
 0x192   : > { %17434 = vst [vmem:[#allocation52_spill] sm:$0xff] %v10951_v15  ;;  %v4237_v20 = vmul.f32 %v10928_v41, %v4236_v7  ;;  %v1706_v6 = vmul.f32 0.010416667, %v1586_v51  ;;  %v3820_v33 = vpop.xlane.xlu0 %3819  ;;  %v10961_v5 = vpop.f32.mrf.mxu0  ;;  %v4068_v47 = vmul.f32 0.015625, %v3948_v46  ;;  %v1872_v22 = vsel %vm10955_vm9, %v10874_v40, %v1868_v58  ;;  %v10979_v46 = vld [vmem:[%s10214_s29] ss:$0 sm:$0xff]  ;;  %vm11040_vm4 = vmor %vm4241_vm15, %vm4242_vm14 }
 0x193   : > { %v1876_v45 = vmul.f32 0.5, %v1875_v60  ;;  %v10965_v28 = vmul.f32 0.015625, %v3820_v33  ;;  %vm4649_vm10 = vcmp.ge.f32.partialorder %v4617_v21, 0.0  ;;  %v4682_v51 = vmul.f32 %v10864_v11, %v4617_v21  ;;  %v11056_v2 = vpop.f32.mrf.mxu2 }
 0x194   : > { %v4238_v27 = vmul.f32 0.5, %v4237_v20  ;;  %v1770_v7 = vsub.f32 %v1706_v6, %v1738_v9  ;;  %v17437_v60 = vsub.f32 %v10528_v50, %v10802_v43  ;;  %v1558_v40 = vmul.f32 %v10911_v54, %v10911_v54 }
 0x195   : > { %v1877_v31 = vsub.f32 1.5, %v1876_v45  ;;  %v4100_v0 = vmul.f32 %v10965_v28, %v10965_v28  ;;  %v4714_v20 = vsel %vm4649_vm10, %v4617_v21, %v4682_v51  ;;  %vm4251_vm8 = vweird.f32 %v10925_v32 }
 0x196   : > { %v2183_v33 = vmul.f32 %v1872_v22, %v17437_v60  ;;  %v10983_v58 = vpop.eup %9695  ;;  %v4239_v9 = vsub.f32 1.5, %v4238_v27  ;;  %v10986_v10 = vadd.f32 1e-05, %v1770_v7  ;;  %1618 = vadd.xlane.f32.xlu2 %v10902_v34  ;;  %3980 = vadd.xlane.f32.xlu1 %v10905_v14  ;;  %v3982_v14 = vsel %vm3808_vm3, %v3920_v53, 0.0  ;;  %v3589_v53 = vld [vmem:[%s10449_s18 + $0xf8] sm:$0xff]  ;;  %s17605_s18 = smov %s17604_s2 }
 0x197   : > { %v10990_v6 = vpop.eup %9697  ;;  %v1878_v50 = vmul.f32 %v10920_v1, %v1877_v31  ;;  %v1884_v22 = vmul.f32 %v10983_v58, %v10923_v55  ;;  %v4132_v43 = vsub.f32 %v4068_v47, %v4100_v0  ;;  %9128 = vmatmul.msk.f32.vlgmr.msra.gmra.mxu3 %vm3808_vm3, %v4714_v20  ;;  %3855 = vadd.xlane.f32.xlu0 %v3854_v39  ;;  %v11013_v47 = vld [vmem:[%s17408_s3] ss:$0 sm:$0xff]  ;;  %vm1890_vm7 = vweird.f32 %v10983_v58 }
 0x198   : > { %v4246_v27 = vmul.f32 %v10990_v6, %v10925_v32  ;;  %9699 = vrsqrt.f32 %v10986_v10  ;;  %v2219_v45 = vmul.f32 %v10979_v46, %v2183_v33  ;;  %v4240_v7 = vmul.f32 %v10928_v41, %v4239_v9  ;;  %9127 = vmatmul.msk.f32.gmra.mxu2 %vm3598_vm0, %v3589_v53  ;;  %vm11104_vm10 = vmor %vm1889_vm6, %vm1890_vm7 }
 0x199   : > { %v1885_v0 = vmul.f32 %v10983_v58, %v1884_v22  ;;  %v11009_v39 = vadd.f32 1e-05, %v4132_v43  ;;  %v1461_v23 = vpop.xlane.xlu2 %1460  ;;  %v3823_v21 = vpop.xlane.xlu1 %3822  ;;  %v1882_v20 = vsel %vm11003_vm13, %v10920_v1, %v1878_v50  ;;  %v1492_v43 = vsel %vm1446_vm2, %v10911_v54, 0.0 }
 0x19a   : > { %v4247_v51 = vmul.f32 %v10990_v6, %v4246_v27  ;;  %v11018_v31 = vmul.f32 0.010416667, %v1461_v23  ;;  %v1589_v60 = vpop.xlane.xlu0 %1588  ;;  %v11031_v27 = vstv %s10971_s15  ;;  %v1620_v23 = vsel %vm1446_vm2, %v1558_v40, 0.0  ;;  %v11034_v34 = vpop.f32.mrf.mxu0  ;;  %s17666_s15 = sld [smem:[#allocation14_spill]] }
 0x19b   : > { %v1886_v22 = vmul.f32 0.5, %v1885_v0  ;;  %9701 = vrsqrt.f32 %v11009_v39  ;;  %v1707_v33 = vmul.f32 0.010416667, %v1589_v60  ;;  %17440 = vst [vmem:[#allocation53_spill] sm:$0xff] %v11031_v27  ;;  %v2255_v38 = vadd.f32 %v11013_v47, %v2219_v45 }
 0x19c   : > { %v1739_v9 = vmul.f32 %v11018_v31, %v11018_v31  ;;  %v4248_v0 = vmul.f32 0.5, %v4247_v51  ;;  %v17443_v53 = vsub.f32 %v10543_v59, %v10823_v13  ;;  %v11052_v40 = vadd.f32 %v10520_v44, %v10961_v5 }
 0x19d   : > { %v11054_v1 = vmul.f32 0.015625, %v3823_v21  ;;  %v4244_v45 = vsel %vm11040_vm4, %v10928_v41, %v4240_v7  ;;  %v1887_v51 = vsub.f32 1.5, %v1886_v22  ;;  %v1495_v44 = vsel %vm1446_vm2, %v10936_v26, 0.0 }
 0x19e   : > { %v2184_v60 = vmul.f32 %v1882_v20, %v17443_v53  ;;  %v11048_v54 = vpop.eup %9699  ;;  %17444 = vst [vmem:[#allocation54_spill] sm:$0xff] %v11052_v40  ;;  %v1771_v57 = vsub.f32 %v1707_v33, %v1739_v9  ;;  %3983 = vadd.xlane.f32.xlu2 %v3982_v14  ;;  %1493 = vadd.xlane.f32.xlu1 %v1492_v43  ;;  %vm2287_vm5 = vcmp.ge.f32.partialorder %v2255_v38, 0.0  ;;  %v4249_v41 = vsub.f32 1.5, %v4248_v0 }
 0x19f   : > { %v1894_v59 = vmul.f32 %v11048_v54, %v10986_v10  ;;  %1621 = vadd.xlane.f32.xlu0 %v1620_v23  ;;  %v3921_v13 = vmul.f32 %v10951_v15, %v10951_v15  ;;  %v2320_v14 = vmul.f32 %v11031_v27, %v2255_v38  ;;  %v17445_v33 = vsub.f32 %v10552_v62, %v10831_v16 }
 0x1a0   : > { %v11067_v5 = vadd.f32 1e-05, %v1771_v57  ;;  %v2220_v21 = vmul.f32 %v10979_v46, %v2184_v60  ;;  %v3857_v57 = vsel %vm3808_vm3, %v10951_v15, 0.0  ;;  %v4101_v23 = vmul.f32 %v11054_v1, %v11054_v1  ;;  %v1219_v60 = vld [vmem:[%s10454_s26 + $0xf8] sm:$0xff]  ;;  %s17607_s26 = sld [smem:[#allocation23_spill]] }
 0x1a1   : > { %v11071_v20 = vpop.eup %9701  ;;  %v3826_v7 = vpop.xlane.xlu2 %3825  ;;  %v4546_v43 = vmul.f32 %v4244_v45, %v17445_v33  ;;  %v1888_v0 = vmul.f32 %v10983_v58, %v1887_v51  ;;  %v1895_v53 = vmul.f32 %v11048_v54, %v1894_v59  ;;  %v2352_v62 = vsel %vm2287_vm5, %v2255_v38, %v2320_v14  ;;  %9063 = vmatmul.msk.f32.gmra.mxu0 %vm1236_vm1, %v1219_v60 }
 0x1a2   : > { %v1464_v22 = vpop.xlane.xlu1 %1463  ;;  %v4256_v9 = vmul.f32 %v11071_v20, %v11009_v39  ;;  %9703 = vrsqrt.f32 %v11067_v5  ;;  %v3951_v50 = vpop.xlane.xlu0 %3950  ;;  %v3985_v16 = vsel %vm3808_vm3, %v3921_v13, 0.0  ;;  %9064 = vmatmul.msk.f32.vlgmr.msra.gmra.mxu1 %vm1446_vm2, %v2352_v62  ;;  %v2256_v15 = vadd.f32 %v11013_v47, %v2220_v21 }
 0x1a3   : > { %v4069_v33 = vmul.f32 0.015625, %v3951_v50  ;;  %v4582_v52 = vmul.f32 %v10893_v63, %v4546_v43  ;;  %v4250_v51 = vmul.f32 %v10990_v6, %v4249_v41  ;;  %vm4252_vm9 = vweird.f32 %v10990_v6  ;;  %v11110_v41 = vpop.f32.mrf.mxu0 }
 0x1a4   : > { %v4257_v45 = vmul.f32 %v11071_v20, %v4256_v9  ;;  %v4164_v38 = vsub.f32 %v10595_v25, %v10965_v28  ;;  %v11108_v14 = vmul.f32 0.015625, %v3826_v7  ;;  %vm2288_vm1 = vcmp.ge.f32.partialorder %v2256_v15, 0.0  ;;  %vm11125_vm11 = vmor %vm4251_vm8, %vm4252_vm9 }
 0x1a5   : > { %v4133_v21 = vsub.f32 %v4069_v33, %v4101_v23  ;;  %v11112_v43 = vmul.f32 0.010416667, %v1464_v22  ;;  %v2321_v25 = vmul.f32 %v11031_v27, %v2256_v15  ;;  %v4618_v28 = vadd.f32 %v10916_v24, %v4582_v52  ;;  %v11130_v52 = vpop.f32.mrf.mxu2 }
 0x1a6   : > { %v4258_v13 = vmul.f32 0.5, %v4257_v45  ;;  %1496 = vadd.xlane.f32.xlu2 %v1495_v44  ;;  %3858 = vadd.xlane.f32.xlu1 %v3857_v57  ;;  %v1892_v55 = vsel %vm11104_vm10, %v10983_v58, %v1888_v0  ;;  %v1896_v7 = vmul.f32 0.5, %v1895_v53  ;;  %vm4262_vm12 = vweird.f32 %v11071_v20 }
 0x1a7   : > { %3986 = vadd.xlane.f32.xlu0 %v3985_v16  ;;  %v17450_v57 = vsub.f32 %v10559_v3, %v10866_v12  ;;  %v4102_v23 = vmul.f32 %v11108_v14, %v11108_v14  ;;  %v2353_v50 = vsel %vm2288_vm1, %v2256_v15, %v2321_v25  ;;  %vm4650_vm13 = vcmp.ge.f32.partialorder %v4618_v28, 0.0 }
 0x1a8   : > { %v11119_v9 = vpop.eup %9703  ;;  %v4259_v22 = vsub.f32 1.5, %v4258_v13  ;;  %v4254_v53 = vsel %vm11125_vm11, %v10990_v6, %v4250_v51  ;;  %vm4261_vm14 = vweird.f32 %v11009_v39  ;;  %v11143_v16 = vadd.f32 1e-05, %v4133_v21 }
 0x1a9   : > { %v2185_v58 = vmul.f32 %v1892_v55, %v17450_v57  ;;  %v1592_v32 = vpop.xlane.xlu2 %1591  ;;  %v4683_v3 = vmul.f32 %v10864_v11, %v4618_v28  ;;  %vm4263_vm15 = vmor %vm4261_vm14, %vm4262_vm12  ;;  %v1904_v15 = vmul.f32 %v11119_v9, %v11067_v5  ;;  %v1740_v60 = vmul.f32 %v11112_v43, %v11112_v43 }
 0x1aa   : > { %v3954_v0 = vpop.xlane.xlu1 %3953  ;;  %v4260_v62 = vmul.f32 %v11071_v20, %v4259_v22  ;;  %v1467_v12 = vpop.xlane.xlu0 %1466  ;;  %v1708_v45 = vmul.f32 0.010416667, %v1592_v32  ;;  %9065 = vmatmul.msk.f32.gmra.mxu1 %vm1446_vm2, %v2353_v50  ;;  %v17451_v59 = vsub.f32 %v10569_v8, %v10868_v35  ;;  %v1897_v21 = vsub.f32 1.5, %v1896_v7 }
 0x1ab   : > { %v4070_v33 = vmul.f32 0.015625, %v3954_v0  ;;  %v4715_v39 = vsel %vm4650_vm13, %v4618_v28, %v4683_v3  ;;  %v2221_v51 = vmul.f32 %v10979_v46, %v2185_v58  ;;  %9705 = vrsqrt.f32 %v11143_v16  ;;  %v11170_v7 = vpop.f32.mrf.mxu0 }
 0x1ac   : > { %v4264_v6 = vsel %vm4263_vm15, %v11071_v20, %v4260_v62  ;;  %v4547_v13 = vmul.f32 %v4254_v53, %v17451_v59  ;;  %9129 = vmatmul.msk.f32.gmra.mxu3 %vm3808_vm3, %v4715_v39  ;;  %v1772_v25 = vsub.f32 %v1708_v45, %v1740_v60  ;;  %v1802_v28 = vsub.f32 %v10588_v19, %v10913_v56 }
 0x1ad   : > { %v4134_v55 = vsub.f32 %v4070_v33, %v4102_v23  ;;  %v4548_v44 = vmul.f32 %v4264_v6, %v4164_v38  ;;  %v2257_v20 = vadd.f32 %v11013_v47, %v2221_v51  ;;  %v1905_v57 = vmul.f32 %v11119_v9, %v1904_v15  ;;  %v11181_v62 = vpop.f32.mrf.mxu2  ;;  %v11184_v15 = vld [vmem:[%s10209_s25] ss:$0 sm:$0xff] }
 0x1ae   : > { %v4583_v22 = vmul.f32 %v10893_v63, %v4547_v13  ;;  %v11164_v58 = vadd.f32 1e-05, %v1772_v25  ;;  %v1560_v38 = vmul.f32 %v11052_v40, %v11052_v40  ;;  %v1898_v23 = vmul.f32 %v11048_v54, %v1897_v21 }
 0x1af   : > { %vm2289_vm4 = vcmp.ge.f32.partialorder %v2257_v20, 0.0  ;;  %v2322_v8 = vmul.f32 %v11031_v27, %v2257_v20  ;;  %vm1899_vm5 = vweird.f32 %v10986_v10  ;;  %vm1900_vm6 = vweird.f32 %v11048_v54 }
 0x1b0   : > { %v4619_v35 = vadd.f32 %v10916_v24, %v4583_v22  ;;  %v11175_v19 = vadd.f32 1e-05, %v4134_v55  ;;  %v4584_v32 = vmul.f32 %v10893_v63, %v4548_v44  ;;  %9707 = vrsqrt.f32 %v11164_v58  ;;  %vm1901_vm8 = vmor %vm1899_vm5, %vm1900_vm6 }
 0x1b1   : > { %v3957_v56 = vpop.xlane.xlu2 %3956  ;;  %v11179_v0 = vmul.f32 0.010416667, %v1467_v12  ;;  %v2354_v53 = vsel %vm2289_vm4, %v2257_v20, %v2322_v8  ;;  %v11188_v60 = vadd.f32 %v11184_v15, %v11110_v41  ;;  %v1626_v33 = vsel %vm1446_vm2, %v1560_v38, 0.0  ;;  %v11192_v6 = vpop.eup %9705 }
 0x1b2   : > { %v1595_v50 = vpop.xlane.xlu1 %1594  ;;  %v3829_v3 = vpop.xlane.xlu0 %3828  ;;  %vm4651_vm7 = vcmp.ge.f32.partialorder %v4619_v35, 0.0  ;;  %v4684_v45 = vmul.f32 %v10864_v11, %v4619_v35  ;;  %v1906_v39 = vmul.f32 0.5, %v1905_v57  ;;  %9066 = vmatmul.msk.f32.gmra.mxu1 %vm1446_vm2, %v2354_v53  ;;  %1627 = vadd.xlane.f32.xlu2 %v1626_v33  ;;  %v1559_v51 = vmul.f32 %v10936_v26, %v10936_v26 }
 0x1b3   : > { %v1741_v12 = vmul.f32 %v11179_v0, %v11179_v0  ;;  %v1498_v41 = vsel %vm1446_vm2, %v11052_v40, 0.0  ;;  %9709 = vrsqrt.f32 %v11175_v19  ;;  %v4071_v13 = vmul.f32 0.015625, %v3957_v56  ;;  %v11223_v56 = vld [vmem:[%s17407_s6] ss:$0 sm:$0xff] }
 0x1b4   : > { %v4716_v59 = vsel %vm4651_vm7, %v4619_v35, %v4684_v45  ;;  %1499 = vadd.xlane.f32.xlu0 %v1498_v41  ;;  %v1709_v21 = vmul.f32 0.010416667, %v1595_v50  ;;  %v1623_v25 = vsel %vm1446_vm2, %v1559_v51, 0.0  ;;  %v11208_v55 = vmul.f32 0.015625, %v3829_v3 }
 0x1b5   : > { %9130 = vmatmul.msk.f32.gmra.mxu3 %vm3808_vm3, %v4716_v59  ;;  %v1902_v44 = vsel %vm1901_vm8, %v11048_v54, %v1898_v23  ;;  %v4620_v20 = vadd.f32 %v10916_v24, %v4584_v32  ;;  %v4266_v10 = vmul.f32 %v11192_v6, %v11143_v16  ;;  %1624 = vadd.xlane.f32.xlu1 %v1623_v25  ;;  %v1907_v8 = vsub.f32 1.5, %v1906_v39  ;;  %v11247_v59 = vpop.f32.mrf.mxu0 }
 0x1b6   : > { %v2186_v22 = vmul.f32 %v1902_v44, %v1802_v28  ;;  %v11214_v57 = vpop.eup %9707  ;;  %v4103_v35 = vmul.f32 %v11208_v55, %v11208_v55  ;;  %v11220_v38 = vadd.f32 %v11184_v15, %v11034_v34  ;;  %v11227_v54 = vadd.f32 %v11223_v56, %v11056_v2 }
 0x1b7   : > { %v1773_v23 = vsub.f32 %v1709_v21, %v1741_v12  ;;  %v1504_v28 = vsel %vm1446_vm2, %v11188_v60, 0.0  ;;  %v1803_v53 = vsub.f32 %v10612_v36, %v11018_v31  ;;  %vm4652_vm9 = vcmp.ge.f32.partialorder %v4620_v20, 0.0 }
 0x1b8   : > { %17452 = vst [vmem:[#allocation55_spill] sm:$0xff] %v11220_v38  ;;  %v4135_v3 = vsub.f32 %v4071_v13, %v4103_v35  ;;  %v2222_v45 = vmul.f32 %v10979_v46, %v2186_v22  ;;  %vm1910_vm10 = vweird.f32 %v11119_v9  ;;  %v4267_v2 = vmul.f32 %v11192_v6, %v4266_v10  ;;  %v11249_v13 = vpop.f32.mrf.mxu2 }
 0x1b9   : > { %17453 = vst [vmem:[#allocation56_spill] sm:$0xff] %v11227_v54  ;;  %v1470_v50 = vpop.xlane.xlu2 %1469  ;;  %v11234_v33 = vpop.eup %9709  ;;  %v1914_v39 = vmul.f32 %v11214_v57, %v11164_v58  ;;  %v4685_v12 = vmul.f32 %v10864_v11, %v4620_v20  ;;  %v1908_v51 = vmul.f32 %v11119_v9, %v1907_v8  ;;  %v3860_v31 = vsel %vm3808_vm3, %v11227_v54, 0.0 }
 0x1ba   : > { %v3832_v32 = vpop.xlane.xlu1 %3831  ;;  %v1598_v34 = vpop.xlane.xlu0 %1597  ;;  %v11242_v41 = vadd.f32 1e-05, %v4135_v3  ;;  %v2258_v36 = vadd.f32 %v11013_v47, %v2222_v45  ;;  %1505 = vadd.xlane.f32.xlu2 %v1504_v28  ;;  %v11253_v21 = vadd.f32 %v11184_v15, %v11170_v7  ;;  %v11255_v25 = vadd.f32 1e-05, %v1773_v23 }
 0x1bb   : > { %v4717_v44 = vsel %vm4652_vm9, %v4620_v20, %v4685_v12  ;;  %v3922_v10 = vmul.f32 %v11227_v54, %v11227_v54  ;;  %vm1909_vm1 = vweird.f32 %v11067_v5  ;;  %v4276_v22 = vmul.f32 %v11234_v33, %v11175_v19 }
 0x1bc   : > { %17454 = vst [vmem:[#allocation57_spill] sm:$0xff] %v11253_v21  ;;  %9711 = vrsqrt.f32 %v11242_v41  ;;  %vm2290_vm11 = vcmp.ge.f32.partialorder %v2258_v36, 0.0  ;;  %v4268_v8 = vmul.f32 0.5, %v4267_v2  ;;  %v1915_v7 = vmul.f32 %v11214_v57, %v1914_v39  ;;  %vm11272_vm12 = vmor %vm1909_vm1, %vm1910_vm10 }
 0x1bd   : > { %9131 = vmatmul.msk.f32.gmra.mxu3 %vm3808_vm3, %v4717_v44  ;;  %v2323_v35 = vmul.f32 %v11031_v27, %v2258_v36  ;;  %3861 = vadd.xlane.f32.xlu1 %v3860_v31  ;;  %v3988_v20 = vsel %vm3808_vm3, %v3922_v10, 0.0  ;;  %v11278_v28 = vadd.f32 %v11223_v56, %v11130_v52  ;;  %v11280_v3 = vmul.f32 0.010416667, %v1470_v50 }
 0x1be   : > { %3989 = vadd.xlane.f32.xlu0 %v3988_v20  ;;  %v1710_v45 = vmul.f32 0.010416667, %v1598_v34  ;;  %9713 = vrsqrt.f32 %v11255_v25  ;;  %v1912_v39 = vsel %vm11272_vm12, %v11119_v9, %v1908_v51  ;;  %v1563_v12 = vmul.f32 %v11253_v21, %v11253_v21 }
 0x1bf   : > { %17457 = vst [vmem:[#allocation58_spill] sm:$0xff] %v11278_v28  ;;  %v2355_v2 = vsel %vm2290_vm11, %v2258_v36, %v2323_v35  ;;  %v4277_v34 = vmul.f32 %v11234_v33, %v4276_v22  ;;  %v1742_v36 = vmul.f32 %v11280_v3, %v11280_v3  ;;  %v4269_v9 = vsub.f32 1.5, %v4268_v8 }
 0x1c0   : > { %9067 = vmatmul.msk.f32.gmra.mxu1 %vm1446_vm2, %v2355_v2  ;;  %v1916_v51 = vmul.f32 0.5, %v1915_v7  ;;  %v2187_v35 = vmul.f32 %v1912_v39, %v1803_v53  ;;  %v1635_v20 = vsel %vm1446_vm2, %v1563_v12, 0.0  ;;  %v11299_v23 = vmul.f32 0.015625, %v3832_v32  ;;  %v1416_v12 = vpop.f32.mrf.mxu0 }
 0x1c1   : > { %v3835_v31 = vpop.xlane.xlu2 %3834  ;;  %v1774_v52 = vsub.f32 %v1710_v45, %v1742_v36  ;;  %v1501_v22 = vsel %vm1446_vm2, %v11220_v38, 0.0  ;;  %v1561_v2 = vmul.f32 %v11220_v38, %v11220_v38  ;;  %vm4271_vm13 = vweird.f32 %v11143_v16  ;;  %v11315_v36 = vpop.f32.mrf.mxu2 }
 0x1c2   : > { %v1473_v44 = vpop.xlane.xlu1 %1472  ;;  %v3960_v10 = vpop.xlane.xlu0 %3959  ;;  %1636 = vadd.xlane.f32.xlu2 %v1635_v20  ;;  %v2223_v7 = vmul.f32 %v10979_v46, %v2187_v35  ;;  %vm4272_vm14 = vweird.f32 %v11192_v6  ;;  %v4278_v32 = vmul.f32 0.5, %v4277_v34  ;;  %v4270_v50 = vmul.f32 %v11192_v6, %v4269_v9 }
 0x1c3   : > { %v11297_v5 = vpop.eup %9711  ;;  %v11312_v45 = vadd.f32 1e-05, %v1774_v52  ;;  %v1629_v39 = vsel %vm1446_vm2, %v1561_v2, 0.0  ;;  %v1917_v8 = vsub.f32 1.5, %v1916_v51  ;;  %vm1919_vm15 = vweird.f32 %v11164_v58  ;;  %vm4273_vm5 = vmor %vm4271_vm13, %vm4272_vm14 }
 0x1c4   : > { %v4286_v53 = vmul.f32 %v11297_v5, %v11242_v41  ;;  %v11317_v20 = vpop.eup %9713  ;;  %v2259_v35 = vadd.f32 %v11013_v47, %v2223_v7  ;;  %v4104_v52 = vmul.f32 %v11299_v23, %v11299_v23  ;;  %v11327_v34 = vadd.f32 %v11184_v15, %v1416_v12 }
 0x1c5   : > { %1502 = vadd.xlane.f32.xlu1 %v1501_v22  ;;  %9715 = vrsqrt.f32 %v11312_v45  ;;  %v4072_v2 = vmul.f32 0.015625, %v3960_v10  ;;  %v11330_v51 = vmul.f32 0.010416667, %v1473_v44  ;;  %vm1920_vm6 = vweird.f32 %v11214_v57 }
 0x1c6   : > { %v4287_v38 = vmul.f32 %v11297_v5, %v4286_v53  ;;  %1630 = vadd.xlane.f32.xlu0 %v1629_v39  ;;  %17458 = vst [vmem:[#allocation59_spill] sm:$0xff] %v11327_v34  ;;  %vm2291_vm4 = vcmp.ge.f32.partialorder %v2259_v35, 0.0  ;;  %v2324_v9 = vmul.f32 %v11031_v27, %v2259_v35  ;;  %v4279_v22 = vsub.f32 1.5, %v4278_v32  ;;  %vm11375_vm9 = vmor %vm1919_vm15, %vm1920_vm6 }
 0x1c7   : > { %vm4281_vm7 = vweird.f32 %v11175_v19  ;;  %v11340_v10 = vmul.f32 0.015625, %v3835_v31  ;;  %v4136_v12 = vsub.f32 %v4072_v2, %v4104_v52  ;;  %v4274_v26 = vsel %vm4273_vm5, %v11192_v6, %v4270_v50 }
 0x1c8   : > { %v4288_v54 = vmul.f32 0.5, %v4287_v38  ;;  %v1924_v38 = vmul.f32 %v11317_v20, %v11255_v25  ;;  %v2356_v39 = vsel %vm2291_vm4, %v2259_v35, %v2324_v9  ;;  %v17459_v16 = vsub.f32 %v10617_v37, %v11054_v1 }
 0x1c9   : > { %v1601_v53 = vpop.xlane.xlu2 %1600  ;;  %9068 = vmatmul.msk.f32.gmra.mxu1 %vm1446_vm2, %v2356_v39  ;;  %v1513_v32 = vsel %vm1446_vm2, %v11327_v34, 0.0  ;;  %v3863_v29 = vsel %vm3808_vm3, %v11278_v28, 0.0  ;;  %v3923_v31 = vmul.f32 %v11278_v28, %v11278_v28  ;;  %v4105_v6 = vmul.f32 %v11340_v10, %v11340_v10 }
 0x1ca   : > { %v3963_v40 = vpop.xlane.xlu1 %3962  ;;  %v3838_v7 = vpop.xlane.xlu0 %3837  ;;  %v4289_v44 = vsub.f32 1.5, %v4288_v54  ;;  %v4549_v42 = vmul.f32 %v4274_v26, %v17459_v16  ;;  %v1918_v54 = vmul.f32 %v11214_v57, %v1917_v8  ;;  %v1743_v50 = vmul.f32 %v11330_v51, %v11330_v51  ;;  %1514 = vadd.xlane.f32.xlu2 %v1513_v32 }
 0x1cb   : > { %v11358_v35 = vadd.f32 1e-05, %v4136_v12  ;;  %v11360_v37 = vpop.eup %9715  ;;  %v3991_v1 = vsel %vm3808_vm3, %v3923_v31, 0.0  ;;  %v1711_v52 = vmul.f32 0.010416667, %v1601_v53  ;;  %v4073_v2 = vmul.f32 0.015625, %v3963_v40 }
 0x1cc   : > { %v4585_v26 = vmul.f32 %v10893_v63, %v4549_v42  ;;  %v4280_v9 = vmul.f32 %v11234_v33, %v4279_v22  ;;  %vm4282_vm8 = vweird.f32 %v11234_v33  ;;  %v11368_v8 = vadd.f32 %v11223_v56, %v11181_v62  ;;  %v1419_v62 = vpop.f32.mrf.mxu0  ;;  %v11382_v22 = vpop.f32.mrf.mxu2 }
 0x1cd   : > { %v1925_v39 = vmul.f32 %v11317_v20, %v1924_v38  ;;  %3864 = vadd.xlane.f32.xlu1 %v3863_v29  ;;  %v4290_v40 = vmul.f32 %v11297_v5, %v4289_v44  ;;  %vm4292_vm10 = vweird.f32 %v11297_v5  ;;  %v1775_v38 = vsub.f32 %v1711_v52, %v1743_v50  ;;  %vm11401_vm11 = vmor %vm4281_vm7, %vm4282_vm8 }
 0x1ce   : > { %17460 = vst [vmem:[#allocation60_spill] sm:$0xff] %v11368_v8  ;;  %v4621_v53 = vadd.f32 %v10916_v24, %v4585_v26  ;;  %3992 = vadd.xlane.f32.xlu0 %v3991_v1  ;;  %v1934_v29 = vmul.f32 %v11360_v37, %v11312_v45  ;;  %9717 = vrsqrt.f32 %v11358_v35  ;;  %v4137_v58 = vsub.f32 %v4073_v2, %v4105_v6 }
 0x1cf   : > { %v1922_v12 = vsel %vm11375_vm9, %v11214_v57, %v1918_v54  ;;  %v4167_v32 = vsub.f32 %v10656_v4, %v11208_v55  ;;  %v11393_v26 = vadd.f32 1e-05, %v1775_v38  ;;  %vm4291_vm12 = vweird.f32 %v11242_v41 }
 0x1d0   : > { %vm4653_vm1 = vcmp.ge.f32.partialorder %v4621_v53, 0.0  ;;  %v4686_v31 = vmul.f32 %v10864_v11, %v4621_v53  ;;  %v11408_v4 = vadd.f32 %v11184_v15, %v11247_v59  ;;  %v11411_v55 = vadd.f32 %v11184_v15, %v1419_v62  ;;  %vm11417_vm13 = vmor %vm4291_vm12, %vm4292_vm10 }
 0x1d1   : > { %v3966_v44 = vpop.xlane.xlu2 %3965  ;;  %v11413_v57 = vadd.f32 1e-05, %v4137_v58  ;;  %v1926_v54 = vmul.f32 0.5, %v1925_v39  ;;  %v11421_v52 = vmul.f32 0.015625, %v3838_v7  ;;  %v17469_v41 = vsub.f32 %v10631_v48, %v11112_v43 }
 0x1d2   : > { %v1476_v16 = vpop.xlane.xlu1 %1475  ;;  %v11395_v50 = vpop.xlane.xlu0 %1603  ;;  %17465 = vst [vmem:[#allocation61_spill] sm:$0xff] %v11408_v4  ;;  %v4718_v1 = vsel %vm4653_vm1, %v4621_v53, %v4686_v31  ;;  %v4294_v2 = vsel %vm11417_vm13, %v11297_v5, %v4290_v40  ;;  %v11431_v39 = vadd.f32 %v11223_v56, %v11249_v13  ;;  %v1935_v42 = vmul.f32 %v11360_v37, %v1934_v29 }
 0x1d3   : > { %17466 = vst [vmem:[#allocation62_spill] sm:$0xff] %v11411_v55  ;;  %v2188_v59 = vmul.f32 %v1922_v12, %v17469_v41  ;;  %9132 = vmatmul.msk.f32.gmra.mxu3 %vm3808_vm3, %v4718_v1  ;;  %v4284_v7 = vsel %vm11401_vm11, %v11234_v33, %v4280_v9  ;;  %vm1929_vm14 = vweird.f32 %v11255_v25  ;;  %9719 = vrsqrt.f32 %v11393_v26 }
 0x1d4   : > { %17470 = vst [vmem:[#allocation63_spill] sm:$0xff] %v11431_v39  ;;  %v4106_v48 = vmul.f32 %v11421_v52, %v11421_v52  ;;  %v17471_v13 = vsub.f32 %v10634_v49, %v11108_v14  ;;  %v11446_v40 = vpop.eup %9717  ;;  %9721 = vrsqrt.f32 %v11413_v57  ;;  %v1566_v33 = vmul.f32 %v11411_v55, %v11411_v55  ;;  %v3781_v41 = vpop.f32.mrf.mxu2 }
 0x1d5   : > { %v2224_v43 = vmul.f32 %v10979_v46, %v2188_v59  ;;  %v3866_v9 = vsel %vm3808_vm3, %v11368_v8, 0.0  ;;  %v3924_v53 = vmul.f32 %v11368_v8, %v11368_v8  ;;  %v1927_v62 = vsub.f32 1.5, %v1926_v54 }
 0x1d6   : > { %v4550_v5 = vmul.f32 %v4284_v7, %v17471_v13  ;;  %v4551_v38 = vmul.f32 %v4294_v2, %v4167_v32  ;;  %3867 = vadd.xlane.f32.xlu1 %v3866_v9  ;;  %v1644_v14 = vsel %vm1446_vm2, %v1566_v33, 0.0  ;;  %v4074_v12 = vmul.f32 0.015625, %v3966_v44 }
 0x1d7   : > { %v2260_v29 = vadd.f32 %v11013_v47, %v2224_v43  ;;  %v3994_v58 = vsel %vm3808_vm3, %v3924_v53, 0.0  ;;  %v11459_v31 = vmul.f32 0.010416667, %v1476_v16  ;;  %v4296_v54 = vmul.f32 %v11446_v40, %v11358_v35  ;;  %1645 = vadd.xlane.f32.xlu2 %v1644_v14 }
 0x1d8   : > { %v4586_v49 = vmul.f32 %v10893_v63, %v4550_v5  ;;  %3995 = vadd.xlane.f32.xlu0 %v3994_v58  ;;  %vm1930_vm4 = vweird.f32 %v11317_v20  ;;  %v1936_v16 = vmul.f32 0.5, %v1935_v42  ;;  %v4138_v2 = vsub.f32 %v4074_v12, %v4106_v48 }
 0x1d9   : > { %v11461_v6 = vpop.xlane.xlu2 %1478  ;;  %vm2292_vm15 = vcmp.ge.f32.partialorder %v2260_v29, 0.0  ;;  %v2325_v32 = vmul.f32 %v11031_v27, %v2260_v29  ;;  %v11472_v7 = vpop.eup %9719  ;;  %v1928_v43 = vmul.f32 %v11317_v20, %v1927_v62  ;;  %v4587_v13 = vmul.f32 %v10893_v63, %v4551_v38  ;;  %vm1931_vm6 = vmor %vm1929_vm14, %vm1930_vm4 }
 0x1da   : > { %v11463_v19 = vpop.xlane.xlu1 %3840  ;;  %v4622_v1 = vadd.f32 %v10916_v24, %v4586_v49  ;;  %v3969_v59 = vpop.xlane.xlu0 %3968  ;;  %v1744_v33 = vmul.f32 %v11459_v31, %v11459_v31  ;;  %v11483_v42 = vadd.f32 %v11223_v56, %v3781_v41  ;;  %v11485_v48 = vadd.f32 1e-05, %v4138_v2 }
 0x1db   : > { %v2357_v5 = vsel %vm2292_vm15, %v2260_v29, %v2325_v32  ;;  %v11478_v9 = vpop.eup %9721  ;;  %v11491_v63 = vadd.f32 %v11223_v56, %v11315_v36  ;;  %v4297_v38 = vmul.f32 %v11446_v40, %v4296_v54  ;;  %v1712_v29 = vmul.f32 0.010416667, %v11395_v50  ;;  %v11495_v49 = vpop.f32.mrf.mxu0 }
 0x1dc   : > { %9069 = vmatmul.msk.f32.gmra.mxu1 %vm1446_vm2, %v2357_v5  ;;  %vm4654_vm5 = vcmp.ge.f32.partialorder %v4622_v1, 0.0  ;;  %v4687_v53 = vmul.f32 %v10864_v11, %v4622_v1  ;;  %17472 = vst [vmem:[#allocation64_spill] sm:$0xff] %v11483_v42  ;;  %v1937_v14 = vsub.f32 1.5, %v1936_v16  ;;  %v1944_v58 = vmul.f32 %v11472_v7, %v11393_v26 }
 0x1dd   : > { %17473 = vst [vmem:[#allocation65_spill] sm:$0xff] %v11491_v63  ;;  %9723 = vrsqrt.f32 %v11485_v48  ;;  %v4306_v36 = vmul.f32 %v11478_v9, %v11413_v57  ;;  %v1776_v50 = vsub.f32 %v1712_v29, %v1744_v33  ;;  %v1932_v54 = vsel %vm1931_vm6, %v11317_v20, %v1928_v43 }
 0x1de   : > { %v4719_v12 = vsel %vm4654_vm5, %v4622_v1, %v4687_v53  ;;  %v4623_v32 = vadd.f32 %v10916_v24, %v4587_v13  ;;  %vm1939_vm7 = vweird.f32 %v11312_v45  ;;  %v17474_v25 = vsub.f32 %v10650_v61, %v11179_v0 }
 0x1df   : > { %9133 = vmatmul.msk.f32.gmra.mxu3 %vm3808_vm3, %v4719_v12  ;;  %v3928_v1 = vmul.f32 %v11483_v42, %v11483_v42  ;;  %v1562_v16 = vmul.f32 %v11188_v60, %v11188_v60  ;;  %v4298_v33 = vmul.f32 0.5, %v4297_v38  ;;  %v11519_v53 = vadd.f32 1e-05, %v1776_v50 }
 0x1e0   : > { %v2189_v41 = vmul.f32 %v1932_v54, %v17474_v25  ;;  %vm4655_vm8 = vcmp.ge.f32.partialorder %v4623_v32, 0.0  ;;  %v4688_v24 = vmul.f32 %v10864_v11, %v4623_v32  ;;  %v1945_v61 = vmul.f32 %v11472_v7, %v1944_v58 }
 0x1e1   : > { %v11517_v2 = vpop.xlane.xlu2 %3843  ;;  %v4006_v43 = vsel %vm3808_vm3, %v3928_v1, 0.0  ;;  %v1632_v13 = vsel %vm1446_vm2, %v1562_v16, 0.0  ;;  %v1938_v29 = vmul.f32 %v11360_v37, %v1937_v14  ;;  %vm1940_vm9 = vweird.f32 %v11360_v37  ;;  %v3784_v14 = vpop.f32.mrf.mxu2 }
 0x1e2   : > { %v1607_v5 = vpop.xlane.xlu1 %1606  ;;  %v11522_v20 = vpop.xlane.xlu0 %1481  ;;  %v2225_v0 = vmul.f32 %v10979_v46, %v2189_v41  ;;  %v4307_v38 = vmul.f32 %v11478_v9, %v4306_v36  ;;  %9725 = vrsqrt.f32 %v11519_v53  ;;  %4007 = vadd.xlane.f32.xlu2 %v4006_v43  ;;  %1633 = vadd.xlane.f32.xlu1 %v1632_v13  ;;  %v4720_v50 = vsel %vm4655_vm8, %v4623_v32, %v4688_v24  ;;  %v17475_v36 = vld [vmem:[#allocation36_spill] sm:$0xff]  ;;  %vm11553_vm1 = vmor %vm1939_vm7, %vm1940_vm9 }
 0x1e3   : > { %v11532_v12 = vpop.eup %9723  ;;  %v1507_v54 = vsel %vm1446_vm2, %v11253_v21, 0.0  ;;  %v11538_v25 = vmul.f32 0.015625, %v11463_v19  ;;  %v4075_v43 = vmul.f32 0.015625, %v3969_v59  ;;  %v11546_v32 = vmul.f32 0.5, %v1945_v61 }
 0x1e4   : > { %v2261_v58 = vadd.f32 %v11013_v47, %v2225_v0  ;;  %v4316_v16 = vmul.f32 %v11532_v12, %v11485_v48  ;;  %1508 = vadd.xlane.f32.xlu0 %v1507_v54  ;;  %v4299_v0 = vsub.f32 1.5, %v4298_v33  ;;  %v11557_v13 = vmul.f32 0.5, %v4307_v38  ;;  %v1425_v54 = vpop.f32.mrf.mxu0 }
 0x1e5   : > { %v11561_v59 = vmul.f32 0.010416667, %v11461_v6  ;;  %v4107_v33 = vmul.f32 %v11538_v25, %v11538_v25  ;;  %v11566_v61 = vadd.f32 %v11223_v56, %v3784_v14  ;;  %v1942_v45 = vsel %vm11553_vm1, %v11360_v37, %v1938_v29 }
 0x1e6   : > { %vm2293_vm10 = vcmp.ge.f32.partialorder %v2261_v58, 0.0  ;;  %v2326_v24 = vmul.f32 %v11031_v27, %v2261_v58  ;;  %v3869_v38 = vsel %vm3808_vm3, %v11431_v39, 0.0  ;;  %v4317_v44 = vmul.f32 %v11532_v12, %v4316_v16 }
 0x1e7   : > { %9134 = vmatmul.msk.f32.gmra.mxu3 %vm3808_vm3, %v4720_v50  ;;  %17478 = vst [vmem:[#allocation36_spill] sm:$0xff] %v11566_v61  ;;  %v3925_v50 = vmul.f32 %v11431_v39, %v11431_v39  ;;  %v4139_v14 = vsub.f32 %v4075_v43, %v4107_v33  ;;  %v3881_v37 = vsel %vm3808_vm3, %v11566_v61, 0.0  ;;  %vm4302_vm11 = vweird.f32 %v11446_v40 }
 0x1e8   : > { %v2358_v41 = vsel %vm2293_vm10, %v2261_v58, %v2326_v24  ;;  %v11575_v62 = vpop.eup %9725  ;;  %v17479_v58 = vsub.f32 %v10674_v17, %v11280_v3  ;;  %v1745_v16 = vmul.f32 %v11561_v59, %v11561_v59  ;;  %v4300_v43 = vmul.f32 %v11446_v40, %v4299_v0 }
 0x1e9   : > { %v1610_v6 = vpop.xlane.xlu2 %1609  ;;  %9070 = vmatmul.msk.f32.gmra.mxu1 %vm1446_vm2, %v2358_v41  ;;  %v1954_v19 = vmul.f32 %v11575_v62, %v11519_v53  ;;  %v3997_v41 = vsel %vm3808_vm3, %v3925_v50, 0.0  ;;  %v11593_v33 = vadd.f32 1e-05, %v4139_v14  ;;  %v1713_v3 = vmul.f32 0.010416667, %v1607_v5 }
 0x1ea   : > { %v3972_v1 = vpop.xlane.xlu1 %3971  ;;  %v2190_v24 = vmul.f32 %v1942_v45, %v17479_v58  ;;  %v11584_v29 = vpop.xlane.xlu0 %3846  ;;  %3882 = vadd.xlane.f32.xlu2 %v3881_v37  ;;  %3870 = vadd.xlane.f32.xlu1 %v3869_v38  ;;  %vm4301_vm12 = vweird.f32 %v11358_v35  ;;  %v1947_v45 = vsub.f32 1.5, %v11546_v32  ;;  %vm1949_vm13 = vweird.f32 %v11393_v26 }
 0x1eb   : > { %vm1950_vm14 = vweird.f32 %v11472_v7  ;;  %v4309_v58 = vsub.f32 1.5, %v11557_v13  ;;  %v11601_v50 = vmul.f32 0.5, %v4317_v44  ;;  %9727 = vrsqrt.f32 %v11593_v33  ;;  %vm4303_vm15 = vmor %vm4301_vm12, %vm4302_vm11 }
 0x1ec   : > { %v2226_v17 = vmul.f32 %v10979_v46, %v2190_v24  ;;  %3998 = vadd.xlane.f32.xlu0 %v3997_v41  ;;  %v1955_v46 = vmul.f32 %v11575_v62, %v1954_v19  ;;  %v11609_v35 = vmul.f32 0.015625, %v11517_v2  ;;  %v1777_v5 = vsub.f32 %v1713_v3, %v1745_v16  ;;  %v11644_v3 = vld [vmem:[%s17405_s12] ss:$0 sm:$0xff]  ;;  %vm1951_vm7 = vmor %vm1949_vm13, %vm1950_vm14 }
 0x1ed   : > { %v11612_v32 = vmul.f32 0.010416667, %v11522_v20  ;;  %v11616_v13 = vadd.f32 %v11184_v15, %v1425_v54  ;;  %v17481_v14 = vsub.f32 %v10677_v18, %v11299_v23  ;;  %v1510_v24 = vsel %vm1446_vm2, %v11408_v4, 0.0 }
 0x1ee   : > { %v2262_v0 = vadd.f32 %v11013_v47, %v2226_v17  ;;  %v4304_v47 = vsel %vm4303_vm15, %v11446_v40, %v4300_v43  ;;  %v4108_v38 = vmul.f32 %v11609_v35, %v11609_v35  ;;  %v11632_v40 = vadd.f32 1e-05, %v1777_v5  ;;  %v1428_v43 = vpop.f32.mrf.mxu0 }
 0x1ef   : > { %17480 = vst [vmem:[#allocation66_spill] sm:$0xff] %v11616_v13  ;;  %v1746_v2 = vmul.f32 %v11612_v32, %v11612_v32  ;;  %v4552_v20 = vmul.f32 %v4304_v47, %v17481_v14  ;;  %v1522_v16 = vsel %vm1446_vm2, %v11616_v13, 0.0  ;;  %v1564_v41 = vmul.f32 %v11408_v4, %v11408_v4  ;;  %v11651_v14 = vpop.f32.mrf.mxu2 }
 0x1f0   : > { %vm2294_vm4 = vcmp.ge.f32.partialorder %v2262_v0, 0.0  ;;  %v2327_v44 = vmul.f32 %v11031_v27, %v2262_v0  ;;  %v1948_v18 = vmul.f32 %v11472_v7, %v1947_v45  ;;  %vm4312_vm5 = vweird.f32 %v11478_v9 }
 0x1f1   : > { %v11628_v37 = vpop.xlane.xlu2 %3974  ;;  %v1956_v23 = vmul.f32 0.5, %v1955_v46  ;;  %v11647_v5 = vpop.eup %9727  ;;  %v1638_v47 = vsel %vm1446_vm2, %v1564_v41, 0.0  ;;  %v1714_v45 = vmul.f32 0.010416667, %v1610_v6  ;;  %v4076_v4 = vmul.f32 0.015625, %v3972_v1 }
 0x1f2   : > { %v11630_v54 = vpop.xlane.xlu1 %1484  ;;  %v2359_v19 = vsel %vm2294_vm4, %v2262_v0, %v2327_v44  ;;  %v11638_v17 = vpop.xlane.xlu0 %1612  ;;  %v4588_v0 = vmul.f32 %v11644_v3, %v4552_v20  ;;  %v4310_v44 = vmul.f32 %v11478_v9, %v4309_v58  ;;  %1523 = vadd.xlane.f32.xlu2 %v1522_v16  ;;  %1511 = vadd.xlane.f32.xlu1 %v1510_v24  ;;  %vm4311_vm6 = vweird.f32 %v11413_v57 }
 0x1f3   : > { %9071 = vmatmul.msk.f32.gmra.mxu1 %vm1446_vm2, %v2359_v19  ;;  %v4319_v46 = vsub.f32 1.5, %v11601_v50  ;;  %v11656_v19 = vld [vmem:[%s10259_s20] ss:$0 sm:$0xff]  ;;  %v11660_v39 = vadd.f32 %v11184_v15, %v1428_v43  ;;  %v4326_v6 = vmul.f32 %v11647_v5, %v11593_v33  ;;  %9729 = vrsqrt.f32 %v11632_v40  ;;  %vm4313_vm8 = vmor %vm4311_vm6, %vm4312_vm5 }
 0x1f4   : > { %v4624_v20 = vadd.f32 %v11656_v19, %v4588_v0  ;;  %1639 = vadd.xlane.f32.xlu0 %v1638_v47  ;;  %v1778_v57 = vsub.f32 %v1714_v45, %v1746_v2  ;;  %v4140_v1 = vsub.f32 %v4076_v4, %v4108_v38  ;;  %v1957_v58 = vsub.f32 1.5, %v1956_v23 }
 0x1f5   : > { %17482 = vst [vmem:[#allocation67_spill] sm:$0xff] %v11660_v39  ;;  %v1952_v24 = vsel %vm1951_vm7, %v11472_v7, %v1948_v18  ;;  %v17483_v41 = vsub.f32 %v17475_v36, %v11330_v51  ;;  %v4314_v4 = vsel %vm4313_vm8, %v11478_v9, %v4310_v44  ;;  %v11682_v2 = vmul.f32 0.015625, %v11584_v29 }
 0x1f6   : > { %vm4656_vm9 = vcmp.ge.f32.partialorder %v4624_v20, 0.0  ;;  %v4689_v50 = vmul.f32 %v10864_v11, %v4624_v20  ;;  %v11673_v16 = vadd.f32 1e-05, %v1778_v57  ;;  %v11675_v26 = vadd.f32 1e-05, %v4140_v1 }
 0x1f7   : > { %v2191_v43 = vmul.f32 %v1952_v24, %v17483_v41  ;;  %v17484_v23 = vsub.f32 %v10694_v30, %v11340_v10  ;;  %v1525_v7 = vsel %vm1446_vm2, %v11660_v39, 0.0  ;;  %v4327_v51 = vmul.f32 %v11647_v5, %v4326_v6  ;;  %v11703_v10 = vld [vmem:[%s10214_s29] ss:$0 sm:$0xff] }
 0x1f8   : > { %v4721_v38 = vsel %vm4656_vm9, %v4624_v20, %v4689_v50  ;;  %9731 = vrsqrt.f32 %v11673_v16  ;;  %vm4322_vm10 = vweird.f32 %v11532_v12  ;;  %v4109_v30 = vmul.f32 %v11682_v2, %v11682_v2  ;;  %v11717_v1 = vld [vmem:[%s17408_s3] ss:$0 sm:$0xff] }
 0x1f9   : > { %v4553_v0 = vmul.f32 %v4314_v4, %v17484_v23  ;;  %v11689_v18 = vpop.xlane.xlu2 %1487  ;;  %9135 = vmatmul.msk.f32.gmra.mxu3 %vm3808_vm3, %v4721_v38  ;;  %9733 = vrsqrt.f32 %v11675_v26  ;;  %v2227_v36 = vmul.f32 %v11703_v10, %v2191_v43  ;;  %v11706_v29 = vpop.eup %9729  ;;  %vm1960_vm1 = vweird.f32 %v11575_v62 }
 0x1fa   : > { %v11691_v47 = vpop.xlane.xlu1 %3849  ;;  %v11696_v9 = vpop.xlane.xlu0 %3977  ;;  %1526 = vadd.xlane.f32.xlu2 %v1525_v7  ;;  %v3872_v45 = vsel %vm3808_vm3, %v11491_v63, 0.0  ;;  %v3926_v20 = vmul.f32 %v11491_v63, %v11491_v63  ;;  %v4320_v6 = vmul.f32 %v11532_v12, %v4319_v46  ;;  %v1958_v57 = vmul.f32 %v11575_v62, %v1957_v58  ;;  %v17490_v63 = vld [vmem:[#allocation38_spill] sm:$0xff] }
 0x1fb   : > { %v4589_v44 = vmul.f32 %v11644_v3, %v4553_v0  ;;  %v2263_v50 = vadd.f32 %v11717_v1, %v2227_v36  ;;  %3873 = vadd.xlane.f32.xlu1 %v3872_v45  ;;  %v4077_v24 = vmul.f32 0.015625, %v11628_v37  ;;  %v11721_v41 = vmul.f32 0.5, %v4327_v51  ;;  %v3790_v38 = vpop.f32.mrf.mxu2 }
 0x1fc   : > { %v4000_v4 = vsel %vm3808_vm3, %v3926_v20, 0.0  ;;  %v11726_v23 = vmul.f32 0.010416667, %v11630_v54  ;;  %v1964_v46 = vmul.f32 %v11706_v29, %v11632_v40  ;;  %v1715_v36 = vmul.f32 0.010416667, %v11638_v17  ;;  %v17493_v17 = vld [vmem:[#allocation39_spill] sm:$0xff] }
 0x1fd   : > { %v4625_v43 = vadd.f32 %v11656_v19, %v4589_v44  ;;  %vm2295_vm11 = vcmp.ge.f32.partialorder %v2263_v50, 0.0  ;;  %v2328_v58 = vmul.f32 %v11031_v27, %v2263_v50  ;;  %4001 = vadd.xlane.f32.xlu0 %v4000_v4  ;;  %v4141_v0 = vsub.f32 %v4077_v24, %v4109_v30 }
 0x1fe   : > { %v11731_v7 = vpop.eup %9731  ;;  %v1747_v51 = vmul.f32 %v11726_v23, %v11726_v23  ;;  %vm4321_vm13 = vweird.f32 %v11485_v48  ;;  %v11743_v30 = vadd.f32 %v11223_v56, %v3790_v38  ;;  %v11749_v24 = vadd.f32 %v11223_v56, %v11382_v22  ;;  %v17489_v22 = vld [vmem:[#allocation37_spill] sm:$0xff] }
 0x1ff   : > { %vm4657_vm12 = vcmp.ge.f32.partialorder %v4625_v43, 0.0  ;;  %v4690_v37 = vmul.f32 %v10864_v11, %v4625_v43  ;;  %v11737_v54 = vpop.eup %9733  ;;  %v1974_v44 = vmul.f32 %v11731_v7, %v11673_v16  ;;  %v2360_v45 = vsel %vm2295_vm11, %v2263_v50, %v2328_v58  ;;  %vm11753_vm14 = vmor %vm4321_vm13, %vm4322_vm10 }
 0x200   : > { %17485 = vst [vmem:[#allocation68_spill] sm:$0xff] %v11743_v30  ;;  %vm1959_vm15 = vweird.f32 %v11519_v53  ;;  %9072 = vmatmul.msk.f32.gmra.mxu1 %vm1446_vm2, %v2360_v45  ;;  %v11759_v50 = vadd.f32 1e-05, %v4141_v0  ;;  %v4170_v58 = vsub.f32 %v17489_v22, %v11421_v52  ;;  %v1808_v21 = vsub.f32 %v17490_v63, %v11459_v31 }
 0x201   : > { %v11745_v20 = vpop.xlane.xlu2 %3852  ;;  %17486 = vst [vmem:[#allocation69_spill] sm:$0xff] %v11749_v24  ;;  %v4722_v48 = vsel %vm4657_vm12, %v4625_v43, %v4690_v37  ;;  %vm1961_vm4 = vmor %vm1959_vm15, %vm1960_vm1  ;;  %v4329_v53 = vsub.f32 1.5, %v11721_v41  ;;  %v1965_v45 = vmul.f32 %v11706_v29, %v1964_v46  ;;  %v4336_v43 = vmul.f32 %v11737_v54, %v11675_v26 }
 0x202   : > { %v11761_v4 = vpop.xlane.xlu1 %1615  ;;  %v11763_v38 = vpop.xlane.xlu0 %1490  ;;  %9136 = vmatmul.msk.f32.gmra.mxu3 %vm3808_vm3, %v4722_v48  ;;  %v1779_v0 = vsub.f32 %v1715_v36, %v1747_v51  ;;  %v4324_v52 = vsel %vm11753_vm14, %v11532_v12, %v4320_v6  ;;  %v1962_v37 = vsel %vm1961_vm4, %v11575_v62, %v1958_v57  ;;  %v1975_v31 = vmul.f32 %v11731_v7, %v1974_v44  ;;  %v17492_v57 = vld [vmem:[#allocation40_spill] sm:$0xff] }
 0x203   : > { %v4554_v63 = vmul.f32 %v4324_v52, %v4170_v58  ;;  %v2192_v22 = vmul.f32 %v1962_v37, %v1808_v21  ;;  %v3931_v41 = vmul.f32 %v11743_v30, %v11743_v30  ;;  %9735 = vrsqrt.f32 %v11759_v50 }
 0x204   : > { %v11784_v46 = vadd.f32 1e-05, %v1779_v0  ;;  %v3875_v51 = vsel %vm3808_vm3, %v11749_v24, 0.0  ;;  %v3927_v36 = vmul.f32 %v11749_v24, %v11749_v24  ;;  %v11792_v62 = vadd.f32 %v11184_v15, %v11495_v49 }
 0x205   : > { %v4590_v12 = vmul.f32 %v11644_v3, %v4554_v63  ;;  %v2228_v21 = vmul.f32 %v11703_v10, %v2192_v22  ;;  %v4015_v6 = vsel %vm3808_vm3, %v3931_v41, 0.0  ;;  %3876 = vadd.xlane.f32.xlu1 %v3875_v51  ;;  %v4171_v48 = vsub.f32 %v17493_v17, %v11538_v25  ;;  %v1431_v51 = vpop.f32.mrf.mxu0 }
 0x206   : > { %17491 = vst [vmem:[#allocation37_spill] sm:$0xff] %v11792_v62  ;;  %v1966_v58 = vmul.f32 0.5, %v1965_v45  ;;  %4016 = vadd.xlane.f32.xlu2 %v4015_v6  ;;  %v4003_v0 = vsel %vm3808_vm3, %v3927_v36, 0.0  ;;  %vm4332_vm5 = vweird.f32 %v11647_v5  ;;  %v4337_v49 = vmul.f32 %v11737_v54, %v4336_v43 }
 0x207   : > { %v4626_v52 = vadd.f32 %v11656_v19, %v4590_v12  ;;  %v2264_v37 = vadd.f32 %v11717_v1, %v2228_v21  ;;  %4004 = vadd.xlane.f32.xlu0 %v4003_v0  ;;  %v4330_v22 = vmul.f32 %v11647_v5, %v4329_v53  ;;  %v1976_v41 = vmul.f32 0.5, %v1975_v31 }
 0x208   : > { %9737 = vrsqrt.f32 %v11784_v46  ;;  %v11811_v25 = vmul.f32 0.015625, %v11691_v47  ;;  %vm4331_vm8 = vweird.f32 %v11593_v33  ;;  %v1967_v53 = vsub.f32 1.5, %v1966_v58 }
 0x209   : > { %v11806_v63 = vpop.xlane.xlu2 %1618  ;;  %vm4658_vm6 = vcmp.ge.f32.partialorder %v4626_v52, 0.0  ;;  %v4691_v45 = vmul.f32 %v10864_v11, %v4626_v52  ;;  %vm2296_vm7 = vcmp.ge.f32.partialorder %v2264_v37, 0.0  ;;  %v2329_v43 = vmul.f32 %v11031_v27, %v2264_v37  ;;  %v11817_v12 = vpop.eup %9735  ;;  %vm4333_vm10 = vmor %vm4331_vm8, %vm4332_vm5 }
 0x20a   : > { %v11815_v36 = vpop.xlane.xlu0 %3855  ;;  %vm1969_vm9 = vweird.f32 %v11632_v40  ;;  %v4110_v47 = vmul.f32 %v11811_v25, %v11811_v25  ;;  %v11823_v31 = vpop.xlane.xlu1 %3980  ;;  %v4338_v21 = vmul.f32 0.5, %v4337_v49  ;;  %v4078_v0 = vmul.f32 0.015625, %v11696_v9 }
 0x20b   : > { %v4723_v6 = vsel %vm4658_vm6, %v4626_v52, %v4691_v45  ;;  %v2361_v17 = vsel %vm2296_vm7, %v2264_v37, %v2329_v43  ;;  %v11831_v33 = vmul.f32 0.010416667, %v11689_v18  ;;  %v11834_v58 = vadd.f32 %v11184_v15, %v1431_v51  ;;  %v3793_v45 = vpop.f32.mrf.mxu2 }
 0x20c   : > { %9137 = vmatmul.msk.f32.gmra.mxu3 %vm3808_vm3, %v4723_v6  ;;  %9073 = vmatmul.msk.f32.gmra.mxu1 %vm1446_vm2, %v2361_v17  ;;  %v4334_v44 = vsel %vm4333_vm10, %v11647_v5, %v4330_v22  ;;  %v1565_v24 = vmul.f32 %v11327_v34, %v11327_v34  ;;  %v1977_v49 = vsub.f32 1.5, %v1976_v41  ;;  %v4346_v52 = vmul.f32 %v11817_v12, %v11759_v50 }
 0x20d   : > { %17494 = vst [vmem:[#allocation38_spill] sm:$0xff] %v11834_v58  ;;  %v4142_v9 = vsub.f32 %v4078_v0, %v4110_v47  ;;  %v4555_v37 = vmul.f32 %v4334_v44, %v4171_v48  ;;  %v1748_v18 = vmul.f32 %v11831_v33, %v11831_v33  ;;  %v1528_v15 = vsel %vm1446_vm2, %v11834_v58, 0.0 }
 0x20e   : > { %v11841_v43 = vpop.eup %9737  ;;  %v1641_v5 = vsel %vm1446_vm2, %v1565_v24, 0.0  ;;  %v1516_v22 = vsel %vm1446_vm2, %v11411_v55, 0.0  ;;  %vm1970_vm1 = vweird.f32 %v11706_v29  ;;  %vm1979_vm11 = vweird.f32 %v11673_v16  ;;  %1529 = vadd.xlane.f32.xlu2 %v1528_v15 }
 0x20f   : > { %v11852_v41 = vadd.f32 1e-05, %v4142_v9  ;;  %v4591_v44 = vmul.f32 %v11644_v3, %v4555_v37  ;;  %1642 = vadd.xlane.f32.xlu1 %v1641_v5  ;;  %v1968_v48 = vmul.f32 %v11706_v29, %v1967_v53  ;;  %vm1980_vm12 = vweird.f32 %v11731_v7  ;;  %1517 = vadd.xlane.f32.xlu0 %v1516_v22  ;;  %vm1971_vm14 = vmor %vm1969_vm9, %vm1970_vm1 }
 0x210   : > { %v1716_v24 = vmul.f32 0.010416667, %v11761_v4  ;;  %v11859_v51 = vadd.f32 %v11223_v56, %v3793_v45  ;;  %vm4342_vm13 = vweird.f32 %v11737_v54  ;;  %v1984_v47 = vmul.f32 %v11841_v43, %v11784_v46  ;;  %vm1981_vm4 = vmor %vm1979_vm11, %vm1980_vm12 }
 0x211   : > { %9739 = vrsqrt.f32 %v11852_v41  ;;  %v4627_v6 = vadd.f32 %v11656_v19, %v4591_v44  ;;  %v11866_v17 = vpop.xlane.xlu2 %3983  ;;  %v1978_v53 = vmul.f32 %v11731_v7, %v1977_v49  ;;  %v4339_v0 = vsub.f32 1.5, %v4338_v21 }
 0x212   : > { %17495 = vst [vmem:[#allocation40_spill] sm:$0xff] %v11859_v51  ;;  %v4347_v9 = vmul.f32 %v11817_v12, %v4346_v52  ;;  %v1780_v4 = vsub.f32 %v1716_v24, %v1748_v18  ;;  %v11876_v37 = vmul.f32 0.015625, %v11745_v20  ;;  %v11879_v45 = vmul.f32 0.010416667, %v11763_v38  ;;  %v11881_v15 = vpop.xlane.xlu0 %1621  ;;  %v11890_v18 = vpop.xlane.xlu1 %1493 }
 0x213   : > { %vm4659_vm15 = vcmp.ge.f32.partialorder %v4627_v6, 0.0  ;;  %v4692_v56 = vmul.f32 %v10864_v11, %v4627_v6  ;;  %v1972_v49 = vsel %vm1971_vm14, %v11706_v29, %v1968_v48  ;;  %v3890_v52 = vsel %vm3808_vm3, %v11859_v51, 0.0  ;;  %v1434_v24 = vpop.f32.mrf.mxu0 }
 0x214   : > { %v11883_v21 = vadd.f32 1e-05, %v1780_v4  ;;  %v3878_v40 = vsel %vm3808_vm3, %v11483_v42, 0.0  ;;  %v1985_v20 = vmul.f32 %v11841_v43, %v1984_v47  ;;  %v17496_v38 = vsub.f32 %v17492_v57, %v11561_v59 }
 0x215   : > { %v4724_v5 = vsel %vm4659_vm15, %v4627_v6, %v4692_v56  ;;  %v1567_v44 = vmul.f32 %v11792_v62, %v11792_v62  ;;  %v4340_v29 = vmul.f32 %v11737_v54, %v4339_v0  ;;  %v4111_v48 = vmul.f32 %v11876_v37, %v11876_v37  ;;  %v17497_v56 = vld [vmem:[#allocation42_spill] sm:$0xff] }
 0x216   : > { %v2193_v22 = vmul.f32 %v1972_v49, %v17496_v38  ;;  %9138 = vmatmul.msk.f32.gmra.mxu3 %vm3808_vm3, %v4724_v5  ;;  %v1749_v47 = vmul.f32 %v11879_v45, %v11879_v45  ;;  %v1717_v6 = vmul.f32 0.010416667, %v11806_v63  ;;  %9741 = vrsqrt.f32 %v11883_v21  ;;  %3891 = vadd.xlane.f32.xlu2 %v3890_v52  ;;  %v11919_v63 = vld [vmem:[%s10209_s25] ss:$0 sm:$0xff] }
 0x217   : > { %v11905_v4 = vpop.eup %9739  ;;  %3879 = vadd.xlane.f32.xlu1 %v3878_v40  ;;  %v1647_v57 = vsel %vm1446_vm2, %v1567_v44, 0.0  ;;  %v4079_v0 = vmul.f32 0.015625, %v11823_v31  ;;  %v1810_v49 = vsub.f32 %v17497_v56, %v11612_v32  ;;  %vm4341_vm5 = vweird.f32 %v11675_v26 }
 0x218   : > { %v2229_v59 = vmul.f32 %v11703_v10, %v2193_v22  ;;  %1648 = vadd.xlane.f32.xlu0 %v1647_v57  ;;  %v11922_v52 = vadd.f32 %v11919_v63, %v1434_v24  ;;  %v4348_v40 = vmul.f32 0.5, %v4347_v9  ;;  %v1986_v5 = vmul.f32 0.5, %v1985_v20  ;;  %vm11928_vm6 = vmor %vm4341_vm5, %vm4342_vm13 }
 0x219   : > { %v1982_v32 = vsel %vm1981_vm4, %v11731_v7, %v1978_v53  ;;  %v4356_v26 = vmul.f32 %v11905_v4, %v11852_v41  ;;  %v1781_v38 = vsub.f32 %v1717_v6, %v1749_v47  ;;  %v4143_v9 = vsub.f32 %v4079_v0, %v4111_v48  ;;  %v11938_v7 = vpop.xlane.xlu2 %1496  ;;  %v17500_v53 = vld [vmem:[#allocation41_spill] sm:$0xff] }
 0x21a   : > { %v2265_v31 = vadd.f32 %v11717_v1, %v2229_v59  ;;  %v2194_v22 = vmul.f32 %v1982_v32, %v1810_v49  ;;  %v4344_v20 = vsel %vm11928_vm6, %v11737_v54, %v4340_v29  ;;  %v4172_v24 = vsub.f32 %v17500_v53, %v11609_v35  ;;  %v11943_v59 = vld [vmem:[%s17407_s6] ss:$0 sm:$0xff]  ;;  %v11955_v0 = vpop.xlane.xlu0 %3986  ;;  %v11964_v32 = vpop.xlane.xlu1 %3858  ;;  %s17746_s6 = sld [smem:[#allocation10_spill]] }
 0x21b   : > { %v11947_v57 = vadd.f32 %v11943_v59, %v11651_v14  ;;  %vm4352_vm8 = vweird.f32 %v11817_v12  ;;  %v1531_v48 = vsel %vm1446_vm2, %v11922_v52, 0.0  ;;  %v4349_v6 = vsub.f32 1.5, %v4348_v40 }
 0x21c   : > { %vm2297_vm7 = vcmp.ge.f32.partialorder %v2265_v31, 0.0  ;;  %v2330_v44 = vmul.f32 %v11031_v27, %v2265_v31  ;;  %v11952_v47 = vpop.eup %9741  ;;  %v1987_v54 = vsub.f32 1.5, %v1986_v5  ;;  %vm1990_vm9 = vweird.f32 %v11841_v43 }
 0x21d   : > { %17501 = vst [vmem:[#allocation39_spill] sm:$0xff] %v11947_v57  ;;  %v11959_v35 = vmul.f32 0.015625, %v11815_v36  ;;  %v2230_v14 = vmul.f32 %v11703_v10, %v2194_v22  ;;  %v4556_v56 = vmul.f32 %v4344_v20, %v4172_v24  ;;  %v1519_v49 = vsel %vm1446_vm2, %v11792_v62, 0.0 }
 0x21e   : > { %v2362_v29 = vsel %vm2297_vm7, %v2265_v31, %v2330_v44  ;;  %v4357_v40 = vmul.f32 %v11905_v4, %v4356_v26  ;;  %v11967_v5 = vadd.f32 1e-05, %v1781_v38  ;;  %v11969_v31 = vadd.f32 1e-05, %v4143_v9  ;;  %1532 = vadd.xlane.f32.xlu2 %v1531_v48  ;;  %v11983_v9 = vpop.f32.mrf.mxu2 }
 0x21f   : > { %9074 = vmatmul.msk.f32.gmra.mxu1 %vm1446_vm2, %v2362_v29  ;;  %1520 = vadd.xlane.f32.xlu1 %v1519_v49  ;;  %v3929_v36 = vmul.f32 %v11566_v61, %v11566_v61  ;;  %v1994_v16 = vmul.f32 %v11952_v47, %v11883_v21  ;;  %v2266_v22 = vadd.f32 %v11717_v1, %v2230_v14  ;;  %v11978_v20 = vmul.f32 0.010416667, %v11890_v18 }
 0x220   : > { %v4592_v44 = vmul.f32 %v11644_v3, %v4556_v56  ;;  %v4112_v26 = vmul.f32 %v11959_v35, %v11959_v35  ;;  %v4080_v53 = vmul.f32 0.015625, %v11866_v17  ;;  %v1718_v24 = vmul.f32 0.010416667, %v11881_v15  ;;  %s14258_s8 = scalar_lea.vmem %s17746_s6, %s10445_s11  ;;  %s17762_s6 = sld [smem:[#allocation29_spill]] }
 0x221   : > { %v4009_v38 = vsel %vm3808_vm3, %v3929_v36, 0.0  ;;  %vm2298_vm10 = vcmp.ge.f32.partialorder %v2266_v22, 0.0  ;;  %v2331_v48 = vmul.f32 %v11031_v27, %v2266_v22  ;;  %v1750_v18 = vmul.f32 %v11978_v20, %v11978_v20  ;;  %v1437_v36 = vpop.f32.mrf.mxu0 }
 0x222   : > { %v4628_v29 = vadd.f32 %v11656_v19, %v4592_v44  ;;  %4010 = vadd.xlane.f32.xlu0 %v4009_v38  ;;  %v4350_v14 = vmul.f32 %v11817_v12, %v4349_v6  ;;  %v1988_v56 = vmul.f32 %v11841_v43, %v1987_v54  ;;  %v4358_v49 = vmul.f32 0.5, %v4357_v40  ;;  %v17502_v44 = vld [vmem:[#allocation43_spill] sm:$0xff]  ;;  %v17503_v54 = vld [vmem:[#allocation44_spill] sm:$0xff] }
 0x223   : > { %9743 = vrsqrt.f32 %v11967_v5  ;;  %v1995_v17 = vmul.f32 %v11952_v47, %v1994_v16  ;;  %v2363_v15 = vsel %vm2298_vm10, %v2266_v22, %v2331_v48  ;;  %v4173_v38 = vsub.f32 %v17502_v44, %v11682_v2  ;;  %v17504_v16 = vld [vmem:[#allocation46_spill] sm:$0xff] }
 0x224   : > { %9745 = vrsqrt.f32 %v11969_v31  ;;  %vm4660_vm1 = vcmp.ge.f32.partialorder %v4628_v29, 0.0  ;;  %vm4351_vm11 = vweird.f32 %v11759_v50  ;;  %v4693_v62 = vmul.f32 %v10864_v11, %v4628_v29  ;;  %v17505_v50 = vld [vmem:[#allocation45_spill] sm:$0xff] }
 0x225   : > { %v4144_v6 = vsub.f32 %v4080_v53, %v4112_v26  ;;  %v12000_v42 = vpop.xlane.xlu2 %1627  ;;  %vm4353_vm12 = vmor %vm4351_vm11, %vm4352_vm8  ;;  %v1811_v40 = vsub.f32 %v17503_v54, %v11726_v23  ;;  %vm1989_vm13 = vweird.f32 %v11784_v46  ;;  %v1782_v2 = vsub.f32 %v1718_v24, %v1750_v18 }
 0x226   : > { %vm1991_vm14 = vmor %vm1989_vm13, %vm1990_vm9  ;;  %v4725_v53 = vsel %vm4660_vm1, %v4628_v29, %v4693_v62  ;;  %v12015_v48 = vadd.f32 %v11919_v63, %v1437_v36  ;;  %v4354_v23 = vsel %vm4353_vm12, %v11817_v12, %v4350_v14  ;;  %v4359_v46 = vsub.f32 1.5, %v4358_v49  ;;  %v17507_v49 = vld [vmem:[#allocation48_spill] sm:$0xff]  ;;  %v17508_v36 = vld [vmem:[#allocation47_spill] sm:$0xff] }
 0x227   : > { %9075 = vmatmul.msk.f32.gmra.mxu1 %vm1446_vm2, %v2363_v15  ;;  %v12018_v44 = vpop.xlane.xlu0 %1499  ;;  %v1996_v54 = vmul.f32 0.5, %v1995_v17  ;;  %9139 = vmatmul.msk.f32.gmra.mxu3 %vm3808_vm3, %v4725_v53  ;;  %v4557_v15 = vmul.f32 %v4354_v23, %v4173_v38  ;;  %v1992_v24 = vsel %vm1991_vm14, %v11841_v43, %v1988_v56  ;;  %v12026_v26 = vadd.f32 1e-05, %v4144_v6  ;;  %v3799_v23 = vpop.f32.mrf.mxu2 }
 0x228   : > { %17506 = vst [vmem:[#allocation42_spill] sm:$0xff] %v12015_v48  ;;  %v12022_v18 = vpop.xlane.xlu1 %1624  ;;  %v2195_v62 = vmul.f32 %v1992_v24, %v1811_v40  ;;  %v1534_v29 = vsel %vm1446_vm2, %v12015_v48, 0.0  ;;  %v1568_v12 = vmul.f32 %v11616_v13, %v11616_v13  ;;  %vm4361_vm15 = vweird.f32 %v11852_v41 }
 0x229   : > { %v12024_v22 = vpop.eup %9743  ;;  %v12037_v56 = vadd.f32 1e-05, %v1782_v2  ;;  %v4593_v17 = vmul.f32 %v11644_v3, %v4557_v15  ;;  %1535 = vadd.xlane.f32.xlu2 %v1534_v29  ;;  %v3884_v53 = vsel %vm3808_vm3, %v11947_v57, 0.0  ;;  %v4360_v24 = vmul.f32 %v11905_v4, %v4359_v46 }
 0x22a   : > { %v12032_v14 = vpop.eup %9745  ;;  %v2231_v6 = vmul.f32 %v11703_v10, %v2195_v62  ;;  %v1650_v40 = vsel %vm1446_vm2, %v1568_v12, 0.0  ;;  %vm4362_vm4 = vweird.f32 %v11905_v4  ;;  %v2004_v2 = vmul.f32 %v12024_v22, %v11967_v5  ;;  %3885 = vadd.xlane.f32.xlu0 %v3884_v53  ;;  %v17510_v53 = vld [vmem:[#allocation49_spill] sm:$0xff] }
 0x22b   : > { %v4629_v15 = vadd.f32 %v11656_v19, %v4593_v17  ;;  %1651 = vadd.xlane.f32.xlu1 %v1650_v40  ;;  %v1997_v29 = vsub.f32 1.5, %v1996_v54  ;;  %v4366_v62 = vmul.f32 %v12032_v14, %v11969_v31  ;;  %9747 = vrsqrt.f32 %v12026_v26  ;;  %vm4363_vm8 = vmor %vm4361_vm15, %vm4362_vm4 }
 0x22c   : > { %v2267_v12 = vadd.f32 %v11717_v1, %v2231_v6  ;;  %9749 = vrsqrt.f32 %v12037_v56  ;;  %v12060_v38 = vadd.f32 %v11943_v59, %v3799_v23  ;;  %v12064_v17 = vmul.f32 0.015625, %v11964_v32 }
 0x22d   : > { %v12055_v43 = vpop.xlane.xlu2 %1505  ;;  %vm4661_vm5 = vcmp.ge.f32.partialorder %v4629_v15, 0.0  ;;  %v4694_v46 = vmul.f32 %v10864_v11, %v4629_v15  ;;  %v4081_v40 = vmul.f32 0.015625, %v11955_v0  ;;  %vm1999_vm7 = vweird.f32 %v11883_v21 }
 0x22e   : > { %17509 = vst [vmem:[#allocation41_spill] sm:$0xff] %v12060_v38  ;;  %vm2299_vm6 = vcmp.ge.f32.partialorder %v2267_v12, 0.0  ;;  %v2332_v54 = vmul.f32 %v11031_v27, %v2267_v12  ;;  %v2005_v6 = vmul.f32 %v12024_v22, %v2004_v2  ;;  %vm2000_vm9 = vweird.f32 %v11952_v47 }
 0x22f   : > { %v4726_v13 = vsel %vm4661_vm5, %v4629_v15, %v4694_v46  ;;  %v4367_v32 = vmul.f32 %v12032_v14, %v4366_v62  ;;  %v4113_v23 = vmul.f32 %v12064_v17, %v12064_v17  ;;  %v12086_v15 = vadd.f32 %v11943_v59, %v11983_v9  ;;  %vm2001_vm10 = vmor %vm1999_vm7, %vm2000_vm9 }
 0x230   : > { %v12071_v61 = vpop.xlane.xlu1 %3861  ;;  %9140 = vmatmul.msk.f32.gmra.mxu3 %vm3808_vm3, %v4726_v13  ;;  %v2364_v0 = vsel %vm2299_vm6, %v2267_v12, %v2332_v54  ;;  %v12090_v41 = vmul.f32 0.010416667, %v11938_v7  ;;  %v4364_v46 = vsel %vm4363_vm8, %v11905_v4, %v4360_v24  ;;  %v3934_v13 = vmul.f32 %v12060_v38, %v12060_v38  ;;  %v1440_v7 = vpop.f32.mrf.mxu0 }
 0x231   : > { %v12082_v2 = vpop.xlane.xlu0 %3989  ;;  %17511 = vst [vmem:[#allocation43_spill] sm:$0xff] %v12086_v15  ;;  %9076 = vmatmul.msk.f32.gmra.mxu1 %vm1446_vm2, %v2364_v0  ;;  %v12095_v62 = vpop.eup %9747  ;;  %v1998_v12 = vmul.f32 %v11952_v47, %v1997_v29  ;;  %v4145_v54 = vsub.f32 %v4081_v40, %v4113_v23  ;;  %v17512_v9 = vsub.f32 %v17505_v50, %v11811_v25  ;;  %v2006_v4 = vmul.f32 0.5, %v2005_v6 }
 0x232   : > { %v3930_v0 = vmul.f32 %v11947_v57, %v11947_v57  ;;  %v12103_v8 = vpop.eup %9749  ;;  %v1751_v24 = vmul.f32 %v12090_v41, %v12090_v41  ;;  %v4024_v28 = vsel %vm3808_vm3, %v3934_v13, 0.0  ;;  %v3932_v29 = vmul.f32 %v11859_v51, %v11859_v51 }
 0x233   : > { %v4558_v55 = vmul.f32 %v4364_v46, %v17512_v9  ;;  %v4368_v40 = vmul.f32 0.5, %v4367_v32  ;;  %v12110_v23 = vadd.f32 1e-05, %v4145_v54  ;;  %4025 = vadd.xlane.f32.xlu2 %v4024_v28  ;;  %v12115_v46 = vld [vmem:[%s10284_s24 + $0x28] sm:$0xff]   ;;  %v4376_v6 = vmul.f32 %v12095_v62, %v12026_v26 }
 0x234   : > { %v4012_v50 = vsel %vm3808_vm3, %v3930_v0, 0.0  ;;  %v4018_v9 = vsel %vm3808_vm3, %v3932_v29, 0.0  ;;  %v1719_v13 = vmul.f32 0.010416667, %v12022_v18  ;;  %v12122_v57 = vadd.f32 %v11919_v63, %v1440_v7 }
 0x235   : > { %v4594_v25 = vmul.f32 %v11644_v3, %v4558_v55  ;;  %4013 = vadd.xlane.f32.xlu1 %v4012_v50  ;;  %v2014_v28 = vmul.f32 %v12103_v8, %v12037_v56  ;;  %9751 = vrsqrt.f32 %v12110_v23  ;;  %4019 = vadd.xlane.f32.xlu0 %v4018_v9  ;;  %v1720_v32 = vmul.f32 0.010416667, %v12000_v42  ;;  %v12133_v54 = vpop.xlane.xlu2 %1636 }
 0x236   : > { %17513 = vst [vmem:[#allocation44_spill] sm:$0xff] %v12122_v57  ;;  %v1783_v18 = vsub.f32 %v1719_v13, %v1751_v24  ;;  %v12136_v0 = vmul.f32 0.010416667, %v12018_v44  ;;  %v9501_v7 = vunpack.c.h.bf16 %v12115_v46  ;;  %v2002_v21 = vsel %vm2001_vm10, %v11952_v47, %v1998_v12 }
 0x237   : > { %v4630_v55 = vadd.f32 %v11656_v19, %v4594_v25  ;;  %v2007_v50 = vsub.f32 1.5, %v2006_v4  ;;  %v17514_v25 = vsub.f32 %v17504_v16, %v11831_v33  ;;  %v4369_v24 = vsub.f32 1.5, %v4368_v40 }
 0x238   : > { %v12140_v29 = vpop.xlane.xlu1 %1502  ;;  %v12148_v13 = vadd.f32 1e-05, %v1783_v18  ;;  %v1752_v44 = vmul.f32 %v12136_v0, %v12136_v0  ;;  %6261 = vmatpush.msrb.mxu0 %v9501_v7  ;;  %v1537_v47 = vsel %vm1446_vm2, %v12122_v57, 0.0  ;;  %v4377_v12 = vmul.f32 %v12095_v62, %v4376_v6 }
 0x239   : > { %vm4662_vm1 = vcmp.ge.f32.partialorder %v4630_v55, 0.0  ;;  %v4695_v51 = vmul.f32 %v10864_v11, %v4630_v55  ;;  %v2196_v42 = vmul.f32 %v2002_v21, %v17514_v25  ;;  %v12146_v9 = vpop.xlane.xlu0 %1630  ;;  %v3887_v33 = vsel %vm3808_vm3, %v11743_v30, 0.0  ;;  %v12178_v25 = vld [vmem:[%s10229_s14] ss:$0 sm:$0xff] }
 0x23a   : > { %vm2009_vm11 = vweird.f32 %v11967_v5  ;;  %v2015_v16 = vmul.f32 %v12103_v8, %v2014_v28  ;;  %v1784_v40 = vsub.f32 %v1720_v32, %v1752_v44  ;;  %v3893_v18 = vsel %vm3808_vm3, %v12086_v15, 0.0  ;;  %v12215_v30 = vld [vmem:[%s17515_s16] ss:$0 sm:$0xff] }
 0x23b   : > { %v4727_v4 = vsel %vm4662_vm1, %v4630_v55, %v4695_v51  ;;  %v2232_v34 = vmul.f32 %v11703_v10, %v2196_v42  ;;  %v12163_v7 = vpop.eup %9751  ;;  %v2008_v51 = vmul.f32 %v12024_v22, %v2007_v50  ;;  %vm2010_vm12 = vweird.f32 %v12024_v22  ;;  %1538 = vadd.xlane.f32.xlu2 %v1537_v47  ;;  %v3802_v55 = vpop.f32.mrf.mxu2 }
 0x23c   : > { %9141 = vmatmul.msk.f32.gmra.mxu3 %vm3808_vm3, %v4727_v4  ;;  %vm4372_vm13 = vweird.f32 %v12032_v14  ;;  %v4370_v28 = vmul.f32 %v12032_v14, %v4369_v24  ;;  %9753 = vrsqrt.f32 %v12148_v13  ;;  %v12171_v32 = vadd.f32 1e-05, %v1784_v40  ;;  %vm12185_vm4 = vmor %vm2009_vm11, %vm2010_vm12  ;;  %v2525_v24 = vpop.f32.mrf.mxu1  ;;  %v4879_v42 = vpop.f32.mrf.mxu3 }
 0x23d   : > { %v2268_v6 = vadd.f32 %v11717_v1, %v2232_v34  ;;  %3888 = vadd.xlane.f32.xlu1 %v3887_v33  ;;  %v12174_v21 = vmul.f32 0.015625, %v12071_v61  ;;  %vm4371_vm14 = vweird.f32 %v11969_v31  ;;  %v4378_v50 = vmul.f32 0.5, %v4377_v12  ;;  %3894 = vadd.xlane.f32.xlu0 %v3893_v18  ;;  %v17521_v18 = vld [vmem:[#allocation50_spill] sm:$0xff] }
 0x23e   : > { %v2016_v61 = vmul.f32 0.5, %v2015_v16  ;;  %9755 = vrsqrt.f32 %v12171_v32  ;;  %v12191_v31 = vadd.f32 %v11943_v59, %v3802_v55  ;;  %vm12197_vm5 = vmor %vm4371_vm14, %vm4372_vm13  ;;  %v4386_v5 = vmul.f32 %v12163_v7, %v12110_v23  ;;  %v12207_v16 = vpop.xlane.xlu2 %1514 }
 0x23f   : > { %vm2300_vm15 = vcmp.ge.f32.partialorder %v2268_v6, 0.0  ;;  %v2333_v34 = vmul.f32 %v11031_v27, %v2268_v6  ;;  %v4114_v44 = vmul.f32 %v12174_v21, %v12174_v21  ;;  %v4082_v4 = vmul.f32 0.015625, %v12082_v2 }
 0x240   : > { %17518 = vst [vmem:[#allocation46_spill] sm:$0xff] %v12191_v31  ;;  %v2012_v33 = vsel %vm12185_vm4, %v12024_v22, %v2008_v51  ;;  %v12209_v40 = vpop.xlane.xlu1 %3864  ;;  %vm4381_vm6 = vweird.f32 %v12026_v26  ;;  %v17522_v2 = vsub.f32 %v17508_v36, %v11879_v45  ;;  %v4374_v22 = vsel %vm12197_vm5, %v12032_v14, %v4370_v28 }
 0x241   : > { %v2365_v12 = vsel %vm2300_vm15, %v2268_v6, %v2333_v34  ;;  %v3899_v51 = vsel %vm3808_vm3, %v12191_v31, 0.0  ;;  %vm4382_vm7 = vweird.f32 %v12095_v62  ;;  %vm2019_vm8 = vweird.f32 %v12037_v56 }
 0x242   : > { %9077 = vmatmul.msk.f32.gmra.mxu1 %vm1446_vm2, %v2365_v12  ;;  %v2197_v6 = vmul.f32 %v2012_v33, %v17522_v2  ;;  %v12229_v34 = vadd.f32 %v12178_v25, %v2525_v24  ;;  %v4146_v12 = vsub.f32 %v4082_v4, %v4114_v44  ;;  %v17524_v45 = vsub.f32 %v17507_v49, %v11876_v37  ;;  %v12234_v33 = vpop.xlane.xlu0 %3992  ;;  %v12236_v47 = vpop.eup %9753  ;;  %vm12276_vm11 = vmor %vm4381_vm6, %vm4382_vm7 }
 0x243   : > { %v4379_v14 = vsub.f32 1.5, %v4378_v50  ;;  %v1569_v2 = vmul.f32 %v11660_v39, %v11660_v39  ;;  %v3935_v24 = vmul.f32 %v12191_v31, %v12191_v31  ;;  %v2017_v55 = vsub.f32 1.5, %v2016_v61  ;;  %3900 = vadd.xlane.f32.xlu2 %v3899_v51  ;;  %v17526_v61 = vld [vmem:[#allocation51_spill] sm:$0xff]  ;;  %v3805_v39 = vpop.f32.mrf.mxu2 }
 0x244   : > { %17523 = vst [vmem:[#allocation45_spill] sm:$0xff] %v12229_v34  ;;  %v4559_v36 = vmul.f32 %v4374_v22, %v17524_v45  ;;  %v2233_v28 = vmul.f32 %v11703_v10, %v2197_v6  ;;  %v4387_v44 = vmul.f32 %v12163_v7, %v4386_v5  ;;  %v12244_v4 = vadd.f32 1e-05, %v4146_v12  ;;  %v12247_v49 = vpop.eup %9755  ;;  %v2528_v57 = vpop.f32.mrf.mxu1 }
 0x245   : > { %v12250_v50 = vadd.f32 %v12215_v30, %v4879_v42  ;;  %v1653_v22 = vsel %vm1446_vm2, %v1569_v2, 0.0  ;;  %v4027_v45 = vsel %vm3808_vm3, %v3935_v24, 0.0  ;;  %v2024_v5 = vmul.f32 %v12236_v47, %v12148_v13 }
 0x246   : > { %v4595_v37 = vmul.f32 %v11644_v3, %v4559_v36  ;;  %v2269_v6 = vadd.f32 %v11717_v1, %v2233_v28  ;;  %v2034_v51 = vmul.f32 %v12247_v49, %v12171_v32  ;;  %9757 = vrsqrt.f32 %v12244_v4  ;;  %1654 = vadd.xlane.f32.xlu1 %v1653_v22  ;;  %4028 = vadd.xlane.f32.xlu0 %v4027_v45  ;;  %v1443_v36 = vpop.f32.mrf.mxu0 }
 0x247   : > { %17525 = vst [vmem:[#allocation48_spill] sm:$0xff] %v12250_v50  ;;  %vm2020_vm9 = vweird.f32 %v12103_v8  ;;  %v4380_v28 = vmul.f32 %v12095_v62, %v4379_v14  ;;  %v2018_v2 = vmul.f32 %v12103_v8, %v2017_v55  ;;  %v4388_v24 = vmul.f32 0.5, %v4387_v44  ;;  %v17529_v55 = vld [vmem:[#allocation52_spill] sm:$0xff] }
 0x248   : > { %vm2301_vm10 = vcmp.ge.f32.partialorder %v2269_v6, 0.0  ;;  %v2334_v42 = vmul.f32 %v11031_v27, %v2269_v6  ;;  %v4631_v12 = vadd.f32 %v11656_v19, %v4595_v37  ;;  %v2035_v31 = vmul.f32 %v12247_v49, %v2034_v51  ;;  %vm12296_vm12 = vmor %vm2019_vm8, %vm2020_vm9 }
 0x249   : > { %v12270_v45 = vmul.f32 0.010416667, %v12140_v29  ;;  %v2025_v37 = vmul.f32 %v12236_v47, %v2024_v5  ;;  %v12286_v29 = vadd.f32 %v11919_v63, %v1443_v36  ;;  %v12303_v63 = vadd.f32 %v11943_v59, %v3805_v39 }
 0x24a   : > { %v2366_v48 = vsel %vm2301_vm10, %v2269_v6, %v2334_v42  ;;  %vm4663_vm1 = vcmp.ge.f32.partialorder %v4631_v12, 0.0  ;;  %v4696_v22 = vmul.f32 %v10864_v11, %v4631_v12  ;;  %v1721_v6 = vmul.f32 0.010416667, %v12146_v9  ;;  %v12288_v51 = vpop.xlane.xlu2 %1645  ;;  %v12290_v42 = vpop.xlane.xlu1 %3867 }
 0x24b   : > { %9078 = vmatmul.msk.f32.gmra.mxu1 %vm1446_vm2, %v2366_v48  ;;  %17530 = vst [vmem:[#allocation47_spill] sm:$0xff] %v12286_v29  ;;  %v2036_v5 = vmul.f32 0.5, %v2035_v31  ;;  %v1753_v48 = vmul.f32 %v12270_v45, %v12270_v45  ;;  %v12308_v36 = vadd.f32 %v12178_v25, %v2528_v57  ;;  %v4384_v56 = vsel %vm12276_vm11, %v12095_v62, %v4380_v28  ;;  %v12319_v39 = vpop.xlane.xlu0 %3995 }
 0x24c   : > { %v4728_v44 = vsel %vm4663_vm1, %v4631_v12, %v4696_v22  ;;  %17533 = vst [vmem:[#allocation49_spill] sm:$0xff] %v12303_v63  ;;  %v12305_v9 = vpop.eup %9757  ;;  %v2022_v31 = vsel %vm12296_vm12, %v12103_v8, %v2018_v2  ;;  %v1540_v12 = vsel %vm1446_vm2, %v12286_v29, 0.0  ;;  %v4389_v59 = vsub.f32 1.5, %v4388_v24 }
 0x24d   : > { %17534 = vst [vmem:[#allocation50_spill] sm:$0xff] %v12308_v36  ;;  %9142 = vmatmul.msk.f32.gmra.mxu3 %vm3808_vm3, %v4728_v44  ;;  %vm4391_vm13 = vweird.f32 %v12110_v23  ;;  %v1785_v57 = vsub.f32 %v1721_v6, %v1753_v48  ;;  %v17535_v22 = vsub.f32 %v17510_v53, %v11959_v35  ;;  %1541 = vadd.xlane.f32.xlu2 %v1540_v12  ;;  %v2026_v14 = vmul.f32 0.5, %v2025_v37  ;;  %v17537_v53 = vld [vmem:[#allocation54_spill] sm:$0xff] }
 0x24e   : > { %v17536_v62 = vsub.f32 %v17521_v18, %v11978_v20  ;;  %v1570_v8 = vmul.f32 %v11834_v58, %v11834_v58  ;;  %v3902_v2 = vsel %vm3808_vm3, %v12303_v63, 0.0  ;;  %v2037_v24 = vsub.f32 1.5, %v2036_v5 }
 0x24f   : > { %v4560_v44 = vmul.f32 %v4384_v56, %v17535_v22  ;;  %v4396_v6 = vmul.f32 %v12305_v9, %v12244_v4  ;;  %v12334_v26 = vadd.f32 1e-05, %v1785_v57  ;;  %3903 = vadd.xlane.f32.xlu0 %v3902_v2  ;;  %v1816_v37 = vsub.f32 %v17537_v53, %v12136_v0  ;;  %v12453_v53 = vld [vmem:[%s10214_s29] ss:$0 sm:$0xff] }
 0x250   : > { %v2198_v28 = vmul.f32 %v2022_v31, %v17536_v62  ;;  %v1656_v18 = vsel %vm1446_vm2, %v1570_v8, 0.0  ;;  %v9500_v48 = vunpack.c.l.bf16 %v12115_v46  ;;  %v4390_v56 = vmul.f32 %v12163_v7, %v4389_v59 }
 0x251   : > { %v4596_v35 = vmul.f32 %v11644_v3, %v4560_v44  ;;  %vm4392_vm14 = vweird.f32 %v12163_v7  ;;  %vm2039_vm15 = vweird.f32 %v12171_v32  ;;  %9759 = vrsqrt.f32 %v12334_v26  ;;  %1657 = vadd.xlane.f32.xlu1 %v1656_v18 }
 0x252   : > { %v2234_v20 = vmul.f32 %v11703_v10, %v2198_v28  ;;  %v2027_v3 = vsub.f32 1.5, %v2026_v14  ;;  %6262 = vmatpush.msrb.mxu0 %v9500_v48  ;;  %v12349_v10 = vmul.f32 0.015625, %v12209_v40  ;;  %v2038_v46 = vmul.f32 %v12247_v49, %v2037_v24  ;;  %vm4393_vm7 = vmor %vm4391_vm13, %vm4392_vm14 }
 0x253   : > { %v4632_v5 = vadd.f32 %v11656_v19, %v4596_v35  ;;  %vm2040_vm4 = vweird.f32 %v12247_v49  ;;  %v4397_v12 = vmul.f32 %v12305_v9, %v4396_v6  ;;  %v4083_v59 = vmul.f32 0.015625, %v12234_v33 }
 0x254   : > { %v2270_v31 = vadd.f32 %v11717_v1, %v2234_v20  ;;  %vm2029_vm8 = vweird.f32 %v12148_v13  ;;  %vm2030_vm9 = vweird.f32 %v12236_v47  ;;  %v12368_v40 = vmul.f32 0.010416667, %v12055_v43  ;;  %vm12382_vm10 = vmor %vm2039_vm15, %vm2040_vm4 }
 0x255   : > { %vm4664_vm5 = vcmp.ge.f32.partialorder %v4632_v5, 0.0  ;;  %v4697_v57 = vmul.f32 %v10864_v11, %v4632_v5  ;;  %v12357_v22 = vpop.xlane.xlu2 %4007  ;;  %v12359_v1 = vpop.xlane.xlu1 %1633  ;;  %v4115_v33 = vmul.f32 %v12349_v10, %v12349_v10  ;;  %v2028_v44 = vmul.f32 %v12236_v47, %v2027_v3  ;;  %vm12406_vm1 = vmor %vm2029_vm8, %vm2030_vm9 }
 0x256   : > { %vm2302_vm6 = vcmp.ge.f32.partialorder %v2270_v31, 0.0  ;;  %v2335_v19 = vmul.f32 %v11031_v27, %v2270_v31  ;;  %v4394_v28 = vsel %vm4393_vm7, %v12163_v7, %v4390_v56  ;;  %v17540_v7 = vsub.f32 %v17529_v55, %v12064_v17  ;;  %v12470_v17 = vld [vmem:[%s17408_s3] ss:$0 sm:$0xff] }
 0x257   : > { %v4729_v14 = vsel %vm4664_vm5, %v4632_v5, %v4697_v57  ;;  %v12374_v8 = vpop.xlane.xlu0 %1508  ;;  %v12376_v23 = vpop.eup %9759  ;;  %v4147_v2 = vsub.f32 %v4083_v59, %v4115_v33  ;;  %v1571_v6 = vmul.f32 %v11922_v52, %v11922_v52  ;;  %v2621_v35 = vsel %vm1446_vm2, %v12229_v34, 0.0 }
 0x258   : > { %v2367_v62 = vsel %vm2302_vm6, %v2270_v31, %v2335_v19  ;;  %9143 = vmatmul.msk.f32.gmra.mxu3 %vm3808_vm3, %v4729_v14  ;;  %v4561_v24 = vmul.f32 %v4394_v28, %v17540_v7  ;;  %v2042_v32 = vsel %vm12382_vm10, %v12247_v49, %v2038_v46  ;;  %v4398_v20 = vmul.f32 0.5, %v4397_v12  ;;  %2622 = vadd.xlane.f32.xlu2 %v2621_v35  ;;  %v12413_v49 = vld [vmem:[%s17405_s12] ss:$0 sm:$0xff]  ;;  %v4882_v31 = vpop.f32.mrf.mxu3  ;;  %v12420_v46 = vpop.f32.mrf.mxu1 }
 0x259   : > { %9079 = vmatmul.msk.f32.gmra.mxu1 %vm1446_vm2, %v2367_v62  ;;  %v2044_v18 = vmul.f32 %v12376_v23, %v12334_v26  ;;  %v2717_v48 = vmul.f32 %v12229_v34, %v12229_v34  ;;  %v12410_v55 = vadd.f32 1e-05, %v4147_v2  ;;  %v1659_v3 = vsel %vm1446_vm2, %v1571_v6, 0.0 }
 0x25a   : > { %v4597_v56 = vmul.f32 %v12413_v49, %v4561_v24  ;;  %v12418_v5 = vmul.f32 0.015625, %v12290_v42  ;;  %1660 = vadd.xlane.f32.xlu1 %v1659_v3  ;;  %v4084_v59 = vmul.f32 0.015625, %v12319_v39  ;;  %v2032_v57 = vsel %vm12406_vm1, %v12236_v47, %v2028_v44  ;;  %v12432_v42 = vld [vmem:[%s10259_s20] ss:$0 sm:$0xff] }
 0x25b   : > { %v2045_v13 = vmul.f32 %v12376_v23, %v2044_v18  ;;  %v2749_v12 = vsel %vm1446_vm2, %v2717_v48, 0.0  ;;  %v1754_v19 = vmul.f32 %v12368_v40, %v12368_v40  ;;  %9761 = vrsqrt.f32 %v12410_v55 }
 0x25c   : > { %v4633_v33 = vadd.f32 %v12432_v42, %v4597_v56  ;;  %2750 = vadd.xlane.f32.xlu0 %v2749_v12  ;;  %v4116_v14 = vmul.f32 %v12418_v5, %v12418_v5  ;;  %v2200_v39 = vmul.f32 %v2042_v32, %v1816_v37  ;;  %v4399_v62 = vsub.f32 1.5, %v4398_v20 }
 0x25d   : > { %v17543_v47 = vsub.f32 %v17526_v61, %v12090_v41  ;;  %v3933_v28 = vmul.f32 %v12086_v15, %v12086_v15  ;;  %v2046_v43 = vmul.f32 0.5, %v2045_v13  ;;  %v12446_v24 = vpop.xlane.xlu2 %3882  ;;  %v12448_v6 = vpop.xlane.xlu1 %3870  ;;  %vm4401_vm12 = vweird.f32 %v12244_v4 }
 0x25e   : > { %vm4665_vm11 = vcmp.ge.f32.partialorder %v4633_v33, 0.0  ;;  %v4698_v2 = vmul.f32 %v10864_v11, %v4633_v33  ;;  %v4148_v7 = vsub.f32 %v4084_v59, %v4116_v14  ;;  %v1723_v0 = vmul.f32 0.010416667, %v12133_v54 }
 0x25f   : > { %v2199_v44 = vmul.f32 %v2032_v57, %v17543_v47  ;;  %v2718_v61 = vmul.f32 %v12308_v36, %v12308_v36  ;;  %v4021_v32 = vsel %vm3808_vm3, %v3933_v28, 0.0  ;;  %v4975_v20 = vsel %vm3808_vm3, %v12250_v50, 0.0  ;;  %v12463_v18 = vpop.xlane.xlu0 %3998  ;;  %v12481_v57 = vld [vmem:[%s10284_s24 + $0x20] sm:$0xff]  }
 0x260   : > { %v4730_v37 = vsel %vm4665_vm11, %v4633_v33, %v4698_v2  ;;  %v12458_v35 = vadd.f32 1e-05, %v4148_v7  ;;  %v2236_v54 = vmul.f32 %v12453_v53, %v2200_v39  ;;  %v4400_v48 = vmul.f32 %v12305_v9, %v4399_v62  ;;  %4976 = vadd.xlane.f32.xlu2 %v4975_v20  ;;  %v17544_v62 = vld [vmem:[#allocation56_spill] sm:$0xff]  ;;  %v4885_v28 = vpop.f32.mrf.mxu3 }
 0x261   : > { %v2235_v41 = vmul.f32 %v12453_v53, %v2199_v44  ;;  %vm4402_vm13 = vweird.f32 %v12305_v9  ;;  %9144 = vmatmul.msk.f32.gmra.mxu3 %vm3808_vm3, %v4730_v37  ;;  %v12473_v3 = vpop.eup %9761  ;;  %v2047_v13 = vsub.f32 1.5, %v2046_v43  ;;  %v1722_v12 = vmul.f32 0.010416667, %v12359_v1  ;;  %v2534_v43 = vpop.f32.mrf.mxu1 }
 0x262   : > { %9763 = vrsqrt.f32 %v12458_v35  ;;  %v12478_v59 = vmul.f32 0.010416667, %v12374_v8  ;;  %v4406_v33 = vmul.f32 %v12473_v3, %v12410_v55  ;;  %4022 = vadd.xlane.f32.xlu1 %v4021_v32  ;;  %v2752_v39 = vsel %vm1446_vm2, %v2718_v61, 0.0  ;;  %vm12493_vm15 = vmor %vm4401_vm12, %vm4402_vm13 }
 0x263   : > { %v2271_v56 = vadd.f32 %v12470_v17, %v2235_v41  ;;  %v4178_v47 = vsub.f32 %v17544_v62, %v12174_v21  ;;  %v1786_v8 = vsub.f32 %v1722_v12, %v1754_v19  ;;  %v2272_v7 = vadd.f32 %v12470_v17, %v2236_v54 }
 0x264   : > { %2753 = vadd.xlane.f32.xlu0 %v2752_v39  ;;  %v1755_v44 = vmul.f32 %v12478_v59, %v12478_v59  ;;  %v4404_v21 = vsel %vm12493_vm15, %v12305_v9, %v4400_v48  ;;  %v9497_v4 = vunpack.c.h.bf16 %v12481_v57  ;;  %v12505_v41 = vadd.f32 %v12215_v30, %v4882_v31 }
 0x265   : > { %vm2303_vm14 = vcmp.ge.f32.partialorder %v2271_v56, 0.0  ;;  %v2336_v14 = vmul.f32 %v11031_v27, %v2271_v56  ;;  %v12508_v19 = vadd.f32 1e-05, %v1786_v8  ;;  %v12510_v37 = vpop.xlane.xlu2 %1523  ;;  %v12512_v32 = vpop.xlane.xlu1 %1511  ;;  %v2048_v20 = vmul.f32 %v12376_v23, %v2047_v13 }
 0x266   : > { %17547 = vst [vmem:[#allocation51_spill] sm:$0xff] %v12505_v41  ;;  %v1787_v61 = vsub.f32 %v1723_v0, %v1755_v44  ;;  %vm2050_vm4 = vweird.f32 %v12376_v23  ;;  %v4407_v9 = vmul.f32 %v12473_v3, %v4406_v33  ;;  %v4562_v54 = vmul.f32 %v4404_v21, %v4178_v47  ;;  %6263 = vmatpush.msrb.mxu0 %v9497_v4 }
 0x267   : > { %v2368_v2 = vsel %vm2303_vm14, %v2271_v56, %v2336_v14  ;;  %9765 = vrsqrt.f32 %v12508_v19  ;;  %v3896_v0 = vsel %vm3808_vm3, %v12060_v38, 0.0  ;;  %v2624_v56 = vsel %vm1446_vm2, %v12308_v36, 0.0  ;;  %v17549_v14 = vld [vmem:[#allocation55_spill] sm:$0xff]  ;;  %v12536_v62 = vpop.xlane.xlu0 %1639 }
 0x268   : > { %9080 = vmatmul.msk.f32.gmra.mxu1 %vm1446_vm2, %v2368_v2  ;;  %v12517_v48 = vpop.eup %9763  ;;  %v12520_v31 = vadd.f32 1e-05, %v1787_v61  ;;  %v12528_v13 = vadd.f32 %v12178_v25, %v12420_v46  ;;  %v2337_v12 = vmul.f32 %v11031_v27, %v2272_v7  ;;  %v4598_v33 = vmul.f32 %v12413_v49, %v4562_v54  ;;  %2625 = vadd.xlane.f32.xlu2 %v2624_v56  ;;  %v4888_v56 = vpop.f32.mrf.mxu3 }
 0x269   : > { %v1817_v39 = vsub.f32 %v17549_v14, %v12270_v45  ;;  %vm2049_vm5 = vweird.f32 %v12334_v26  ;;  %vm2304_vm6 = vcmp.ge.f32.partialorder %v2272_v7, 0.0  ;;  %v4408_v46 = vmul.f32 0.5, %v4407_v9 }
 0x26a   : > { %17548 = vst [vmem:[#allocation52_spill] sm:$0xff] %v12528_v13  ;;  %9767 = vrsqrt.f32 %v12520_v31  ;;  %vm2051_vm7 = vmor %vm2049_vm5, %vm2050_vm4  ;;  %v4416_v47 = vmul.f32 %v12517_v48, %v12458_v35  ;;  %v4634_v1 = vadd.f32 %v12432_v42, %v4598_v33  ;;  %3897 = vadd.xlane.f32.xlu1 %v3896_v0  ;;  %v4978_v45 = vsel %vm3808_vm3, %v12505_v41, 0.0 }
 0x26b   : > { %v12548_v8 = vmul.f32 0.015625, %v12448_v6  ;;  %v4085_v44 = vmul.f32 0.015625, %v12463_v18  ;;  %v2052_v2 = vsel %vm2051_vm7, %v12376_v23, %v2048_v20  ;;  %v2369_v21 = vsel %vm2304_vm6, %v2272_v7, %v2337_v12  ;;  %v2537_v18 = vpop.f32.mrf.mxu1 }
 0x26c   : > { %4979 = vadd.xlane.f32.xlu0 %v4978_v45  ;;  %vm4666_vm8 = vcmp.ge.f32.partialorder %v4634_v1, 0.0  ;;  %v4699_v4 = vmul.f32 %v10864_v11, %v4634_v1  ;;  %v2201_v61 = vmul.f32 %v2052_v2, %v1817_v39  ;;  %v12556_v54 = vadd.f32 %v12215_v30, %v4885_v28  ;;  %v17552_v45 = vld [vmem:[#allocation42_spill] sm:$0xff] }
 0x26d   : > { %v12553_v9 = vpop.eup %9765  ;;  %v12559_v0 = vadd.f32 %v12178_v25, %v2534_v43  ;;  %v12562_v6 = vmul.f32 0.010416667, %v12207_v16  ;;  %v4117_v23 = vmul.f32 %v12548_v8, %v12548_v8  ;;  %v4409_v7 = vsub.f32 1.5, %v4408_v46  ;;  %v12570_v33 = vpop.xlane.xlu2 %1526 }
 0x26e   : > { %17550 = vst [vmem:[#allocation54_spill] sm:$0xff] %v12556_v54  ;;  %v4417_v20 = vmul.f32 %v12517_v48, %v4416_v47  ;;  %v2054_v28 = vmul.f32 %v12553_v9, %v12508_v19  ;;  %v4731_v12 = vsel %vm4666_vm8, %v4634_v1, %v4699_v4  ;;  %v3874_v43 = vpop.xlane.xlu1 %3873  ;;  %v2237_v39 = vmul.f32 %v12453_v53, %v2201_v61 }
 0x26f   : > { %17551 = vst [vmem:[#allocation56_spill] sm:$0xff] %v12559_v0  ;;  %9145 = vmatmul.msk.f32.gmra.mxu3 %vm3808_vm3, %v4731_v12  ;;  %v4149_v16 = vsub.f32 %v4085_v44, %v4117_v23  ;;  %v1572_v2 = vmul.f32 %v17552_v45, %v17552_v45  ;;  %v2627_v46 = vsel %vm1446_vm2, %v12528_v13, 0.0  ;;  %v12581_v47 = vadd.f32 %v12215_v30, %v4888_v56 }
 0x270   : > { %9081 = vmatmul.msk.f32.gmra.mxu1 %vm1446_vm2, %v2369_v21  ;;  %v12572_v14 = vpop.eup %9767  ;;  %v12585_v1 = vmul.f32 %v12562_v6, %v12562_v6  ;;  %v12588_v21 = vadd.f32 %v12178_v25, %v2537_v18  ;;  %2628 = vadd.xlane.f32.xlu2 %v2627_v46  ;;  %v2273_v61 = vadd.f32 %v12470_v17, %v2237_v39  ;;  %vm4412_vm9 = vweird.f32 %v12473_v3  ;;  %v4002_v39 = vpop.xlane.xlu0 %4001 }
 0x271   : > { %17553 = vst [vmem:[#allocation55_spill] sm:$0xff] %v12581_v47  ;;  %v2064_v44 = vmul.f32 %v12572_v14, %v12520_v31  ;;  %v12592_v4 = vadd.f32 1e-05, %v4149_v16  ;;  %v1662_v23 = vsel %vm1446_vm2, %v1572_v2, 0.0  ;;  %v2719_v56 = vmul.f32 %v12528_v13, %v12528_v13  ;;  %v17555_v2 = vld [vmem:[#allocation59_spill] sm:$0xff] }
 0x272   : > { %17554 = vst [vmem:[#allocation70_spill] sm:$0xff] %v12588_v21  ;;  %v4410_v12 = vmul.f32 %v12473_v3, %v4409_v7  ;;  %v4418_v26 = vmul.f32 0.5, %v4417_v20  ;;  %1663 = vadd.xlane.f32.xlu1 %v1662_v23  ;;  %v2055_v36 = vmul.f32 %v12553_v9, %v2054_v28  ;;  %vm2305_vm10 = vcmp.ge.f32.partialorder %v2273_v61, 0.0  ;;  %v17556_v20 = vld [vmem:[#allocation58_spill] sm:$0xff]  ;;  %v4891_v23 = vpop.f32.mrf.mxu3 }
 0x273   : > { %v2065_v18 = vmul.f32 %v12572_v14, %v2064_v44  ;;  %9769 = vrsqrt.f32 %v12592_v4  ;;  %v2338_v16 = vmul.f32 %v11031_v27, %v2273_v61  ;;  %vm4411_vm1 = vweird.f32 %v12410_v55  ;;  %v17557_v55 = vld [vmem:[#allocation60_spill] sm:$0xff] }
 0x274   : > { %v2755_v13 = vsel %vm1446_vm2, %v2719_v56, 0.0  ;;  %v4179_v44 = vsub.f32 %v17556_v20, %v12349_v10  ;;  %vm4413_vm11 = vmor %vm4411_vm1, %vm4412_vm9  ;;  %v12611_v38 = vmul.f32 0.010416667, %v12512_v32  ;;  %v1724_v34 = vmul.f32 0.010416667, %v12536_v62  ;;  %v2540_v56 = vpop.f32.mrf.mxu1 }
 0x275   : > { %v2066_v7 = vmul.f32 0.5, %v2065_v18  ;;  %v2370_v28 = vsel %vm2305_vm10, %v2273_v61, %v2338_v16  ;;  %2756 = vadd.xlane.f32.xlu0 %v2755_v13  ;;  %v12615_v15 = vmul.f32 0.010416667, %v12288_v51  ;;  %v4180_v18 = vsub.f32 %v17557_v55, %v12418_v5  ;;  %v17558_v61 = vld [vmem:[#allocation44_spill] sm:$0xff] }
 0x276   : > { %v4419_v46 = vsub.f32 1.5, %v4418_v26  ;;  %v4414_v10 = vsel %vm4413_vm11, %v12473_v3, %v4410_v12  ;;  %v2056_v20 = vmul.f32 0.5, %v2055_v36  ;;  %v1756_v13 = vmul.f32 %v12611_v38, %v12611_v38 }
 0x277   : > { %v4563_v32 = vmul.f32 %v4414_v10, %v4179_v44  ;;  %v1573_v62 = vmul.f32 %v17558_v61, %v17558_v61  ;;  %v12628_v51 = vadd.f32 %v12215_v30, %v4891_v23  ;;  %v2067_v5 = vsub.f32 1.5, %v2066_v7 }
 0x278   : > { %9082 = vmatmul.msk.f32.gmra.mxu1 %vm1446_vm2, %v2370_v28  ;;  %v12625_v16 = vpop.xlane.xlu1 %3876  ;;  %v5072_v26 = vmul.f32 %v12505_v41, %v12505_v41  ;;  %v5073_v3 = vmul.f32 %v12556_v54, %v12556_v54  ;;  %v1788_v44 = vsub.f32 %v1724_v34, %v1756_v13  ;;  %v12640_v10 = vmul.f32 0.015625, %v3874_v43 }
 0x279   : > { %17559 = vst [vmem:[#allocation59_spill] sm:$0xff] %v12628_v51  ;;  %v12634_v36 = vpop.xlane.xlu2 %4016  ;;  %v12636_v12 = vpop.eup %9769  ;;  %v4599_v28 = vmul.f32 %v12413_v49, %v4563_v32  ;;  %v1665_v55 = vsel %vm1446_vm2, %v1573_v62, 0.0  ;;  %vm4422_vm12 = vweird.f32 %v12517_v48  ;;  %v12644_v7 = vadd.f32 %v12178_v25, %v2540_v56 }
 0x27a   : > { %v4426_v23 = vmul.f32 %v12636_v12, %v12592_v4  ;;  %1666 = vadd.xlane.f32.xlu1 %v1665_v55  ;;  %v5106_v41 = vsel %vm3808_vm3, %v5072_v26, 0.0  ;;  %v4420_v61 = vmul.f32 %v12517_v48, %v4419_v46  ;;  %v2057_v34 = vsub.f32 1.5, %v2056_v20  ;;  %v4005_v46 = vpop.xlane.xlu0 %4004  ;;  %v4894_v55 = vpop.f32.mrf.mxu3 }
 0x27b   : > { %17560 = vst [vmem:[#allocation58_spill] sm:$0xff] %v12644_v7  ;;  %v12650_v13 = vadd.f32 1e-05, %v1788_v44  ;;  %v4635_v32 = vadd.f32 %v12432_v42, %v4599_v28  ;;  %5107 = vadd.xlane.f32.xlu2 %v5106_v41  ;;  %vm4421_vm13 = vweird.f32 %v12458_v35  ;;  %vm2069_vm14 = vweird.f32 %v12520_v31 }
 0x27c   : > { %v5109_v43 = vsel %vm3808_vm3, %v5073_v3, 0.0  ;;  %v4118_v56 = vmul.f32 %v12640_v10, %v12640_v10  ;;  %v2068_v62 = vmul.f32 %v12572_v14, %v2067_v5  ;;  %vm2070_vm15 = vweird.f32 %v12572_v14  ;;  %vm4423_vm5 = vmor %vm4421_vm13, %vm4422_vm12 }
 0x27d   : > { %9771 = vrsqrt.f32 %v12650_v13  ;;  %vm4667_vm4 = vcmp.ge.f32.partialorder %v4635_v32, 0.0  ;;  %5110 = vadd.xlane.f32.xlu0 %v5109_v43  ;;  %vm2060_vm6 = vweird.f32 %v12553_v9  ;;  %v4427_v35 = vmul.f32 %v12636_v12, %v4426_v23  ;;  %vm12673_vm7 = vmor %vm2069_vm14, %vm2070_vm15 }
 0x27e   : > { %v4700_v41 = vmul.f32 %v10864_v11, %v4635_v32  ;;  %v4086_v20 = vmul.f32 0.015625, %v4002_v39  ;;  %v2058_v26 = vmul.f32 %v12553_v9, %v2057_v34  ;;  %v9496_v5 = vunpack.c.l.bf16 %v12481_v57  ;;  %v17563_v57 = vld [vmem:[#allocation57_spill] sm:$0xff] }
 0x27f   : > { %v4424_v3 = vsel %vm4423_vm5, %v12517_v48, %v4420_v61  ;;  %v1574_v44 = vmul.f32 %v12286_v29, %v12286_v29  ;;  %v2720_v39 = vmul.f32 %v12559_v0, %v12559_v0  ;;  %vm2059_vm8 = vweird.f32 %v12508_v19 }
 0x280   : > { %v4732_v23 = vsel %vm4667_vm4, %v4635_v32, %v4700_v41  ;;  %v4150_v43 = vsub.f32 %v4086_v20, %v4118_v56  ;;  %v4564_v45 = vmul.f32 %v4424_v3, %v4180_v18  ;;  %v1819_v48 = vsub.f32 %v17563_v57, %v12478_v59  ;;  %6264 = vmatpush.msrb.mxu0 %v9496_v5  ;;  %vm12691_vm9 = vmor %vm2059_vm8, %vm2060_vm6  ;;  %v2543_v20 = vpop.f32.mrf.mxu1 }
 0x281   : > { %v2072_v31 = vsel %vm12673_vm7, %v12572_v14, %v2068_v62  ;;  %9146 = vmatmul.msk.f32.gmra.mxu3 %vm3808_vm3, %v4732_v23  ;;  %v1668_v61 = vsel %vm1446_vm2, %v1574_v44, 0.0  ;;  %v12687_v34 = vpop.xlane.xlu2 %1529  ;;  %v4428_v19 = vmul.f32 0.5, %v4427_v35  ;;  %v2630_v14 = vsel %vm1446_vm2, %v12559_v0, 0.0 }
 0x282   : > { %v1643_v18 = vpop.xlane.xlu1 %1642  ;;  %v12695_v59 = vadd.f32 1e-05, %v4150_v43  ;;  %v4600_v56 = vmul.f32 %v12413_v49, %v4564_v45  ;;  %1669 = vadd.xlane.f32.xlu1 %v1668_v61  ;;  %v12703_v41 = vmul.f32 0.015625, %v12357_v22  ;;  %v12706_v5 = vmul.f32 0.015625, %v12625_v16  ;;  %v1518_v61 = vpop.xlane.xlu0 %1517 }
 0x283   : > { %v12700_v62 = vpop.eup %9771  ;;  %2631 = vadd.xlane.f32.xlu2 %v2630_v14  ;;  %v4087_v3 = vmul.f32 0.015625, %v4005_v46  ;;  %v2062_v35 = vsel %vm12691_vm9, %v12553_v9, %v2058_v26  ;;  %v2203_v45 = vmul.f32 %v2072_v31, %v1819_v48  ;;  %v12712_v44 = vadd.f32 %v12215_v30, %v4894_v55 }
 0x284   : > { %9773 = vrsqrt.f32 %v12695_v59  ;;  %v2758_v28 = vsel %vm1446_vm2, %v2720_v39, 0.0  ;;  %v2074_v22 = vmul.f32 %v12700_v62, %v12650_v13  ;;  %v4636_v23 = vadd.f32 %v12432_v42, %v4600_v56 }
 0x285   : > { %17566 = vst [vmem:[#allocation60_spill] sm:$0xff] %v12712_v44  ;;  %2759 = vadd.xlane.f32.xlu0 %v2758_v28  ;;  %v4119_v16 = vmul.f32 %v12706_v5, %v12706_v5  ;;  %v17567_v9 = vsub.f32 %v11188_v60, %v12368_v40  ;;  %v12725_v26 = vadd.f32 %v12178_v25, %v2543_v20  ;;  %v12728_v55 = vmul.f32 0.015625, %v12446_v24  ;;  %v4897_v40 = vpop.f32.mrf.mxu3 }
 0x286   : > { %v4429_v43 = vsub.f32 1.5, %v4428_v19  ;;  %v3936_v39 = vmul.f32 %v12303_v63, %v12303_v63  ;;  %vm4668_vm10 = vcmp.ge.f32.partialorder %v4636_v23, 0.0  ;;  %v4701_v57 = vmul.f32 %v10864_v11, %v4636_v23 }
 0x287   : > { %v2202_v46 = vmul.f32 %v2062_v35, %v17567_v9  ;;  %17568 = vst [vmem:[#allocation57_spill] sm:$0xff] %v12725_v26  ;;  %v4151_v48 = vsub.f32 %v4087_v3, %v4119_v16  ;;  %v2239_v60 = vmul.f32 %v12453_v53, %v2203_v45  ;;  %vm4432_vm1 = vweird.f32 %v12636_v12 }
 0x288   : > { %v4030_v32 = vsel %vm3808_vm3, %v3936_v39, 0.0  ;;  %v2721_v24 = vmul.f32 %v12588_v21, %v12588_v21  ;;  %v2075_v19 = vmul.f32 %v12700_v62, %v2074_v22  ;;  %v4733_v56 = vsel %vm4668_vm10, %v4636_v23, %v4701_v57  ;;  %v17569_v23 = vld [vmem:[#allocation63_spill] sm:$0xff] }
 0x289   : > { %v2238_v31 = vmul.f32 %v12453_v53, %v2202_v46  ;;  %v12740_v14 = vadd.f32 1e-05, %v4151_v48  ;;  %v4430_v35 = vmul.f32 %v12636_v12, %v4429_v43  ;;  %9147 = vmatmul.msk.f32.gmra.mxu3 %vm3808_vm3, %v4733_v56  ;;  %v2633_v45 = vsel %vm1446_vm2, %v12588_v21, 0.0  ;;  %v12760_v39 = vpop.xlane.xlu2 %3891  ;;  %v12811_v56 = vld [vmem:[%s10284_s24 + $0x18] sm:$0xff]  }
 0x28a   : > { %v12743_v3 = vpop.eup %9773  ;;  %4031 = vadd.xlane.f32.xlu1 %v4030_v32  ;;  %v1725_v28 = vmul.f32 0.010416667, %v1643_v18  ;;  %v12749_v16 = vmul.f32 0.010416667, %v1518_v61  ;;  %v3880_v9 = vpop.xlane.xlu1 %3879  ;;  %v12753_v22 = vmul.f32 %v12728_v55, %v12728_v55  ;;  %v4181_v46 = vsub.f32 %v17569_v23, %v12548_v8 }
 0x28b   : > { %v2274_v20 = vadd.f32 %v12470_v17, %v2238_v31  ;;  %v4436_v43 = vmul.f32 %v12743_v3, %v12695_v59  ;;  %9775 = vrsqrt.f32 %v12740_v14  ;;  %2634 = vadd.xlane.f32.xlu2 %v2633_v45  ;;  %vm4431_vm11 = vweird.f32 %v12592_v4  ;;  %v2546_v18 = vpop.f32.mrf.mxu1  ;;  %v17571_v4 = vld [vmem:[#allocation36_spill] sm:$0xff] }
 0x28c   : > { %v2761_v48 = vsel %vm1446_vm2, %v2721_v24, 0.0  ;;  %vm4433_vm13 = vmor %vm4431_vm11, %vm4432_vm1  ;;  %v12768_v8 = vmul.f32 0.010416667, %v12510_v37  ;;  %v2076_v31 = vmul.f32 0.5, %v2075_v19  ;;  %v1789_v61 = vsub.f32 %v1725_v28, %v12585_v1 }
 0x28d   : > { %vm2306_vm12 = vcmp.ge.f32.partialorder %v2274_v20, 0.0  ;;  %v2339_v57 = vmul.f32 %v11031_v27, %v2274_v20  ;;  %2762 = vadd.xlane.f32.xlu0 %v2761_v48  ;;  %v1758_v32 = vmul.f32 %v12749_v16, %v12749_v16  ;;  %v2275_v23 = vadd.f32 %v12470_v17, %v2239_v60  ;;  %v4900_v60 = vpop.f32.mrf.mxu3 }
 0x28e   : > { %17570 = vst [vmem:[#allocation63_spill] sm:$0xff] %v12768_v8  ;;  %v4434_v24 = vsel %vm4433_vm13, %v12636_v12, %v4430_v35  ;;  %v4437_v21 = vmul.f32 %v12743_v3, %v4436_v43  ;;  %v12779_v37 = vadd.f32 1e-05, %v1789_v61  ;;  %v12783_v28 = vadd.f32 %v12215_v30, %v4897_v40  ;;  %v12802_v61 = vpop.xlane.xlu0 %1648 }
 0x28f   : > { %v2371_v45 = vsel %vm2306_vm12, %v2274_v20, %v2339_v57  ;;  %v1790_v19 = vsub.f32 %v12615_v15, %v1758_v32  ;;  %v4565_v1 = vmul.f32 %v4434_v24, %v4181_v46  ;;  %v12787_v20 = vmul.f32 %v12768_v8, %v12768_v8  ;;  %v17573_v15 = vld [vmem:[#allocation66_spill] sm:$0xff] }
 0x290   : > { %9083 = vmatmul.msk.f32.gmra.mxu1 %vm1446_vm2, %v2371_v45  ;;  %17572 = vst [vmem:[#allocation36_spill] sm:$0xff] %v12783_v28  ;;  %v5071_v12 = vmul.f32 %v12250_v50, %v12250_v50  ;;  %v2722_v35 = vmul.f32 %v12644_v7, %v12644_v7  ;;  %v2077_v57 = vsub.f32 1.5, %v2076_v31  ;;  %v12798_v40 = vadd.f32 %v12178_v25, %v2546_v18 }
 0x291   : > { %v12793_v43 = vpop.eup %9775  ;;  %v12800_v48 = vadd.f32 1e-05, %v1790_v19  ;;  %vm2080_vm14 = vweird.f32 %v12700_v62  ;;  %v12806_v32 = vmul.f32 0.010416667, %v12570_v33  ;;  %v2340_v45 = vmul.f32 %v11031_v27, %v2275_v23  ;;  %v12826_v29 = vpop.xlane.xlu2 %1532 }
 0x292   : > { %17574 = vst [vmem:[#allocation66_spill] sm:$0xff] %v12798_v40  ;;  %v4601_v24 = vmul.f32 %v12413_v49, %v4565_v1  ;;  %v4438_v46 = vmul.f32 0.5, %v4437_v21  ;;  %9777 = vrsqrt.f32 %v12779_v37  ;;  %vm2307_vm15 = vcmp.ge.f32.partialorder %v2275_v23, 0.0  ;;  %v1521_v50 = vpop.xlane.xlu1 %1520 }
 0x293   : > { %17575 = vst [vmem:[#allocation71_spill] sm:$0xff] %v12806_v32  ;;  %v5103_v18 = vsel %vm3808_vm3, %v5071_v12, 0.0  ;;  %v2549_v31 = vpop.f32.mrf.mxu1  ;;  %v4446_v19 = vmul.f32 %v12793_v43, %v12740_v14  ;;  %v2764_v33 = vsel %vm1446_vm2, %v2722_v35, 0.0  ;;  %v2636_v1 = vsel %vm1446_vm2, %v12644_v7, 0.0 }
 0x294   : > { %v4637_v0 = vadd.f32 %v12432_v42, %v4601_v24  ;;  %5104 = vadd.xlane.f32.xlu1 %v5103_v18  ;;  %v2078_v21 = vmul.f32 %v12700_v62, %v2077_v57  ;;  %9779 = vrsqrt.f32 %v12800_v48  ;;  %2637 = vadd.xlane.f32.xlu2 %v2636_v1  ;;  %v9493_v12 = vunpack.c.h.bf16 %v12811_v56  ;;  %v17576_v24 = vld [vmem:[#allocation61_spill] sm:$0xff] }
 0x295   : > { %2765 = vadd.xlane.f32.xlu0 %v2764_v33  ;;  %v12824_v63 = vmul.f32 0.015625, %v3880_v9  ;;  %v1820_v18 = vsub.f32 %v17576_v24, %v12611_v38  ;;  %v2372_v35 = vsel %vm2307_vm15, %v2275_v23, %v2340_v45  ;;  %vm2079_vm5 = vweird.f32 %v12650_v13  ;;  %v17579_v23 = vld [vmem:[#allocation67_spill] sm:$0xff]  ;;  %v17580_v45 = vld [vmem:[#allocation65_spill] sm:$0xff] }
 0x296   : > { %vm4669_vm4 = vcmp.ge.f32.partialorder %v4637_v0, 0.0  ;;  %v4702_v7 = vmul.f32 %v10864_v11, %v4637_v0  ;;  %v12835_v57 = vmul.f32 %v12806_v32, %v12806_v32  ;;  %v4439_v33 = vsub.f32 1.5, %v4438_v46  ;;  %6265 = vmatpush.msrb.mxu0 %v9493_v12  ;;  %vm12842_vm6 = vmor %vm2079_vm5, %vm2080_vm14 }
 0x297   : > { %v4120_v9 = vmul.f32 %v12824_v63, %v12824_v63  ;;  %v4182_v1 = vsub.f32 %v17580_v45, %v12640_v10  ;;  %v4447_v46 = vmul.f32 %v12793_v43, %v4446_v19  ;;  %v12854_v12 = vadd.f32 %v12215_v30, %v4900_v60  ;;  %v4011_v60 = vpop.xlane.xlu0 %4010 }
 0x298   : > { %9084 = vmatmul.msk.f32.gmra.mxu1 %vm1446_vm2, %v2372_v35  ;;  %v4734_v24 = vsel %vm4669_vm4, %v4637_v0, %v4702_v7  ;;  %v12851_v35 = vpop.eup %9777  ;;  %v2082_v8 = vsel %vm12842_vm6, %v12700_v62, %v2078_v21  ;;  %v2723_v13 = vmul.f32 %v12725_v26, %v12725_v26  ;;  %vm4441_vm7 = vweird.f32 %v12695_v59  ;;  %v4903_v7 = vpop.f32.mrf.mxu3 }
 0x299   : > { %17581 = vst [vmem:[#allocation61_spill] sm:$0xff] %v12854_v12  ;;  %9148 = vmatmul.msk.f32.gmra.mxu3 %vm3808_vm3, %v4734_v24  ;;  %v4152_v28 = vsub.f32 %v12703_v41, %v4120_v9  ;;  %vm4442_vm8 = vweird.f32 %v12743_v3  ;;  %v12866_v0 = vadd.f32 %v12178_v25, %v2549_v31  ;;  %v12869_v10 = vmul.f32 0.015625, %v12634_v36 }
 0x29a   : > { %v12871_v41 = vpop.eup %9779  ;;  %v4440_v19 = vmul.f32 %v12743_v3, %v4439_v33  ;;  %v2204_v21 = vmul.f32 %v2082_v8, %v1820_v18  ;;  %v4981_v9 = vsel %vm3808_vm3, %v12556_v54, 0.0  ;;  %v4448_v38 = vmul.f32 0.5, %v4447_v46  ;;  %v17583_v33 = vld [vmem:[#allocation69_spill] sm:$0xff]  ;;  %vm12894_vm9 = vmor %vm4441_vm7, %vm4442_vm8 }
 0x29b   : > { %17582 = vst [vmem:[#allocation67_spill] sm:$0xff] %v12866_v0  ;;  %v12874_v62 = vadd.f32 1e-05, %v4152_v28  ;;  %v2084_v25 = vmul.f32 %v12851_v35, %v12779_v37  ;;  %v2552_v31 = vpop.f32.mrf.mxu1  ;;  %v2767_v36 = vsel %vm1446_vm2, %v2723_v13, 0.0  ;;  %v2639_v45 = vsel %vm1446_vm2, %v12725_v26, 0.0 }
 0x29c   : > { %4982 = vadd.xlane.f32.xlu1 %v4981_v9  ;;  %v12886_v8 = vadd.f32 %v12215_v30, %v4903_v7  ;;  %v2240_v18 = vmul.f32 %v12453_v53, %v2204_v21  ;;  %2640 = vadd.xlane.f32.xlu2 %v2639_v45  ;;  %v12899_v46 = vmul.f32 0.010416667, %v12687_v34  ;;  %v2094_v30 = vmul.f32 %v12871_v41, %v12800_v48  ;;  %v12907_v9 = vld [vmem:[%s10229_s14] ss:$0 sm:$0xff]  ;;  %v12916_v45 = vpop.xlane.xlu2 %1535 }
 0x29d   : > { %9781 = vrsqrt.f32 %v12874_v62  ;;  %2768 = vadd.xlane.f32.xlu0 %v2767_v36  ;;  %v12903_v24 = vmul.f32 0.010416667, %v1521_v50  ;;  %v4089_v7 = vmul.f32 0.015625, %v4011_v60  ;;  %vm4451_vm10 = vweird.f32 %v12740_v14 }
 0x29e   : > { %17584 = vst [vmem:[#allocation65_spill] sm:$0xff] %v12886_v8  ;;  %v1652_v21 = vpop.xlane.xlu1 %1651  ;;  %v12910_v59 = vadd.f32 %v12907_v9, %v2552_v31  ;;  %v2276_v36 = vadd.f32 %v12470_v17, %v2240_v18  ;;  %v4444_v34 = vsel %vm12894_vm9, %v12743_v3, %v4440_v19  ;;  %v4449_v28 = vsub.f32 1.5, %v4448_v38 }
 0x29f   : > { %17587 = vst [vmem:[#allocation69_spill] sm:$0xff] %v12899_v46  ;;  %v2085_v50 = vmul.f32 %v12851_v35, %v2084_v25  ;;  %v1727_v60 = vmul.f32 0.010416667, %v12802_v61  ;;  %v1759_v26 = vmul.f32 %v12903_v24, %v12903_v24  ;;  %v4153_v54 = vsub.f32 %v4089_v7, %v12753_v22  ;;  %v12931_v61 = vpop.xlane.xlu0 %3885 }
 0x2a0   : > { %17588 = vst [vmem:[#allocation72_spill] sm:$0xff] %v12910_v59  ;;  %vm2308_vm1 = vcmp.ge.f32.partialorder %v2276_v36, 0.0  ;;  %v2341_v31 = vmul.f32 %v11031_v27, %v2276_v36  ;;  %v4566_v18 = vmul.f32 %v4444_v34, %v4182_v1  ;;  %v12926_v13 = vmul.f32 %v12899_v46, %v12899_v46 }
 0x2a1   : > { %v2095_v3 = vmul.f32 %v12871_v41, %v2094_v30  ;;  %v1791_v19 = vsub.f32 %v1727_v60, %v1759_v26  ;;  %v5074_v38 = vmul.f32 %v12581_v47, %v12581_v47  ;;  %v12937_v22 = vadd.f32 1e-05, %v4153_v54 }
 0x2a2   : > { %v2373_v32 = vsel %vm2308_vm1, %v2276_v36, %v2341_v31  ;;  %v4602_v1 = vmul.f32 %v12413_v49, %v4566_v18  ;;  %v4984_v30 = vsel %vm3808_vm3, %v12581_v47, 0.0  ;;  %v2642_v34 = vsel %vm1446_vm2, %v12798_v40, 0.0 }
 0x2a3   : > { %v12933_v25 = vpop.eup %9781  ;;  %9085 = vmatmul.msk.f32.gmra.mxu1 %vm1446_vm2, %v2373_v32  ;;  %v12943_v26 = vadd.f32 1e-05, %v1791_v19  ;;  %v4450_v60 = vmul.f32 %v12793_v43, %v4449_v28  ;;  %vm4452_vm11 = vweird.f32 %v12793_v43  ;;  %v2086_v54 = vmul.f32 0.5, %v2085_v50  ;;  %v17589_v19 = vld [vmem:[#allocation62_spill] sm:$0xff] }
 0x2a4   : > { %v4456_v7 = vmul.f32 %v12933_v25, %v12874_v62  ;;  %v4638_v36 = vadd.f32 %v12432_v42, %v4602_v1  ;;  %4985 = vadd.xlane.f32.xlu2 %v4984_v30  ;;  %v2096_v31 = vmul.f32 0.5, %v2095_v3  ;;  %v5112_v18 = vsel %vm3808_vm3, %v5074_v38, 0.0  ;;  %vm12961_vm13 = vmor %vm4451_vm10, %vm4452_vm11  ;;  %v4906_v3 = vpop.f32.mrf.mxu3 }
 0x2a5   : > { %2643 = vadd.xlane.f32.xlu0 %v2642_v34  ;;  %9783 = vrsqrt.f32 %v12943_v26  ;;  %5113 = vadd.xlane.f32.xlu1 %v5112_v18  ;;  %vm2089_vm14 = vweird.f32 %v12779_v37  ;;  %v12967_v38 = vmul.f32 0.015625, %v12760_v39  ;;  %v4454_v18 = vsel %vm12961_vm13, %v12793_v43, %v4450_v60 }
 0x2a6   : > { %v4457_v32 = vmul.f32 %v12933_v25, %v4456_v7  ;;  %9785 = vrsqrt.f32 %v12937_v22  ;;  %vm4670_vm12 = vcmp.ge.f32.partialorder %v4638_v36, 0.0  ;;  %v4703_v28 = vmul.f32 %v10864_v11, %v4638_v36  ;;  %v12975_v47 = vpop.xlane.xlu2 %4025 }
 0x2a7   : > { %v1728_v7 = vmul.f32 0.010416667, %v1652_v21  ;;  %v9492_v14 = vunpack.c.l.bf16 %v12811_v56  ;;  %v2725_v8 = vmul.f32 %v12866_v0, %v12866_v0  ;;  %v2087_v46 = vsub.f32 1.5, %v2086_v54  ;;  %v12981_v21 = vld [vmem:[%s17515_s16] ss:$0 sm:$0xff] }
 0x2a8   : > { %v4458_v1 = vmul.f32 0.5, %v4457_v32  ;;  %v4014_v30 = vpop.xlane.xlu1 %4013  ;;  %v4735_v34 = vsel %vm4670_vm12, %v4638_v36, %v4703_v28  ;;  %v2097_v58 = vsub.f32 1.5, %v2096_v31  ;;  %vm2099_vm15 = vweird.f32 %v12800_v48 }
 0x2a9   : > { %9149 = vmatmul.msk.f32.gmra.mxu3 %vm3808_vm3, %v4735_v34  ;;  %v1792_v39 = vsub.f32 %v1728_v7, %v12787_v20  ;;  %v12984_v36 = vadd.f32 %v12981_v21, %v4906_v3  ;;  %v12988_v56 = vmul.f32 %v12967_v38, %v12967_v38  ;;  %v17593_v60 = vsub.f32 %v17583_v33, %v12706_v5  ;;  %v17594_v20 = vld [vmem:[#allocation40_spill] sm:$0xff]  ;;  %v4020_v3 = vpop.xlane.xlu0 %4019 }
 0x2aa   : > { %v4459_v43 = vsub.f32 1.5, %v4458_v1  ;;  %6266 = vmatpush.msrb.mxu0 %v9492_v14  ;;  %vm2090_vm4 = vweird.f32 %v12851_v35  ;;  %v2773_v50 = vsel %vm1446_vm2, %v2725_v8, 0.0  ;;  %vm2100_vm5 = vweird.f32 %v12871_v41 }
 0x2ab   : > { %17592 = vst [vmem:[#allocation62_spill] sm:$0xff] %v12984_v36  ;;  %v4567_v54 = vmul.f32 %v4454_v18, %v17593_v60  ;;  %v12993_v31 = vpop.eup %9783  ;;  %v12998_v28 = vadd.f32 1e-05, %v1792_v39  ;;  %v2724_v1 = vmul.f32 %v12798_v40, %v12798_v40  ;;  %v2088_v34 = vmul.f32 %v12851_v35, %v2087_v46  ;;  %v2555_v39 = vpop.f32.mrf.mxu1  ;;  %vm13023_vm7 = vmor %vm2089_vm14, %vm2090_vm4 }
 0x2ac   : > { %v13001_v7 = vpop.eup %9785  ;;  %v2104_v5 = vmul.f32 %v12993_v31, %v12943_v26  ;;  %2774 = vadd.xlane.f32.xlu2 %v2773_v50  ;;  %v2098_v18 = vmul.f32 %v12871_v41, %v2097_v58  ;;  %vm4462_vm6 = vweird.f32 %v12933_v25  ;;  %v13013_v8 = vmul.f32 0.015625, %v12931_v61  ;;  %vm13038_vm8 = vmor %vm2099_vm15, %vm2100_vm5 }
 0x2ad   : > { %v4603_v33 = vmul.f32 %v12413_v49, %v4567_v54  ;;  %v4460_v14 = vmul.f32 %v12933_v25, %v4459_v43  ;;  %v2770_v54 = vsel %vm1446_vm2, %v2724_v1, 0.0  ;;  %v4466_v46 = vmul.f32 %v13001_v7, %v12937_v22 }
 0x2ae   : > { %v2105_v60 = vmul.f32 %v12993_v31, %v2104_v5  ;;  %9787 = vrsqrt.f32 %v12998_v28  ;;  %v4122_v61 = vmul.f32 %v13013_v8, %v13013_v8  ;;  %2771 = vadd.xlane.f32.xlu1 %v2770_v54  ;;  %vm4461_vm9 = vweird.f32 %v12874_v62  ;;  %v17599_v5 = vld [vmem:[#allocation64_spill] sm:$0xff]  ;;  %v4909_v54 = vpop.f32.mrf.mxu3  ;;  %v13064_v36 = vpop.xlane.xlu2 %1538 }
 0x2af   : > { %v4639_v49 = vadd.f32 %v12432_v42, %v4603_v33  ;;  %v4987_v42 = vsel %vm3808_vm3, %v12628_v51, 0.0  ;;  %v4184_v33 = vsub.f32 %v17599_v5, %v12824_v63  ;;  %vm13048_vm1 = vmor %vm4461_vm9, %vm4462_vm6  ;;  %v13053_v48 = vadd.f32 %v12907_v9, %v2555_v39 }
 0x2b0   : > { %v2106_v43 = vmul.f32 0.5, %v2105_v60  ;;  %4988 = vadd.xlane.f32.xlu0 %v4987_v42  ;;  %v4090_v32 = vmul.f32 0.015625, %v4014_v30  ;;  %v4092_v62 = vmul.f32 0.015625, %v4020_v3  ;;  %v3889_v60 = vpop.xlane.xlu1 %3888  ;;  %v2102_v42 = vsel %vm13038_vm8, %v12871_v41, %v2098_v18 }
 0x2b1   : > { %vm4671_vm10 = vcmp.ge.f32.partialorder %v4639_v49, 0.0  ;;  %v4704_v50 = vmul.f32 %v10864_v11, %v4639_v49  ;;  %17602 = vst [vmem:[#allocation40_spill] sm:$0xff] %v13053_v48  ;;  %v4464_v63 = vsel %vm13048_vm1, %v12933_v25, %v4460_v14  ;;  %v2092_v40 = vsel %vm13023_vm7, %v12851_v35, %v2088_v34 }
 0x2b2   : > { %v2107_v39 = vsub.f32 1.5, %v2106_v43  ;;  %v4467_v30 = vmul.f32 %v13001_v7, %v4466_v46  ;;  %v4154_v3 = vsub.f32 %v4090_v32, %v4122_v61  ;;  %v17603_v41 = vsub.f32 %v17555_v2, %v12562_v6  ;;  %v13088_v46 = vpop.xlane.xlu0 %3894 }
 0x2b3   : > { %v4736_v5 = vsel %vm4671_vm10, %v4639_v49, %v4704_v50  ;;  %v13072_v25 = vadd.f32 %v12981_v21, %v4909_v54  ;;  %v13075_v14 = vmul.f32 0.010416667, %v12826_v29  ;;  %v4156_v35 = vsub.f32 %v4092_v62, %v12988_v56  ;;  %v13113_v62 = vld [vmem:[%s17405_s12] ss:$0 sm:$0xff] }
 0x2b4   : > { %9150 = vmatmul.msk.f32.gmra.mxu3 %vm3808_vm3, %v4736_v5  ;;  %v2205_v18 = vmul.f32 %v2092_v40, %v17603_v41  ;;  %v2726_v34 = vmul.f32 %v12910_v59, %v12910_v59  ;;  %v13080_v49 = vpop.eup %9787  ;;  %v17606_v32 = vsub.f32 %v17589_v19, %v12749_v16  ;;  %v4568_v6 = vmul.f32 %v4464_v63, %v4184_v33  ;;  %v13100_v19 = vld [vmem:[%s17604_s2 + $0x18] sm:$0xff]   ;;  %v9519_v41 = vld [vmem:[%s17607_s26] sm:$0xff]   ;;  %s17671_s2 = sld [smem:[#allocation15_spill]] }
 0x2b5   : > { %v13085_v2 = vadd.f32 1e-05, %v4154_v3  ;;  %v13092_v29 = vmul.f32 %v13075_v14, %v13075_v14  ;;  %vm2110_vm11 = vweird.f32 %v12993_v31  ;;  %v2645_v56 = vsel %vm1446_vm2, %v12866_v0, 0.0 }
 0x2b6   : > { %v2206_v58 = vmul.f32 %v2102_v42, %v17606_v32  ;;  %v2241_v40 = vmul.f32 %v12453_v53, %v2205_v18  ;;  %v2648_v16 = vsel %vm1446_vm2, %v12910_v59, 0.0  ;;  %v2108_v61 = vmul.f32 %v12993_v31, %v2107_v39  ;;  %2646 = vadd.xlane.f32.xlu1 %v2645_v56  ;;  %v17608_v39 = vld [vmem:[#allocation37_spill] sm:$0xff] }
 0x2b7   : > { %v4468_v37 = vmul.f32 0.5, %v4467_v30  ;;  %9789 = vrsqrt.f32 %v13085_v2  ;;  %v2776_v43 = vsel %vm1446_vm2, %v2726_v34, 0.0  ;;  %2649 = vadd.xlane.f32.xlu2 %v2648_v16  ;;  %vm2109_vm12 = vweird.f32 %v12943_v26  ;;  %v13192_v26 = vld [vmem:[%s10284_s24 + $0x10] sm:$0xff]  }
 0x2b8   : > { %v2114_v50 = vmul.f32 %v13080_v49, %v12998_v28  ;;  %v13108_v33 = vadd.f32 1e-05, %v4156_v35  ;;  %v2277_v1 = vadd.f32 %v12470_v17, %v2241_v40  ;;  %2777 = vadd.xlane.f32.xlu0 %v2776_v43  ;;  %v2242_v54 = vmul.f32 %v12453_v53, %v2206_v58  ;;  %vm13125_vm13 = vmor %vm2109_vm12, %vm2110_vm11  ;;  %v2558_v35 = vpop.f32.mrf.mxu1  ;;  %v3901_v40 = vpop.xlane.xlu2 %3900 }
 0x2b9   : > { %v4604_v42 = vmul.f32 %v13113_v62, %v4568_v6  ;;  %v9517_v63 = vunpack.c.h.bf16 %v13100_v19  ;;  %v13117_v5 = vmul.f32 0.015625, %v3889_v60  ;;  %v1823_v30 = vsub.f32 %v17608_v39, %v12903_v24  ;;  %v1655_v34 = vpop.xlane.xlu1 %1654  ;;  %v17612_v39 = vld [vmem:[#allocation42_spill] sm:$0xff] }
 0x2ba   : > { %vm2309_vm14 = vcmp.ge.f32.partialorder %v2277_v1, 0.0  ;;  %v2342_v53 = vmul.f32 %v11031_v27, %v2277_v1  ;;  %v2112_v60 = vsel %vm13125_vm13, %v12993_v31, %v2108_v61  ;;  %v4469_v18 = vsub.f32 1.5, %v4468_v37  ;;  %v13148_v61 = vld [vmem:[%s10259_s20] ss:$0 sm:$0xff]  ;;  %s17672_s5 = smov %s17671_s2 }
 0x2bb   : > { %vm4471_vm15 = vweird.f32 %v12937_v22  ;;  %6056 = vmatpush.msrb.mxu2 %v9517_v63  ;;  %v4123_v24 = vmul.f32 %v13117_v5, %v13117_v5  ;;  %v13138_v32 = vmul.f32 0.010416667, %v12916_v45  ;;  %v2115_v58 = vmul.f32 %v13080_v49, %v2114_v50 }
 0x2bc   : > { %9791 = vrsqrt.f32 %v13108_v33  ;;  %v2374_v6 = vsel %vm2309_vm14, %v2277_v1, %v2342_v53  ;;  %v2278_v16 = vadd.f32 %v12470_v17, %v2242_v54  ;;  %v4640_v37 = vadd.f32 %v13148_v61, %v4604_v42  ;;  %v4029_v42 = vpop.xlane.xlu0 %4028 }
 0x2bd   : > { %v13142_v31 = vpop.eup %9789  ;;  %9086 = vmatmul.msk.f32.gmra.mxu1 %vm1446_vm2, %v2374_v6  ;;  %v4155_v56 = vsub.f32 %v12869_v10, %v4123_v24  ;;  %v9521_v45 = vunpack.c.h.bf16 %v9519_v41  ;;  %v2207_v43 = vmul.f32 %v2112_v60, %v1823_v30  ;;  %v13152_v50 = vadd.f32 %v12907_v9, %v2558_v35  ;;  %v13176_v35 = vld [vmem:[%s10214_s29] ss:$0 sm:$0xff] }
 0x2be   : > { %v13156_v1 = vmul.f32 %v13138_v32, %v13138_v32  ;;  %v4990_v63 = vsel %vm3808_vm3, %v12712_v44, 0.0  ;;  %v4470_v10 = vmul.f32 %v13001_v7, %v4469_v18  ;;  %vm4472_vm4 = vweird.f32 %v13001_v7 }
 0x2bf   : > { %17611 = vst [vmem:[#allocation64_spill] sm:$0xff] %v13152_v50  ;;  %v4476_v17 = vmul.f32 %v13142_v31, %v13085_v2  ;;  %v13164_v54 = vadd.f32 1e-05, %v4155_v56  ;;  %6552 = vmatpush.msrb.mxu3 %v9521_v45  ;;  %4991 = vadd.xlane.f32.xlu1 %v4990_v63  ;;  %v2343_v3 = vmul.f32 %v11031_v27, %v2278_v16  ;;  %vm4672_vm5 = vcmp.ge.f32.partialorder %v4640_v37, 0.0  ;;  %vm13183_vm7 = vmor %vm4471_vm15, %vm4472_vm4  ;;  %v4912_v45 = vpop.f32.mrf.mxu3 }
 0x2c0   : > { %v4705_v53 = vmul.f32 %v10864_v11, %v4640_v37  ;;  %v2116_v41 = vmul.f32 0.5, %v2115_v58  ;;  %vm2310_vm6 = vcmp.ge.f32.partialorder %v2278_v16, 0.0  ;;  %v2651_v60 = vsel %vm1446_vm2, %v13053_v48, 0.0  ;;  %v17615_v58 = vld [vmem:[#allocation39_spill] sm:$0xff]  ;;  %v13221_v6 = vpop.xlane.xlu2 %1541 }
 0x2c1   : > { %9793 = vrsqrt.f32 %v13164_v54  ;;  %v2243_v24 = vmul.f32 %v13176_v35, %v2207_v43  ;;  %2652 = vadd.xlane.f32.xlu0 %v2651_v60  ;;  %v5075_v30 = vmul.f32 %v12628_v51, %v12628_v51  ;;  %v4474_v43 = vsel %vm13183_vm7, %v13001_v7, %v4470_v10  ;;  %v2561_v7 = vpop.f32.mrf.mxu1 }
 0x2c2   : > { %v13173_v18 = vpop.eup %9791  ;;  %v4737_v63 = vsel %vm4672_vm5, %v4640_v37, %v4705_v53  ;;  %vm2119_vm8 = vweird.f32 %v12998_v28  ;;  %v4477_v22 = vmul.f32 %v13142_v31, %v4476_v17  ;;  %v13200_v56 = vmul.f32 0.015625, %v3901_v40 }
 0x2c3   : > { %9151 = vmatmul.msk.f32.gmra.mxu3 %vm3808_vm3, %v4737_v63  ;;  %v2375_v37 = vsel %vm2310_vm6, %v2278_v16, %v2343_v3  ;;  %v5115_v53 = vsel %vm3808_vm3, %v5075_v30, 0.0  ;;  %v1729_v60 = vmul.f32 0.010416667, %v1655_v34  ;;  %v4095_v59 = vmul.f32 0.015625, %v4029_v42  ;;  %v13215_v42 = vld [vmem:[%s17408_s3] ss:$0 sm:$0xff] }
 0x2c4   : > { %v2117_v0 = vsub.f32 1.5, %v2116_v41  ;;  %v13205_v51 = vadd.f32 %v12981_v21, %v4912_v45  ;;  %5116 = vadd.xlane.f32.xlu2 %v5115_v53  ;;  %v4127_v10 = vmul.f32 %v13200_v56, %v13200_v56  ;;  %v9489_v40 = vunpack.c.h.bf16 %v13192_v26  ;;  %v1658_v17 = vpop.xlane.xlu1 %1657 }
 0x2c5   : > { %9087 = vmatmul.msk.f32.gmra.mxu1 %vm1446_vm2, %v2375_v37  ;;  %v4496_v16 = vmul.f32 %v13173_v18, %v13108_v33  ;;  %v1793_v34 = vsub.f32 %v1729_v60, %v12835_v57  ;;  %v2279_v30 = vadd.f32 %v13215_v42, %v2243_v24  ;;  %v17617_v3 = vsub.f32 %v17571_v4, %v12728_v55 }
 0x2c6   : > { %17616 = vst [vmem:[#allocation37_spill] sm:$0xff] %v13205_v51  ;;  %v13226_v63 = vmul.f32 0.015625, %v12975_v47  ;;  %v4478_v37 = vmul.f32 0.5, %v4477_v22  ;;  %v4159_v53 = vsub.f32 %v4095_v59, %v4127_v10  ;;  %6267 = vmatpush.msrb.mxu0 %v9489_v40  ;;  %v2727_v57 = vmul.f32 %v13053_v48, %v13053_v48 }
 0x2c7   : > { %v4569_v41 = vmul.f32 %v4474_v43, %v17617_v3  ;;  %v13223_v45 = vpop.eup %9793  ;;  %v13231_v60 = vadd.f32 %v12907_v9, %v2561_v7  ;;  %v13235_v4 = vadd.f32 1e-05, %v1793_v34  ;;  %v5076_v24 = vmul.f32 %v12712_v44, %v12712_v44  ;;  %v13242_v43 = vpop.xlane.xlu0 %3903 }
 0x2c8   : > { %v4486_v55 = vmul.f32 %v13223_v45, %v13164_v54  ;;  %v2118_v47 = vmul.f32 %v13080_v49, %v2117_v0  ;;  %vm2120_vm9 = vweird.f32 %v13080_v49  ;;  %vm2311_vm10 = vcmp.ge.f32.partialorder %v2279_v30, 0.0 }
 0x2c9   : > { %17618 = vst [vmem:[#allocation42_spill] sm:$0xff] %v13231_v60  ;;  %v2344_v59 = vmul.f32 %v11031_v27, %v2279_v30  ;;  %v4497_v22 = vmul.f32 %v13173_v18, %v4496_v16  ;;  %9795 = vrsqrt.f32 %v13235_v4  ;;  %v4605_v10 = vmul.f32 %v13113_v62, %v4569_v41  ;;  %vm13253_vm1 = vmor %vm2119_vm8, %vm2120_vm9 }
 0x2ca   : > { %v4487_v7 = vmul.f32 %v13223_v45, %v4486_v55  ;;  %v4479_v40 = vsub.f32 1.5, %v4478_v37  ;;  %v13248_v34 = vadd.f32 1e-05, %v4159_v53  ;;  %v2779_v0 = vsel %vm1446_vm2, %v2727_v57, 0.0 }
 0x2cb   : > { %v2376_v3 = vsel %vm2311_vm10, %v2279_v30, %v2344_v59  ;;  %v4641_v16 = vadd.f32 %v13148_v61, %v4605_v10  ;;  %2780 = vadd.xlane.f32.xlu1 %v2779_v0  ;;  %v5118_v55 = vsel %vm3808_vm3, %v5076_v24, 0.0  ;;  %v2728_v41 = vmul.f32 %v13152_v50, %v13152_v50  ;;  %v4915_v59 = vpop.f32.mrf.mxu3  ;;  %v17622_v10 = vld [vmem:[#allocation63_spill] sm:$0xff]  ;;  %v2623_v0 = vpop.xlane.xlu2 %2622 }
 0x2cc   : > { %v4488_v44 = vmul.f32 0.5, %v4487_v7  ;;  %v2122_v30 = vsel %vm13253_vm1, %v13080_v49, %v2118_v47  ;;  %vm4481_vm11 = vweird.f32 %v13085_v2  ;;  %vm4501_vm12 = vweird.f32 %v13108_v33  ;;  %5119 = vadd.xlane.f32.xlu0 %v5118_v55 }
 0x2cd   : > { %9088 = vmatmul.msk.f32.gmra.mxu1 %vm1446_vm2, %v2376_v3  ;;  %v1730_v28 = vmul.f32 0.010416667, %v1658_v17  ;;  %vm4673_vm13 = vcmp.ge.f32.partialorder %v4641_v16, 0.0  ;;  %v4706_v53 = vmul.f32 %v10864_v11, %v4641_v16  ;;  %v2782_v57 = vsel %vm1446_vm2, %v2728_v41, 0.0  ;;  %v1661_v49 = vpop.xlane.xlu1 %1660 }
 0x2ce   : > { %v4489_v37 = vsub.f32 1.5, %v4488_v44  ;;  %v4498_v24 = vmul.f32 0.5, %v4497_v22  ;;  %v13270_v7 = vmul.f32 0.010416667, %v13064_v36  ;;  %9797 = vrsqrt.f32 %v13248_v34  ;;  %2783 = vadd.xlane.f32.xlu2 %v2782_v57 }
 0x2cf   : > { %v1794_v48 = vsub.f32 %v1730_v28, %v12926_v13  ;;  %v13274_v47 = vpop.eup %9795  ;;  %v4480_v44 = vmul.f32 %v13142_v31, %v4479_v40  ;;  %vm4482_vm14 = vweird.f32 %v13142_v31  ;;  %v4738_v17 = vsel %vm4673_vm13, %v4641_v16, %v4706_v53  ;;  %v2751_v53 = vpop.xlane.xlu0 %2750 }
 0x2d0   : > { %17621 = vst [vmem:[#allocation39_spill] sm:$0xff] %v13270_v7  ;;  %v17623_v22 = vsub.f32 %v17573_v15, %v17622_v10  ;;  %v4490_v36 = vmul.f32 %v13223_v45, %v4489_v37  ;;  %vm4492_vm15 = vweird.f32 %v13223_v45  ;;  %v2124_v13 = vmul.f32 %v13274_v47, %v13235_v4  ;;  %9152 = vmatmul.msk.f32.gmra.mxu3 %vm3808_vm3, %v4738_v17  ;;  %vm13301_vm4 = vmor %vm4481_vm11, %vm4482_vm14 }
 0x2d1   : > { %v13286_v55 = vadd.f32 1e-05, %v1794_v48  ;;  %v13289_v40 = vadd.f32 %v12981_v21, %v4915_v59  ;;  %v13293_v16 = vmul.f32 %v13270_v7, %v13270_v7  ;;  %v13296_v15 = vmul.f32 0.015625, %v13088_v46  ;;  %v17627_v46 = vld [vmem:[#allocation68_spill] sm:$0xff] }
 0x2d2   : > { %v2208_v3 = vmul.f32 %v2122_v30, %v17623_v22  ;;  %v4499_v28 = vsub.f32 1.5, %v4498_v24  ;;  %vm4491_vm5 = vweird.f32 %v13164_v54  ;;  %v2654_v37 = vsel %vm1446_vm2, %v13152_v50, 0.0  ;;  %v2564_v22 = vpop.f32.mrf.mxu1 }
 0x2d3   : > { %17624 = vst [vmem:[#allocation63_spill] sm:$0xff] %v13289_v40  ;;  %9799 = vrsqrt.f32 %v13286_v55  ;;  %vm4502_vm6 = vweird.f32 %v13173_v18  ;;  %v4187_v57 = vsub.f32 %v17627_v46, %v13117_v5  ;;  %vm13314_vm7 = vmor %vm4491_vm5, %vm4492_vm15  ;;  %2655 = vadd.xlane.f32.xlu1 %v2654_v37  ;;  %v2729_v54 = vmul.f32 %v13231_v60, %v13231_v60  ;;  %v4918_v30 = vpop.f32.mrf.mxu3 }
 0x2d4   : > { %v2244_v41 = vmul.f32 %v13176_v35, %v2208_v3  ;;  %v13321_v59 = vpop.eup %9797  ;;  %v4484_v48 = vsel %vm13301_vm4, %v13142_v31, %v4480_v44  ;;  %v4494_v5 = vsel %vm13314_vm7, %v13223_v45, %v4490_v36  ;;  %v2125_v17 = vmul.f32 %v13274_v47, %v2124_v13  ;;  %vm13346_vm9 = vmor %vm4501_vm12, %vm4502_vm6  ;;  %v17638_v44 = vld [vmem:[#allocation36_spill] sm:$0xff] }
 0x2d5   : > { %v1731_v10 = vmul.f32 0.010416667, %v1661_v49  ;;  %v2657_v37 = vsel %vm1446_vm2, %v13231_v60, 0.0  ;;  %v13335_v46 = vmul.f32 %v13173_v18, %v4499_v28  ;;  %v13340_v49 = vmul.f32 0.010416667, %v2623_v0 }
 0x2d6   : > { %v2280_v24 = vadd.f32 %v13215_v42, %v2244_v41  ;;  %v2785_v41 = vsel %vm1446_vm2, %v2729_v54, 0.0  ;;  %2658 = vadd.xlane.f32.xlu2 %v2657_v37  ;;  %v4571_v13 = vmul.f32 %v4494_v5, %v4187_v57  ;;  %v4526_v28 = vmul.f32 %v13321_v59, %v13248_v34  ;;  %v4023_v5 = vpop.xlane.xlu1 %4022 }
 0x2d7   : > { %2786 = vadd.xlane.f32.xlu0 %v2785_v41  ;;  %v1795_v45 = vsub.f32 %v1731_v10, %v13092_v29  ;;  %v17633_v54 = vsub.f32 %v17615_v58, %v13013_v8  ;;  %v2126_v10 = vmul.f32 0.5, %v2125_v17  ;;  %v2909_v41 = vmul.f32 %v13340_v49, %v13340_v49 }
 0x2d8   : > { %vm2312_vm8 = vcmp.ge.f32.partialorder %v2280_v24, 0.0  ;;  %v2345_v3 = vmul.f32 %v11031_v27, %v2280_v24  ;;  %v2877_v57 = vmul.f32 0.010416667, %v2751_v53  ;;  %v4125_v37 = vmul.f32 %v13296_v15, %v13296_v15 }
 0x2d9   : > { %v4570_v29 = vmul.f32 %v4484_v48, %v17633_v54  ;;  %v13355_v0 = vpop.eup %9799  ;;  %v13358_v33 = vadd.f32 1e-05, %v1795_v45  ;;  %v13367_v8 = vadd.f32 %v12907_v9, %v2564_v22  ;;  %v13370_v48 = vpop.xlane.xlu2 %4976  ;;  %v13377_v53 = vadd.f32 %v12981_v21, %v4918_v30  ;;  %v17637_v45 = vld [vmem:[#allocation46_spill] sm:$0xff] }
 0x2da   : > { %v2377_v2 = vsel %vm2312_vm8, %v2280_v24, %v2345_v3  ;;  %v17634_v24 = vld [vmem:[#allocation43_spill] sm:$0xff]  ;;  %v2941_v54 = vsub.f32 %v2877_v57, %v2909_v41  ;;  %v2134_v22 = vmul.f32 %v13355_v0, %v13286_v55  ;;  %v5077_v3 = vmul.f32 %v17638_v44, %v17638_v44 }
 0x2db   : > { %9089 = vmatmul.msk.f32.gmra.mxu1 %vm1446_vm2, %v2377_v2  ;;  %17635 = vst [vmem:[#allocation68_spill] sm:$0xff] %v13367_v8  ;;  %v4606_v58 = vmul.f32 %v13113_v62, %v4570_v29  ;;  %9801 = vrsqrt.f32 %v13358_v33  ;;  %v4607_v60 = vmul.f32 %v13113_v62, %v4571_v13  ;;  %v2127_v17 = vsub.f32 1.5, %v2126_v10 }
 0x2dc   : > { %17636 = vst [vmem:[#allocation43_spill] sm:$0xff] %v13377_v53  ;;  %v4527_v30 = vmul.f32 %v13321_v59, %v4526_v28  ;;  %v13389_v50 = vadd.f32 1e-05, %v2941_v54  ;;  %v13391_v53 = vpop.xlane.xlu0 %2753  ;;  %v5121_v57 = vsel %vm3808_vm3, %v5077_v3, 0.0  ;;  %v4993_v13 = vsel %vm3808_vm3, %v17638_v44, 0.0  ;;  %v2567_v54 = vpop.f32.mrf.mxu1 }
 0x2dd   : > { %v4642_v29 = vadd.f32 %v13148_v61, %v4606_v58  ;;  %v2660_v58 = vsel %vm1446_vm2, %v13367_v8, 0.0  ;;  %5122 = vadd.xlane.f32.xlu1 %v5121_v57  ;;  %v9488_v28 = vunpack.c.l.bf16 %v13192_v26  ;;  %v9516_v10 = vunpack.c.l.bf16 %v13100_v19 }
 0x2de   : > { %9803 = vrsqrt.f32 %v13389_v50  ;;  %v13403_v2 = vmul.f32 0.010416667, %v13221_v6  ;;  %v2135_v3 = vmul.f32 %v13355_v0, %v2134_v22  ;;  %4994 = vadd.xlane.f32.xlu2 %v4993_v13  ;;  %v4093_v51 = vmul.f32 0.015625, %v4023_v5 }
 0x2df   : > { %vm4674_vm10 = vcmp.ge.f32.partialorder %v4642_v29, 0.0  ;;  %v4707_v41 = vmul.f32 %v10864_v11, %v4642_v29  ;;  %2661 = vadd.xlane.f32.xlu0 %v2660_v58  ;;  %v2128_v7 = vmul.f32 %v13274_v47, %v2127_v17  ;;  %vm2130_vm1 = vweird.f32 %v13274_v47  ;;  %6268 = vmatpush.msrb.mxu0 %v9488_v28 }
 0x2e0   : > { %17639 = vst [vmem:[#allocation46_spill] sm:$0xff] %v13403_v2  ;;  %v4528_v57 = vmul.f32 0.5, %v4527_v30  ;;  %v4643_v26 = vadd.f32 %v13148_v61, %v4607_v60  ;;  %vm2129_vm11 = vweird.f32 %v13235_v4  ;;  %vm4531_vm12 = vweird.f32 %v13248_v34  ;;  %6057 = vmatpush.msrb.mxu2 %v9516_v10 }
 0x2e1   : > { %v4739_v40 = vsel %vm4674_vm10, %v4642_v29, %v4707_v41  ;;  %v13410_v19 = vpop.eup %9801  ;;  %v4157_v6 = vsub.f32 %v4093_v51, %v4125_v37  ;;  %v2730_v5 = vmul.f32 %v13367_v8, %v13367_v8  ;;  %v13417_v17 = vadd.f32 %v12907_v9, %v2567_v54  ;;  %vm13425_vm14 = vmor %vm2129_vm11, %vm2130_vm1  ;;  %v2626_v41 = vpop.xlane.xlu2 %2625 }
 0x2e2   : > { %9153 = vmatmul.msk.f32.gmra.mxu3 %vm3808_vm3, %v4739_v40  ;;  %v13420_v22 = vmul.f32 0.015625, %v13242_v43  ;;  %vm4675_vm13 = vcmp.ge.f32.partialorder %v4643_v26, 0.0  ;;  %v4708_v60 = vmul.f32 %v10864_v11, %v4643_v26  ;;  %v3898_v40 = vpop.xlane.xlu1 %3897  ;;  %v13431_v51 = vmul.f32 %v13403_v2, %v13403_v2  ;;  %v4921_v2 = vpop.f32.mrf.mxu3 }
 0x2e3   : > { %17640 = vst [vmem:[#allocation73_spill] sm:$0xff] %v13417_v17  ;;  %v2136_v30 = vmul.f32 0.5, %v2135_v3  ;;  %v13435_v43 = vadd.f32 1e-05, %v4157_v6  ;;  %v2132_v13 = vsel %vm13425_vm14, %v13274_v47, %v2128_v7  ;;  %v4529_v28 = vsub.f32 1.5, %v4528_v57 }
 0x2e4   : > { %17641 = vst [vmem:[#allocation74_spill] sm:$0xff] %v13420_v22  ;;  %v13437_v58 = vpop.eup %9803  ;;  %v2144_v10 = vmul.f32 %v13410_v19, %v13358_v33  ;;  %v5078_v54 = vmul.f32 %v12854_v12, %v12854_v12  ;;  %v4740_v3 = vsel %vm4675_vm13, %v4643_v26, %v4708_v60  ;;  %v2788_v6 = vsel %vm1446_vm2, %v2730_v5, 0.0  ;;  %v4980_v44 = vpop.xlane.xlu0 %4979  ;;  %v17645_v5 = vld [vmem:[#allocation71_spill] sm:$0xff] }
 0x2e5   : > { %v3038_v29 = vmul.f32 %v13437_v58, %v13389_v50  ;;  %v4996_v8 = vsel %vm3808_vm3, %v12854_v12, 0.0  ;;  %v13453_v4 = vmul.f32 %v13420_v22, %v13420_v22  ;;  %2789 = vadd.xlane.f32.xlu1 %v2788_v6  ;;  %v13456_v47 = vmul.f32 0.015625, %v3898_v40  ;;  %v2570_v6 = vpop.f32.mrf.mxu1 }
 0x2e6   : > { %v5124_v7 = vsel %vm3808_vm3, %v5078_v54, 0.0  ;;  %v13458_v57 = vmul.f32 0.010416667, %v2626_v41  ;;  %vm4532_vm15 = vweird.f32 %v13321_v59  ;;  %v2137_v26 = vsub.f32 1.5, %v2136_v30 }
 0x2e7   : > { %4997 = vadd.xlane.f32.xlu0 %v4996_v8  ;;  %9805 = vrsqrt.f32 %v13435_v43  ;;  %5125 = vadd.xlane.f32.xlu2 %v5124_v7  ;;  %v17646_v60 = vsub.f32 %v17579_v23, %v17645_v5  ;;  %v2145_v8 = vmul.f32 %v13410_v19, %v2144_v10  ;;  %v2878_v54 = vmul.f32 0.010416667, %v13391_v53  ;;  %vm13493_vm5 = vmor %vm4531_vm12, %vm4532_vm15 }
 0x2e8   : > { %v4126_v40 = vmul.f32 %v13456_v47, %v13456_v47  ;;  %v2910_v30 = vmul.f32 %v13458_v57, %v13458_v57  ;;  %v13473_v41 = vmul.f32 %v13321_v59, %v4529_v28  ;;  %vm2139_vm4 = vweird.f32 %v13286_v55 }
 0x2e9   : > { %v2209_v12 = vmul.f32 %v2132_v13, %v17646_v60  ;;  %v3039_v10 = vmul.f32 %v13437_v58, %v3038_v29  ;;  %v17648_v5 = vsub.f32 %v17594_v20, %v12967_v38  ;;  %v17649_v28 = vsel %vm13346_vm9, %v13173_v18, %v13335_v46  ;;  %v13546_v13 = vld [vmem:[%s10284_s24 + $0x8] sm:$0xff]  }
 0x2ea   : > { %9154 = vmatmul.msk.f32.gmra.mxu3 %vm3808_vm3, %v4740_v3  ;;  %v4158_v53 = vsub.f32 %v13226_v63, %v4126_v40  ;;  %v2942_v3 = vsub.f32 %v2878_v54, %v2910_v30  ;;  %v2138_v63 = vmul.f32 %v13355_v0, %v2137_v26  ;;  %vm2140_vm6 = vweird.f32 %v13355_v0  ;;  %v1664_v36 = vpop.xlane.xlu1 %1663  ;;  %v17654_v26 = vld [vmem:[#allocation45_spill] sm:$0xff] }
 0x2eb   : > { %v2245_v7 = vmul.f32 %v13176_v35, %v2209_v12  ;;  %v4572_v60 = vmul.f32 %v17649_v28, %v17648_v5  ;;  %v13500_v12 = vadd.f32 %v12981_v21, %v4921_v2  ;;  %v2731_v38 = vmul.f32 %v13417_v17, %v13417_v17  ;;  %vm13525_vm7 = vmor %vm2139_vm4, %vm2140_vm6 }
 0x2ec   : > { %v2146_v20 = vmul.f32 0.5, %v2145_v8  ;;  %v13505_v18 = vadd.f32 %v12907_v9, %v2570_v6  ;;  %v13507_v46 = vadd.f32 1e-05, %v4158_v53  ;;  %v13509_v34 = vadd.f32 1e-05, %v2942_v3 }
 0x2ed   : > { %17652 = vst [vmem:[#allocation71_spill] sm:$0xff] %v13500_v12  ;;  %v13511_v54 = vpop.eup %9805  ;;  %v2281_v2 = vadd.f32 %v13215_v42, %v2245_v7  ;;  %v4608_v30 = vmul.f32 %v13113_v62, %v4572_v60  ;;  %v2663_v8 = vsel %vm1446_vm2, %v13417_v17, 0.0  ;;  %v3040_v53 = vmul.f32 0.5, %v3039_v10  ;;  %v2629_v7 = vpop.xlane.xlu2 %2628 }
 0x2ee   : > { %17653 = vst [vmem:[#allocation75_spill] sm:$0xff] %v13505_v18  ;;  %9807 = vrsqrt.f32 %v13507_v46  ;;  %v2791_v3 = vsel %vm1446_vm2, %v2731_v38, 0.0  ;;  %2664 = vadd.xlane.f32.xlu1 %v2663_v8  ;;  %v2142_v5 = vsel %vm13525_vm7, %v13355_v0, %v2138_v63  ;;  %vm2149_vm8 = vweird.f32 %v13358_v33  ;;  %v2757_v8 = vpop.xlane.xlu0 %2756 }
 0x2ef   : > { %9809 = vrsqrt.f32 %v13509_v34  ;;  %vm2313_vm9 = vcmp.ge.f32.partialorder %v2281_v2, 0.0  ;;  %v2346_v55 = vmul.f32 %v11031_v27, %v2281_v2  ;;  %2792 = vadd.xlane.f32.xlu2 %v2791_v3  ;;  %v2147_v10 = vsub.f32 1.5, %v2146_v20 }
 0x2f0   : > { %v4506_v28 = vmul.f32 %v13511_v54, %v13435_v43  ;;  %v4644_v60 = vadd.f32 %v13148_v61, %v4608_v30  ;;  %v2666_v38 = vsel %vm1446_vm2, %v13505_v18, 0.0  ;;  %vm2150_vm10 = vweird.f32 %v13410_v19 }
 0x2f1   : > { %v2378_v0 = vsel %vm2313_vm9, %v2281_v2, %v2346_v55  ;;  %2667 = vadd.xlane.f32.xlu0 %v2666_v38  ;;  %v1732_v63 = vmul.f32 0.010416667, %v1664_v36  ;;  %v13543_v6 = vmul.f32 0.010416667, %v2629_v7  ;;  %v3041_v3 = vsub.f32 1.5, %v3040_v53  ;;  %v17657_v55 = vld [vmem:[#allocation38_spill] sm:$0xff]  ;;  %vm13588_vm13 = vmor %vm2149_vm8, %vm2150_vm10 }
 0x2f2   : > { %v13548_v20 = vmul.f32 0.015625, %v4980_v44  ;;  %9090 = vmatmul.msk.f32.gmra.mxu1 %vm1446_vm2, %v2378_v0  ;;  %vm4676_vm1 = vcmp.ge.f32.partialorder %v4644_v60, 0.0  ;;  %v4709_v30 = vmul.f32 %v10864_v11, %v4644_v60  ;;  %v2879_v2 = vmul.f32 0.010416667, %v2757_v8  ;;  %v17658_v36 = vld [vmem:[#allocation69_spill] sm:$0xff] }
 0x2f3   : > { %v1796_v9 = vsub.f32 %v1732_v63, %v13156_v1  ;;  %v2911_v40 = vmul.f32 %v13543_v6, %v13543_v6  ;;  %v17659_v7 = vsub.f32 %v17657_v55, %v17658_v36  ;;  %v13561_v44 = vmul.f32 %v13410_v19, %v2147_v10  ;;  %v4924_v1 = vpop.f32.mrf.mxu3  ;;  %v2573_v63 = vpop.f32.mrf.mxu1  ;;  %v17660_v36 = vld [vmem:[#allocation65_spill] sm:$0xff] }
 0x2f4   : > { %v13558_v12 = vpop.eup %9807  ;;  %v4507_v53 = vmul.f32 %v13511_v54, %v4506_v28  ;;  %v4741_v0 = vsel %vm4676_vm1, %v4644_v60, %v4709_v30  ;;  %v9485_v17 = vunpack.c.h.bf16 %v13546_v13  ;;  %v4999_v10 = vsel %vm3808_vm3, %v17660_v36, 0.0  ;;  %v1667_v30 = vpop.xlane.xlu1 %1666 }
 0x2f5   : > { %v2210_v38 = vmul.f32 %v2142_v5, %v17659_v7  ;;  %v13565_v22 = vpop.eup %9809  ;;  %v4516_v8 = vmul.f32 %v13558_v12, %v13507_v46  ;;  %9155 = vmatmul.msk.f32.gmra.mxu3 %vm3808_vm3, %v4741_v0  ;;  %v13570_v5 = vadd.f32 1e-05, %v1796_v9  ;;  %v2943_v55 = vsub.f32 %v2879_v2, %v2911_v40 }
 0x2f6   : > { %vm3043_vm11 = vweird.f32 %v13389_v50  ;;  %vm3044_vm12 = vweird.f32 %v13437_v58  ;;  %v3048_v28 = vmul.f32 %v13565_v22, %v13509_v34  ;;  %6269 = vmatpush.msrb.mxu0 %v9485_v17  ;;  %5000 = vadd.xlane.f32.xlu1 %v4999_v10  ;;  %v3042_v7 = vmul.f32 %v13437_v58, %v3041_v3 }
 0x2f7   : > { %v2246_v60 = vmul.f32 %v13176_v35, %v2210_v38  ;;  %v4517_v9 = vmul.f32 %v13558_v12, %v4516_v8  ;;  %9811 = vrsqrt.f32 %v13570_v5  ;;  %v13582_v40 = vadd.f32 1e-05, %v2943_v55  ;;  %vm13614_vm15 = vmor %vm3043_vm11, %vm3044_vm12 }
 0x2f8   : > { %v3049_v17 = vmul.f32 %v13565_v22, %v3048_v28  ;;  %v2732_v3 = vmul.f32 %v13505_v18, %v13505_v18  ;;  %v5079_v0 = vmul.f32 %v17660_v36, %v17660_v36  ;;  %v2152_v8 = vsel %vm13588_vm13, %v13410_v19, %v13561_v44  ;;  %v5108_v28 = vpop.xlane.xlu2 %5107  ;;  %v9479_v36 = vld [vmem:[%s10284_s24] sm:$0xff]  }
 0x2f9   : > { %v2282_v38 = vadd.f32 %v13215_v42, %v2246_v60  ;;  %v4508_v33 = vmul.f32 0.5, %v4507_v53  ;;  %v13603_v55 = vmul.f32 0.015625, %v13370_v48  ;;  %v5264_v10 = vmul.f32 %v13548_v20, %v13548_v20 }
 0x2fa   : > { %v4518_v60 = vmul.f32 0.5, %v4517_v9  ;;  %v2794_v23 = vsel %vm1446_vm2, %v2732_v3, 0.0  ;;  %9813 = vrsqrt.f32 %v13582_v40  ;;  %v5127_v48 = vsel %vm3808_vm3, %v5079_v0, 0.0 }
 0x2fb   : > { %17663 = vst [vmem:[#allocation45_spill] sm:$0xff] %v13603_v55  ;;  %vm2314_vm14 = vcmp.ge.f32.partialorder %v2282_v38, 0.0  ;;  %v2347_v18 = vmul.f32 %v11031_v27, %v2282_v38  ;;  %2795 = vadd.xlane.f32.xlu2 %v2794_v23  ;;  %v9484_v44 = vunpack.c.l.bf16 %v13546_v13  ;;  %v1733_v53 = vmul.f32 0.010416667, %v1667_v30  ;;  %5128 = vadd.xlane.f32.xlu0 %v5127_v48  ;;  %v4927_v30 = vpop.f32.mrf.mxu3 }
 0x2fc   : > { %v3046_v9 = vsel %vm13614_vm15, %v13437_v58, %v3042_v7  ;;  %v3050_v2 = vmul.f32 0.5, %v3049_v17  ;;  %v5232_v50 = vmul.f32 0.015625, %v5108_v28  ;;  %v13629_v23 = vadd.f32 %v12981_v21, %v4924_v1  ;;  %v13642_v28 = vld [vmem:[%s10229_s14] ss:$0 sm:$0xff] }
 0x2fd   : > { %v2379_v3 = vsel %vm2314_vm14, %v2282_v38, %v2347_v18  ;;  %v13626_v37 = vpop.eup %9811  ;;  %v13633_v13 = vmul.f32 %v13603_v55, %v13603_v55  ;;  %6270 = vmatpush.msrb.mxu0 %v9484_v44  ;;  %v1797_v58 = vsub.f32 %v1733_v53, %v13293_v16  ;;  %v13637_v18 = vpop.xlane.xlu0 %5110  ;;  %v9481_v7 = vunpack.c.h.bf16 %v9479_v36 }
 0x2fe   : > { %17667 = vst [vmem:[#allocation38_spill] sm:$0xff] %v13629_v23  ;;  %9091 = vmatmul.msk.f32.gmra.mxu1 %vm1446_vm2, %v2379_v3  ;;  %v4509_v17 = vsub.f32 1.5, %v4508_v33  ;;  %v13645_v1 = vadd.f32 %v13642_v28, %v2573_v63  ;;  %v5296_v19 = vsub.f32 %v5232_v50, %v5264_v10  ;;  %v17670_v48 = vsub.f32 %v17654_v26, %v13340_v49  ;;  %v13651_v23 = vld [vmem:[%s17666_s15] ss:$0 sm:$0xff]  ;;  %v2576_v16 = vpop.f32.mrf.mxu1  ;;  %v1670_v26 = vpop.xlane.xlu1 %1669 }
 0x2ff   : > { %v4519_v44 = vsub.f32 1.5, %v4518_v60  ;;  %6271 = vmatpush.msrb.mxu0 %v9481_v7  ;;  %v17673_v33 = vsub.f32 %v11922_v52, %v13075_v14  ;;  %v9480_v0 = vunpack.c.l.bf16 %v9479_v36  ;;  %vm4511_vm4 = vweird.f32 %v13435_v43 }
 0x300   : > { %17669 = vst [vmem:[#allocation69_spill] sm:$0xff] %v13645_v1  ;;  %v3357_v3 = vmul.f32 %v3046_v9, %v17670_v48  ;;  %v13658_v63 = vadd.f32 %v12981_v21, %v4927_v30  ;;  %v3051_v10 = vsub.f32 1.5, %v3050_v2  ;;  %v2154_v49 = vmul.f32 %v13626_v37, %v13570_v5  ;;  %v13662_v60 = vpop.eup %9813  ;;  %v13670_v21 = vld [vmem:[%s17671_s2] ss:$0 sm:$0xff]  ;;  %v13684_v30 = vld [vmem:[%s17605_s18 + $0x10] sm:$0xff]   ;;  %s14192_s2 = sld [smem:[#allocation2 + $0x3]] }
 0x301   : > { %v2211_v53 = vmul.f32 %v2152_v8, %v17673_v33  ;;  %vm4512_vm6 = vweird.f32 %v13511_v54  ;;  %vm4521_vm7 = vweird.f32 %v13507_v46  ;;  %vm3053_vm8 = vweird.f32 %v13509_v34  ;;  %6272 = vmatpush.msrb.mxu0 %v9480_v0  ;;  %17676 = vst [vmem:[#allocation78_spill] sm:$0xff] %v13684_v30 }
 0x302   : > { %17674 = vst [vmem:[#allocation76_spill] sm:$0xff] %v13658_v63  ;;  %v13667_v52 = vadd.f32 1e-05, %v1797_v58  ;;  %v4510_v14 = vmul.f32 %v13511_v54, %v4509_v17  ;;  %vm4522_vm9 = vweird.f32 %v13558_v12  ;;  %v13675_v36 = vadd.f32 %v13642_v28, %v2576_v16  ;;  %vm13697_vm1 = vmor %vm4511_vm4, %vm4512_vm6  ;;  %v17683_v63 = vld [vmem:[#allocation41_spill] sm:$0xff] }
 0x303   : > { %v13677_v8 = vadd.f32 1e-05, %v5296_v19  ;;  %v4520_v9 = vmul.f32 %v13558_v12, %v4519_v44  ;;  %vm3054_vm10 = vweird.f32 %v13565_v22  ;;  %v2247_v2 = vmul.f32 %v13176_v35, %v2211_v53  ;;  %v2632_v19 = vpop.xlane.xlu2 %2631  ;;  %vm13710_vm11 = vmor %vm4521_vm7, %vm4522_vm9 }
 0x304   : > { %17675 = vst [vmem:[#allocation77_spill] sm:$0xff] %v13675_v36  ;;  %v3393_v50 = vmul.f32 %v13651_v23, %v3357_v3  ;;  %v3052_v58 = vmul.f32 %v13565_v22, %v3051_v10  ;;  %v2155_v7 = vmul.f32 %v13626_v37, %v2154_v49  ;;  %v3058_v17 = vmul.f32 %v13662_v60, %v13582_v40  ;;  %vm13724_vm12 = vmor %vm3053_vm8, %vm3054_vm10 }
 0x305   : > { %v13691_v0 = vstv %s13624_s10  ;;  %9815 = vrsqrt.f32 %v13667_v52  ;;  %v2283_v3 = vadd.f32 %v13215_v42, %v2247_v2  ;;  %v2669_v16 = vsel %vm1446_vm2, %v13645_v1, 0.0  ;;  %s17741_s10 = sld [smem:[#allocation19_spill]] }
 0x306   : > { %v3429_v44 = vadd.f32 %v13670_v21, %v3393_v50  ;;  %9817 = vrsqrt.f32 %v13677_v8  ;;  %2670 = vadd.xlane.f32.xlu1 %v2669_v16  ;;  %v2733_v43 = vmul.f32 %v13645_v1, %v13645_v1  ;;  %v2672_v53 = vsel %vm1446_vm2, %v13675_v36, 0.0  ;;  %v2760_v50 = vpop.xlane.xlu0 %2759 }
 0x307   : > { %v9513_v10 = vunpack.c.h.bf16 %v13684_v30  ;;  %vm2315_vm13 = vcmp.ge.f32.partialorder %v2283_v3, 0.0  ;;  %v2348_v49 = vmul.f32 %v11031_v27, %v2283_v3  ;;  %2673 = vadd.xlane.f32.xlu2 %v2672_v53  ;;  %v4514_v16 = vsel %vm13697_vm1, %v13511_v54, %v4510_v14  ;;  %v17684_v27 = vld [vmem:[#allocation50_spill] sm:$0xff]  ;;  %v17685_v54 = vld [vmem:[#allocation51_spill] sm:$0xff] }
 0x308   : > { %vm3461_vm14 = vcmp.ge.f32.partialorder %v3429_v44, 0.0  ;;  %v3494_v2 = vmul.f32 %v13691_v0, %v3429_v44  ;;  %v4190_v1 = vsub.f32 %v17683_v63, %v13456_v47  ;;  %v4524_v34 = vsel %vm13710_vm11, %v13558_v12, %v4520_v9  ;;  %v2579_v47 = vpop.f32.mrf.mxu1 }
 0x309   : > { %v3056_v55 = vsel %vm13724_vm12, %v13565_v22, %v3052_v58  ;;  %6058 = vmatpush.msrb.mxu2 %v9513_v10  ;;  %v2156_v38 = vmul.f32 0.5, %v2155_v7  ;;  %v2380_v30 = vsel %vm2315_vm13, %v2283_v3, %v2348_v49  ;;  %v1734_v31 = vmul.f32 0.010416667, %v1670_v26  ;;  %v4032_v22 = vpop.xlane.xlu1 %4031  ;;  %v17689_v10 = vld [vmem:[#allocation62_spill] sm:$0xff] }
 0x30a   : > { %v3526_v53 = vsel %vm3461_vm14, %v3429_v44, %v3494_v2  ;;  %v2974_v48 = vsub.f32 %v17684_v27, %v13458_v57  ;;  %9092 = vmatmul.msk.f32.gmra.mxu1 %vm1446_vm2, %v2380_v30  ;;  %v2797_v12 = vsel %vm1446_vm2, %v2733_v43, 0.0  ;;  %v13748_v63 = vmul.f32 0.010416667, %v2632_v19 }
 0x30b   : > { %9192 = vmatmul.msk.f32.vlgmr.msrb.gmra.mxu0 %vm1446_vm2, %v3526_v53  ;;  %v13750_v9 = vpop.eup %9815  ;;  %v4574_v58 = vmul.f32 %v4524_v34, %v4190_v1  ;;  %v3059_v26 = vmul.f32 %v13662_v60, %v3058_v17  ;;  %2798 = vadd.xlane.f32.xlu0 %v2797_v12  ;;  %v1798_v27 = vsub.f32 %v1734_v31, %v13431_v51  ;;  %v2880_v44 = vmul.f32 0.010416667, %v2760_v50  ;;  %v17687_v17 = vld [vmem:[#allocation52_spill] sm:$0xff] }
 0x30c   : > { %v17686_v57 = vsub.f32 %v17634_v24, %v13296_v15  ;;  %v13757_v30 = vpop.eup %9817  ;;  %v3358_v3 = vmul.f32 %v3056_v55, %v2974_v48  ;;  %v2912_v19 = vmul.f32 %v13748_v63, %v13748_v63  ;;  %v2734_v33 = vmul.f32 %v13675_v36, %v13675_v36 }
 0x30d   : > { %v2157_v1 = vsub.f32 1.5, %v2156_v38  ;;  %v2975_v43 = vsub.f32 %v17687_v17, %v13543_v6  ;;  %v13766_v31 = vadd.f32 %v13642_v28, %v2579_v47  ;;  %vm2159_vm15 = vweird.f32 %v13570_v5  ;;  %v2635_v38 = vpop.xlane.xlu2 %2634 }
 0x30e   : > { %v4573_v7 = vmul.f32 %v4514_v16, %v17686_v57  ;;  %v2164_v24 = vmul.f32 %v13750_v9, %v13667_v52  ;;  %v2944_v51 = vsub.f32 %v2880_v44, %v2912_v19  ;;  %v2800_v55 = vsel %vm1446_vm2, %v2734_v33, 0.0 }
 0x30f   : > { %17688 = vst [vmem:[#allocation41_spill] sm:$0xff] %v13766_v31  ;;  %v5002_v46 = vsel %vm3808_vm3, %v17689_v10, 0.0  ;;  %vm2160_vm4 = vweird.f32 %v13626_v37  ;;  %v3060_v49 = vmul.f32 0.5, %v3059_v26  ;;  %v13776_v2 = vadd.f32 1e-05, %v1798_v27  ;;  %2801 = vadd.xlane.f32.xlu1 %v2800_v55  ;;  %v2763_v27 = vpop.xlane.xlu0 %2762 }
 0x310   : > { %v4609_v15 = vmul.f32 %v13113_v62, %v4573_v7  ;;  %5003 = vadd.xlane.f32.xlu2 %v5002_v46  ;;  %v4610_v16 = vmul.f32 %v13113_v62, %v4574_v58  ;;  %v3394_v34 = vmul.f32 %v13651_v23, %v3358_v3  ;;  %v5402_v53 = vmul.f32 %v13757_v30, %v13677_v8  ;;  %vm13820_vm9 = vmor %vm2159_vm15, %vm2160_vm4 }
 0x311   : > { %v4096_v48 = vmul.f32 0.015625, %v4032_v22  ;;  %v13783_v47 = vadd.f32 1e-05, %v2944_v51  ;;  %v13786_v26 = vmul.f32 0.010416667, %v2635_v38  ;;  %v2158_v57 = vmul.f32 %v13626_v37, %v2157_v1  ;;  %v4930_v22 = vpop.f32.mrf.mxu3 }
 0x312   : > { %v4645_v50 = vadd.f32 %v13148_v61, %v4609_v15  ;;  %v2165_v7 = vmul.f32 %v13750_v9, %v2164_v24  ;;  %v2675_v62 = vsel %vm1446_vm2, %v13766_v31, 0.0  ;;  %v3061_v3 = vsub.f32 1.5, %v3060_v49  ;;  %v5105_v24 = vpop.xlane.xlu1 %5104  ;;  %v13810_v38 = vld [vmem:[%s17515_s16] ss:$0 sm:$0xff] }
 0x313   : > { %v4160_v58 = vsub.f32 %v4096_v48, %v13453_v4  ;;  %vm3063_vm7 = vweird.f32 %v13582_v40  ;;  %9819 = vrsqrt.f32 %v13776_v2  ;;  %2676 = vadd.xlane.f32.xlu0 %v2675_v62  ;;  %v2913_v44 = vmul.f32 %v13786_v26, %v13786_v26 }
 0x314   : > { %vm4677_vm6 = vcmp.ge.f32.partialorder %v4645_v50, 0.0  ;;  %v4710_v12 = vmul.f32 %v10864_v11, %v4645_v50  ;;  %v5403_v33 = vmul.f32 %v13757_v30, %v5402_v53  ;;  %v4646_v4 = vadd.f32 %v13148_v61, %v4610_v16 }
 0x315   : > { %v13799_v1 = vadd.f32 1e-05, %v4160_v58  ;;  %v3430_v15 = vadd.f32 %v13670_v21, %v3394_v34  ;;  %9821 = vrsqrt.f32 %v13783_v47  ;;  %v2881_v51 = vmul.f32 0.010416667, %v2763_v27 }
 0x316   : > { %v4742_v19 = vsel %vm4677_vm6, %v4645_v50, %v4710_v12  ;;  %v5080_v55 = vmul.f32 %v17689_v10, %v17689_v10  ;;  %v2735_v46 = vmul.f32 %v13766_v31, %v13766_v31  ;;  %vm3064_vm8 = vweird.f32 %v13662_v60 }
 0x317   : > { %9156 = vmatmul.msk.f32.gmra.mxu3 %vm3808_vm3, %v4742_v19  ;;  %v13813_v49 = vadd.f32 %v13810_v38, %v4930_v22  ;;  %v2166_v61 = vmul.f32 0.5, %v2165_v7  ;;  %9823 = vrsqrt.f32 %v13799_v1  ;;  %v2945_v16 = vsub.f32 %v2881_v51, %v2913_v44  ;;  %v2638_v19 = vpop.xlane.xlu2 %2637  ;;  %vm13853_vm13 = vmor %vm3063_vm7, %vm3064_vm8 }
 0x318   : > { %vm4678_vm10 = vcmp.ge.f32.partialorder %v4646_v4, 0.0  ;;  %v4711_v34 = vmul.f32 %v10864_v11, %v4646_v4  ;;  %vm3462_vm1 = vcmp.ge.f32.partialorder %v3430_v15, 0.0  ;;  %v2162_v53 = vsel %vm13820_vm9, %v13626_v37, %v2158_v57 }
 0x319   : > { %17690 = vst [vmem:[#allocation50_spill] sm:$0xff] %v13813_v49  ;;  %v3495_v48 = vmul.f32 %v13691_v0, %v3430_v15  ;;  %v5130_v12 = vsel %vm3808_vm3, %v5080_v55, 0.0  ;;  %v2803_v27 = vsel %vm1446_vm2, %v2735_v46, 0.0  ;;  %v13831_v5 = vpop.eup %9819  ;;  %v3062_v7 = vmul.f32 %v13662_v60, %v3061_v3 }
 0x31a   : > { %v5404_v62 = vmul.f32 0.5, %v5403_v33  ;;  %v13834_v58 = vadd.f32 1e-05, %v2945_v16  ;;  %v4743_v22 = vsel %vm4678_vm10, %v4646_v4, %v4711_v34  ;;  %5131 = vadd.xlane.f32.xlu1 %v5130_v12  ;;  %2804 = vadd.xlane.f32.xlu2 %v2803_v27  ;;  %vm2169_vm11 = vweird.f32 %v13667_v52  ;;  %v2766_v33 = vpop.xlane.xlu0 %2765  ;;  %v2582_v16 = vpop.f32.mrf.mxu1 }
 0x31b   : > { %v13838_v37 = vmul.f32 0.015625, %v13637_v18  ;;  %v3527_v57 = vsel %vm3462_vm1, %v3430_v15, %v3495_v48  ;;  %v5005_v44 = vsel %vm3808_vm3, %v13072_v25, 0.0  ;;  %v13842_v51 = vpop.eup %9821  ;;  %v2167_v55 = vsub.f32 1.5, %v2166_v61 }
 0x31c   : > { %vm5407_vm12 = vweird.f32 %v13677_v8  ;;  %9825 = vrsqrt.f32 %v13834_v58  ;;  %9193 = vmatmul.msk.f32.gmra.mxu0 %vm1446_vm2, %v3527_v57  ;;  %5006 = vadd.xlane.f32.xlu0 %v5005_v44  ;;  %v5231_v3 = vmul.f32 0.015625, %v5105_v24  ;;  %vm2170_vm14 = vweird.f32 %v13750_v9 }
 0x31d   : > { %v13847_v4 = vpop.eup %9823  ;;  %v2174_v15 = vmul.f32 %v13831_v5, %v13776_v2  ;;  %v13861_v46 = vmul.f32 0.010416667, %v2638_v19  ;;  %v17695_v24 = vsub.f32 %v17612_v39, %v13138_v32  ;;  %v3066_v40 = vsel %vm13853_vm13, %v13662_v60, %v3062_v7  ;;  %v4983_v39 = vpop.xlane.xlu1 %4982 }
 0x31e   : > { %v5405_v50 = vsub.f32 1.5, %v5404_v62  ;;  %vm5408_vm15 = vweird.f32 %v13757_v30  ;;  %v5295_v34 = vsub.f32 %v5231_v3, %v13633_v13  ;;  %v3068_v48 = vmul.f32 %v13842_v51, %v13783_v47  ;;  %v4933_v60 = vpop.f32.mrf.mxu3 }
 0x31f   : > { %9157 = vmatmul.msk.f32.gmra.mxu3 %vm3808_vm3, %v4743_v22  ;;  %v2212_v61 = vmul.f32 %v2162_v53, %v17695_v24  ;;  %v2914_v12 = vmul.f32 %v13861_v46, %v13861_v46  ;;  %v2882_v27 = vmul.f32 0.010416667, %v2766_v33  ;;  %v13877_v53 = vmul.f32 %v13750_v9, %v2167_v55  ;;  %v17703_v33 = vld [vmem:[#allocation53_spill] sm:$0xff]  ;;  %vm13935_vm6 = vmor %vm5407_vm12, %vm5408_vm15 }
 0x320   : > { %v4536_v7 = vmul.f32 %v13847_v4, %v13799_v1  ;;  %v13881_v62 = vadd.f32 1e-05, %v5295_v34  ;;  %v17696_v13 = vsub.f32 %v17637_v45, %v13200_v56  ;;  %v17697_v22 = vsel %vm13493_vm5, %v13321_v59, %v13473_v41  ;;  %v17698_v45 = vld [vmem:[#allocation56_spill] sm:$0xff]  ;;  %vm13911_vm5 = vmor %vm2169_vm11, %vm2170_vm14 }
 0x321   : > { %v2248_v32 = vmul.f32 %v13176_v35, %v2212_v61  ;;  %v2175_v35 = vmul.f32 %v13831_v5, %v2174_v15  ;;  %v2946_v57 = vsub.f32 %v2882_v27, %v2914_v12  ;;  %v3359_v55 = vmul.f32 %v3066_v40, %v2975_v43  ;;  %v13928_v15 = vld [vmem:[%s17405_s12] ss:$0 sm:$0xff] }
 0x322   : > { %v4575_v19 = vmul.f32 %v17697_v22, %v17696_v13  ;;  %v13896_v3 = vpop.eup %9825  ;;  %v13899_v56 = vmul.f32 %v13757_v30, %v5405_v50  ;;  %v13904_v59 = vadd.f32 %v13642_v28, %v2582_v16  ;;  %9827 = vrsqrt.f32 %v13881_v62  ;;  %v17706_v50 = vld [vmem:[#allocation70_spill] sm:$0xff]  ;;  %v13950_v12 = vld [vmem:[%s10259_s20] ss:$0 sm:$0xff]  ;;  %v2769_v22 = vpop.xlane.xlu0 %2768 }
 0x323   : > { %v2284_v44 = vadd.f32 %v13215_v42, %v2248_v32  ;;  %v3069_v41 = vmul.f32 %v13842_v51, %v3068_v48  ;;  %v13917_v6 = vadd.f32 %v13810_v38, %v4933_v60  ;;  %v13919_v17 = vadd.f32 1e-05, %v2946_v57 }
 0x324   : > { %17699 = vst [vmem:[#allocation51_spill] sm:$0xff] %v13904_v59  ;;  %v2172_v43 = vsel %vm13911_vm5, %v13750_v9, %v13877_v53  ;;  %v4537_v52 = vmul.f32 %v13847_v4, %v4536_v7  ;;  %v4611_v24 = vmul.f32 %v13928_v15, %v4575_v19  ;;  %v2176_v40 = vmul.f32 0.5, %v2175_v35  ;;  %v2641_v53 = vpop.xlane.xlu2 %2640 }
 0x325   : > { %17702 = vst [vmem:[#allocation52_spill] sm:$0xff] %v13917_v6  ;;  %vm2316_vm4 = vcmp.ge.f32.partialorder %v2284_v44, 0.0  ;;  %v2349_v18 = vmul.f32 %v17703_v33, %v2284_v44  ;;  %v3078_v16 = vmul.f32 %v13896_v3, %v13834_v58  ;;  %v3395_v34 = vmul.f32 %v13651_v23, %v3359_v55 }
 0x326   : > { %vm2179_vm7 = vweird.f32 %v13776_v2  ;;  %v4647_v27 = vadd.f32 %v13950_v12, %v4611_v24  ;;  %v2678_v32 = vsel %vm1446_vm2, %v13904_v59, 0.0  ;;  %v3070_v60 = vmul.f32 0.5, %v3069_v41  ;;  %v13969_v24 = vpop.xlane.xlu1 %5113 }
 0x327   : > { %v2381_v8 = vsel %vm2316_vm4, %v2284_v44, %v2349_v18  ;;  %9829 = vrsqrt.f32 %v13919_v17  ;;  %v3431_v7 = vadd.f32 %v13670_v21, %v3395_v34  ;;  %2679 = vadd.xlane.f32.xlu1 %v2678_v32  ;;  %v2736_v13 = vmul.f32 %v13904_v59, %v13904_v59  ;;  %v2585_v44 = vpop.f32.mrf.mxu1 }
 0x328   : > { %9093 = vmatmul.msk.f32.gmra.mxu1 %vm1446_vm2, %v2381_v8  ;;  %v13960_v19 = vpop.eup %9827  ;;  %v4538_v35 = vmul.f32 0.5, %v4537_v52  ;;  %vm4679_vm8 = vcmp.ge.f32.partialorder %v4647_v27, 0.0  ;;  %v4712_v57 = vmul.f32 %v10864_v11, %v4647_v27  ;;  %v13963_v55 = vmul.f32 0.015625, %v4983_v39 }
 0x329   : > { %v2177_v42 = vsub.f32 1.5, %v2176_v40  ;;  %vm3073_vm9 = vweird.f32 %v13783_v47  ;;  %v3079_v41 = vmul.f32 %v13896_v3, %v3078_v16  ;;  %v5392_v18 = vmul.f32 %v13960_v19, %v13881_v62  ;;  %v17736_v47 = vld [vmem:[#allocation48_spill] sm:$0xff] }
 0x32a   : > { %vm3463_vm10 = vcmp.ge.f32.partialorder %v3431_v7, 0.0  ;;  %v4744_v34 = vsel %vm4679_vm8, %v4647_v27, %v4712_v57  ;;  %v3496_v52 = vmul.f32 %v13691_v0, %v3431_v7  ;;  %v2806_v8 = vsel %vm1446_vm2, %v2736_v13, 0.0 }
 0x32b   : > { %v5265_v39 = vmul.f32 %v13963_v55, %v13963_v55  ;;  %vm2180_vm1 = vweird.f32 %v13831_v5  ;;  %v3071_v40 = vsub.f32 1.5, %v3070_v60  ;;  %9158 = vmatmul.msk.f32.gmra.mxu3 %vm3808_vm3, %v4744_v34  ;;  %2807 = vadd.xlane.f32.xlu0 %v2806_v8  ;;  %v13978_v16 = vadd.f32 %v13642_v28, %v2585_v44  ;;  %v4936_v34 = vpop.f32.mrf.mxu3  ;;  %v17708_v8 = vld [vmem:[#allocation44_spill] sm:$0xff] }
 0x32c   : > { %v13980_v32 = vmul.f32 0.010416667, %v2641_v53  ;;  %v4539_v48 = vsub.f32 1.5, %v4538_v35  ;;  %vm4541_vm11 = vweird.f32 %v13799_v1  ;;  %v3528_v27 = vsel %vm3463_vm10, %v3431_v7, %v3496_v52  ;;  %vm14013_vm14 = vmor %vm2179_vm7, %vm2180_vm1 }
 0x32d   : > { %17707 = vst [vmem:[#allocation56_spill] sm:$0xff] %v13978_v16  ;;  %v5297_v13 = vsub.f32 %v13838_v37, %v5265_v39  ;;  %v13984_v57 = vpop.eup %9829  ;;  %vm3074_vm12 = vweird.f32 %v13842_v51  ;;  %vm4542_vm13 = vweird.f32 %v13847_v4  ;;  %v5393_v60 = vmul.f32 %v13960_v19, %v5392_v18  ;;  %9194 = vmatmul.msk.f32.gmra.mxu0 %vm1446_vm2, %v3528_v27  ;;  %v17709_v39 = vld [vmem:[#allocation39_spill] sm:$0xff] }
 0x32e   : > { %v2915_v53 = vmul.f32 %v13980_v32, %v13980_v32  ;;  %v2178_v35 = vmul.f32 %v13831_v5, %v2177_v42  ;;  %v3080_v44 = vmul.f32 0.5, %v3079_v41  ;;  %v2883_v37 = vmul.f32 0.010416667, %v2769_v22  ;;  %vm14026_vm15 = vmor %vm3073_vm9, %vm3074_vm12 }
 0x32f   : > { %v13993_v7 = vadd.f32 1e-05, %v5297_v13  ;;  %v3072_v52 = vmul.f32 %v13842_v51, %v3071_v40  ;;  %v17710_v14 = vsub.f32 %v17708_v8, %v17709_v39  ;;  %v2681_v18 = vsel %vm1446_vm2, %v13978_v16, 0.0  ;;  %v4986_v40 = vpop.xlane.xlu2 %4985  ;;  %v10029_v13 = vld [vmem:[%s10214_s29] ss:$0 sm:$0xff]  ;;  %vm14043_vm4 = vmor %vm4541_vm11, %vm4542_vm13 }
 0x330   : > { %v2737_v27 = vmul.f32 %v13978_v16, %v13978_v16  ;;  %v14004_v42 = vmul.f32 %v13847_v4, %v4539_v48  ;;  %v3088_v41 = vmul.f32 %v13984_v57, %v13919_v17  ;;  %v2947_v22 = vsub.f32 %v2883_v37, %v2915_v53  ;;  %2682 = vadd.xlane.f32.xlu2 %v2681_v18  ;;  %v2644_v53 = vpop.xlane.xlu0 %2643  ;;  %v17722_v16 = vld [vmem:[#allocation46_spill] sm:$0xff] }
 0x331   : > { %v2213_v9 = vmul.f32 %v2172_v43, %v17710_v14  ;;  %9831 = vrsqrt.f32 %v13993_v7  ;;  %v14018_v43 = vadd.f32 %v13810_v38, %v4936_v34  ;;  %v5394_v48 = vmul.f32 0.5, %v5393_v60  ;;  %v17716_v34 = vld [vmem:[#allocation58_spill] sm:$0xff] }
 0x332   : > { %v2809_v39 = vsel %vm1446_vm2, %v2737_v27, 0.0  ;;  %v3081_v37 = vsub.f32 1.5, %v3080_v44  ;;  %vm3083_vm5 = vweird.f32 %v13834_v58  ;;  %v14033_v60 = vadd.f32 1e-05, %v2947_v22  ;;  %v10030_v44 = vld [vmem:[%s17408_s3] ss:$0 sm:$0xff] }
 0x333   : > { %17713 = vst [vmem:[#allocation53_spill] sm:$0xff] %v14018_v43  ;;  %v2249_v8 = vmul.f32 %v10029_v13, %v2213_v9  ;;  %2810 = vadd.xlane.f32.xlu1 %v2809_v39  ;;  %v17717_v9 = vld [vmem:[#allocation78_spill] sm:$0xff]  ;;  %v2182_v29 = vsel %vm14013_vm14, %v13831_v5, %v2178_v35  ;;  %vm3084_vm7 = vweird.f32 %v13896_v3  ;;  %v14049_v18 = vmul.f32 0.015625, %v4986_v40  ;;  %v2588_v39 = vpop.f32.mrf.mxu1  ;;  %s17742_s3 = sld [smem:[#allocation20_spill]] }
 0x334   : > { %v9512_v27 = vunpack.c.l.bf16 %v17717_v9  ;;  %v2772_v9 = vpop.xlane.xlu1 %2771  ;;  %v3076_v5 = vsel %vm14026_vm15, %v13842_v51, %v3072_v52  ;;  %v3089_v35 = vmul.f32 %v13984_v57, %v3088_v41  ;;  %9833 = vrsqrt.f32 %v14033_v60  ;;  %vm14103_vm11 = vmor %vm3083_vm5, %vm3084_vm7 }
 0x335   : > { %v2285_v22 = vadd.f32 %v10030_v44, %v2249_v8  ;;  %v5395_v14 = vsub.f32 1.5, %v5394_v48  ;;  %vm5397_vm8 = vweird.f32 %v13881_v62  ;;  %v5266_v8 = vmul.f32 %v14049_v18, %v14049_v18  ;;  %v17720_v48 = vld [vmem:[#allocation54_spill] sm:$0xff] }
 0x336   : > { %6059 = vmatpush.msrb.mxu2 %v9512_v27  ;;  %v3082_v52 = vmul.f32 %v13896_v3, %v3081_v37  ;;  %vm5398_vm10 = vweird.f32 %v13960_v19  ;;  %v5234_v41 = vmul.f32 0.015625, %v13969_v24  ;;  %v14070_v2 = vadd.f32 %v13642_v28, %v2588_v39  ;;  %v17721_v37 = vld [vmem:[#allocation47_spill] sm:$0xff] }
 0x337   : > { %vm2317_vm9 = vcmp.ge.f32.partialorder %v2285_v22, 0.0  ;;  %v2350_v40 = vmul.f32 %v17703_v33, %v2285_v22  ;;  %v14064_v51 = vpop.eup %9831  ;;  %v14076_v6 = vmul.f32 0.010416667, %v2644_v53  ;;  %v17723_v59 = vsub.f32 %v17721_v37, %v17722_v16  ;;  %v17725_v53 = vld [vmem:[#allocation37_spill] sm:$0xff]  ;;  %vm14131_vm13 = vmor %vm5397_vm8, %vm5398_vm10 }
 0x338   : > { %v5412_v1 = vmul.f32 %v14064_v51, %v13993_v7  ;;  %v5298_v49 = vsub.f32 %v5234_v41, %v5266_v8  ;;  %v5081_v24 = vmul.f32 %v13072_v25, %v13072_v25  ;;  %v17724_v39 = vsub.f32 %v17698_v45, %v13748_v63 }
 0x339   : > { %v2382_v43 = vsel %vm2317_vm9, %v2285_v22, %v2350_v40  ;;  %v2214_v31 = vmul.f32 %v2182_v29, %v17723_v59  ;;  %v5396_v10 = vmul.f32 %v13960_v19, %v5395_v14  ;;  %v3090_v36 = vmul.f32 0.5, %v3089_v35  ;;  %v14115_v14 = vpop.xlane.xlu0 %4988 }
 0x33a   : > { %9094 = vmatmul.msk.f32.gmra.mxu1 %vm1446_vm2, %v2382_v43  ;;  %v3360_v27 = vmul.f32 %v3076_v5, %v17724_v39  ;;  %vm3094_vm1 = vweird.f32 %v13984_v57  ;;  %v5008_v43 = vsel %vm3808_vm3, %v17725_v53, 0.0  ;;  %v2684_v22 = vsel %vm1446_vm2, %v14070_v2, 0.0  ;;  %v14093_v16 = vpop.eup %9833  ;;  %v14113_v5 = vpop.xlane.xlu2 %2774 }
 0x33b   : > { %v14095_v29 = vadd.f32 1e-05, %v5298_v49  ;;  %v2250_v59 = vmul.f32 %v10029_v13, %v2214_v31  ;;  %v5133_v40 = vsel %vm3808_vm3, %v5081_v24, 0.0  ;;  %5009 = vadd.xlane.f32.xlu1 %v5008_v43  ;;  %2685 = vadd.xlane.f32.xlu0 %v2684_v22  ;;  %vm3093_vm12 = vweird.f32 %v13919_v17 }
 0x33c   : > { %v3396_v63 = vmul.f32 %v13651_v23, %v3360_v27  ;;  %v5413_v49 = vmul.f32 %v14064_v51, %v5412_v1  ;;  %v3098_v31 = vmul.f32 %v14093_v16, %v14033_v60  ;;  %v2916_v13 = vmul.f32 %v14076_v6, %v14076_v6  ;;  %5134 = vadd.xlane.f32.xlu2 %v5133_v40  ;;  %v17728_v27 = vld [vmem:[#allocation57_spill] sm:$0xff]  ;;  %vm14178_vm7 = vmor %vm3093_vm12, %vm3094_vm1 }
 0x33d   : > { %v2884_v35 = vmul.f32 0.010416667, %v2772_v9  ;;  %v3086_v58 = vsel %vm14103_vm11, %v13896_v3, %v3082_v52  ;;  %9835 = vrsqrt.f32 %v14095_v29  ;;  %v2286_v8 = vadd.f32 %v10030_v44, %v2250_v59  ;;  %v14125_v9 = vpop.xlane.xlu1 %2646  ;;  %v4939_v44 = vpop.f32.mrf.mxu3 }
 0x33e   : > { %v3432_v1 = vadd.f32 %v13670_v21, %v3396_v63  ;;  %v3091_v41 = vsub.f32 1.5, %v3090_v36  ;;  %v3099_v24 = vmul.f32 %v14093_v16, %v3098_v31  ;;  %v17731_v43 = vsub.f32 %v17706_v50, %v13786_v26  ;;  %v9569_v63 = vld [vmem:[%s17605_s18 + $0x8] sm:$0xff]  }
 0x33f   : > { %v2948_v39 = vsub.f32 %v2884_v35, %v2916_v13  ;;  %vm2318_vm14 = vcmp.ge.f32.partialorder %v2286_v8, 0.0  ;;  %v2351_v36 = vmul.f32 %v17703_v33, %v2286_v8  ;;  %v5400_v59 = vsel %vm14131_vm13, %v13960_v19, %v5396_v10  ;;  %v17732_v35 = vld [vmem:[#allocation49_spill] sm:$0xff]  ;;  %v17733_v33 = vld [vmem:[#allocation74_spill] sm:$0xff] }
 0x340   : > { %vm3464_vm15 = vcmp.ge.f32.partialorder %v3432_v1, 0.0  ;;  %v3497_v52 = vmul.f32 %v13691_v0, %v3432_v1  ;;  %v3361_v22 = vmul.f32 %v3086_v58, %v17731_v43  ;;  %v5414_v62 = vmul.f32 0.5, %v5413_v49  ;;  %v17737_v49 = vld [vmem:[#allocation45_spill] sm:$0xff] }
 0x341   : > { %v14143_v40 = vadd.f32 1e-05, %v2948_v39  ;;  %v3100_v45 = vmul.f32 0.5, %v3099_v24  ;;  %v2383_v31 = vsel %vm2318_vm14, %v2286_v8, %v2351_v36  ;;  %v17734_v37 = vsub.f32 %v17732_v35, %v17733_v33 }
 0x342   : > { %v3529_v13 = vsel %vm3464_vm15, %v3432_v1, %v3497_v52  ;;  %v17735_v26 = vsel %vm14043_vm4, %v13847_v4, %v14004_v42  ;;  %v3092_v58 = vmul.f32 %v13984_v57, %v3091_v41  ;;  %vm5417_vm5 = vweird.f32 %v13993_v7  ;;  %9095 = vmatmul.msk.f32.gmra.mxu1 %vm1446_vm2, %v2383_v31 }
 0x343   : > { %v4576_v50 = vmul.f32 %v17735_v26, %v17734_v37  ;;  %v14157_v10 = vadd.f32 %v13810_v38, %v4939_v44  ;;  %9195 = vmatmul.msk.f32.gmra.mxu0 %vm1446_vm2, %v3529_v13  ;;  %9837 = vrsqrt.f32 %v14143_v40  ;;  %v14162_v19 = vpop.eup %9835  ;;  %v17738_v8 = vsub.f32 %v17736_v47, %v17737_v49  ;;  %v14205_v26 = vld [vmem:[%s17741_s10] ss:$0 sm:$0xff] }
 0x344   : > { %v9509_v1 = vunpack.c.h.bf16 %v9569_v63  ;;  %v2738_v41 = vmul.f32 %v14070_v2, %v14070_v2  ;;  %v5415_v37 = vsub.f32 1.5, %v5414_v62  ;;  %vm3103_vm4 = vweird.f32 %v14033_v60  ;;  %v2650_v62 = vpop.xlane.xlu2 %2649 }
 0x345   : > { %v5711_v4 = vmul.f32 %v5400_v59, %v17738_v8  ;;  %v4612_v42 = vmul.f32 %v13928_v15, %v4576_v50  ;;  %v5422_v24 = vmul.f32 %v14162_v19, %v14095_v29  ;;  %v3397_v39 = vmul.f32 %v13651_v23, %v3361_v22  ;;  %v9503_v59 = vld [vmem:[%s17605_s18] sm:$0xff]   ;;  %v14202_v33 = vpop.xlane.xlu1 %4991 }
 0x346   : > { %v3101_v15 = vsub.f32 1.5, %v3100_v45  ;;  %6060 = vmatpush.msrb.mxu2 %v9509_v1  ;;  %v2812_v36 = vsel %vm1446_vm2, %v2738_v41, 0.0  ;;  %v9508_v52 = vunpack.c.l.bf16 %v9569_v63  ;;  %v3096_v43 = vsel %vm14178_vm7, %v13984_v57, %v3092_v58 }
 0x347   : > { %v4648_v44 = vadd.f32 %v13950_v12, %v4612_v42  ;;  %vm5418_vm8 = vweird.f32 %v14064_v51  ;;  %2813 = vadd.xlane.f32.xlu2 %v2812_v36  ;;  %v3433_v17 = vadd.f32 %v13670_v21, %v3397_v39  ;;  %v5082_v22 = vmul.f32 %v17725_v53, %v17725_v53  ;;  %v2778_v12 = vpop.xlane.xlu0 %2777  ;;  %v14231_v39 = vld [vmem:[%s17742_s3] ss:$0 sm:$0xff] }
 0x348   : > { %vm3104_vm9 = vweird.f32 %v14093_v16  ;;  %v5423_v63 = vmul.f32 %v14162_v19, %v5422_v24  ;;  %6061 = vmatpush.msrb.mxu2 %v9508_v52  ;;  %v5416_v31 = vmul.f32 %v14064_v51, %v5415_v37  ;;  %v3102_v50 = vmul.f32 %v14093_v16, %v3101_v15  ;;  %vm14223_vm11 = vmor %vm5417_vm5, %vm5418_vm8 }
 0x349   : > { %vm4680_vm10 = vcmp.ge.f32.partialorder %v4648_v44, 0.0  ;;  %v4713_v57 = vmul.f32 %v10864_v11, %v4648_v44  ;;  %v14197_v45 = vpop.eup %9837  ;;  %vm3465_vm1 = vcmp.ge.f32.partialorder %v3433_v17, 0.0  ;;  %v3498_v13 = vmul.f32 %v13691_v0, %v3433_v17  ;;  %vm14237_vm12 = vmor %vm3103_vm4, %vm3104_vm9 }
 0x34a   : > { %v5136_v35 = vsel %vm3808_vm3, %v5082_v22, 0.0  ;;  %v3108_v58 = vmul.f32 %v14197_v45, %v14143_v40  ;;  %v9505_v47 = vunpack.c.h.bf16 %v9503_v59  ;;  %v17743_v49 = vsub.f32 %v17716_v34, %v13861_v46 }
 0x34b   : > { %v4745_v11 = vsel %vm4680_vm10, %v4648_v44, %v4713_v57  ;;  %5137 = vadd.xlane.f32.xlu0 %v5136_v35  ;;  %v3530_v42 = vsel %vm3465_vm1, %v3433_v17, %v3498_v13  ;;  %v14215_v1 = vmul.f32 0.010416667, %v14125_v9  ;;  %v14217_v41 = vmul.f32 0.010416667, %v2650_v62  ;;  %v10031_v35 = vld [vmem:[%s17607_s26] sm:$0xff]  }
 0x34c   : > { %v3362_v8 = vmul.f32 %v3096_v43, %v17743_v49  ;;  %9159 = vmatmul.msk.f32.gmra.mxu3 %vm3808_vm3, %v4745_v11  ;;  %v5424_v24 = vmul.f32 0.5, %v5423_v63  ;;  %v3109_v46 = vmul.f32 %v14197_v45, %v3108_v58  ;;  %9196 = vmatmul.msk.f32.gmra.mxu0 %vm1446_vm2, %v3530_v42  ;;  %v9504_v34 = vunpack.c.l.bf16 %v9503_v59  ;;  %v2591_v43 = vpop.f32.mrf.mxu1  ;;  %v5117_v62 = vpop.xlane.xlu2 %5116  ;;  %v6406_v58 = vld [vmem:[%s14258_s8] sm:$0xff] }
 0x34d   : > { %6062 = vmatpush.msrb.mxu2 %v9505_v47  ;;  %v5747_v9 = vmul.f32 %v14205_v26, %v5711_v4  ;;  %v2885_v3 = vmul.f32 0.010416667, %v14113_v5  ;;  %v2917_v15 = vmul.f32 %v14215_v1, %v14215_v1  ;;  %v2918_v44 = vmul.f32 %v14217_v41, %v14217_v41  ;;  %v2781_v11 = vpop.xlane.xlu1 %2780 }
 0x34e   : > { %v2886_v4 = vmul.f32 0.010416667, %v2778_v12  ;;  %v5420_v36 = vsel %vm14223_vm11, %v14064_v51, %v5416_v31  ;;  %v3106_v60 = vsel %vm14237_vm12, %v14093_v16, %v3102_v50  ;;  %v14253_v52 = vmul.f32 0.015625, %v14115_v14 }
 0x34f   : > { %6063 = vmatpush.msrb.mxu2 %v9504_v34  ;;  %v5783_v5 = vadd.f32 %v14231_v39, %v5747_v9  ;;  %v2949_v17 = vsub.f32 %v2885_v3, %v2917_v15  ;;  %v14261_v59 = vstv %s14192_s2  ;;  %v3398_v51 = vmul.f32 %v13651_v23, %v3362_v8  ;;  %v2653_v12 = vpop.xlane.xlu0 %2652  ;;  %v17750_v8 = vld [vmem:[#allocation55_spill] sm:$0xff]  ;;  %s17772_s2 = sld [smem:[#allocation24_spill]] }
 0x350   : > { %v2950_v22 = vsub.f32 %v2886_v4, %v2918_v44  ;;  %v5425_v16 = vsub.f32 1.5, %v5424_v24  ;;  %v3110_v63 = vmul.f32 0.5, %v3109_v46  ;;  %v9520_v50 = vunpack.c.l.bf16 %v10031_v35 }
 0x351   : > { %vm5815_vm13 = vcmp.ge.f32.partialorder %v5783_v5, 0.0  ;;  %v5848_v14 = vmul.f32 %v14261_v59, %v5783_v5  ;;  %v14265_v57 = vadd.f32 1e-05, %v2949_v17  ;;  %v3434_v13 = vadd.f32 %v13670_v21, %v3398_v51 }
 0x352   : > { %v14267_v31 = vadd.f32 1e-05, %v2950_v22  ;;  %v17749_v47 = vsub.f32 %v17728_v27, %v13980_v32  ;;  %v5330_v42 = vsub.f32 %v17750_v8, %v14049_v18  ;;  %v14278_v24 = vadd.f32 %v13642_v28, %v2591_v43  ;;  %6553 = vmatpush.msrb.mxu3 %v9520_v50 }
 0x353   : > { %v5880_v37 = vsel %vm5815_vm13, %v5783_v5, %v5848_v14  ;;  %v17751_v46 = vsub.f32 %v17720_v48, %v13963_v55  ;;  %vm5427_vm14 = vweird.f32 %v14095_v29  ;;  %9839 = vrsqrt.f32 %v14265_v57  ;;  %v6407_v14 = vld [vmem:[%s14258_s8 + $0x8] sm:$0xff] }
 0x354   : > { %v3363_v49 = vmul.f32 %v3106_v60, %v17749_v47  ;;  %9160 = vmatmul.msk.f32.vlgmr.msrb.gmra.mxu2 %vm3808_vm3, %v5880_v37  ;;  %vm3466_vm15 = vcmp.ge.f32.partialorder %v3434_v13, 0.0  ;;  %v5426_v32 = vmul.f32 %v14162_v19, %v5425_v16  ;;  %vm5428_vm5 = vweird.f32 %v14162_v19  ;;  %9224 = vmatmul.msk.f32.vlgmr.msrb.gmra.mxu3 %vm3598_vm0, %v6406_v58  ;;  %v14318_v17 = vpop.xlane.xlu2 %2783  ;;  %v2594_v51 = vpop.f32.mrf.mxu1 }
 0x355   : > { %v5713_v34 = vmul.f32 %v5420_v36, %v17751_v46  ;;  %9841 = vrsqrt.f32 %v14267_v31  ;;  %v3499_v27 = vmul.f32 %v13691_v0, %v3434_v13  ;;  %v3111_v55 = vsub.f32 1.5, %v3110_v63  ;;  %vm14309_vm4 = vmor %vm5427_vm14, %vm5428_vm5  ;;  %v4942_v58 = vpop.f32.mrf.mxu3 }
 0x356   : > { %v5267_v48 = vmul.f32 %v14253_v52, %v14253_v52  ;;  %v5235_v9 = vmul.f32 0.015625, %v5117_v62  ;;  %v14293_v7 = vmul.f32 0.010416667, %v2653_v12  ;;  %v17752_v15 = vsub.f32 %v17685_v54, %v13548_v20  ;;  %v17756_v20 = vld [vmem:[#allocation66_spill] sm:$0xff] }
 0x357   : > { %v3531_v3 = vsel %vm3466_vm15, %v3434_v13, %v3499_v27  ;;  %v17753_v44 = vsel %vm13935_vm6, %v13757_v30, %v13899_v56  ;;  %v2687_v36 = vsel %vm1446_vm2, %v14278_v24, 0.0  ;;  %v3399_v60 = vmul.f32 %v13651_v23, %v3363_v49  ;;  %v17757_v30 = vld [vmem:[#allocation59_spill] sm:$0xff]  ;;  %v5120_v13 = vpop.xlane.xlu0 %5119  ;;  %v2656_v49 = vpop.xlane.xlu1 %2655 }
 0x358   : > { %v5712_v4 = vmul.f32 %v17753_v44, %v17752_v15  ;;  %v5749_v5 = vmul.f32 %v14205_v26, %v5713_v34  ;;  %v2980_v54 = vsub.f32 %v17756_v20, %v14076_v6  ;;  %v5331_v56 = vsub.f32 %v17757_v30, %v14253_v52  ;;  %9197 = vmatmul.msk.f32.gmra.mxu0 %vm1446_vm2, %v3531_v3 }
 0x359   : > { %v5299_v61 = vsub.f32 %v5235_v9, %v5267_v48  ;;  %v5430_v23 = vsel %vm14309_vm4, %v14162_v19, %v5426_v32  ;;  %vm3114_vm6 = vweird.f32 %v14197_v45  ;;  %2688 = vadd.xlane.f32.xlu1 %v2687_v36  ;;  %v3435_v22 = vadd.f32 %v13670_v21, %v3399_v60  ;;  %v14326_v62 = vpop.eup %9839 }
 0x35a   : > { %v5748_v29 = vmul.f32 %v14205_v26, %v5712_v4  ;;  %v14329_v12 = vmul.f32 0.015625, %v14202_v33  ;;  %v2739_v63 = vmul.f32 %v14278_v24, %v14278_v24  ;;  %v2887_v19 = vmul.f32 0.010416667, %v2781_v11 }
 0x35b   : > { %v14331_v16 = vadd.f32 1e-05, %v5299_v61  ;;  %v14336_v35 = vpop.eup %9841  ;;  %v3112_v50 = vmul.f32 %v14197_v45, %v3111_v55  ;;  %v3118_v21 = vmul.f32 %v14326_v62, %v14265_v57  ;;  %v2919_v33 = vmul.f32 %v14293_v7, %v14293_v7 }
 0x35c   : > { %v5784_v47 = vadd.f32 %v14231_v39, %v5748_v29  ;;  %v3128_v37 = vmul.f32 %v14336_v35, %v14267_v31  ;;  %vm3467_vm7 = vcmp.ge.f32.partialorder %v3435_v22, 0.0  ;;  %v14348_v11 = vadd.f32 %v13642_v28, %v2594_v51  ;;  %9225 = vmatmul.msk.f32.gmra.mxu3 %vm3598_vm0, %v6407_v14  ;;  %v17761_v29 = vld [vmem:[#allocation72_spill] sm:$0xff]  ;;  %v2659_v14 = vpop.xlane.xlu2 %2658 }
 0x35d   : > { %9843 = vrsqrt.f32 %v14331_v16  ;;  %v3119_v46 = vmul.f32 %v14326_v62, %v3118_v21  ;;  %v3500_v32 = vmul.f32 %v13691_v0, %v3435_v22  ;;  %v5268_v27 = vmul.f32 %v14329_v12, %v14329_v12 }
 0x35e   : > { %vm5816_vm8 = vcmp.ge.f32.partialorder %v5784_v47, 0.0  ;;  %v5849_v34 = vmul.f32 %v14261_v59, %v5784_v47  ;;  %v2815_v55 = vsel %vm1446_vm2, %v2739_v63, 0.0  ;;  %v2951_v48 = vsub.f32 %v2887_v19, %v2919_v33  ;;  %v6408_v63 = vld [vmem:[%s14258_s8 + $0x10] sm:$0xff] }
 0x35f   : > { %v5236_v9 = vmul.f32 0.015625, %v5120_v13  ;;  %v3120_v3 = vmul.f32 0.5, %v3119_v46  ;;  %v3532_v28 = vsel %vm3467_vm7, %v3435_v22, %v3500_v32  ;;  %2816 = vadd.xlane.f32.xlu0 %v2815_v55  ;;  %v5785_v44 = vadd.f32 %v14231_v39, %v5749_v5  ;;  %v14404_v32 = vpop.xlane.xlu1 %5122 }
 0x360   : > { %v5881_v15 = vsel %vm5816_vm8, %v5784_v47, %v5849_v34  ;;  %v5714_v4 = vmul.f32 %v5430_v23, %v5330_v42  ;;  %9198 = vmatmul.msk.f32.gmra.mxu0 %vm1446_vm2, %v3532_v28  ;;  %v14363_v36 = vadd.f32 1e-05, %v2951_v48  ;;  %v2690_v43 = vsel %vm1446_vm2, %v14348_v11, 0.0  ;;  %v17760_v23 = vld [vmem:[#allocation67_spill] sm:$0xff]  ;;  %v4945_v34 = vpop.f32.mrf.mxu3  ;;  %v2597_v28 = vpop.f32.mrf.mxu1 }
 0x361   : > { %9161 = vmatmul.msk.f32.gmra.mxu2 %vm3808_vm3, %v5881_v15  ;;  %v5300_v60 = vsub.f32 %v5236_v9, %v5268_v27  ;;  %vm3113_vm9 = vweird.f32 %v14143_v40  ;;  %v14369_v61 = vadd.f32 %v13810_v38, %v4942_v58  ;;  %v3129_v5 = vmul.f32 %v14336_v35, %v3128_v37  ;;  %2691 = vadd.xlane.f32.xlu2 %v2690_v43  ;;  %v2787_v37 = vpop.xlane.xlu0 %2786 }
 0x362   : > { %v2740_v18 = vmul.f32 %v14348_v11, %v14348_v11  ;;  %vm14378_vm10 = vmor %vm3113_vm9, %vm3114_vm6  ;;  %v2981_v40 = vsub.f32 %v17760_v23, %v14215_v1  ;;  %v2982_v22 = vsub.f32 %v17761_v29, %v14217_v41  ;;  %9845 = vrsqrt.f32 %v14363_v36  ;;  %v17769_v23 = vld [vmem:[#allocation63_spill] sm:$0xff] }
 0x363   : > { %v14374_v8 = vpop.eup %9843  ;;  %v14387_v51 = vadd.f32 1e-05, %v5300_v60  ;;  %v3116_v19 = vsel %vm14378_vm10, %v14197_v45, %v3112_v50  ;;  %v3121_v13 = vsub.f32 1.5, %v3120_v3  ;;  %v5850_v21 = vmul.f32 %v14261_v59, %v5785_v44 }
 0x364   : > { %v5432_v58 = vmul.f32 %v14374_v8, %v14331_v16  ;;  %v5750_v33 = vmul.f32 %v14205_v26, %v5714_v4  ;;  %vm5817_vm1 = vcmp.ge.f32.partialorder %v5785_v44, 0.0  ;;  %v2818_v47 = vsel %vm1446_vm2, %v2740_v18, 0.0  ;;  %9226 = vmatmul.msk.f32.gmra.mxu3 %vm3598_vm0, %v6408_v63  ;;  %v7420_v4 = vld [vmem:[%s17762_s6] sm:$0xf]  ;;  %s17773_s6 = smov %s17772_s2 }
 0x365   : > { %9847 = vrsqrt.f32 %v14387_v51  ;;  %vm3123_vm11 = vweird.f32 %v14265_v57  ;;  %v3130_v46 = vmul.f32 0.5, %v3129_v5  ;;  %2819 = vadd.xlane.f32.xlu1 %v2818_v47  ;;  %v14402_v50 = vmul.f32 0.010416667, %v2656_v49  ;;  %v4995_v47 = vpop.xlane.xlu2 %4994 }
 0x366   : > { %v5433_v45 = vmul.f32 %v14374_v8, %v5432_v58  ;;  %v3364_v27 = vmul.f32 %v3116_v19, %v2980_v54  ;;  %vm3124_vm12 = vweird.f32 %v14326_v62  ;;  %v2888_v55 = vmul.f32 0.010416667, %v14318_v17  ;;  %v17763_v54 = vld [vmem:[#allocation60_spill] sm:$0xff] }
 0x367   : > { %v14411_v48 = vmul.f32 0.010416667, %v2659_v14  ;;  %v3122_v9 = vmul.f32 %v14326_v62, %v3121_v13  ;;  %vm3133_vm13 = vweird.f32 %v14267_v31  ;;  %v5882_v49 = vsel %vm5817_vm1, %v5785_v44, %v5850_v21  ;;  %vm14438_vm15 = vmor %vm3123_vm11, %vm3124_vm12  ;;  %v14444_v13 = vld [vmem:[%s17666_s15] ss:$0 sm:$0xff]  ;;  %v6409_v21 = vld [vmem:[%s14258_s8 + $0x18] sm:$0xff] }
 0x368   : > { %v5434_v3 = vmul.f32 0.5, %v5433_v45  ;;  %v2920_v15 = vmul.f32 %v14402_v50, %v14402_v50  ;;  %v14419_v6 = vpop.eup %9845  ;;  %v14422_v20 = vadd.f32 %v13810_v38, %v4945_v34  ;;  %v5332_v17 = vsub.f32 %v17763_v54, %v14329_v12  ;;  %v2790_v38 = vpop.xlane.xlu1 %2789 }
 0x369   : > { %9162 = vmatmul.msk.f32.gmra.mxu2 %vm3808_vm3, %v5882_v49  ;;  %v2921_v44 = vmul.f32 %v14411_v48, %v14411_v48  ;;  %v2889_v60 = vmul.f32 0.010416667, %v2787_v37  ;;  %v3131_v43 = vsub.f32 1.5, %v3130_v46  ;;  %vm3134_vm14 = vweird.f32 %v14336_v35 }
 0x36a   : > { %v3138_v5 = vmul.f32 %v14419_v6, %v14363_v36  ;;  %v2952_v18 = vsub.f32 %v2888_v55, %v2920_v15  ;;  %v7421_v14 = vunpack.c.l.bf16 %v7420_v4  ;;  %v5786_v19 = vadd.f32 %v14231_v39, %v5750_v33  ;;  %v14461_v15 = vld [vmem:[%s10229_s14] ss:$0 sm:$0xff]  ;;  %vm14486_vm6 = vmor %vm3133_vm13, %vm3134_vm14 }
 0x36b   : > { %v14432_v42 = vpop.eup %9847  ;;  %v2953_v63 = vsub.f32 %v2889_v60, %v2921_v44  ;;  %v3400_v58 = vmul.f32 %v14444_v13, %v3364_v27  ;;  %v3126_v57 = vsel %vm14438_vm15, %v14326_v62, %v3122_v9  ;;  %v5435_v37 = vsub.f32 1.5, %v5434_v3  ;;  %v14467_v9 = vld [vmem:[%s17672_s5] ss:$0 sm:$0xff] }
 0x36c   : > { %v3139_v46 = vmul.f32 %v14419_v6, %v3138_v5  ;;  %v5442_v34 = vmul.f32 %v14432_v42, %v14387_v51  ;;  %v14454_v45 = vadd.f32 1e-05, %v2952_v18  ;;  %7538 = vmatpush.msra.mxu0 %v7421_v14  ;;  %vm5818_vm5 = vcmp.ge.f32.partialorder %v5786_v19, 0.0  ;;  %9227 = vmatmul.msk.f32.gmra.mxu3 %vm3598_vm0, %v6409_v21  ;;  %v17766_v4 = vld [vmem:[#allocation40_spill] sm:$0xff]  ;;  %v2600_v21 = vpop.f32.mrf.mxu1 }
 0x36d   : > { %v14456_v33 = vadd.f32 1e-05, %v2953_v63  ;;  %v5851_v27 = vmul.f32 %v14261_v59, %v5786_v19  ;;  %v3132_v55 = vmul.f32 %v14336_v35, %v3131_v43  ;;  %v14464_v62 = vadd.f32 %v14461_v15, %v2597_v28  ;;  %v2662_v43 = vpop.xlane.xlu0 %2661 }
 0x36e   : > { %v3140_v49 = vmul.f32 0.5, %v3139_v46  ;;  %v3436_v3 = vadd.f32 %v14467_v9, %v3400_v58  ;;  %vm5438_vm4 = vweird.f32 %v14374_v8  ;;  %v2983_v44 = vsub.f32 %v17766_v4, %v14293_v7 }
 0x36f   : > { %v5443_v60 = vmul.f32 %v14432_v42, %v5442_v34  ;;  %9849 = vrsqrt.f32 %v14454_v45  ;;  %v3365_v28 = vmul.f32 %v3126_v57, %v2981_v40  ;;  %v5436_v5 = vmul.f32 %v14374_v8, %v5435_v37 }
 0x370   : > { %9851 = vrsqrt.f32 %v14456_v33  ;;  %v5883_v18 = vsel %vm5818_vm5, %v5786_v19, %v5851_v27  ;;  %vm3468_vm7 = vcmp.ge.f32.partialorder %v3436_v3, 0.0  ;;  %v3501_v1 = vmul.f32 %v13691_v0, %v3436_v3 }
 0x371   : > { %9163 = vmatmul.msk.f32.gmra.mxu2 %vm3808_vm3, %v5883_v18  ;;  %v5011_v40 = vsel %vm3808_vm3, %v17769_v23, 0.0  ;;  %v5083_v14 = vmul.f32 %v17769_v23, %v17769_v23  ;;  %v3136_v19 = vsel %vm14486_vm6, %v14336_v35, %v3132_v55  ;;  %vm5437_vm8 = vweird.f32 %v14331_v16  ;;  %v5126_v16 = vpop.xlane.xlu2 %5125 }
 0x372   : > { %v3141_v31 = vsub.f32 1.5, %v3140_v49  ;;  %5012 = vadd.xlane.f32.xlu2 %v5011_v40  ;;  %v2693_v58 = vsel %vm1446_vm2, %v14464_v62, 0.0  ;;  %vm14504_vm9 = vmor %vm5437_vm8, %vm5438_vm4  ;;  %v5444_v37 = vmul.f32 0.5, %v5443_v60  ;;  %v3533_v46 = vsel %vm3468_vm7, %v3436_v3, %v3501_v1 }
 0x373   : > { %v5139_v34 = vsel %vm3808_vm3, %v5083_v14, 0.0  ;;  %2694 = vadd.xlane.f32.xlu0 %v2693_v58  ;;  %v14509_v35 = vmul.f32 0.015625, %v4995_v47  ;;  %v3401_v27 = vmul.f32 %v14444_v13, %v3365_v28  ;;  %v5440_v55 = vsel %vm14504_vm9, %v14374_v8, %v5436_v5  ;;  %9199 = vmatmul.msk.f32.gmra.mxu0 %vm1446_vm2, %v3533_v46 }
 0x374   : > { %vm3143_vm10 = vweird.f32 %v14363_v36  ;;  %5140 = vadd.xlane.f32.xlu1 %v5139_v34  ;;  %v14517_v49 = vmul.f32 0.010416667, %v2662_v43  ;;  %v5237_v60 = vmul.f32 0.015625, %v14404_v32  ;;  %v14525_v28 = vadd.f32 %v14461_v15, %v2600_v21  ;;  %v14549_v21 = vpop.xlane.xlu1 %2664 }
 0x375   : > { %v14519_v3 = vpop.eup %9849  ;;  %v5269_v47 = vmul.f32 %v14509_v35, %v14509_v35  ;;  %v2741_v8 = vmul.f32 %v14464_v62, %v14464_v62  ;;  %v3366_v43 = vmul.f32 %v3136_v19, %v2982_v22  ;;  %vm3144_vm1 = vweird.f32 %v14419_v6  ;;  %v4998_v14 = vpop.xlane.xlu0 %4997  ;;  %v6410_v19 = vld [vmem:[%s14258_s8 + $0x20] sm:$0xff] }
 0x376   : > { %v14529_v5 = vpop.eup %9851  ;;  %vm5447_vm11 = vweird.f32 %v14387_v51  ;;  %v3148_v32 = vmul.f32 %v14519_v3, %v14454_v45  ;;  %v5715_v18 = vmul.f32 %v5440_v55, %v5331_v56  ;;  %v3142_v63 = vmul.f32 %v14419_v6, %v3141_v31  ;;  %v17774_v31 = vld [vmem:[#allocation43_spill] sm:$0xff]  ;;  %9228 = vmatmul.msk.f32.gmra.mxu3 %vm3598_vm0, %v6410_v19  ;;  %vm14567_vm13 = vmor %vm3143_vm10, %vm3144_vm1 }
 0x377   : > { %v5445_v1 = vsub.f32 1.5, %v5444_v37  ;;  %v5301_v40 = vsub.f32 %v5237_v60, %v5269_v47  ;;  %v3158_v41 = vmul.f32 %v14529_v5, %v14456_v33  ;;  %v2922_v29 = vmul.f32 %v14517_v49, %v14517_v49  ;;  %v17777_v47 = vld [vmem:[#allocation64_spill] sm:$0xff] }
 0x378   : > { %v3149_v58 = vmul.f32 %v14519_v3, %v3148_v32  ;;  %v3437_v22 = vadd.f32 %v14467_v9, %v3401_v27  ;;  %v2821_v30 = vsel %vm1446_vm2, %v2741_v8, 0.0  ;;  %v2696_v56 = vsel %vm1446_vm2, %v14525_v28, 0.0  ;;  %v14561_v27 = vld [vmem:[%s17772_s2 + $0x8] sm:$0xff]   ;;  %s15223_s2 = sld [smem:[#allocation2 + $0x4]] }
 0x379   : > { %v14551_v52 = vadd.f32 1e-05, %v5301_v40  ;;  %v5014_v57 = vsel %vm3808_vm3, %v17774_v31, 0.0  ;;  %v2890_v34 = vmul.f32 0.010416667, %v2790_v38  ;;  %v5446_v60 = vmul.f32 %v14432_v42, %v5445_v1 }
 0x37a   : > { %v3150_v37 = vmul.f32 0.5, %v3149_v58  ;;  %2822 = vadd.xlane.f32.xlu2 %v2821_v30  ;;  %vm3469_vm12 = vcmp.ge.f32.partialorder %v3437_v22, 0.0  ;;  %v3502_v46 = vmul.f32 %v13691_v0, %v3437_v22  ;;  %vm5448_vm14 = vweird.f32 %v14432_v42 }
 0x37b   : > { %v2984_v8 = vsub.f32 %v17777_v47, %v14402_v50  ;;  %9853 = vrsqrt.f32 %v14551_v52  ;;  %5015 = vadd.xlane.f32.xlu0 %v5014_v57  ;;  %v3146_v38 = vsel %vm14567_vm13, %v14419_v6, %v3142_v63  ;;  %v2954_v36 = vsub.f32 %v2890_v34, %v2922_v29  ;;  %v2793_v57 = vpop.xlane.xlu2 %2792  ;;  %vm14590_vm15 = vmor %vm5447_vm11, %vm5448_vm14  ;;  %v17780_v29 = vld [vmem:[#allocation42_spill] sm:$0xff] }
 0x37c   : > { %v3534_v32 = vsel %vm3469_vm12, %v3437_v22, %v3502_v46  ;;  %2697 = vadd.xlane.f32.xlu1 %v2696_v56  ;;  %v14579_v40 = vmul.f32 0.015625, %v4998_v14  ;;  %v3159_v58 = vmul.f32 %v14529_v5, %v3158_v41  ;;  %v5751_v1 = vmul.f32 %v14205_v26, %v5715_v18 }
 0x37d   : > { %9200 = vmatmul.msk.f32.gmra.mxu0 %vm1446_vm2, %v3534_v32  ;;  %v3402_v19 = vmul.f32 %v14444_v13, %v3366_v43  ;;  %v9529_v30 = vunpack.c.h.bf16 %v14561_v27  ;;  %v3151_v63 = vsub.f32 1.5, %v3150_v37  ;;  %v14594_v14 = vadd.f32 1e-05, %v2954_v36  ;;  %v6411_v32 = vld [vmem:[%s14258_s8 + $0x28] sm:$0xff]  ;;  %v5001_v36 = vpop.xlane.xlu1 %5000 }
 0x37e   : > { %v5238_v41 = vmul.f32 0.015625, %v5126_v16  ;;  %v5270_v18 = vmul.f32 %v14579_v40, %v14579_v40  ;;  %v5450_v43 = vsel %vm14590_vm15, %v14432_v42, %v5446_v60  ;;  %v2985_v22 = vsub.f32 %v17780_v29, %v14411_v48  ;;  %v2668_v60 = vpop.xlane.xlu0 %2667  ;;  %9229 = vmatmul.msk.f32.gmra.mxu3 %vm3598_vm0, %v6411_v32 }
 0x37f   : > { %v5787_v51 = vadd.f32 %v14231_v39, %v5751_v1  ;;  %v3438_v56 = vadd.f32 %v14467_v9, %v3402_v19  ;;  %6901 = vmatpush.msrb.mxu1 %v9529_v30  ;;  %v3367_v16 = vmul.f32 %v3146_v38, %v2983_v44  ;;  %9855 = vrsqrt.f32 %v14594_v14  ;;  %9576 = vmatpush.msra.mxu2 %v9529_v30  ;;  %v17783_v19 = vld [vmem:[#allocation36_spill] sm:$0xff] }
 0x380   : > { %v5302_v37 = vsub.f32 %v5238_v41, %v5270_v18  ;;  %v2742_v46 = vmul.f32 %v14525_v28, %v14525_v28  ;;  %vm3154_vm5 = vweird.f32 %v14519_v3  ;;  %v3160_v34 = vmul.f32 0.5, %v3159_v58 }
 0x381   : > { %v14611_v42 = vpop.eup %9853  ;;  %vm5819_vm4 = vcmp.ge.f32.partialorder %v5787_v51, 0.0  ;;  %v5852_v55 = vmul.f32 %v14261_v59, %v5787_v51  ;;  %v5716_v7 = vmul.f32 %v5450_v43, %v5332_v17  ;;  %v3152_v4 = vmul.f32 %v14519_v3, %v3151_v63 }
 0x382   : > { %v5452_v44 = vmul.f32 %v14611_v42, %v14551_v52  ;;  %v14622_v38 = vadd.f32 1e-05, %v5302_v37  ;;  %vm3153_vm6 = vweird.f32 %v14454_v45  ;;  %vm3470_vm7 = vcmp.ge.f32.partialorder %v3438_v56, 0.0 }
 0x383   : > { %v5884_v58 = vsel %vm5819_vm4, %v5787_v51, %v5852_v55  ;;  %v3503_v1 = vmul.f32 %v13691_v0, %v3438_v56  ;;  %vm3163_vm8 = vweird.f32 %v14456_v33  ;;  %v2824_v54 = vsel %vm1446_vm2, %v2742_v46, 0.0  ;;  %vm14634_vm9 = vmor %vm3153_vm6, %vm3154_vm5 }
 0x384   : > { %v5453_v12 = vmul.f32 %v14611_v42, %v5452_v44  ;;  %9857 = vrsqrt.f32 %v14622_v38  ;;  %9164 = vmatmul.msk.f32.gmra.mxu2 %vm3808_vm3, %v5884_v58  ;;  %v3161_v45 = vsub.f32 1.5, %v3160_v34  ;;  %v5333_v30 = vsub.f32 %v17783_v19, %v14509_v35  ;;  %2825 = vadd.xlane.f32.xlu0 %v2824_v54  ;;  %v2796_v34 = vpop.xlane.xlu2 %2795  ;;  %v14667_v54 = vpop.f32.mrf.mxu3 }
 0x385   : > { %v3535_v6 = vsel %vm3470_vm7, %v3438_v56, %v3503_v1  ;;  %v14641_v63 = vmul.f32 0.010416667, %v14549_v21  ;;  %v14643_v41 = vpop.eup %9855  ;;  %v3156_v18 = vsel %vm14634_vm9, %v14519_v3, %v3152_v4  ;;  %v5752_v51 = vmul.f32 %v14205_v26, %v5716_v7  ;;  %v17784_v3 = vld [vmem:[#allocation68_spill] sm:$0xff]  ;;  %v2603_v4 = vpop.f32.mrf.mxu1 }
 0x386   : > { %v5454_v43 = vmul.f32 0.5, %v5453_v12  ;;  %9201 = vmatmul.msk.f32.gmra.mxu0 %vm1446_vm2, %v3535_v6  ;;  %v3403_v37 = vmul.f32 %v14444_v13, %v3367_v16  ;;  %vm3164_vm10 = vweird.f32 %v14529_v5  ;;  %v3168_v56 = vmul.f32 %v14643_v41, %v14594_v14  ;;  %v5129_v1 = vpop.xlane.xlu0 %5128 }
 0x387   : > { %v2891_v21 = vmul.f32 0.010416667, %v2793_v57  ;;  %v2923_v46 = vmul.f32 %v14641_v63, %v14641_v63  ;;  %vm5457_vm1 = vweird.f32 %v14551_v52  ;;  %v2986_v32 = vsub.f32 %v17784_v3, %v14517_v49  ;;  %vm14683_vm13 = vmor %vm3163_vm8, %vm3164_vm10 }
 0x388   : > { %v5455_v55 = vsub.f32 1.5, %v5454_v43  ;;  %v5788_v7 = vadd.f32 %v14231_v39, %v5752_v51  ;;  %v3368_v16 = vmul.f32 %v3156_v18, %v2984_v8  ;;  %v3162_v44 = vmul.f32 %v14529_v5, %v3161_v45  ;;  %v2671_v43 = vpop.xlane.xlu1 %2670 }
 0x389   : > { %v2955_v57 = vsub.f32 %v2891_v21, %v2923_v46  ;;  %v3439_v58 = vadd.f32 %v14467_v9, %v3403_v37  ;;  %vm5458_vm11 = vweird.f32 %v14611_v42  ;;  %v14670_v17 = vmul.f32 0.010416667, %v2668_v60 }
 0x38a   : > { %v14665_v12 = vpop.eup %9857  ;;  %vm5820_vm12 = vcmp.ge.f32.partialorder %v5788_v7, 0.0  ;;  %v5853_v6 = vmul.f32 %v14261_v59, %v5788_v7  ;;  %v5456_v50 = vmul.f32 %v14611_v42, %v5455_v55  ;;  %v3169_v47 = vmul.f32 %v14643_v41, %v3168_v56  ;;  %vm14702_vm15 = vmor %vm5457_vm1, %vm5458_vm11 }
 0x38b   : > { %v5462_v8 = vmul.f32 %v14665_v12, %v14622_v38  ;;  %v14677_v45 = vadd.f32 1e-05, %v2955_v57  ;;  %vm3471_vm14 = vcmp.ge.f32.partialorder %v3439_v58, 0.0  ;;  %v3504_v51 = vmul.f32 %v13691_v0, %v3439_v58  ;;  %v17789_v57 = vld [vmem:[#allocation61_spill] sm:$0xff] }
 0x38c   : > { %v5885_v18 = vsel %vm5820_vm12, %v5788_v7, %v5853_v6  ;;  %v14689_v37 = vadd.f32 %v14461_v15, %v2603_v4  ;;  %v3404_v56 = vmul.f32 %v14444_v13, %v3368_v16  ;;  %v3166_v21 = vsel %vm14683_vm13, %v14529_v5, %v3162_v44  ;;  %v14737_v35 = vpop.f32.mrf.mxu3 }
 0x38d   : > { %v5463_v46 = vmul.f32 %v14665_v12, %v5462_v8  ;;  %9859 = vrsqrt.f32 %v14677_v45  ;;  %9165 = vmatmul.msk.f32.gmra.mxu2 %vm3808_vm3, %v5885_v18  ;;  %v2924_v55 = vmul.f32 %v14670_v17, %v14670_v17  ;;  %v3536_v7 = vsel %vm3471_vm14, %v3439_v58, %v3504_v51  ;;  %v2606_v29 = vpop.f32.mrf.mxu1 }
 0x38e   : > { %v14708_v4 = vmul.f32 0.015625, %v5001_v36  ;;  %v2892_v5 = vmul.f32 0.010416667, %v2796_v34  ;;  %v5460_v16 = vsel %vm14702_vm15, %v14611_v42, %v5456_v50  ;;  %v3170_v44 = vmul.f32 0.5, %v3169_v47  ;;  %9202 = vmatmul.msk.f32.gmra.mxu0 %vm1446_vm2, %v3536_v7  ;;  %v2674_v47 = vpop.xlane.xlu2 %2673  ;;  %v2799_v51 = vpop.xlane.xlu0 %2798 }
 0x38f   : > { %v5334_v6 = vsub.f32 %v17789_v57, %v14579_v40  ;;  %v5464_v52 = vmul.f32 0.5, %v5463_v46  ;;  %v5239_v18 = vmul.f32 0.015625, %v5129_v1  ;;  %v2699_v36 = vsel %vm1446_vm2, %v14689_v37, 0.0 }
 0x390   : > { %v5271_v8 = vmul.f32 %v14708_v4, %v14708_v4  ;;  %v2956_v60 = vsub.f32 %v2892_v5, %v2924_v55  ;;  %v3369_v34 = vmul.f32 %v3166_v21, %v2985_v22  ;;  %2700 = vadd.xlane.f32.xlu2 %v2699_v36  ;;  %v3440_v58 = vadd.f32 %v14467_v9, %v3404_v56  ;;  %v2802_v55 = vpop.xlane.xlu1 %2801  ;;  %v6412_v36 = vld [vmem:[%s14258_s8 + $0x30] sm:$0xff] }
 0x391   : > { %v5465_v42 = vsub.f32 1.5, %v5464_v52  ;;  %v2743_v50 = vmul.f32 %v14689_v37, %v14689_v37  ;;  %v5717_v1 = vmul.f32 %v5460_v16, %v5333_v30  ;;  %vm3173_vm5 = vweird.f32 %v14594_v14  ;;  %v17791_v52 = vld [vmem:[#allocation73_spill] sm:$0xff]  ;;  %9230 = vmatmul.msk.f32.gmra.mxu3 %vm3598_vm0, %v6412_v36 }
 0x392   : > { %vm5467_vm4 = vweird.f32 %v14622_v38  ;;  %v14731_v46 = vadd.f32 1e-05, %v2956_v60  ;;  %v5303_v48 = vsub.f32 %v5239_v18, %v5271_v8  ;;  %v3171_v56 = vsub.f32 1.5, %v3170_v44 }
 0x393   : > { %v14733_v22 = vpop.eup %9859  ;;  %vm3472_vm6 = vcmp.ge.f32.partialorder %v3440_v58, 0.0  ;;  %v3505_v21 = vmul.f32 %v13691_v0, %v3440_v58  ;;  %v2827_v33 = vsel %vm1446_vm2, %v2743_v50, 0.0  ;;  %v5466_v19 = vmul.f32 %v14665_v12, %v5465_v42 }
 0x394   : > { %vm5468_vm7 = vweird.f32 %v14665_v12  ;;  %v3178_v30 = vmul.f32 %v14733_v22, %v14677_v45  ;;  %9861 = vrsqrt.f32 %v14731_v46  ;;  %2828 = vadd.xlane.f32.xlu1 %v2827_v33  ;;  %vm3174_vm8 = vweird.f32 %v14643_v41 }
 0x395   : > { %v14745_v7 = vadd.f32 1e-05, %v5303_v48  ;;  %v3537_v5 = vsel %vm3472_vm6, %v3440_v58, %v3505_v21  ;;  %v14748_v16 = vadd.f32 %v14461_v15, %v2606_v29  ;;  %v5753_v44 = vmul.f32 %v14205_v26, %v5717_v1  ;;  %vm14760_vm9 = vmor %vm5467_vm4, %vm5468_vm7  ;;  %v17794_v58 = vld [vmem:[#allocation75_spill] sm:$0xff]  ;;  %v2609_v3 = vpop.f32.mrf.mxu1 }
 0x396   : > { %v3179_v60 = vmul.f32 %v14733_v22, %v3178_v30  ;;  %v14754_v18 = vmul.f32 0.010416667, %v2671_v43  ;;  %v3172_v42 = vmul.f32 %v14643_v41, %v3171_v56  ;;  %9203 = vmatmul.msk.f32.gmra.mxu0 %vm1446_vm2, %v3537_v5  ;;  %v5084_v43 = vmul.f32 %v17774_v31, %v17774_v31  ;;  %vm14790_vm1 = vmor %vm3173_vm5, %vm3174_vm8 }
 0x397   : > { %17790 = vst [vmem:[#allocation70_spill] sm:$0xff] %v14748_v16  ;;  %9863 = vrsqrt.f32 %v14745_v7  ;;  %v5470_v38 = vsel %vm14760_vm9, %v14665_v12, %v5466_v19  ;;  %v2893_v56 = vmul.f32 0.010416667, %v2799_v51  ;;  %vm3183_vm10 = vweird.f32 %v14677_v45 }
 0x398   : > { %v3180_v1 = vmul.f32 0.5, %v3179_v60  ;;  %v2925_v29 = vmul.f32 %v14754_v18, %v14754_v18  ;;  %v14777_v21 = vmul.f32 0.010416667, %v2674_v47  ;;  %v5142_v33 = vsel %vm3808_vm3, %v5084_v43, 0.0  ;;  %v17797_v60 = vld [vmem:[#allocation65_spill] sm:$0xff]  ;;  %v17798_v43 = vld [vmem:[#allocation71_spill] sm:$0xff]  ;;  %v5132_v50 = vpop.xlane.xlu1 %5131 }
 0x399   : > { %v2702_v30 = vsel %vm1446_vm2, %v14748_v16, 0.0  ;;  %5143 = vadd.xlane.f32.xlu2 %v5142_v33  ;;  %v5789_v12 = vadd.f32 %v14231_v39, %v5753_v44  ;;  %v3405_v19 = vmul.f32 %v14444_v13, %v3369_v34  ;;  %v5718_v51 = vmul.f32 %v5470_v38, %v5334_v6 }
 0x39a   : > { %v14782_v5 = vpop.eup %9861  ;;  %v3181_v36 = vsub.f32 1.5, %v3180_v1  ;;  %v2957_v48 = vsub.f32 %v2893_v56, %v2925_v29  ;;  %2703 = vadd.xlane.f32.xlu0 %v2702_v30  ;;  %v5017_v34 = vsel %vm3808_vm3, %v17798_v43, 0.0  ;;  %v5004_v1 = vpop.xlane.xlu2 %5003  ;;  %v3176_v14 = vsel %vm14790_vm1, %v14643_v41, %v3172_v42 }
 0x39b   : > { %v3188_v44 = vmul.f32 %v14782_v5, %v14731_v46  ;;  %v2677_v29 = vpop.xlane.xlu0 %2676  ;;  %v14806_v56 = vpop.f32.mrf.mxu3  ;;  %vm5821_vm11 = vcmp.ge.f32.partialorder %v5789_v12, 0.0  ;;  %v5854_v40 = vmul.f32 %v14261_v59, %v5789_v12  ;;  %vm3184_vm12 = vweird.f32 %v14733_v22 }
 0x39c   : > { %v14808_v33 = vadd.f32 1e-05, %v2957_v48  ;;  %5018 = vadd.xlane.f32.xlu1 %v5017_v34  ;;  %v3441_v38 = vadd.f32 %v14467_v9, %v3405_v19  ;;  %v2894_v30 = vmul.f32 0.010416667, %v2802_v55  ;;  %v3182_v41 = vmul.f32 %v14733_v22, %v3181_v36  ;;  %vm14834_vm14 = vmor %vm3183_vm10, %vm3184_vm12 }
 0x39d   : > { %v14811_v57 = vpop.eup %9863  ;;  %v3189_v6 = vmul.f32 %v14782_v5, %v3188_v44  ;;  %v2926_v48 = vmul.f32 %v14777_v21, %v14777_v21  ;;  %v3370_v47 = vmul.f32 %v3176_v14, %v2986_v32  ;;  %v5754_v44 = vmul.f32 %v14205_v26, %v5718_v51 }
 0x39e   : > { %v5472_v42 = vmul.f32 %v14811_v57, %v14745_v7  ;;  %9865 = vrsqrt.f32 %v14808_v33  ;;  %v5886_v55 = vsel %vm5821_vm11, %v5789_v12, %v5854_v40  ;;  %vm3473_vm13 = vcmp.ge.f32.partialorder %v3441_v38, 0.0  ;;  %v6413_v12 = vld [vmem:[%s14258_s8 + $0x38] sm:$0xff] }
 0x39f   : > { %v3190_v19 = vmul.f32 0.5, %v3189_v6  ;;  %9166 = vmatmul.msk.f32.gmra.mxu2 %vm3808_vm3, %v5886_v55  ;;  %v3506_v34 = vmul.f32 %v13691_v0, %v3441_v38  ;;  %v2958_v8 = vsub.f32 %v2894_v30, %v2926_v48  ;;  %vm3193_vm15 = vweird.f32 %v14731_v46  ;;  %9231 = vmatmul.msk.f32.gmra.mxu3 %vm3598_vm0, %v6413_v12 }
 0x3a0   : > { %v5473_v36 = vmul.f32 %v14811_v57, %v5472_v42  ;;  %vm5477_vm5 = vweird.f32 %v14745_v7  ;;  %v14840_v32 = vmul.f32 0.015625, %v5004_v1  ;;  %v3186_v51 = vsel %vm14834_vm14, %v14733_v22, %v3182_v41  ;;  %v2680_v12 = vpop.xlane.xlu1 %2679 }
 0x3a1   : > { %v3191_v26 = vsub.f32 1.5, %v3190_v19  ;;  %v3538_v40 = vsel %vm3473_vm13, %v3441_v38, %v3506_v34  ;;  %v14846_v45 = vadd.f32 1e-05, %v2958_v8  ;;  %vm3194_vm4 = vweird.f32 %v14782_v5 }
 0x3a2   : > { %v5474_v14 = vmul.f32 0.5, %v5473_v36  ;;  %9204 = vmatmul.msk.f32.gmra.mxu0 %vm1446_vm2, %v3538_v40  ;;  %v2744_v6 = vmul.f32 %v14748_v16, %v14748_v16  ;;  %v5085_v1 = vmul.f32 %v17798_v43, %v17798_v43  ;;  %v5790_v30 = vadd.f32 %v14231_v39, %v5754_v44  ;;  %v2805_v44 = vpop.xlane.xlu2 %2804  ;;  %vm14885_vm8 = vmor %vm3193_vm15, %vm3194_vm4 }
 0x3a3   : > { %v14858_v22 = vpop.f32.mrf.mxu3  ;;  %v14861_v38 = vadd.f32 %v14461_v15, %v2609_v3  ;;  %9867 = vrsqrt.f32 %v14846_v45  ;;  %v14864_v41 = vmul.f32 0.010416667, %v2677_v29  ;;  %v17802_v48 = vsub.f32 %v17791_v52, %v14641_v63  ;;  %v5007_v36 = vpop.xlane.xlu0 %5006 }
 0x3a4   : > { %v14856_v42 = vpop.eup %9865  ;;  %v5475_v8 = vsub.f32 1.5, %v5474_v14  ;;  %v3192_v55 = vmul.f32 %v14782_v5, %v3191_v26  ;;  %vm5478_vm6 = vweird.f32 %v14811_v57  ;;  %v5272_v49 = vmul.f32 %v14840_v32, %v14840_v32 }
 0x3a5   : > { %17801 = vst [vmem:[#allocation44_spill] sm:$0xff] %v14861_v38  ;;  %v3371_v19 = vmul.f32 %v3186_v51, %v17802_v48  ;;  %v3198_v39 = vmul.f32 %v14856_v42, %v14808_v33  ;;  %v2830_v29 = vsel %vm1446_vm2, %v2744_v6, 0.0  ;;  %v5145_v3 = vsel %vm3808_vm3, %v5085_v1, 0.0  ;;  %vm14900_vm9 = vmor %vm5477_vm5, %vm5478_vm6 }
 0x3a6   : > { %v5476_v34 = vmul.f32 %v14811_v57, %v5475_v8  ;;  %2831 = vadd.xlane.f32.xlu2 %v2830_v29  ;;  %5146 = vadd.xlane.f32.xlu0 %v5145_v3  ;;  %vm5822_vm7 = vcmp.ge.f32.partialorder %v5790_v30, 0.0  ;;  %v5855_v52 = vmul.f32 %v14261_v59, %v5790_v30  ;;  %v3406_v26 = vmul.f32 %v14444_v13, %v3370_v47 }
 0x3a7   : > { %v3199_v63 = vmul.f32 %v14856_v42, %v3198_v39  ;;  %v2927_v14 = vmul.f32 %v14864_v41, %v14864_v41  ;;  %v2705_v40 = vsel %vm1446_vm2, %v14861_v38, 0.0  ;;  %v5240_v6 = vmul.f32 0.015625, %v5132_v50 }
 0x3a8   : > { %v2895_v1 = vmul.f32 0.010416667, %v2805_v44  ;;  %v3196_v47 = vsel %vm14885_vm8, %v14782_v5, %v3192_v55  ;;  %v5887_v48 = vsel %vm5822_vm7, %v5790_v30, %v5855_v52  ;;  %v3442_v39 = vadd.f32 %v14467_v9, %v3406_v26  ;;  %2706 = vadd.xlane.f32.xlu1 %v2705_v40 }
 0x3a9   : > { %v3200_v8 = vmul.f32 0.5, %v3199_v63  ;;  %v14905_v29 = vpop.eup %9867  ;;  %v5480_v50 = vsel %vm14900_vm9, %v14811_v57, %v5476_v34  ;;  %9167 = vmatmul.msk.f32.gmra.mxu2 %vm3808_vm3, %v5887_v48  ;;  %v5304_v5 = vsub.f32 %v5240_v6, %v5272_v49  ;;  %v2745_v7 = vmul.f32 %v14861_v38, %v14861_v38  ;;  %v17807_v63 = vld [vmem:[#allocation69_spill] sm:$0xff]  ;;  %v17811_v48 = vld [vmem:[#allocation62_spill] sm:$0xff] }
 0x3aa   : > { %v2959_v55 = vsub.f32 %v2895_v1, %v2927_v14  ;;  %v3407_v44 = vmul.f32 %v14444_v13, %v3371_v19  ;;  %v3208_v30 = vmul.f32 %v14905_v29, %v14846_v45  ;;  %vm3474_vm10 = vcmp.ge.f32.partialorder %v3442_v39, 0.0  ;;  %v2683_v6 = vpop.xlane.xlu2 %2682 }
 0x3ab   : > { %v3201_v3 = vsub.f32 1.5, %v3200_v8  ;;  %v2989_v52 = vsub.f32 %v17807_v63, %v14754_v18  ;;  %v3507_v26 = vmul.f32 %v13691_v0, %v3442_v39  ;;  %v14919_v57 = vadd.f32 1e-05, %v5304_v5  ;;  %v14934_v8 = vpop.f32.mrf.mxu3  ;;  %v6414_v63 = vld [vmem:[%s14258_s8 + $0x40] sm:$0xff] }
 0x3ac   : > { %v14921_v34 = vadd.f32 1e-05, %v2959_v55  ;;  %v17808_v49 = vsub.f32 %v17794_v58, %v14670_v17  ;;  %v17809_v19 = vsub.f32 %v17797_v60, %v14708_v4  ;;  %vm3204_vm1 = vweird.f32 %v14856_v42  ;;  %v17810_v17 = vld [vmem:[#allocation77_spill] sm:$0xff]  ;;  %9232 = vmatmul.msk.f32.gmra.mxu3 %vm3598_vm0, %v6414_v63 }
 0x3ad   : > { %v3209_v40 = vmul.f32 %v14905_v29, %v3208_v30  ;;  %v3202_v18 = vmul.f32 %v14856_v42, %v3201_v3  ;;  %v3539_v1 = vsel %vm3474_vm10, %v3442_v39, %v3507_v26  ;;  %9869 = vrsqrt.f32 %v14919_v57  ;;  %v14956_v3 = vld [vmem:[%s17741_s10] ss:$0 sm:$0xff]  ;;  %v2612_v30 = vpop.f32.mrf.mxu1  ;;  %v17814_v63 = vld [vmem:[#allocation41_spill] sm:$0xff] }
 0x3ae   : > { %v3372_v51 = vmul.f32 %v3196_v47, %v17808_v49  ;;  %v5719_v14 = vmul.f32 %v5480_v50, %v17809_v19  ;;  %v2833_v46 = vsel %vm1446_vm2, %v2745_v7, 0.0  ;;  %9205 = vmatmul.msk.f32.gmra.mxu0 %vm1446_vm2, %v3539_v1  ;;  %9871 = vrsqrt.f32 %v14921_v34  ;;  %v2808_v47 = vpop.xlane.xlu0 %2807 }
 0x3af   : > { %v3210_v4 = vmul.f32 0.5, %v3209_v40  ;;  %2834 = vadd.xlane.f32.xlu0 %v2833_v46  ;;  %v3443_v60 = vadd.f32 %v14467_v9, %v3407_v44  ;;  %vm3203_vm11 = vweird.f32 %v14808_v33  ;;  %v14944_v50 = vmul.f32 0.015625, %v5007_v36  ;;  %v2811_v36 = vpop.xlane.xlu1 %2810 }
 0x3b0   : > { %v14946_v5 = vmul.f32 0.010416667, %v2680_v12  ;;  %vm14950_vm12 = vmor %vm3203_vm11, %vm3204_vm1  ;;  %v5755_v33 = vmul.f32 %v14956_v3, %v5719_v14  ;;  %v2896_v49 = vmul.f32 0.010416667, %v2808_v47  ;;  %v3408_v19 = vmul.f32 %v14444_v13, %v3372_v51  ;;  %v14970_v14 = vld [vmem:[%s17742_s3] ss:$0 sm:$0xff] }
 0x3b1   : > { %v3211_v7 = vsub.f32 1.5, %v3210_v4  ;;  %vm3475_vm13 = vcmp.ge.f32.partialorder %v3443_v60, 0.0  ;;  %v3508_v44 = vmul.f32 %v13691_v0, %v3443_v60  ;;  %v3206_v12 = vsel %vm14950_vm12, %v14856_v42, %v3202_v18 }
 0x3b2   : > { %v2928_v26 = vmul.f32 %v14946_v5, %v14946_v5  ;;  %vm3213_vm14 = vweird.f32 %v14846_v45  ;;  %vm3214_vm15 = vweird.f32 %v14905_v29  ;;  %v5791_v40 = vadd.f32 %v14970_v14, %v5755_v33 }
 0x3b3   : > { %v14973_v1 = vmul.f32 0.010416667, %v2683_v6  ;;  %v14975_v46 = vpop.eup %9869  ;;  %v14978_v42 = vmul.f32 %v14905_v29, %v3211_v7  ;;  %v3540_v18 = vsel %vm3475_vm13, %v3443_v60, %v3508_v44  ;;  %v3444_v4 = vadd.f32 %v14467_v9, %v3408_v19  ;;  %vm15003_vm4 = vmor %vm3213_vm14, %vm3214_vm15  ;;  %v5135_v19 = vpop.xlane.xlu2 %5134 }
 0x3b4   : > { %v2960_v51 = vsub.f32 %v2896_v49, %v2928_v26  ;;  %v14982_v47 = vpop.eup %9871  ;;  %v3373_v55 = vmul.f32 %v3206_v12, %v2989_v52  ;;  %v5482_v6 = vmul.f32 %v14975_v46, %v14919_v57  ;;  %v14990_v33 = vmul.f32 %v14944_v50, %v14944_v50  ;;  %v15010_v26 = vpop.f32.mrf.mxu3 }
 0x3b5   : > { %v3218_v7 = vmul.f32 %v14982_v47, %v14921_v34  ;;  %vm5823_vm5 = vcmp.ge.f32.partialorder %v5791_v40, 0.0  ;;  %v14997_v44 = vadd.f32 %v14461_v15, %v2612_v30  ;;  %vm5487_vm6 = vweird.f32 %v14919_v57 }
 0x3b6   : > { %v14994_v60 = vadd.f32 1e-05, %v2960_v51  ;;  %v5483_v12 = vmul.f32 %v14975_v46, %v5482_v6  ;;  %9206 = vmatmul.msk.f32.gmra.mxu0 %vm1446_vm2, %v3540_v18  ;;  %v5856_v49 = vmul.f32 %v14261_v59, %v5791_v40  ;;  %v2929_v30 = vmul.f32 %v14973_v1, %v14973_v1  ;;  %v2686_v6 = vpop.xlane.xlu0 %2685 }
 0x3b7   : > { %17815 = vst [vmem:[#allocation39_spill] sm:$0xff] %v14997_v44  ;;  %v3216_v45 = vsel %vm15003_vm4, %v14905_v29, %v14978_v42  ;;  %v3219_v51 = vmul.f32 %v14982_v47, %v3218_v7  ;;  %vm3476_vm7 = vcmp.ge.f32.partialorder %v3444_v4, 0.0  ;;  %v3509_v58 = vmul.f32 %v13691_v0, %v3444_v4 }
 0x3b8   : > { %9873 = vrsqrt.f32 %v14994_v60  ;;  %v5484_v18 = vmul.f32 0.5, %v5483_v12  ;;  %v5888_v39 = vsel %vm5823_vm5, %v5791_v40, %v5856_v49  ;;  %v2897_v38 = vmul.f32 0.010416667, %v2811_v36  ;;  %v2615_v12 = vpop.f32.mrf.mxu1  ;;  %v5010_v49 = vpop.xlane.xlu1 %5009 }
 0x3b9   : > { %v3220_v43 = vmul.f32 0.5, %v3219_v51  ;;  %9168 = vmatmul.msk.f32.gmra.mxu2 %vm3808_vm3, %v5888_v39  ;;  %v2708_v16 = vsel %vm1446_vm2, %v14997_v44, 0.0  ;;  %v3409_v29 = vmul.f32 %v14444_v13, %v3373_v55  ;;  %v2746_v42 = vmul.f32 %v14997_v44, %v14997_v44 }
 0x3ba   : > { %v5485_v7 = vsub.f32 1.5, %v5484_v18  ;;  %vm5488_vm8 = vweird.f32 %v14975_v46  ;;  %v2961_v52 = vsub.f32 %v2897_v38, %v2929_v30  ;;  %2709 = vadd.xlane.f32.xlu2 %v2708_v16  ;;  %v5241_v40 = vmul.f32 0.015625, %v5135_v19 }
 0x3bb   : > { %v3221_v36 = vsub.f32 1.5, %v3220_v43  ;;  %vm3224_vm9 = vweird.f32 %v14982_v47  ;;  %v3445_v39 = vadd.f32 %v14467_v9, %v3409_v29  ;;  %v2836_v51 = vsel %vm1446_vm2, %v2746_v42, 0.0  ;;  %vm15044_vm10 = vmor %vm5487_vm6, %vm5488_vm8 }
 0x3bc   : > { %v5486_v55 = vmul.f32 %v14975_v46, %v5485_v7  ;;  %v3541_v44 = vsel %vm3476_vm7, %v3444_v4, %v3509_v58  ;;  %v15035_v18 = vadd.f32 1e-05, %v2961_v52  ;;  %2837 = vadd.xlane.f32.xlu1 %v2836_v51  ;;  %v5305_v16 = vsub.f32 %v5241_v40, %v14990_v33  ;;  %v6415_v33 = vld [vmem:[%s14258_s8 + $0x48] sm:$0xff]  ;;  %v15062_v42 = vpop.f32.mrf.mxu3  ;;  %v17821_v40 = vld [vmem:[#allocation51_spill] sm:$0xff] }
 0x3bd   : > { %v3222_v30 = vmul.f32 %v14982_v47, %v3221_v36  ;;  %v3510_v19 = vmul.f32 %v13691_v0, %v3445_v39  ;;  %v15051_v58 = vadd.f32 %v14461_v15, %v2615_v12  ;;  %v15053_v4 = vmul.f32 0.015625, %v5010_v49  ;;  %9233 = vmatmul.msk.f32.gmra.mxu3 %vm3598_vm0, %v6415_v33 }
 0x3be   : > { %v15038_v38 = vpop.eup %9873  ;;  %v5490_v29 = vsel %vm15044_vm10, %v14975_v46, %v5486_v55  ;;  %9207 = vmatmul.msk.f32.gmra.mxu0 %vm1446_vm2, %v3541_v44  ;;  %9875 = vrsqrt.f32 %v15035_v18  ;;  %vm3477_vm1 = vcmp.ge.f32.partialorder %v3445_v39, 0.0  ;;  %v17820_v7 = vsub.f32 %v17810_v17, %v14777_v21  ;;  %v5138_v55 = vpop.xlane.xlu0 %5137 }
 0x3bf   : > { %v3228_v57 = vmul.f32 %v15038_v38, %v14994_v60  ;;  %vm3223_vm11 = vweird.f32 %v14921_v34  ;;  %v2992_v12 = vsub.f32 %v17821_v40, %v14946_v5  ;;  %v17822_v44 = vsub.f32 %v17811_v48, %v14840_v32  ;;  %v17825_v48 = vld [vmem:[#allocation38_spill] sm:$0xff]  ;;  %v6274_v46 = vpop.f32.mrf.mxu0 }
 0x3c0   : > { %v3374_v52 = vmul.f32 %v3216_v45, %v17820_v7  ;;  %vm15079_vm12 = vmor %vm3223_vm11, %vm3224_vm9  ;;  %v15084_v17 = vadd.f32 1e-05, %v5305_v16  ;;  %v15086_v34 = vmul.f32 0.010416667, %v2686_v6  ;;  %v2814_v45 = vpop.xlane.xlu2 %2813  ;;  %vm3234_vm13 = vweird.f32 %v15038_v38 }
 0x3c1   : > { %v5720_v49 = vmul.f32 %v5490_v29, %v17822_v44  ;;  %v3229_v21 = vmul.f32 %v15038_v38, %v3228_v57  ;;  %v3226_v5 = vsel %vm15079_vm12, %v14982_v47, %v3222_v30  ;;  %v3542_v32 = vsel %vm3477_vm1, %v3445_v39, %v3510_v19  ;;  %v17826_v44 = vld [vmem:[#allocation56_spill] sm:$0xff] }
 0x3c2   : > { %v5020_v51 = vsel %vm3808_vm3, %v17825_v48, 0.0  ;;  %9877 = vrsqrt.f32 %v15084_v17  ;;  %v5274_v16 = vmul.f32 %v15053_v4, %v15053_v4  ;;  %v2711_v6 = vsel %vm1446_vm2, %v15051_v58, 0.0 }
 0x3c3   : > { %v3230_v43 = vmul.f32 0.5, %v3229_v21  ;;  %5021 = vadd.xlane.f32.xlu2 %v5020_v51  ;;  %2712 = vadd.xlane.f32.xlu0 %v2711_v6  ;;  %v3410_v47 = vmul.f32 %v14444_v13, %v3374_v52  ;;  %v9528_v30 = vunpack.c.l.bf16 %v14561_v27  ;;  %v5086_v39 = vmul.f32 %v17825_v48, %v17825_v48 }
 0x3c4   : > { %v2898_v19 = vmul.f32 0.010416667, %v2814_v45  ;;  %v15103_v33 = vpop.eup %9875  ;;  %v2930_v57 = vmul.f32 %v15086_v34, %v15086_v34  ;;  %v5242_v7 = vmul.f32 0.015625, %v5138_v55  ;;  %v5756_v40 = vmul.f32 %v14956_v3, %v5720_v49  ;;  %v2618_v45 = vpop.f32.mrf.mxu1 }
 0x3c5   : > { %v3231_v29 = vsub.f32 1.5, %v3230_v43  ;;  %v2993_v36 = vsub.f32 %v17826_v44, %v14973_v1  ;;  %v3238_v13 = vmul.f32 %v15103_v33, %v15035_v18  ;;  %v3446_v27 = vadd.f32 %v14467_v9, %v3410_v47  ;;  %6902 = vmatpush.msrb.mxu1 %v9528_v30  ;;  %9577 = vmatpush.msra.mxu2 %v9528_v30  ;;  %v15128_v30 = vpop.f32.mrf.mxu3 }
 0x3c6   : > { %v5148_v52 = vsel %vm3808_vm3, %v5086_v39, 0.0  ;;  %vm3233_vm14 = vweird.f32 %v14994_v60  ;;  %9208 = vmatmul.msk.f32.gmra.mxu0 %vm1446_vm2, %v3542_v32  ;;  %v2962_v49 = vsub.f32 %v2898_v19, %v2930_v57  ;;  %v5306_v51 = vsub.f32 %v5242_v7, %v5274_v16 }
 0x3c7   : > { %v3232_v21 = vmul.f32 %v15038_v38, %v3231_v29  ;;  %5149 = vadd.xlane.f32.xlu1 %v5148_v52  ;;  %v17827_v55 = vsub.f32 %v17814_v63, %v14864_v41  ;;  %vm3235_vm15 = vmor %vm3233_vm14, %vm3234_vm13  ;;  %v3239_v9 = vmul.f32 %v15103_v33, %v3238_v13  ;;  %v3511_v6 = vmul.f32 %v13691_v0, %v3446_v27  ;;  %v15150_v52 = vld [vmem:[%s17666_s15] ss:$0 sm:$0xff] }
 0x3c8   : > { %v5792_v47 = vadd.f32 %v14970_v14, %v5756_v40  ;;  %v15125_v60 = vpop.eup %9877  ;;  %v15130_v16 = vadd.f32 1e-05, %v2962_v49  ;;  %v15132_v39 = vadd.f32 1e-05, %v5306_v51  ;;  %v2747_v41 = vmul.f32 %v15051_v58, %v15051_v58 }
 0x3c9   : > { %v3375_v43 = vmul.f32 %v3226_v5, %v17827_v55  ;;  %v3236_v32 = vsel %vm3235_vm15, %v15038_v38, %v3232_v21  ;;  %v3240_v63 = vmul.f32 0.5, %v3239_v9  ;;  %v5492_v5 = vmul.f32 %v15125_v60, %v15084_v17  ;;  %v17829_v38 = vld [vmem:[#allocation76_spill] sm:$0xff] }
 0x3ca   : > { %vm3478_vm5 = vcmp.ge.f32.partialorder %v3446_v27, 0.0  ;;  %v15139_v19 = vadd.f32 %v14461_v15, %v2618_v45  ;;  %v3376_v29 = vmul.f32 %v3236_v32, %v2992_v12  ;;  %vm3244_vm4 = vweird.f32 %v15103_v33  ;;  %v15160_v9 = vld [vmem:[%s17672_s5] ss:$0 sm:$0xff] }
 0x3cb   : > { %9879 = vrsqrt.f32 %v15130_v16  ;;  %v5023_v57 = vsel %vm3808_vm3, %v17829_v38, 0.0  ;;  %v3241_v7 = vsub.f32 1.5, %v3240_v63  ;;  %v5493_v40 = vmul.f32 %v15125_v60, %v5492_v5  ;;  %v6416_v5 = vld [vmem:[%s14258_s8 + $0x50] sm:$0xff] }
 0x3cc   : > { %17828 = vst [vmem:[#allocation58_spill] sm:$0xff] %v15139_v19  ;;  %9881 = vrsqrt.f32 %v15132_v39  ;;  %vm5824_vm6 = vcmp.ge.f32.partialorder %v5792_v47, 0.0  ;;  %5024 = vadd.xlane.f32.xlu0 %v5023_v57  ;;  %v3543_v13 = vsel %vm3478_vm5, %v3446_v27, %v3511_v6  ;;  %v5857_v15 = vmul.f32 %v14261_v59, %v5792_v47  ;;  %9234 = vmatmul.msk.f32.gmra.mxu3 %vm3598_vm0, %v6416_v5 }
 0x3cd   : > { %v2839_v12 = vsel %vm1446_vm2, %v2747_v41, 0.0  ;;  %v3411_v21 = vmul.f32 %v15150_v52, %v3375_v43  ;;  %v3242_v49 = vmul.f32 %v15103_v33, %v3241_v7  ;;  %v5494_v45 = vmul.f32 0.5, %v5493_v40  ;;  %v2689_v40 = vpop.xlane.xlu1 %2688 }
 0x3ce   : > { %2840 = vadd.xlane.f32.xlu2 %v2839_v12  ;;  %v2714_v51 = vsel %vm1446_vm2, %v15139_v19, 0.0  ;;  %v2748_v55 = vmul.f32 %v15139_v19, %v15139_v19  ;;  %9209 = vmatmul.msk.f32.gmra.mxu0 %vm1446_vm2, %v3543_v13  ;;  %v5889_v27 = vsel %vm5824_vm6, %v5792_v47, %v5857_v15  ;;  %v3412_v43 = vmul.f32 %v15150_v52, %v3376_v29  ;;  %v17832_v29 = vld [vmem:[#allocation50_spill] sm:$0xff] }
 0x3cf   : > { %v3447_v6 = vadd.f32 %v15160_v9, %v3411_v21  ;;  %2715 = vadd.xlane.f32.xlu1 %v2714_v51  ;;  %vm3243_vm7 = vweird.f32 %v15035_v18  ;;  %v5495_v32 = vsub.f32 1.5, %v5494_v45  ;;  %vm5498_vm8 = vweird.f32 %v15125_v60  ;;  %9169 = vmatmul.msk.f32.gmra.mxu2 %vm3808_vm3, %v5889_v27  ;;  %v15184_v7 = vpop.f32.mrf.mxu3 }
 0x3d0   : > { %v5087_v41 = vmul.f32 %v17829_v38, %v17829_v38  ;;  %vm15173_vm9 = vmor %vm3243_vm7, %vm3244_vm4  ;;  %vm5497_vm10 = vweird.f32 %v15084_v17  ;;  %v5026_v57 = vsel %vm3808_vm3, %v17832_v29, 0.0  ;;  %vm3253_vm1 = vweird.f32 %v15130_v16 }
 0x3d1   : > { %v15169_v63 = vpop.eup %9879  ;;  %v3246_v15 = vsel %vm15173_vm9, %v15103_v33, %v3242_v49  ;;  %v5496_v17 = vmul.f32 %v15125_v60, %v5495_v32  ;;  %v3512_v21 = vmul.f32 %v13691_v0, %v3447_v6  ;;  %vm5499_vm11 = vmor %vm5497_vm10, %vm5498_vm8  ;;  %vm3479_vm12 = vcmp.ge.f32.partialorder %v3447_v6, 0.0 }
 0x3d2   : > { %v15186_v13 = vpop.eup %9881  ;;  %v3248_v12 = vmul.f32 %v15169_v63, %v15130_v16  ;;  %v2842_v51 = vsel %vm1446_vm2, %v2748_v55, 0.0  ;;  %v3448_v33 = vadd.f32 %v15160_v9, %v3412_v43  ;;  %v2817_v49 = vpop.xlane.xlu0 %2816  ;;  %v5151_v47 = vsel %vm3808_vm3, %v5087_v41, 0.0 }
 0x3d3   : > { %v5502_v45 = vmul.f32 %v15186_v13, %v15132_v39  ;;  %v5500_v27 = vsel %vm5499_vm11, %v15125_v60, %v5496_v17  ;;  %v15205_v18 = vmul.f32 0.010416667, %v2689_v40  ;;  %v3377_v19 = vmul.f32 %v3246_v15, %v2993_v36 }
 0x3d4   : > { %v3249_v32 = vmul.f32 %v15169_v63, %v3248_v12  ;;  %2843 = vadd.xlane.f32.xlu0 %v2842_v51  ;;  %v17833_v55 = vsub.f32 %v13072_v25, %v14944_v50  ;;  %v2899_v60 = vmul.f32 0.010416667, %v2817_v49  ;;  %v2692_v17 = vpop.xlane.xlu2 %2691  ;;  %vm3254_vm13 = vweird.f32 %v15169_v63 }
 0x3d5   : > { %v5503_v38 = vmul.f32 %v15186_v13, %v5502_v45  ;;  %v3544_v40 = vsel %vm3479_vm12, %v3447_v6, %v3512_v21  ;;  %v2931_v1 = vmul.f32 %v15205_v18, %v15205_v18  ;;  %vm5508_vm14 = vweird.f32 %v15186_v13  ;;  %v17835_v21 = vld [vmem:[#allocation52_spill] sm:$0xff]  ;;  %vm15245_vm5 = vmor %vm3253_vm1, %vm3254_vm13 }
 0x3d6   : > { %v5721_v43 = vmul.f32 %v5500_v27, %v17833_v55  ;;  %v3250_v41 = vmul.f32 0.5, %v3249_v32  ;;  %5152 = vadd.xlane.f32.xlu2 %v5151_v47  ;;  %9210 = vmatmul.msk.f32.gmra.mxu0 %vm1446_vm2, %v3544_v40  ;;  %vm3480_vm15 = vcmp.ge.f32.partialorder %v3448_v33, 0.0  ;;  %v3513_v25 = vmul.f32 %v13691_v0, %v3448_v33 }
 0x3d7   : > { %v5504_v44 = vmul.f32 0.5, %v5503_v38  ;;  %5027 = vadd.xlane.f32.xlu1 %v5026_v57  ;;  %v2963_v36 = vsub.f32 %v2899_v60, %v2931_v1  ;;  %v5088_v6 = vmul.f32 %v17832_v29, %v17832_v29  ;;  %v6065_v5 = vpop.f32.mrf.mxu2  ;;  %v15227_v15 = vmul.f32 0.010416667, %v2692_v17  ;;  %v6555_v49 = vpop.f32.mrf.mxu3  ;;  %v15239_v60 = vld [vmem:[%s17834_s9] ss:$0 sm:$0xff] }
 0x3d8   : > { %v3251_v50 = vsub.f32 1.5, %v3250_v41  ;;  %v3413_v12 = vmul.f32 %v15150_v52, %v3377_v19  ;;  %v5089_v45 = vmul.f32 %v17835_v21, %v17835_v21  ;;  %v2820_v51 = vpop.xlane.xlu1 %2819  ;;  %v5757_v57 = vmul.f32 %v14956_v3, %v5721_v43 }
 0x3d9   : > { %v5505_v38 = vsub.f32 1.5, %v5504_v44  ;;  %v15234_v32 = vadd.f32 1e-05, %v2963_v36  ;;  %v6275_v47 = vadd.f32 %v6274_v46, %v6065_v5  ;;  %v2932_v55 = vmul.f32 %v15227_v15, %v15227_v15 }
 0x3da   : > { %v3252_v27 = vmul.f32 %v15169_v63, %v3251_v50  ;;  %vm5507_vm4 = vweird.f32 %v15132_v39  ;;  %v3545_v46 = vsel %vm3480_vm15, %v3448_v33, %v3513_v25  ;;  %v5029_v17 = vsel %vm3808_vm3, %v17835_v21, 0.0  ;;  %v6277_v39 = vpop.f32.mrf.mxu0 }
 0x3db   : > { %v5506_v43 = vmul.f32 %v15186_v13, %v5505_v38  ;;  %vm5509_vm6 = vmor %vm5507_vm4, %vm5508_vm14  ;;  %9883 = vrsqrt.f32 %v15234_v32  ;;  %v5154_v16 = vsel %vm3808_vm3, %v5088_v6, 0.0  ;;  %v2900_v40 = vmul.f32 0.010416667, %v2820_v51 }
 0x3dc   : > { %v3256_v41 = vsel %vm15245_vm5, %v15169_v63, %v3252_v27  ;;  %5030 = vadd.xlane.f32.xlu0 %v5029_v17  ;;  %v3449_v1 = vadd.f32 %v15160_v9, %v3413_v12  ;;  %v5157_v44 = vsel %vm3808_vm3, %v5089_v45, 0.0  ;;  %v5793_v25 = vadd.f32 %v14970_v14, %v5757_v57  ;;  %v9523_v63 = vld [vmem:[%s17773_s6] sm:$0xff]   ;;  %v17840_v45 = vld [vmem:[#allocation53_spill] sm:$0xff] }
 0x3dd   : > { %v5510_v33 = vsel %vm5509_vm6, %v15186_v13, %v5506_v43  ;;  %v17838_v50 = vsub.f32 %v14070_v2, %v15086_v34  ;;  %v17839_v6 = vsub.f32 %v17725_v53, %v15053_v4  ;;  %v2964_v38 = vsub.f32 %v2900_v40, %v2932_v55 }
 0x3de   : > { %5155 = vadd.xlane.f32.xlu2 %v5154_v16  ;;  %v6374_v51 = vadd.f32 %v15239_v60, %v6275_v47  ;;  %9211 = vmatmul.msk.f32.gmra.mxu0 %vm1446_vm2, %v3545_v46  ;;  %vm5825_vm7 = vcmp.ge.f32.partialorder %v5793_v25, 0.0  ;;  %v5858_v13 = vmul.f32 %v14261_v59, %v5793_v25  ;;  %v15276_v12 = vstv %s15223_s2  ;;  %s17841_s2 = sld [smem:[#allocation31_spill]] }
 0x3df   : > { %v3378_v36 = vmul.f32 %v3256_v41, %v17838_v50  ;;  %v5722_v5 = vmul.f32 %v5510_v33, %v17839_v6  ;;  %5158 = vadd.xlane.f32.xlu1 %v5157_v44  ;;  %v5090_v2 = vmul.f32 %v17840_v45, %v17840_v45  ;;  %v2995_v34 = vsub.f32 %v14278_v24, %v15205_v18  ;;  %v6558_v46 = vpop.f32.mrf.mxu3  ;;  %v15369_v18 = vld [vmem:[%s17515_s16] ss:$0 sm:$0xff] }
 0x3e0   : > { %v15282_v53 = vadd.f32 1e-05, %v2964_v38  ;;  %v6651_v4 = vadd.f32 %v6555_v49, %v6374_v51  ;;  %v9525_v57 = vunpack.c.h.bf16 %v9523_v63  ;;  %vm3481_vm8 = vcmp.ge.f32.partialorder %v3449_v1, 0.0 }
 0x3e1   : > { %v3514_v27 = vmul.f32 %v13691_v0, %v3449_v1  ;;  %v5890_v47 = vsel %vm5825_vm7, %v5793_v25, %v5858_v13  ;;  %v9524_v55 = vunpack.c.l.bf16 %v9523_v63  ;;  %v15285_v19 = vpop.eup %9883  ;;  %vm6792_vm10 = vcmask 261120  }
 0x3e2   : > { %9885 = vrsqrt.f32 %v15282_v53  ;;  %9170 = vmatmul.msk.f32.gmra.mxu2 %vm3808_vm3, %v5890_v47  ;;  %vm6683_vm9 = vcmp.ge.f32.partialorder %v6651_v4, 0.0  ;;  %v6716_v43 = vmul.f32 %v15276_v12, %v6651_v4  ;;  %6903 = vmatpush.msrb.mxu1 %v9525_v57  ;;  %v3258_v49 = vmul.f32 %v15285_v19, %v15234_v32 }
 0x3e3   : > { %v5160_v17 = vsel %vm3808_vm3, %v5090_v2, 0.0  ;;  %v3414_v41 = vmul.f32 %v15150_v52, %v3378_v36  ;;  %v5758_v16 = vmul.f32 %v14956_v3, %v5722_v5  ;;  %9578 = vmatpush.msra.mxu2 %v9525_v57  ;;  %vm3263_vm1 = vweird.f32 %v15234_v32 }
 0x3e4   : > { %v5032_v40 = vsel %vm3808_vm3, %v17840_v45, 0.0  ;;  %5161 = vadd.xlane.f32.xlu0 %v5160_v17  ;;  %v6068_v33 = vpop.f32.mrf.mxu2  ;;  %6904 = vmatpush.msrb.mxu1 %v9524_v55  ;;  %v6748_v44 = vsel %vm6683_vm9, %v6651_v4, %v6716_v43  ;;  %v5091_v25 = vmul.f32 %v14157_v10, %v14157_v10  ;;  %v3259_v63 = vmul.f32 %v15285_v19, %v3258_v49  ;;  %v6280_v4 = vpop.f32.mrf.mxu0  ;;  %s17842_s6 = smov %s17841_s2 }
 0x3e5   : > { %v6278_v50 = vadd.f32 %v6277_v39, %v6068_v33  ;;  %v5013_v36 = vpop.xlane.xlu2 %5012  ;;  %9256 = vmatmul.msk.f32.vlgmr.msrb.gmra.mxu1 %vm6792_vm10, %v6748_v44  ;;  %v3450_v6 = vadd.f32 %v15160_v9, %v3414_v41  ;;  %v5092_v5 = vmul.f32 %v14369_v61, %v14369_v61  ;;  %vm3264_vm11 = vweird.f32 %v15285_v19  ;;  %v6417_v39 = vld [vmem:[%s14258_s8 + $0x58] sm:$0xff]  ;;  %9579 = vmatpush.msra.mxu2 %v9524_v55 }
 0x3e6   : > { %v3546_v38 = vsel %vm3481_vm8, %v3449_v1, %v3514_v27  ;;  %5033 = vadd.xlane.f32.xlu2 %v5032_v40  ;;  %v5035_v51 = vsel %vm3808_vm3, %v14157_v10, 0.0  ;;  %v15309_v13 = vmul.f32 0.015625, %v5013_v36  ;;  %v2695_v2 = vpop.xlane.xlu0 %2694  ;;  %v3260_v57 = vmul.f32 0.5, %v3259_v63  ;;  %9235 = vmatmul.msk.f32.gmra.mxu3 %vm3598_vm0, %v6417_v39  ;;  %vm15337_vm15 = vmor %vm3263_vm1, %vm3264_vm11 }
 0x3e7   : > { %9212 = vmatmul.msk.f32.gmra.mxu0 %vm1446_vm2, %v3546_v38  ;;  %5036 = vadd.xlane.f32.xlu1 %v5035_v51  ;;  %v5141_v47 = vpop.xlane.xlu1 %5140  ;;  %v5794_v43 = vadd.f32 %v14970_v14, %v5758_v16  ;;  %v5163_v49 = vsel %vm3808_vm3, %v5091_v25, 0.0  ;;  %v5038_v1 = vsel %vm3808_vm3, %v14369_v61, 0.0  ;;  %v3515_v55 = vmul.f32 %v13691_v0, %v3450_v6 }
 0x3e8   : > { %v15317_v27 = vpop.eup %9885  ;;  %v5275_v17 = vmul.f32 %v15309_v13, %v15309_v13  ;;  %v5243_v41 = vmul.f32 0.015625, %v5141_v47  ;;  %v6375_v40 = vadd.f32 %v15239_v60, %v6278_v50  ;;  %v3261_v33 = vsub.f32 1.5, %v3260_v57  ;;  %v6561_v47 = vpop.f32.mrf.mxu3 }
 0x3e9   : > { %v3268_v16 = vmul.f32 %v15317_v27, %v15282_v53  ;;  %vm3482_vm12 = vcmp.ge.f32.partialorder %v3450_v6, 0.0  ;;  %v5166_v44 = vsel %vm3808_vm3, %v5092_v5, 0.0  ;;  %vm3274_vm13 = vweird.f32 %v15317_v27 }
 0x3ea   : > { %v5307_v25 = vsub.f32 %v5243_v41, %v5275_v17  ;;  %v15328_v63 = vmul.f32 0.010416667, %v2695_v2  ;;  %v6652_v36 = vadd.f32 %v6558_v46, %v6375_v40  ;;  %v3262_v38 = vmul.f32 %v15285_v19, %v3261_v33 }
 0x3eb   : > { %v3269_v51 = vmul.f32 %v15317_v27, %v3268_v16  ;;  %vm5826_vm14 = vcmp.ge.f32.partialorder %v5794_v43, 0.0  ;;  %v5859_v50 = vmul.f32 %v14261_v59, %v5794_v43  ;;  %v3547_v2 = vsel %vm3482_vm12, %v3450_v6, %v3515_v55  ;;  %v15348_v16 = vld [vmem:[%s17841_s2 + $0x8] sm:$0xff]   ;;  %s17863_s2 = sld [smem:[#allocation11_spill]] }
 0x3ec   : > { %v15341_v39 = vadd.f32 1e-05, %v5307_v25  ;;  %v6717_v46 = vmul.f32 %v15276_v12, %v6652_v36  ;;  %5039 = vadd.xlane.f32.xlu0 %v5038_v1  ;;  %v6071_v57 = vpop.f32.mrf.mxu2  ;;  %vm6684_vm5 = vcmp.ge.f32.partialorder %v6652_v36, 0.0  ;;  %v3266_v17 = vsel %vm15337_vm15, %v15285_v19, %v3262_v38 }
 0x3ed   : > { %v3270_v41 = vmul.f32 0.5, %v3269_v51  ;;  %v5891_v40 = vsel %vm5826_vm14, %v5794_v43, %v5859_v50  ;;  %v6281_v32 = vadd.f32 %v6280_v4, %v6071_v57  ;;  %v2823_v33 = vpop.xlane.xlu2 %2822  ;;  %v2933_v6 = vmul.f32 %v15328_v63, %v15328_v63  ;;  %v6283_v43 = vpop.f32.mrf.mxu0 }
 0x3ee   : > { %9887 = vrsqrt.f32 %v15341_v39  ;;  %9171 = vmatmul.msk.f32.gmra.mxu2 %vm3808_vm3, %v5891_v40  ;;  %5164 = vadd.xlane.f32.xlu2 %v5163_v49  ;;  %v2901_v1 = vmul.f32 0.010416667, %v2823_v33  ;;  %v15354_v55 = vpop.xlane.xlu0 %5015  ;;  %v5093_v19 = vmul.f32 %v14422_v20, %v14422_v20  ;;  %v3379_v4 = vmul.f32 %v3266_v17, %v2995_v34 }
 0x3ef   : > { %v3271_v25 = vsub.f32 1.5, %v3270_v41  ;;  %9213 = vmatmul.msk.f32.gmra.mxu0 %vm1446_vm2, %v3547_v2  ;;  %5167 = vadd.xlane.f32.xlu1 %v5166_v44  ;;  %v6749_v38 = vsel %vm6684_vm5, %v6652_v36, %v6717_v46  ;;  %v6376_v49 = vadd.f32 %v15239_v60, %v6281_v32  ;;  %v9545_v50 = vunpack.c.h.bf16 %v15348_v16  ;;  %v2698_v57 = vpop.xlane.xlu1 %2697 }
 0x3f0   : > { %v2965_v51 = vsub.f32 %v2901_v1, %v2933_v6  ;;  %9257 = vmatmul.msk.f32.gmra.mxu1 %vm6792_vm10, %v6749_v38  ;;  %vm3273_vm4 = vweird.f32 %v15282_v53  ;;  %v15373_v34 = vadd.f32 %v15369_v18, %v14667_v54  ;;  %v2996_v44 = vsub.f32 %v14348_v11, %v15227_v15  ;;  %v6564_v1 = vpop.f32.mrf.mxu3 }
 0x3f1   : > { %v3272_v5 = vmul.f32 %v15317_v27, %v3271_v25  ;;  %v6653_v24 = vadd.f32 %v6561_v47, %v6376_v49  ;;  %vm3275_vm6 = vmor %vm3273_vm4, %vm3274_vm13  ;;  %v5169_v2 = vsel %vm3808_vm3, %v5093_v19, 0.0  ;;  %7853 = vmatpush.msra.mxu3 %v9545_v50  ;;  %v3415_v47 = vmul.f32 %v15150_v52, %v3379_v4 }
 0x3f2   : > { %v15379_v36 = vadd.f32 1e-05, %v2965_v51  ;;  %v15386_v11 = vmul.f32 0.010416667, %v2698_v57  ;;  %v5041_v40 = vsel %vm3808_vm3, %v14422_v20, 0.0  ;;  %v15393_v33 = vadd.f32 %v15369_v18, %v14737_v35 }
 0x3f3   : > { %v3276_v53 = vsel %vm3275_vm6, %v15317_v27, %v3272_v5  ;;  %v6718_v46 = vmul.f32 %v15276_v12, %v6653_v24  ;;  %vm6685_vm7 = vcmp.ge.f32.partialorder %v6653_v24, 0.0  ;;  %v5044_v6 = vsel %vm3808_vm3, %v15373_v34, 0.0 }
 0x3f4   : > { %v9888_v54 = vpop.eup %9887  ;;  %v3380_v17 = vmul.f32 %v3276_v53, %v2996_v44  ;;  %9889 = vrsqrt.f32 %v15379_v36  ;;  %5170 = vadd.xlane.f32.xlu0 %v5169_v2  ;;  %v6074_v15 = vpop.f32.mrf.mxu2  ;;  %v3451_v19 = vadd.f32 %v15160_v9, %v3415_v47  ;;  %v15400_v4 = vadd.f32 %v15369_v18, %v14806_v56 }
 0x3f5   : > { %v5512_v41 = vmul.f32 %v9888_v54, %v15341_v39  ;;  %v6284_v32 = vadd.f32 %v6283_v43, %v6074_v15  ;;  %v6750_v27 = vsel %vm6685_vm7, %v6653_v24, %v6718_v46  ;;  %v2934_v35 = vmul.f32 %v15386_v11, %v15386_v11  ;;  %v15410_v56 = vpop.f32.mrf.mxu0 }
 0x3f6   : > { %5042 = vadd.xlane.f32.xlu2 %v5041_v40  ;;  %v3416_v38 = vmul.f32 %v15150_v52, %v3380_v17  ;;  %vm3483_vm8 = vcmp.ge.f32.partialorder %v3451_v19, 0.0  ;;  %v3516_v51 = vmul.f32 %v13691_v0, %v3451_v19  ;;  %v5094_v50 = vmul.f32 %v15373_v34, %v15373_v34 }
 0x3f7   : > { %v5513_v25 = vmul.f32 %v9888_v54, %v5512_v41  ;;  %5045 = vadd.xlane.f32.xlu1 %v5044_v6  ;;  %v6377_v43 = vadd.f32 %v15239_v60, %v6284_v32  ;;  %v2826_v49 = vpop.xlane.xlu0 %2825  ;;  %vm5517_vm9 = vweird.f32 %v15341_v39  ;;  %vm5518_vm1 = vweird.f32 %v9888_v54 }
 0x3f8   : > { %9258 = vmatmul.msk.f32.gmra.mxu1 %vm6792_vm10, %v6750_v27  ;;  %v2902_v57 = vmul.f32 0.010416667, %v2826_v49  ;;  %v3452_v44 = vadd.f32 %v15160_v9, %v3416_v38  ;;  %v3548_v53 = vsel %vm3483_vm8, %v3451_v19, %v3516_v51  ;;  %v5095_v46 = vmul.f32 %v15393_v33, %v15393_v33  ;;  %vm5519_vm13 = vmor %vm5517_vm9, %vm5518_vm1 }
 0x3f9   : > { %v5514_v5 = vmul.f32 0.5, %v5513_v25  ;;  %v6654_v24 = vadd.f32 %v6564_v1, %v6377_v43  ;;  %9214 = vmatmul.msk.f32.gmra.mxu0 %vm1446_vm2, %v3548_v53  ;;  %v5047_v41 = vsel %vm3808_vm3, %v15393_v33, 0.0  ;;  %v5172_v32 = vsel %vm3808_vm3, %v5094_v50, 0.0 }
 0x3fa   : > { %v9890_v2 = vpop.eup %9889  ;;  %v2966_v15 = vsub.f32 %v2902_v57, %v2934_v35  ;;  %v3517_v27 = vmul.f32 %v13691_v0, %v3452_v44  ;;  %vm3484_vm12 = vcmp.ge.f32.partialorder %v3452_v44, 0.0  ;;  %v5339_v25 = vsub.f32 %v17769_v23, %v15309_v13 }
 0x3fb   : > { %v5515_v47 = vsub.f32 1.5, %v5514_v5  ;;  %v3278_v17 = vmul.f32 %v9890_v2, %v15379_v36  ;;  %v6719_v40 = vmul.f32 %v15276_v12, %v6654_v24  ;;  %vm6686_vm11 = vcmp.ge.f32.partialorder %v6654_v24, 0.0 }
 0x3fc   : > { %5048 = vadd.xlane.f32.xlu0 %v5047_v41  ;;  %v15423_v19 = vadd.f32 1e-05, %v2966_v15  ;;  %v5175_v43 = vsel %vm3808_vm3, %v5095_v46, 0.0  ;;  %v5096_v51 = vmul.f32 %v15400_v4, %v15400_v4  ;;  %v3549_v23 = vsel %vm3484_vm12, %v3452_v44, %v3517_v27 }
 0x3fd   : > { %v5516_v6 = vmul.f32 %v9888_v54, %v5515_v47  ;;  %v3279_v1 = vmul.f32 %v9890_v2, %v3278_v17  ;;  %v6751_v38 = vsel %vm6686_vm11, %v6654_v24, %v6719_v40  ;;  %vm3284_vm14 = vweird.f32 %v9890_v2 }
 0x3fe   : > { %5173 = vadd.xlane.f32.xlu2 %v5172_v32  ;;  %9891 = vrsqrt.f32 %v15423_v19  ;;  %v15437_v39 = vadd.f32 %v15369_v18, %v14858_v22  ;;  %vm3283_vm15 = vweird.f32 %v15379_v36  ;;  %v5178_v24 = vsel %vm3808_vm3, %v5096_v51, 0.0  ;;  %v6418_v32 = vld [vmem:[%s14258_s8 + $0x60] sm:$0xff] }
 0x3ff   : > { %v5520_v35 = vsel %vm5519_vm13, %v9888_v54, %v5516_v6  ;;  %v3280_v49 = vmul.f32 0.5, %v3279_v1  ;;  %5176 = vadd.xlane.f32.xlu1 %v5175_v43  ;;  %v15440_v54 = vpop.f32.mrf.mxu0  ;;  %v2997_v44 = vsub.f32 %v14464_v62, %v15328_v63  ;;  %vm3285_vm5 = vmor %vm3283_vm15, %vm3284_vm14  ;;  %v5050_v47 = vsel %vm3808_vm3, %v15400_v4, 0.0  ;;  %9236 = vmatmul.msk.f32.gmra.mxu3 %vm3598_vm0, %v6418_v32 }
 0x400   : > { %v5723_v50 = vmul.f32 %v5520_v35, %v5339_v25  ;;  %9259 = vmatmul.msk.f32.gmra.mxu1 %vm6792_vm10, %v6751_v38  ;;  %v15463_v63 = vmul.f32 0.015625, %v15354_v55  ;;  %v6567_v55 = vpop.f32.mrf.mxu3  ;;  %v5097_v38 = vmul.f32 %v15437_v39, %v15437_v39  ;;  %vm3293_vm8 = vweird.f32 %v15423_v19 }
 0x401   : > { %v3281_v13 = vsub.f32 1.5, %v3280_v49  ;;  %9215 = vmatmul.msk.f32.gmra.mxu0 %vm1446_vm2, %v3549_v23  ;;  %v15482_v23 = vadd.f32 %v15369_v18, %v15010_v26  ;;  %v2998_v26 = vsub.f32 %v14525_v28, %v15386_v11 }
 0x402   : > { %v5759_v5 = vmul.f32 %v14956_v3, %v5723_v50  ;;  %v15452_v3 = vadd.f32 %v15369_v18, %v14934_v8 }
 0x403   : > { %v3282_v57 = vmul.f32 %v9890_v2, %v3281_v13  ;;  %v2701_v53 = vpop.xlane.xlu2 %2700  ;;  %v5276_v13 = vmul.f32 %v15463_v63, %v15463_v63 }
 0x404   : > { %5179 = vadd.xlane.f32.xlu0 %v5178_v24  ;;  %v5795_v22 = vadd.f32 %v14970_v14, %v5759_v5  ;;  %v15448_v46 = vpop.eup %9891  ;;  %v15456_v17 = vmul.f32 0.010416667, %v2701_v53  ;;  %v5053_v14 = vsel %vm3808_vm3, %v15437_v39, 0.0  ;;  %v5098_v35 = vmul.f32 %v15452_v3, %v15452_v3 }
 0x405   : > { %v3286_v36 = vsel %vm3285_vm5, %v9890_v2, %v3282_v57  ;;  %v3288_v62 = vmul.f32 %v15448_v46, %v15423_v19  ;;  %vm3294_vm6 = vweird.f32 %v15448_v46  ;;  %v5056_v5 = vsel %vm3808_vm3, %v15452_v3, 0.0 }
 0x406   : > { %v3381_v15 = vmul.f32 %v3286_v36, %v2997_v44  ;;  %5051 = vadd.xlane.f32.xlu2 %v5050_v47  ;;  %vm5827_vm4 = vcmp.ge.f32.partialorder %v5795_v22, 0.0  ;;  %v2935_v2 = vmul.f32 %v15456_v17, %v15456_v17  ;;  %v5860_v40 = vmul.f32 %v14261_v59, %v5795_v22  ;;  %vm3295_vm9 = vmor %vm3293_vm8, %vm3294_vm6 }
 0x407   : > { %5054 = vadd.xlane.f32.xlu1 %v5053_v14  ;;  %v6077_v8 = vpop.f32.mrf.mxu2  ;;  %v2829_v41 = vpop.xlane.xlu1 %2828  ;;  %v3289_v27 = vmul.f32 %v15448_v46, %v3288_v62  ;;  %v5184_v14 = vsel %vm3808_vm3, %v5098_v35, 0.0  ;;  %v5099_v19 = vmul.f32 %v15482_v23, %v15482_v23 }
 0x408   : > { %v6287_v6 = vadd.f32 %v15410_v56, %v6077_v8  ;;  %v2903_v1 = vmul.f32 0.010416667, %v2829_v41  ;;  %v3417_v25 = vmul.f32 %v15150_v52, %v3381_v15  ;;  %v5892_v43 = vsel %vm5827_vm4, %v5795_v22, %v5860_v40  ;;  %v15491_v53 = vpop.f32.mrf.mxu0 }
 0x409   : > { %v3290_v49 = vmul.f32 0.5, %v3289_v27  ;;  %9172 = vmatmul.msk.f32.gmra.mxu2 %vm3808_vm3, %v5892_v43  ;;  %v5181_v22 = vsel %vm3808_vm3, %v5097_v38, 0.0  ;;  %v6570_v43 = vpop.f32.mrf.mxu3  ;;  %v5187_v38 = vsel %vm3808_vm3, %v5099_v19, 0.0 }
 0x40a   : > { %v2967_v51 = vsub.f32 %v2903_v1, %v2935_v2  ;;  %v6378_v50 = vadd.f32 %v15239_v60, %v6287_v6  ;;  %v3453_v56 = vadd.f32 %v15160_v9, %v3417_v25  ;;  %v15513_v1 = vadd.f32 %v15369_v18, %v15062_v42 }
 0x40b   : > { %v3291_v57 = vsub.f32 1.5, %v3290_v49 }
 0x40c   : > { %v15489_v24 = vadd.f32 1e-05, %v2967_v51  ;;  %v6655_v44 = vadd.f32 %v6567_v55, %v6378_v50  ;;  %5057 = vadd.xlane.f32.xlu0 %v5056_v5  ;;  %vm3485_vm7 = vcmp.ge.f32.partialorder %v3453_v56, 0.0  ;;  %v5144_v36 = vpop.xlane.xlu2 %5143  ;;  %v3518_v47 = vmul.f32 %v13691_v0, %v3453_v56 }
 0x40d   : > { %v3292_v15 = vmul.f32 %v15448_v46, %v3291_v57  ;;  %v5244_v28 = vmul.f32 0.015625, %v5144_v36  ;;  %v2704_v41 = vpop.xlane.xlu0 %2703  ;;  %v5062_v57 = vsel %vm3808_vm3, %v15513_v1, 0.0 }
 0x40e   : > { %9893 = vrsqrt.f32 %v15489_v24  ;;  %v6720_v62 = vmul.f32 %v15276_v12, %v6655_v44  ;;  %5182 = vadd.xlane.f32.xlu2 %v5181_v22  ;;  %vm6687_vm1 = vcmp.ge.f32.partialorder %v6655_v44, 0.0  ;;  %v3550_v11 = vsel %vm3485_vm7, %v3453_v56, %v3518_v47 }
 0x40f   : > { %5185 = vadd.xlane.f32.xlu1 %v5184_v14  ;;  %v3296_v8 = vsel %vm3295_vm9, %v15448_v46, %v3292_v15  ;;  %9216 = vmatmul.msk.f32.gmra.mxu0 %vm1446_vm2, %v3550_v11  ;;  %v5308_v6 = vsub.f32 %v5244_v28, %v5276_v13  ;;  %v5019_v25 = vpop.xlane.xlu1 %5018  ;;  %v15526_v50 = vmul.f32 0.010416667, %v2704_v41  ;;  %v15532_v13 = vadd.f32 %v15369_v18, %v15128_v30 }
 0x410   : > { %v6080_v2 = vpop.f32.mrf.mxu2  ;;  %v6752_v40 = vsel %vm6687_vm1, %v6655_v44, %v6720_v62  ;;  %v3382_v32 = vmul.f32 %v3296_v8, %v2998_v26  ;;  %v15522_v51 = vpop.f32.mrf.mxu0  ;;  %v15528_v56 = vmul.f32 0.015625, %v5019_v25  ;;  %v15539_v26 = vadd.f32 %v15369_v18, %v15184_v7 }
 0x411   : > { %v6290_v27 = vadd.f32 %v15440_v54, %v6080_v2  ;;  %9260 = vmatmul.msk.f32.gmra.mxu1 %vm6792_vm10, %v6752_v40  ;;  %v15515_v55 = vadd.f32 1e-05, %v5308_v6  ;;  %v5059_v54 = vsel %vm3808_vm3, %v15482_v23, 0.0  ;;  %v2936_v15 = vmul.f32 %v15526_v50, %v15526_v50 }
 0x412   : > { %v3418_v49 = vmul.f32 %v15150_v52, %v3382_v32  ;;  %17845 = vst [vmem:[#allocation78_spill] sm:$0xff] %v15539_v26  ;;  %v5277_v62 = vmul.f32 %v15528_v56, %v15528_v56  ;;  %v5100_v14 = vmul.f32 %v15513_v1, %v15513_v1  ;;  %v5065_v19 = vsel %vm3808_vm3, %v15532_v13, 0.0 }
 0x413   : > { %v6379_v46 = vadd.f32 %v15239_v60, %v6290_v27  ;;  %9895 = vrsqrt.f32 %v15515_v55  ;;  %v5101_v8 = vmul.f32 %v15532_v13, %v15532_v13  ;;  %vm3303_vm14 = vweird.f32 %v15489_v24 }
 0x414   : > { %v9894_v35 = vpop.eup %9893  ;;  %5188 = vadd.xlane.f32.xlu0 %v5187_v38  ;;  %v3454_v44 = vadd.f32 %v15160_v9, %v3418_v49  ;;  %v2999_v49 = vsub.f32 %v14689_v37, %v15456_v17  ;;  %vm5527_vm4 = vweird.f32 %v15515_v55 }
 0x415   : > { %v3298_v42 = vmul.f32 %v9894_v35, %v15489_v24  ;;  %v6656_v5 = vadd.f32 %v6570_v43, %v6379_v46  ;;  %vm3304_vm13 = vweird.f32 %v9894_v35  ;;  %v5193_v24 = vsel %vm3808_vm3, %v5101_v8, 0.0  ;;  %v6573_v8 = vpop.f32.mrf.mxu3 }
 0x416   : > { %5060 = vadd.xlane.f32.xlu2 %v5059_v54  ;;  %vm3486_vm12 = vcmp.ge.f32.partialorder %v3454_v44, 0.0  ;;  %v3519_v30 = vmul.f32 %v13691_v0, %v3454_v44  ;;  %v5190_v54 = vsel %vm3808_vm3, %v5100_v14, 0.0  ;;  %vm3305_vm15 = vmor %vm3303_vm14, %vm3304_vm13 }
 0x417   : > { %v3299_v22 = vmul.f32 %v9894_v35, %v3298_v42  ;;  %5063 = vadd.xlane.f32.xlu1 %v5062_v57  ;;  %v6721_v36 = vmul.f32 %v15276_v12, %v6656_v5  ;;  %vm6688_vm11 = vcmp.ge.f32.partialorder %v6656_v5, 0.0 }
 0x418   : > { %v3551_v11 = vsel %vm3486_vm12, %v3454_v44, %v3519_v30  ;;  %v15557_v25 = vpop.f32.mrf.mxu0 }
 0x419   : > { %v3300_v47 = vmul.f32 0.5, %v3299_v22  ;;  %v2832_v7 = vpop.xlane.xlu2 %2831  ;;  %v5147_v18 = vpop.xlane.xlu0 %5146  ;;  %v6753_v28 = vsel %vm6688_vm11, %v6656_v5, %v6721_v36  ;;  %9217 = vmatmul.msk.f32.gmra.mxu0 %vm1446_vm2, %v3551_v11  ;;  %v5102_v5 = vmul.f32 %v15539_v26, %v15539_v26 }
 0x41a   : > { %v9896_v2 = vpop.eup %9895  ;;  %v2904_v40 = vmul.f32 0.010416667, %v2832_v7  ;;  %v5245_v32 = vmul.f32 0.015625, %v5147_v18  ;;  %9261 = vmatmul.msk.f32.gmra.mxu1 %vm6792_vm10, %v6753_v28 }
 0x41b   : > { %v3301_v41 = vsub.f32 1.5, %v3300_v47  ;;  %v5522_v27 = vmul.f32 %v9896_v2, %v15515_v55  ;;  %v2707_v6 = vpop.xlane.xlu1 %2706  ;;  %vm5528_vm5 = vweird.f32 %v9896_v2  ;;  %v5196_v7 = vsel %vm3808_vm3, %v5102_v5, 0.0 }
 0x41c   : > { %5066 = vadd.xlane.f32.xlu0 %v5065_v19  ;;  %v2968_v43 = vsub.f32 %v2904_v40, %v2936_v15  ;;  %v5309_v38 = vsub.f32 %v5245_v32, %v5277_v62  ;;  %v15570_v36 = vmul.f32 0.010416667, %v2707_v6  ;;  %v5340_v19 = vsub.f32 %v17774_v31, %v15463_v63  ;;  %vm5529_vm6 = vmor %vm5527_vm4, %vm5528_vm5 }
 0x41d   : > { %v3302_v46 = vmul.f32 %v9894_v35, %v3301_v41  ;;  %v5523_v42 = vmul.f32 %v9896_v2, %v5522_v27  ;;  %v5068_v41 = vsel %vm3808_vm3, %v15539_v26, 0.0 }
 0x41e   : > { %5191 = vadd.xlane.f32.xlu2 %v5190_v54  ;;  %v15566_v44 = vadd.f32 1e-05, %v2968_v43  ;;  %v15568_v22 = vadd.f32 1e-05, %v5309_v38  ;;  %v6419_v38 = vld [vmem:[%s14258_s8 + $0x68] sm:$0xff] }
 0x41f   : > { %v3306_v57 = vsel %vm3305_vm15, %v9894_v35, %v3302_v46  ;;  %5194 = vadd.xlane.f32.xlu1 %v5193_v24  ;;  %v5524_v47 = vmul.f32 0.5, %v5523_v42  ;;  %v2937_v35 = vmul.f32 %v15570_v36, %v15570_v36  ;;  %v15598_v42 = vld [vmem:[%s17741_s10] ss:$0 sm:$0xff]  ;;  %9237 = vmatmul.msk.f32.gmra.mxu3 %vm3598_vm0, %v6419_v38 }
 0x420   : > { %v3383_v30 = vmul.f32 %v3306_v57, %v2999_v49  ;;  %9897 = vrsqrt.f32 %v15566_v44  ;;  %v9544_v57 = vunpack.c.l.bf16 %v15348_v16  ;;  %vm3313_vm12 = vweird.f32 %v15566_v44 }
 0x421   : > { %v5525_v37 = vsub.f32 1.5, %v5524_v47  ;;  %9899 = vrsqrt.f32 %v15568_v22  ;;  %vm5537_vm14 = vweird.f32 %v15568_v22 }
 0x422   : > { %v2835_v17 = vpop.xlane.xlu0 %2834  ;;  %v3419_v15 = vmul.f32 %v15150_v52, %v3383_v30  ;;  %v6083_v14 = vpop.f32.mrf.mxu2  ;;  %7854 = vmatpush.msra.mxu3 %v9544_v57 }
 0x423   : > { %v2905_v62 = vmul.f32 0.010416667, %v2835_v17  ;;  %v5526_v18 = vmul.f32 %v9896_v2, %v5525_v37  ;;  %v6293_v28 = vadd.f32 %v15491_v53, %v6083_v14  ;;  %v15604_v37 = vld [vmem:[%s17742_s3] ss:$0 sm:$0xff] }
 0x424   : > { %5197 = vadd.xlane.f32.xlu0 %v5196_v7  ;;  %v3455_v11 = vadd.f32 %v15160_v9, %v3419_v15  ;;  %v15587_v9 = vpop.f32.mrf.mxu0  ;;  %v17846_v15 = vld [vmem:[#allocation70_spill] sm:$0xff] }
 0x425   : > { %v2969_v52 = vsub.f32 %v2905_v62, %v2937_v35  ;;  %v5530_v40 = vsel %vm5529_vm6, %v9896_v2, %v5526_v18  ;;  %v6380_v32 = vadd.f32 %v15239_v60, %v6293_v28  ;;  %v3000_v35 = vsub.f32 %v17846_v15, %v15526_v50  ;;  %v17847_v62 = vld [vmem:[#allocation71_spill] sm:$0xff] }
 0x426   : > { %5069 = vadd.xlane.f32.xlu2 %v5068_v41  ;;  %vm3487_vm7 = vcmp.ge.f32.partialorder %v3455_v11, 0.0  ;;  %v3520_v53 = vmul.f32 %v13691_v0, %v3455_v11  ;;  %v9898_v55 = vpop.eup %9897  ;;  %v5724_v27 = vmul.f32 %v5530_v40, %v5340_v19  ;;  %v5341_v14 = vsub.f32 %v17847_v62, %v15528_v56  ;;  %v6576_v41 = vpop.f32.mrf.mxu3 }
 0x427   : > { %v15589_v31 = vadd.f32 1e-05, %v2969_v52  ;;  %v9900_v63 = vpop.eup %9899  ;;  %v3308_v6 = vmul.f32 %v9898_v55, %v15566_v44  ;;  %v6657_v46 = vadd.f32 %v6573_v8, %v6380_v32  ;;  %vm3314_vm9 = vweird.f32 %v9898_v55 }
 0x428   : > { %v3552_v2 = vsel %vm3487_vm7, %v3455_v11, %v3520_v53  ;;  %v5532_v43 = vmul.f32 %v9900_v63, %v15568_v22  ;;  %v5760_v24 = vmul.f32 %v15598_v42, %v5724_v27  ;;  %vm5538_vm1 = vweird.f32 %v9900_v63  ;;  %vm3315_vm13 = vmor %vm3313_vm12, %vm3314_vm9 }
 0x429   : > { %9901 = vrsqrt.f32 %v15589_v31  ;;  %9218 = vmatmul.msk.f32.gmra.mxu0 %vm1446_vm2, %v3552_v2  ;;  %v3309_v54 = vmul.f32 %v9898_v55, %v3308_v6  ;;  %v6722_v49 = vmul.f32 %v15276_v12, %v6657_v46  ;;  %vm6689_vm8 = vcmp.ge.f32.partialorder %v6657_v46, 0.0  ;;  %vm5539_vm15 = vmor %vm5537_vm14, %vm5538_vm1 }
 0x42a   : > { %v5533_v5 = vmul.f32 %v9900_v63, %v5532_v43  ;;  %v5796_v17 = vadd.f32 %v15604_v37, %v5760_v24  ;;  %vm3323_vm6 = vweird.f32 %v15589_v31 }
 0x42b   : > { %v3310_v30 = vmul.f32 0.5, %v3309_v54  ;;  %v6754_v47 = vsel %vm6689_vm8, %v6657_v46, %v6722_v49 }
 0x42c   : > { %v5534_v7 = vmul.f32 0.5, %v5533_v5  ;;  %v6086_v18 = vpop.f32.mrf.mxu2  ;;  %9262 = vmatmul.msk.f32.gmra.mxu1 %vm6792_vm10, %v6754_v47  ;;  %v5861_v19 = vmul.f32 %v14261_v59, %v5796_v17  ;;  %vm5828_vm11 = vcmp.ge.f32.partialorder %v5796_v17, 0.0  ;;  %v6420_v5 = vld [vmem:[%s14258_s8 + $0x70] sm:$0xff]  ;;  %v15634_v47 = vld [vmem:[%s17666_s15] ss:$0 sm:$0xff] }
 0x42d   : > { %v3311_v28 = vsub.f32 1.5, %v3310_v30  ;;  %v6296_v16 = vadd.f32 %v15522_v51, %v6086_v18  ;;  %v2710_v11 = vpop.xlane.xlu2 %2709  ;;  %v15619_v51 = vpop.f32.mrf.mxu0  ;;  %9238 = vmatmul.msk.f32.gmra.mxu3 %vm3598_vm0, %v6420_v5  ;;  %v15643_v18 = vld [vmem:[%s17672_s5] ss:$0 sm:$0xff]  ;;  %s15898_s5 = scalar_lea.vmem %s17863_s2, %s10445_s11  ;;  %s9030_s11 = sld [smem:[#allocation2 + $0x6]] }
 0x42e   : > { %v5535_v8 = vsub.f32 1.5, %v5534_v7  ;;  %v15614_v50 = vmul.f32 0.010416667, %v2710_v11  ;;  %v5893_v38 = vsel %vm5828_vm11, %v5796_v17, %v5861_v19  ;;  %v17848_v19 = vld [vmem:[#allocation44_spill] sm:$0xff]  ;;  %s17887_s2 = sld [smem:[#allocation26_spill]] }
 0x42f   : > { %v9902_v52 = vpop.eup %9901  ;;  %v3312_v56 = vmul.f32 %v9898_v55, %v3311_v28  ;;  %v6381_v32 = vadd.f32 %v15239_v60, %v6296_v16  ;;  %v2838_v53 = vpop.xlane.xlu1 %2837  ;;  %9173 = vmatmul.msk.f32.gmra.mxu2 %vm3808_vm3, %v5893_v38 }
 0x430   : > { %v3318_v40 = vmul.f32 %v9902_v52, %v15589_v31  ;;  %v5536_v27 = vmul.f32 %v9900_v63, %v5535_v8  ;;  %v2938_v6 = vmul.f32 %v15614_v50, %v15614_v50  ;;  %v2906_v46 = vmul.f32 0.010416667, %v2838_v53  ;;  %v6579_v5 = vpop.f32.mrf.mxu3 }
 0x431   : > { %v3316_v2 = vsel %vm3315_vm13, %v9898_v55, %v3312_v56  ;;  %v6658_v43 = vadd.f32 %v6576_v41, %v6381_v32  ;;  %vm3324_vm4 = vweird.f32 %v9902_v52  ;;  %v3001_v8 = vsub.f32 %v17848_v19, %v15570_v36 }
 0x432   : > { %v3319_v44 = vmul.f32 %v9902_v52, %v3318_v40  ;;  %v3384_v54 = vmul.f32 %v3316_v2, %v3000_v35  ;;  %v5540_v49 = vsel %vm5539_vm15, %v9900_v63, %v5536_v27  ;;  %v2970_v24 = vsub.f32 %v2906_v46, %v2938_v6  ;;  %vm3325_vm7 = vmor %vm3323_vm6, %vm3324_vm4 }
 0x433   : > { %v5725_v57 = vmul.f32 %v5540_v49, %v5341_v14  ;;  %v6723_v30 = vmul.f32 %v15276_v12, %v6658_v43  ;;  %vm6690_vm5 = vcmp.ge.f32.partialorder %v6658_v43, 0.0 }
 0x434   : > { %v3320_v22 = vmul.f32 0.5, %v3319_v44  ;;  %v15631_v55 = vadd.f32 1e-05, %v2970_v24  ;;  %v3420_v17 = vmul.f32 %v15634_v47, %v3384_v54 }
 0x435   : > { %v6755_v63 = vsel %vm6690_vm5, %v6658_v43, %v6723_v30  ;;  %v5761_v62 = vmul.f32 %v15598_v42, %v5725_v57  ;;  %v15653_v53 = vpop.f32.mrf.mxu0 }
 0x436   : > { %v3321_v15 = vsub.f32 1.5, %v3320_v22  ;;  %v5022_v35 = vpop.xlane.xlu2 %5021  ;;  %9903 = vrsqrt.f32 %v15631_v55  ;;  %9263 = vmatmul.msk.f32.gmra.mxu1 %vm6792_vm10, %v6755_v63  ;;  %v2713_v7 = vpop.xlane.xlu0 %2712  ;;  %v3456_v28 = vadd.f32 %v15643_v18, %v3420_v17  ;;  %vm3333_vm13 = vweird.f32 %v15631_v55 }
 0x437   : > { %v15640_v14 = vmul.f32 0.015625, %v5022_v35  ;;  %v5797_v11 = vadd.f32 %v15604_v37, %v5761_v62 }
 0x438   : > { %v3322_v16 = vmul.f32 %v9902_v52, %v3321_v15  ;;  %vm3488_vm8 = vcmp.ge.f32.partialorder %v3456_v28, 0.0  ;;  %v3521_v56 = vmul.f32 %v13691_v0, %v3456_v28 }
 0x439   : > { %v5278_v41 = vmul.f32 %v15640_v14, %v15640_v14  ;;  %vm5829_vm9 = vcmp.ge.f32.partialorder %v5797_v11, 0.0  ;;  %v5862_v31 = vmul.f32 %v14261_v59, %v5797_v11 }
 0x43a   : > { %v3326_v40 = vsel %vm3325_vm7, %v9902_v52, %v3322_v16  ;;  %v5150_v32 = vpop.xlane.xlu1 %5149  ;;  %v3553_v46 = vsel %vm3488_vm8, %v3456_v28, %v3521_v56  ;;  %v15659_v52 = vmul.f32 0.010416667, %v2713_v7 }
 0x43b   : > { %v3385_v27 = vmul.f32 %v3326_v40, %v3001_v8  ;;  %v5246_v6 = vmul.f32 0.015625, %v5150_v32  ;;  %9219 = vmatmul.msk.f32.gmra.mxu0 %vm1446_vm2, %v3553_v46  ;;  %v5894_v43 = vsel %vm5829_vm9, %v5797_v11, %v5862_v31  ;;  %v17849_v31 = vld [vmem:[#allocation39_spill] sm:$0xff] }
 0x43c   : > { %v9904_v36 = vpop.eup %9903  ;;  %v6089_v2 = vpop.f32.mrf.mxu2  ;;  %9174 = vmatmul.msk.f32.gmra.mxu2 %vm3808_vm3, %v5894_v43  ;;  %v3002_v46 = vsub.f32 %v17849_v31, %v15614_v50 }
 0x43d   : > { %v5310_v44 = vsub.f32 %v5246_v6, %v5278_v41  ;;  %v3421_v38 = vmul.f32 %v15634_v47, %v3385_v27  ;;  %v3328_v54 = vmul.f32 %v9904_v36, %v15631_v55  ;;  %v6299_v49 = vadd.f32 %v15557_v25, %v6089_v2 }
 0x43e   : > { %v2939_v25 = vmul.f32 %v15659_v52, %v15659_v52  ;;  %vm3334_vm11 = vweird.f32 %v9904_v36 }
 0x43f   : > { %v15663_v24 = vadd.f32 1e-05, %v5310_v44  ;;  %v5025_v57 = vpop.xlane.xlu0 %5024  ;;  %v3457_v22 = vadd.f32 %v15643_v18, %v3421_v38  ;;  %v3329_v30 = vmul.f32 %v9904_v36, %v3328_v54  ;;  %v6382_v17 = vadd.f32 %v15239_v60, %v6299_v49  ;;  %v15673_v60 = vpop.f32.mrf.mxu0  ;;  %vm3335_vm14 = vmor %vm3333_vm13, %vm3334_vm11 }
 0x440   : > { %v15680_v32 = vmul.f32 0.015625, %v5025_v57 }
 0x441   : > { %9905 = vrsqrt.f32 %v15663_v24  ;;  %v2841_v15 = vpop.xlane.xlu2 %2840  ;;  %vm3489_vm1 = vcmp.ge.f32.partialorder %v3457_v22, 0.0  ;;  %v3522_v63 = vmul.f32 %v13691_v0, %v3457_v22  ;;  %v3330_v35 = vmul.f32 0.5, %v3329_v30 }
 0x442   : > { %v6659_v62 = vadd.f32 %v6579_v5, %v6382_v17  ;;  %v2907_v7 = vmul.f32 0.010416667, %v2841_v15  ;;  %v2716_v28 = vpop.xlane.xlu1 %2715  ;;  %v5279_v50 = vmul.f32 %v15680_v32, %v15680_v32  ;;  %vm5547_vm5 = vweird.f32 %v15663_v24 }
 0x443   : > { %v3554_v16 = vsel %vm3489_vm1, %v3457_v22, %v3522_v63  ;;  %v3331_v11 = vsub.f32 1.5, %v3330_v35  ;;  %v15676_v41 = vmul.f32 0.010416667, %v2716_v28 }
 0x444   : > { %v6724_v19 = vmul.f32 %v15276_v12, %v6659_v62  ;;  %v2971_v8 = vsub.f32 %v2907_v7, %v2939_v25  ;;  %9220 = vmatmul.msk.f32.gmra.mxu0 %vm1446_vm2, %v3554_v16  ;;  %vm6691_vm12 = vcmp.ge.f32.partialorder %v6659_v62, 0.0 }
 0x445   : > { %v3332_v56 = vmul.f32 %v9904_v36, %v3331_v11  ;;  %v2940_v38 = vmul.f32 %v15676_v41, %v15676_v41 }
 0x446   : > { %v15678_v40 = vadd.f32 1e-05, %v2971_v8  ;;  %v6756_v27 = vsel %vm6691_vm12, %v6659_v62, %v6724_v19 }
 0x447   : > { %v9906_v6 = vpop.eup %9905  ;;  %9264 = vmatmul.msk.f32.gmra.mxu1 %vm6792_vm10, %v6756_v27  ;;  %v2844_v2 = vpop.xlane.xlu0 %2843  ;;  %v3336_v44 = vsel %vm3335_vm14, %v9904_v36, %v3332_v56 }
 0x448   : > { %v5542_v55 = vmul.f32 %v9906_v6, %v15663_v24  ;;  %9907 = vrsqrt.f32 %v15678_v40  ;;  %v3386_v43 = vmul.f32 %v3336_v44, %v3002_v46  ;;  %v2908_v49 = vmul.f32 0.010416667, %v2844_v2  ;;  %v15702_v16 = vpop.f32.mrf.mxu0 }
 0x449   : > { %v5153_v54 = vpop.xlane.xlu2 %5152  ;;  %vm5548_vm15 = vweird.f32 %v9906_v6  ;;  %vm3343_vm8 = vweird.f32 %v15678_v40 }
 0x44a   : > { %v5543_v5 = vmul.f32 %v9906_v6, %v5542_v55  ;;  %v5247_v57 = vmul.f32 0.015625, %v5153_v54  ;;  %v5028_v22 = vpop.xlane.xlu1 %5027  ;;  %v2972_v30 = vsub.f32 %v2908_v49, %v2940_v38  ;;  %v3422_v17 = vmul.f32 %v15634_v47, %v3386_v43  ;;  %vm15711_vm4 = vmor %vm5547_vm5, %vm5548_vm15 }
 0x44b   : > { %v15700_v28 = vmul.f32 0.015625, %v5028_v22  ;;  %v5342_v54 = vsub.f32 %v17825_v48, %v15640_v14 }
 0x44c   : > { %v5544_v36 = vmul.f32 0.5, %v5543_v5  ;;  %v5311_v15 = vsub.f32 %v5247_v57, %v5279_v50  ;;  %v15693_v63 = vadd.f32 1e-05, %v2972_v30  ;;  %v3458_v35 = vadd.f32 %v15643_v18, %v3422_v17 }
 0x44d   : > { %v5280_v24 = vmul.f32 %v15700_v28, %v15700_v28 }
 0x44e   : > { %v15696_v25 = vpop.eup %9907  ;;  %v5545_v62 = vsub.f32 1.5, %v5544_v36  ;;  %v15698_v7 = vadd.f32 1e-05, %v5311_v15  ;;  %9909 = vrsqrt.f32 %v15693_v63  ;;  %vm3490_vm6 = vcmp.ge.f32.partialorder %v3458_v35, 0.0 }
 0x44f   : > { %v3338_v11 = vmul.f32 %v15696_v25, %v15678_v40  ;;  %v5031_v19 = vpop.xlane.xlu0 %5030  ;;  %v3523_v2 = vmul.f32 %v13691_v0, %v3458_v35  ;;  %vm3344_vm7 = vweird.f32 %v15696_v25  ;;  %vm3353_vm12 = vweird.f32 %v15693_v63 }
 0x450   : > { %v5546_v8 = vmul.f32 %v9906_v6, %v5545_v62  ;;  %9911 = vrsqrt.f32 %v15698_v7  ;;  %v15709_v56 = vmul.f32 0.015625, %v5031_v19  ;;  %v6582_v62 = vpop.f32.mrf.mxu3  ;;  %vm15746_vm9 = vmor %vm3343_vm8, %vm3344_vm7  ;;  %vm5557_vm15 = vweird.f32 %v15698_v7 }
 0x451   : > { %v3339_v31 = vmul.f32 %v15696_v25, %v3338_v11  ;;  %v5156_v46 = vpop.xlane.xlu2 %5155  ;;  %v3555_v57 = vsel %vm3490_vm6, %v3458_v35, %v3523_v2  ;;  %v15737_v35 = vld [vmem:[%s17834_s9] ss:$0 sm:$0xff] }
 0x452   : > { %v5550_v44 = vsel %vm15711_vm4, %v9906_v6, %v5546_v8  ;;  %v5248_v55 = vmul.f32 0.015625, %v5156_v46  ;;  %v5281_v43 = vmul.f32 %v15709_v56, %v15709_v56  ;;  %v5159_v38 = vpop.xlane.xlu1 %5158  ;;  %v6092_v5 = vpop.f32.mrf.mxu2  ;;  %9221 = vmatmul.msk.f32.gmra.mxu0 %vm1446_vm2, %v3555_v57 }
 0x453   : > { %v3340_v49 = vmul.f32 0.5, %v3339_v31  ;;  %v5249_v50 = vmul.f32 0.015625, %v5159_v38  ;;  %v6302_v22 = vadd.f32 %v15587_v9, %v6092_v5  ;;  %v5726_v17 = vmul.f32 %v5550_v44, %v5342_v54 }
 0x454   : > { %v5312_v30 = vsub.f32 %v5248_v55, %v5280_v24  ;;  %v15727_v6 = vpop.eup %9909  ;;  %v15752_v24 = vpop.f32.mrf.mxu0  ;;  %v3003_v54 = vsub.f32 %v15051_v58, %v15659_v52 }
 0x455   : > { %v3341_v36 = vsub.f32 1.5, %v3340_v49  ;;  %v5313_v15 = vsub.f32 %v5249_v50, %v5281_v43  ;;  %v3348_v48 = vmul.f32 %v15727_v6, %v15693_v63  ;;  %v6383_v9 = vadd.f32 %v15737_v35, %v6302_v22 }
 0x456   : > { %v15730_v11 = vpop.eup %9911  ;;  %v15734_v14 = vadd.f32 1e-05, %v5312_v30  ;;  %v5762_v38 = vmul.f32 %v15598_v42, %v5726_v17  ;;  %v6421_v30 = vld [vmem:[%s14258_s8 + $0x78] sm:$0xff]  ;;  %vm3354_vm14 = vweird.f32 %v15727_v6 }
 0x457   : > { %v3342_v19 = vmul.f32 %v15696_v25, %v3341_v36  ;;  %v5552_v8 = vmul.f32 %v15730_v11, %v15698_v7  ;;  %v15744_v27 = vadd.f32 1e-05, %v5313_v15  ;;  %v5162_v31 = vpop.xlane.xlu0 %5161  ;;  %v3349_v2 = vmul.f32 %v15727_v6, %v3348_v48  ;;  %9239 = vmatmul.msk.f32.gmra.mxu3 %vm3598_vm0, %v6421_v30  ;;  %vm15816_vm4 = vmor %vm3353_vm12, %vm3354_vm14 }
 0x458   : > { %9913 = vrsqrt.f32 %v15734_v14  ;;  %v6660_v44 = vadd.f32 %v6582_v62, %v6383_v9  ;;  %v5250_v15 = vmul.f32 0.015625, %v5162_v31  ;;  %v5798_v58 = vadd.f32 %v15604_v37, %v5762_v38 }
 0x459   : > { %v3346_v40 = vsel %vm15746_vm9, %v15696_v25, %v3342_v19  ;;  %v5553_v55 = vmul.f32 %v15730_v11, %v5552_v8  ;;  %v5034_v43 = vpop.xlane.xlu2 %5033  ;;  %v3350_v22 = vmul.f32 0.5, %v3349_v2  ;;  %9915 = vrsqrt.f32 %v15744_v27 }
 0x45a   : > { %v6725_v49 = vmul.f32 %v15276_v12, %v6660_v44  ;;  %v15762_v5 = vmul.f32 0.015625, %v5034_v43  ;;  %v5037_v50 = vpop.xlane.xlu1 %5036  ;;  %vm6692_vm1 = vcmp.ge.f32.partialorder %v6660_v44, 0.0  ;;  %v3387_v25 = vmul.f32 %v3346_v40, %v3003_v54 }
 0x45b   : > { %v5554_v57 = vmul.f32 0.5, %v5553_v55  ;;  %v15773_v9 = vmul.f32 0.015625, %v5037_v50  ;;  %v3351_v19 = vsub.f32 1.5, %v3350_v22  ;;  %vm5830_vm11 = vcmp.ge.f32.partialorder %v5798_v58, 0.0 }
 0x45c   : > { %v5282_v36 = vmul.f32 %v15762_v5, %v15762_v5  ;;  %v6757_v17 = vsel %vm6692_vm1, %v6660_v44, %v6725_v49  ;;  %v3423_v31 = vmul.f32 %v15634_v47, %v3387_v25  ;;  %v5863_v55 = vmul.f32 %v14261_v59, %v5798_v58  ;;  %v15790_v50 = vpop.f32.mrf.mxu0 }
 0x45d   : > { %9265 = vmatmul.msk.f32.gmra.mxu1 %vm6792_vm10, %v6757_v17  ;;  %v5555_v62 = vsub.f32 1.5, %v5554_v57  ;;  %vm5558_vm13 = vweird.f32 %v15730_v11  ;;  %v5283_v54 = vmul.f32 %v15773_v9, %v15773_v9  ;;  %17854 = vst [vmem:[#allocation54_spill] sm:$0xff] %v15790_v50  ;;  %v3352_v57 = vmul.f32 %v15727_v6, %v3351_v19 }
 0x45e   : > { %v15771_v52 = vpop.eup %9913  ;;  %v5314_v48 = vsub.f32 %v5250_v15, %v5282_v36  ;;  %v5895_v22 = vsel %vm5830_vm11, %v5798_v58, %v5863_v55  ;;  %v3459_v17 = vadd.f32 %v15643_v18, %v3423_v31  ;;  %vm15801_vm5 = vmor %vm5557_vm15, %vm5558_vm13  ;;  %v17859_v55 = vld [vmem:[#allocation76_spill] sm:$0xff]  ;;  %vm5567_vm8 = vweird.f32 %v15734_v14 }
 0x45f   : > { %v5562_v8 = vmul.f32 %v15771_v52, %v15734_v14  ;;  %v5040_v46 = vpop.xlane.xlu0 %5039  ;;  %v15778_v2 = vpop.eup %9915  ;;  %v5556_v38 = vmul.f32 %v15730_v11, %v5555_v62  ;;  %9175 = vmatmul.msk.f32.gmra.mxu2 %vm3808_vm3, %v5895_v22  ;;  %vm5568_vm7 = vweird.f32 %v15771_v52 }
 0x460   : > { %v15782_v40 = vadd.f32 1e-05, %v5314_v48  ;;  %v15794_v25 = vmul.f32 0.015625, %v5040_v46  ;;  %v5572_v15 = vmul.f32 %v15778_v2, %v15744_v27  ;;  %vm3491_vm6 = vcmp.ge.f32.partialorder %v3459_v17, 0.0  ;;  %vm15851_vm9 = vmor %vm5567_vm8, %vm5568_vm7 }
 0x461   : > { %v5563_v44 = vmul.f32 %v15771_v52, %v5562_v8  ;;  %v5165_v43 = vpop.xlane.xlu2 %5164  ;;  %v6422_v8 = vld [vmem:[%s14258_s8 + $0x80] sm:$0xff]  ;;  %v5560_v46 = vsel %vm15801_vm5, %v15730_v11, %v5556_v38  ;;  %v3356_v11 = vsel %vm15816_vm4, %v15727_v6, %v3352_v57  ;;  %vm5578_vm12 = vweird.f32 %v15778_v2 }
 0x462   : > { %v5168_v49 = vpop.xlane.xlu1 %5167  ;;  %v5251_v30 = vmul.f32 0.015625, %v5165_v43  ;;  %9917 = vrsqrt.f32 %v15782_v40  ;;  %v5284_v48 = vmul.f32 %v15794_v25, %v15794_v25  ;;  %9240 = vmatmul.msk.f32.gmra.mxu3 %vm3598_vm0, %v6422_v8  ;;  %v5343_v43 = vsub.f32 %v17859_v55, %v15680_v32 }
 0x463   : > { %v5564_v36 = vmul.f32 0.5, %v5563_v44  ;;  %v5252_v19 = vmul.f32 0.015625, %v5168_v49  ;;  %v3524_v44 = vmul.f32 %v13691_v0, %v3459_v17  ;;  %v5573_v38 = vmul.f32 %v15778_v2, %v5572_v15 }
 0x464   : > { %v5315_v58 = vsub.f32 %v5251_v30, %v5283_v54  ;;  %v17860_v54 = vld [vmem:[#allocation58_spill] sm:$0xff]  ;;  %v5727_v62 = vmul.f32 %v5560_v46, %v5343_v43  ;;  %v5344_v43 = vsub.f32 %v17832_v29, %v15700_v28  ;;  %vm7426_vm5 = vcmask 64512  }
 0x465   : > { %v6095_v7 = vpop.f32.mrf.mxu2  ;;  %v3004_v49 = vsub.f32 %v17860_v54, %v15676_v41  ;;  %v5565_v63 = vsub.f32 1.5, %v5564_v36  ;;  %v3556_v22 = vsel %vm3491_vm6, %v3459_v17, %v3524_v44  ;;  %v5316_v8 = vsub.f32 %v5252_v19, %v5284_v48  ;;  %v6585_v54 = vpop.f32.mrf.mxu3 }
 0x466   : > { %v6305_v30 = vadd.f32 %v15619_v51, %v6095_v7  ;;  %v15831_v50 = vadd.f32 1e-05, %v5315_v58  ;;  %9222 = vmatmul.msk.f32.gmra.mxu0 %vm1446_vm2, %v3556_v22  ;;  %v5574_v57 = vmul.f32 0.5, %v5573_v38  ;;  %v15839_v51 = vpop.f32.mrf.mxu0  ;;  %v5763_v58 = vmul.f32 %v15598_v42, %v5727_v62  ;;  %v6423_v38 = vld [vmem:[%s14258_s8 + $0x88] sm:$0xff] }
 0x467   : > { %v3388_v55 = vmul.f32 %v3356_v11, %v3004_v49  ;;  %v5171_v26 = vpop.xlane.xlu0 %5170  ;;  %v5566_v6 = vmul.f32 %v15771_v52, %v5565_v63  ;;  %v15842_v15 = vadd.f32 1e-05, %v5316_v8  ;;  %vm5587_vm6 = vweird.f32 %v15782_v40 }
 0x468   : > { %v15834_v41 = vpop.eup %9917  ;;  %v6384_v36 = vadd.f32 %v15737_v35, %v6305_v30  ;;  %9919 = vrsqrt.f32 %v15831_v50  ;;  %v5799_v44 = vadd.f32 %v15604_v37, %v5763_v58  ;;  %v5575_v49 = vsub.f32 1.5, %v5574_v57 }
 0x469   : > { %v5043_v32 = vpop.xlane.xlu2 %5042  ;;  %v5582_v48 = vmul.f32 %v15834_v41, %v15782_v40  ;;  %v3424_v46 = vmul.f32 %v15634_v47, %v3388_v55  ;;  %v5570_v14 = vsel %vm15851_vm9, %v15771_v52, %v5566_v6  ;;  %9921 = vrsqrt.f32 %v15842_v15 }
 0x46a   : > { %v15844_v17 = vmul.f32 0.015625, %v5043_v32  ;;  %v6661_v19 = vadd.f32 %v6585_v54, %v6384_v36  ;;  %v5046_v7 = vpop.xlane.xlu1 %5045  ;;  %vm5831_vm1 = vcmp.ge.f32.partialorder %v5799_v44, 0.0  ;;  %v5864_v63 = vmul.f32 %v14261_v59, %v5799_v44  ;;  %9241 = vmatmul.msk.f32.gmra.mxu3 %vm3598_vm0, %v6423_v38 }
 0x46b   : > { %v3460_v11 = vadd.f32 %v15643_v18, %v3424_v46  ;;  %v5583_v22 = vmul.f32 %v15834_v41, %v5582_v48  ;;  %v5728_v62 = vmul.f32 %v5570_v14, %v5344_v43  ;;  %v5253_v8 = vmul.f32 0.015625, %v5171_v26 }
 0x46c   : > { %v5285_v47 = vmul.f32 %v15844_v17, %v15844_v17  ;;  %v6726_v29 = vmul.f32 %v15276_v12, %v6661_v19  ;;  %v15873_v32 = vmul.f32 0.015625, %v5046_v7  ;;  %v5576_v55 = vmul.f32 %v15778_v2, %v5575_v49 }
 0x46d   : > { %vm3492_vm11 = vcmp.ge.f32.partialorder %v3460_v11, 0.0  ;;  %v3525_v28 = vmul.f32 %v13691_v0, %v3460_v11  ;;  %v5896_v54 = vsel %vm5831_vm1, %v5799_v44, %v5864_v63  ;;  %vm6693_vm13 = vcmp.ge.f32.partialorder %v6661_v19, 0.0 }
 0x46e   : > { %v15871_v18 = vpop.eup %9919  ;;  %v5317_v57 = vsub.f32 %v5253_v8, %v5285_v47  ;;  %9176 = vmatmul.msk.f32.gmra.mxu2 %vm3808_vm3, %v5896_v54  ;;  %v5584_v58 = vmul.f32 0.5, %v5583_v22  ;;  %v6758_v48 = vsel %vm6693_vm13, %v6661_v19, %v6726_v29  ;;  %v15885_v31 = vpop.f32.mrf.mxu0  ;;  %v5286_v44 = vmul.f32 %v15873_v32, %v15873_v32  ;;  %v15922_v8 = vld [vmem:[%s17842_s6] sm:$0xff]   ;;  %s9029_s6 = sld [smem:[#allocation2 + $0x5]] }
 0x46f   : > { %v5049_v6 = vpop.xlane.xlu0 %5048  ;;  %v3557_v0 = vsel %vm3492_vm11, %v3460_v11, %v3525_v28  ;;  %v5592_v26 = vmul.f32 %v15871_v18, %v15831_v50  ;;  %v15883_v46 = vpop.eup %9921  ;;  %9266 = vmatmul.msk.f32.gmra.mxu1 %vm6792_vm10, %v6758_v48  ;;  %v5764_v43 = vmul.f32 %v15598_v42, %v5728_v62  ;;  %v5345_v14 = vsub.f32 %v17835_v21, %v15709_v56  ;;  %v6424_v56 = vld [vmem:[%s14258_s8 + $0x90] sm:$0xff]  ;;  %v7388_v62 = vld [vmem:[%s15898_s5] sm:$0xff] }
 0x470   : > { %9223 = vmatmul.msk.f32.gmra.mxu0 %vm1446_vm2, %v3557_v0  ;;  %vm5577_vm2 = vweird.f32 %v15744_v27  ;;  %v15906_v11 = vadd.f32 1e-05, %v5317_v57  ;;  %v5585_v38 = vsub.f32 1.5, %v5584_v58  ;;  %v5602_v29 = vmul.f32 %v15883_v46, %v15842_v15  ;;  %v6588_v28 = vpop.f32.mrf.mxu3 }
 0x471   : > { %v6098_v52 = vpop.f32.mrf.mxu2  ;;  %v5174_v30 = vpop.xlane.xlu2 %5173  ;;  %vm15902_vm14 = vmor %vm5577_vm2, %vm5578_vm12  ;;  %v5800_v63 = vadd.f32 %v15604_v37, %v5764_v43  ;;  %v5593_v22 = vmul.f32 %v15871_v18, %v5592_v26  ;;  %vm5588_vm4 = vweird.f32 %v15834_v41  ;;  %v9541_v26 = vunpack.c.h.bf16 %v15922_v8 }
 0x472   : > { %v6308_v36 = vadd.f32 %v15653_v53, %v6098_v52  ;;  %v5254_v7 = vmul.f32 0.015625, %v5174_v30  ;;  %v15890_v53 = vmul.f32 0.015625, %v5049_v6  ;;  %v5177_v19 = vpop.xlane.xlu1 %5176  ;;  %v5580_v27 = vsel %vm15902_vm14, %v15778_v2, %v5576_v55  ;;  %9242 = vmatmul.msk.f32.gmra.mxu3 %vm3598_vm0, %v6424_v56  ;;  %vm15942_vm8 = vmor %vm5587_vm6, %vm5588_vm4 }
 0x473   : > { %v5255_v30 = vmul.f32 0.015625, %v5177_v19  ;;  %vm5832_vm15 = vcmp.ge.f32.partialorder %v5800_v63, 0.0  ;;  %v5865_v2 = vmul.f32 %v14261_v59, %v5800_v63  ;;  %v5729_v54 = vmul.f32 %v5580_v27, %v5345_v14  ;;  %7855 = vmatpush.msra.mxu3 %v9541_v26 }
 0x474   : > { %v5318_v47 = vsub.f32 %v5254_v7, %v5286_v44  ;;  %v6385_v21 = vadd.f32 %v15737_v35, %v6308_v36  ;;  %v5287_v52 = vmul.f32 %v15890_v53, %v15890_v53  ;;  %9923 = vrsqrt.f32 %v15906_v11 }
 0x475   : > { %v5586_v0 = vmul.f32 %v15834_v41, %v5585_v38  ;;  %v5603_v36 = vmul.f32 %v15883_v46, %v5602_v29  ;;  %v5897_v58 = vsel %vm5832_vm15, %v5800_v63, %v5865_v2  ;;  %v5594_v48 = vmul.f32 0.5, %v5593_v22  ;;  %v6425_v63 = vld [vmem:[%s14258_s8 + $0x98] sm:$0xff] }
 0x476   : > { %v15927_v6 = vadd.f32 1e-05, %v5318_v47  ;;  %v6662_v57 = vadd.f32 %v6588_v28, %v6385_v21  ;;  %v5319_v7 = vsub.f32 %v5255_v30, %v5287_v52  ;;  %9177 = vmatmul.msk.f32.gmra.mxu2 %vm3808_vm3, %v5897_v58  ;;  %v15938_v14 = vpop.f32.mrf.mxu0  ;;  %v5765_v47 = vmul.f32 %v15598_v42, %v5729_v54  ;;  %v15969_v54 = vld [vmem:[%s10349_s19 + $0x8] sm:$0xff]  }
 0x477   : > { %v5346_v40 = vsub.f32 %v17840_v45, %v15762_v5  ;;  %v5590_v21 = vsel %vm15942_vm8, %v15834_v41, %v5586_v0  ;;  %v5604_v56 = vmul.f32 0.5, %v5603_v36  ;;  %v5180_v27 = vpop.xlane.xlu0 %5179  ;;  %v5595_v22 = vsub.f32 1.5, %v5594_v48  ;;  %v7389_v45 = vld [vmem:[%s15898_s5 + $0x8] sm:$0xff]  ;;  %v6426_v48 = vld [vmem:[%s14258_s8 + $0xa0] sm:$0xff] }
 0x478   : > { %9320 = vmatmul.msk.f32.vlgmr.msra.gmra.mxu0 %vm7426_vm5, %v7388_v62  ;;  %v6727_v44 = vmul.f32 %v15276_v12, %v6662_v57  ;;  %vm6694_vm7 = vcmp.ge.f32.partialorder %v6662_v57, 0.0  ;;  %9925 = vrsqrt.f32 %v15927_v6  ;;  %v15957_v29 = vadd.f32 1e-05, %v5319_v7 }
 0x479   : > { %v5052_v55 = vpop.xlane.xlu2 %5051  ;;  %v5801_v52 = vadd.f32 %v15604_v37, %v5765_v47  ;;  %v5730_v5 = vmul.f32 %v5590_v21, %v5346_v40  ;;  %v5256_v41 = vmul.f32 0.015625, %v5180_v27  ;;  %v5605_v30 = vsub.f32 1.5, %v5604_v56 }
 0x47a   : > { %v15935_v43 = vmul.f32 0.015625, %v5052_v55  ;;  %v6759_v49 = vsel %vm6694_vm7, %v6662_v57, %v6727_v44  ;;  %v15955_v38 = vpop.eup %9923  ;;  %9243 = vmatmul.msk.f32.gmra.mxu3 %vm3598_vm0, %v6425_v63  ;;  %v5055_v2 = vpop.xlane.xlu1 %5054  ;;  %v5596_v0 = vmul.f32 %v15871_v18, %v5595_v22  ;;  %vm5598_vm1 = vweird.f32 %v15871_v18 }
 0x47b   : > { %9267 = vmatmul.msk.f32.gmra.mxu1 %vm6792_vm10, %v6759_v49  ;;  %vm5833_vm9 = vcmp.ge.f32.partialorder %v5801_v52, 0.0  ;;  %v5612_v62 = vmul.f32 %v15955_v38, %v15906_v11  ;;  %v5866_v55 = vmul.f32 %v14261_v59, %v5801_v52  ;;  %9927 = vrsqrt.f32 %v15957_v29 }
 0x47c   : > { %v5288_v28 = vmul.f32 %v15935_v43, %v15935_v43  ;;  %vm5597_vm11 = vweird.f32 %v15831_v50  ;;  %v15978_v7 = vmul.f32 0.015625, %v5055_v2  ;;  %v5766_v44 = vmul.f32 %v15598_v42, %v5730_v5 }
 0x47d   : > { %v5898_v58 = vsel %vm5833_vm9, %v5801_v52, %v5866_v55  ;;  %v9553_v19 = vunpack.c.h.bf16 %v15969_v54  ;;  %vm15983_vm12 = vmor %vm5597_vm11, %vm5598_vm1  ;;  %v5606_v47 = vmul.f32 %v15883_v46, %v5605_v30  ;;  %vm5608_vm13 = vweird.f32 %v15883_v46 }
 0x47e   : > { %v15971_v57 = vpop.eup %9925  ;;  %v5320_v36 = vsub.f32 %v5256_v41, %v5288_v28  ;;  %9178 = vmatmul.msk.f32.gmra.mxu2 %vm3808_vm3, %v5898_v58  ;;  %v5613_v63 = vmul.f32 %v15955_v38, %v5612_v62  ;;  %v15992_v40 = vpop.f32.mrf.mxu0  ;;  %v5600_v21 = vsel %vm15983_vm12, %v15871_v18, %v5596_v0  ;;  %v5802_v22 = vadd.f32 %v15604_v37, %v5766_v44  ;;  %v7390_v28 = vld [vmem:[%s15898_s5 + $0x10] sm:$0xff] }
 0x47f   : > { %v5622_v50 = vmul.f32 %v15971_v57, %v15927_v6  ;;  %8171 = vmatpush.msra.mxu1 %v9553_v19  ;;  %v5347_v52 = vsub.f32 %v14157_v10, %v15773_v9  ;;  %vm5607_vm2 = vweird.f32 %v15842_v15  ;;  %v5289_v41 = vmul.f32 %v15978_v7, %v15978_v7 }
 0x480   : > { %9321 = vmatmul.msk.f32.gmra.mxu0 %vm7426_vm5, %v7389_v45  ;;  %v15997_v56 = vadd.f32 1e-05, %v5320_v36  ;;  %v5058_v45 = vpop.xlane.xlu0 %5057  ;;  %vm16009_vm14 = vmor %vm5607_vm2, %vm5608_vm13  ;;  %vm5834_vm15 = vcmp.ge.f32.partialorder %v5802_v22, 0.0  ;;  %v5867_v30 = vmul.f32 %v14261_v59, %v5802_v22  ;;  %v5614_v9 = vmul.f32 0.5, %v5613_v63  ;;  %v7391_v63 = vld [vmem:[%s15898_s5 + $0x18] sm:$0xff] }
 0x481   : > { %v5183_v26 = vpop.xlane.xlu2 %5182  ;;  %v16005_v5 = vpop.eup %9927  ;;  %v5731_v62 = vmul.f32 %v5600_v21, %v5347_v52  ;;  %v5610_v10 = vsel %vm16009_vm14, %v15883_v46, %v5606_v47  ;;  %v5623_v15 = vmul.f32 %v15971_v57, %v5622_v50  ;;  %v5348_v2 = vsub.f32 %v14369_v61, %v15794_v25 }
 0x482   : > { %v5257_v27 = vmul.f32 0.015625, %v5183_v26  ;;  %9244 = vmatmul.msk.f32.gmra.mxu3 %vm3598_vm0, %v6426_v48  ;;  %9929 = vrsqrt.f32 %v15997_v56  ;;  %v16024_v0 = vmul.f32 0.015625, %v5058_v45  ;;  %v5632_v36 = vmul.f32 %v16005_v5, %v15957_v29  ;;  %v5186_v58 = vpop.xlane.xlu1 %5185  ;;  %v6427_v48 = vld [vmem:[%s14258_s8 + $0xa8] sm:$0xff] }
 0x483   : > { %v5899_v26 = vsel %vm5834_vm15, %v5802_v22, %v5867_v30  ;;  %v5732_v46 = vmul.f32 %v5610_v10, %v5348_v2  ;;  %v5615_v44 = vsub.f32 1.5, %v5614_v9  ;;  %v5624_v19 = vmul.f32 0.5, %v5623_v15  ;;  %v6428_v2 = vld [vmem:[%s14258_s8 + $0xb0] sm:$0xff] }
 0x484   : > { %v5321_v55 = vsub.f32 %v5257_v27, %v5289_v41  ;;  %v5767_v49 = vmul.f32 %v15598_v42, %v5731_v62  ;;  %v5290_v25 = vmul.f32 %v16024_v0, %v16024_v0  ;;  %v5258_v47 = vmul.f32 0.015625, %v5186_v58 }
 0x485   : > { %v5633_v50 = vmul.f32 %v16005_v5, %v5632_v36  ;;  %v5768_v45 = vmul.f32 %v15598_v42, %v5732_v46  ;;  %v5616_v18 = vmul.f32 %v15955_v38, %v5615_v44  ;;  %vm5618_vm4 = vweird.f32 %v15955_v38  ;;  %v7392_v44 = vld [vmem:[%s15898_s5 + $0x20] sm:$0xff] }
 0x486   : > { %9179 = vmatmul.msk.f32.gmra.mxu2 %vm3808_vm3, %v5899_v26  ;;  %v16031_v61 = vadd.f32 1e-05, %v5321_v55  ;;  %v5803_v27 = vadd.f32 %v15604_v37, %v5767_v49  ;;  %v5625_v41 = vsub.f32 1.5, %v5624_v19  ;;  %v5322_v30 = vsub.f32 %v5258_v47, %v5290_v25  ;;  %v6591_v19 = vpop.f32.mrf.mxu3 }
 0x487   : > { %v5634_v9 = vmul.f32 0.5, %v5633_v50  ;;  %vm5617_vm7 = vweird.f32 %v15906_v11  ;;  %v5804_v36 = vadd.f32 %v15604_v37, %v5768_v45  ;;  %vm5628_vm9 = vweird.f32 %v15971_v57 }
 0x488   : > { %9322 = vmatmul.msk.f32.gmra.mxu0 %vm7426_vm5, %v7390_v28  ;;  %v16039_v22 = vpop.eup %9929  ;;  %v16041_v28 = vpop.f32.mrf.mxu0  ;;  %vm5835_vm6 = vcmp.ge.f32.partialorder %v5803_v27, 0.0  ;;  %9931 = vrsqrt.f32 %v16031_v61  ;;  %v5868_v10 = vmul.f32 %v14261_v59, %v5803_v27  ;;  %vm16059_vm8 = vmor %vm5617_vm7, %vm5618_vm4  ;;  %v5626_v26 = vmul.f32 %v15971_v57, %v5625_v41 }
 0x489   : > { %v5061_v21 = vpop.xlane.xlu2 %5060  ;;  %v5642_v42 = vmul.f32 %v16039_v22, %v15997_v56  ;;  %v5189_v46 = vpop.xlane.xlu0 %5188  ;;  %v5620_v37 = vsel %vm16059_vm8, %v15955_v38, %v5616_v18  ;;  %v16071_v11 = vadd.f32 1e-05, %v5322_v30  ;;  %vm5627_vm1 = vweird.f32 %v15927_v6 }
 0x48a   : > { %9245 = vmatmul.msk.f32.gmra.mxu3 %vm3598_vm0, %v6427_v48  ;;  %v16048_v62 = vmul.f32 0.015625, %v5061_v21  ;;  %v5900_v55 = vsel %vm5835_vm6, %v5803_v27, %v5868_v10  ;;  %v5635_v49 = vsub.f32 1.5, %v5634_v9  ;;  %vm16086_vm11 = vmor %vm5627_vm1, %vm5628_vm9  ;;  %v5869_v50 = vmul.f32 %v14261_v59, %v5804_v36  ;;  %v5064_v18 = vpop.xlane.xlu1 %5063  ;;  %v6429_v10 = vld [vmem:[%s14258_s8 + $0xb8] sm:$0xff] }
 0x48b   : > { %v5643_v25 = vmul.f32 %v16039_v22, %v5642_v42  ;;  %v5630_v21 = vsel %vm16086_vm11, %v15971_v57, %v5626_v26  ;;  %vm5836_vm12 = vcmp.ge.f32.partialorder %v5804_v36, 0.0  ;;  %9933 = vrsqrt.f32 %v16071_v11 }
 0x48c   : > { %v6101_v52 = vpop.f32.mrf.mxu2  ;;  %v5291_v48 = vmul.f32 %v16048_v62, %v16048_v62  ;;  %v5636_v41 = vmul.f32 %v16005_v5, %v5635_v49  ;;  %vm5638_vm13 = vweird.f32 %v16005_v5  ;;  %v5901_v42 = vsel %vm5836_vm12, %v5804_v36, %v5869_v50 }
 0x48d   : > { %v6311_v15 = vadd.f32 %v15673_v60, %v6101_v52  ;;  %v5349_v60 = vsub.f32 %v14422_v20, %v15844_v17  ;;  %v5350_v52 = vsub.f32 %v15373_v34, %v15873_v32  ;;  %v5644_v30 = vmul.f32 0.5, %v5643_v25  ;;  %v16107_v32 = vld [vmem:[%s17741_s10] ss:$0 sm:$0xff] }
 0x48e   : > { %9180 = vmatmul.msk.f32.gmra.mxu2 %vm3808_vm3, %v5900_v55  ;;  %v16080_v17 = vpop.eup %9931  ;;  %vm5637_vm2 = vweird.f32 %v15957_v29  ;;  %v16116_v36 = vmul.f32 0.015625, %v5064_v18  ;;  %v5351_v49 = vsub.f32 %v15393_v33, %v15890_v53  ;;  %vm5648_vm4 = vweird.f32 %v16039_v22 }
 0x48f   : > { %v6386_v20 = vadd.f32 %v15737_v35, %v6311_v15  ;;  %v5733_v6 = vmul.f32 %v5620_v37, %v5349_v60  ;;  %v5652_v57 = vmul.f32 %v16080_v17, %v16031_v61  ;;  %v5734_v9 = vmul.f32 %v5630_v21, %v5350_v52  ;;  %vm16110_vm15 = vmor %vm5637_vm2, %vm5638_vm13 }
 0x490   : > { %9323 = vmatmul.msk.f32.gmra.mxu0 %vm7426_vm5, %v7391_v63  ;;  %v16082_v47 = vpop.f32.mrf.mxu0  ;;  %v5259_v63 = vmul.f32 0.015625, %v5189_v46  ;;  %v7393_v46 = vld [vmem:[%s15898_s5 + $0x28] sm:$0xff]  ;;  %v5640_v29 = vsel %vm16110_vm15, %v16005_v5, %v5636_v41  ;;  %v5645_v60 = vsub.f32 1.5, %v5644_v30  ;;  %v5292_v50 = vmul.f32 %v16116_v36, %v16116_v36 }
 0x491   : > { %v6663_v27 = vadd.f32 %v6591_v19, %v6386_v20  ;;  %v5192_v34 = vpop.xlane.xlu2 %5191  ;;  %v5653_v37 = vmul.f32 %v16080_v17, %v5652_v57  ;;  %v16129_v19 = vpop.eup %9933  ;;  %v5770_v5 = vmul.f32 %v16107_v32, %v5734_v9  ;;  %v9540_v52 = vunpack.c.l.bf16 %v15922_v8  ;;  %v7394_v9 = vld [vmem:[%s15898_s5 + $0x30] sm:$0xff] }
 0x492   : > { %9246 = vmatmul.msk.f32.gmra.mxu3 %vm3598_vm0, %v6428_v2  ;;  %v5323_v45 = vsub.f32 %v5259_v63, %v5291_v48  ;;  %v5769_v2 = vmul.f32 %v16107_v32, %v5733_v6  ;;  %v16126_v48 = vld [vmem:[%s17742_s3] ss:$0 sm:$0xff]  ;;  %v5260_v20 = vmul.f32 0.015625, %v5192_v34  ;;  %v5067_v38 = vpop.xlane.xlu0 %5066  ;;  %v5735_v63 = vmul.f32 %v5640_v29, %v5351_v49  ;;  %v5195_v41 = vpop.xlane.xlu1 %5194  ;;  %v6431_v49 = vld [vmem:[%s14258_s8 + $0xc8] sm:$0xff] }
 0x493   : > { %v6728_v15 = vmul.f32 %v15276_v12, %v6663_v27  ;;  %vm6695_vm14 = vcmp.ge.f32.partialorder %v6663_v27, 0.0  ;;  %v5646_v33 = vmul.f32 %v16039_v22, %v5645_v60  ;;  %v5654_v53 = vmul.f32 0.5, %v5653_v37  ;;  %7856 = vmatpush.msra.mxu3 %v9540_v52 }
 0x494   : > { %v16114_v58 = vadd.f32 1e-05, %v5323_v45  ;;  %v5662_v21 = vmul.f32 %v16129_v19, %v16071_v11  ;;  %v5324_v45 = vsub.f32 %v5260_v20, %v5292_v50  ;;  %v16147_v18 = vmul.f32 0.015625, %v5067_v38 }
 0x495   : > { %v6760_v26 = vsel %vm6695_vm14, %v6663_v27, %v6728_v15  ;;  %v6430_v27 = vld [vmem:[%s14258_s8 + $0xc0] sm:$0xff]  ;;  %v5806_v57 = vadd.f32 %v16126_v48, %v5770_v5  ;;  %vm5647_vm7 = vweird.f32 %v15997_v56  ;;  %v5261_v34 = vmul.f32 0.015625, %v5195_v41 }
 0x496   : > { %9181 = vmatmul.msk.f32.gmra.mxu2 %vm3808_vm3, %v5901_v42  ;;  %9268 = vmatmul.msk.f32.gmra.mxu1 %vm6792_vm10, %v6760_v26  ;;  %9935 = vrsqrt.f32 %v16114_v58  ;;  %vm5649_vm8 = vmor %vm5647_vm7, %vm5648_vm4  ;;  %v5655_v42 = vsub.f32 1.5, %v5654_v53  ;;  %v5663_v15 = vmul.f32 %v16129_v19, %v5662_v21  ;;  %v5771_v26 = vmul.f32 %v16107_v32, %v5735_v63 }
 0x497   : > { %v5650_v8 = vsel %vm5649_vm8, %v16039_v22, %v5646_v33  ;;  %v5871_v55 = vmul.f32 %v14261_v59, %v5806_v57  ;;  %vm5838_vm9 = vcmp.ge.f32.partialorder %v5806_v57, 0.0  ;;  %vm5658_vm1 = vweird.f32 %v16080_v17 }
 0x498   : > { %9324 = vmatmul.msk.f32.gmra.mxu0 %vm7426_vm5, %v7392_v44  ;;  %v5805_v44 = vadd.f32 %v16126_v48, %v5769_v2  ;;  %v16133_v25 = vpop.f32.mrf.mxu0  ;;  %v16162_v2 = vadd.f32 1e-05, %v5324_v45  ;;  %v5656_v29 = vmul.f32 %v16080_v17, %v5655_v42  ;;  %v5664_v60 = vmul.f32 0.5, %v5663_v15 }
 0x499   : > { %v5903_v5 = vsel %vm5838_vm9, %v5806_v57, %v5871_v55  ;;  %v5807_v38 = vadd.f32 %v16126_v48, %v5771_v26  ;;  %v9552_v63 = vunpack.c.l.bf16 %v15969_v54  ;;  %vm5657_vm11 = vweird.f32 %v16031_v61 }
 0x49a   : > { %9247 = vmatmul.msk.f32.gmra.mxu3 %vm3598_vm0, %v6429_v10  ;;  %vm5837_vm6 = vcmp.ge.f32.partialorder %v5805_v44, 0.0  ;;  %v5870_v6 = vmul.f32 %v14261_v59, %v5805_v44  ;;  %v5352_v10 = vsub.f32 %v15400_v4, %v15935_v43  ;;  %v5293_v4 = vmul.f32 %v16147_v18, %v16147_v18  ;;  %v5070_v43 = vpop.xlane.xlu2 %5069  ;;  %v5198_v50 = vpop.xlane.xlu0 %5197  ;;  %vm16187_vm12 = vmor %vm5657_vm11, %vm5658_vm1 }
 0x49b   : > { %9937 = vrsqrt.f32 %v16162_v2  ;;  %v5665_v53 = vsub.f32 1.5, %v5664_v60  ;;  %8172 = vmatpush.msra.mxu1 %v9552_v63  ;;  %v5660_v54 = vsel %vm16187_vm12, %v16080_v17, %v5656_v29  ;;  %v5872_v52 = vmul.f32 %v14261_v59, %v5807_v38 }
 0x49c   : > { %v5902_v30 = vsel %vm5837_vm6, %v5805_v44, %v5870_v6  ;;  %v16160_v56 = vpop.eup %9935  ;;  %v5736_v22 = vmul.f32 %v5650_v8, %v5352_v10  ;;  %v16175_v44 = vmul.f32 0.015625, %v5070_v43  ;;  %v5325_v20 = vsub.f32 %v5261_v34, %v5293_v4  ;;  %v7395_v6 = vld [vmem:[%s15898_s5 + $0x38] sm:$0xff] }
 0x49d   : > { %v5672_v37 = vmul.f32 %v16160_v56, %v16114_v58  ;;  %v5353_v41 = vsub.f32 %v15437_v39, %v15978_v7  ;;  %vm5839_vm13 = vcmp.ge.f32.partialorder %v5807_v38, 0.0  ;;  %vm5668_vm2 = vweird.f32 %v16129_v19  ;;  %v6432_v7 = vld [vmem:[%s14258_s8 + $0xd0] sm:$0xff] }
 0x49e   : > { %9182 = vmatmul.msk.f32.gmra.mxu2 %vm3808_vm3, %v5902_v30  ;;  %v16197_v61 = vadd.f32 1e-05, %v5325_v20  ;;  %v5772_v45 = vmul.f32 %v16107_v32, %v5736_v22  ;;  %v5262_v30 = vmul.f32 0.015625, %v5198_v50  ;;  %v5666_v42 = vmul.f32 %v16129_v19, %v5665_v53  ;;  %v7396_v22 = vld [vmem:[%s15898_s5 + $0x40] sm:$0xff]  ;;  %v6433_v53 = vld [vmem:[%s14258_s8 + $0xd8] sm:$0xff] }
 0x49f   : > { %v5673_v21 = vmul.f32 %v16160_v56, %v5672_v37  ;;  %v5737_v8 = vmul.f32 %v5660_v54, %v5353_v41  ;;  %v5904_v4 = vsel %vm5839_vm13, %v5807_v38, %v5872_v52  ;;  %vm5667_vm14 = vweird.f32 %v16071_v11  ;;  %v7397_v41 = vld [vmem:[%s15898_s5 + $0x48] sm:$0xff] }
 0x4a0   : > { %9325 = vmatmul.msk.f32.gmra.mxu0 %vm7426_vm5, %v7393_v46  ;;  %v16170_v46 = vpop.f32.mrf.mxu0  ;;  %9939 = vrsqrt.f32 %v16197_v61  ;;  %v5808_v43 = vadd.f32 %v16126_v48, %v5772_v45  ;;  %vm16221_vm15 = vmor %vm5667_vm14, %vm5668_vm2  ;;  %v5354_v38 = vsub.f32 %v15452_v3, %v16024_v0  ;;  %vm5678_vm7 = vweird.f32 %v16160_v56 }
 0x4a1   : > { %v16204_v10 = vpop.eup %9937  ;;  %v5674_v15 = vmul.f32 0.5, %v5673_v21  ;;  %v5670_v60 = vsel %vm16221_vm15, %v16129_v19, %v5666_v42  ;;  %vm5677_vm8 = vweird.f32 %v16114_v58  ;;  %vm5687_vm13 = vweird.f32 %v16162_v2 }
 0x4a2   : > { %9248 = vmatmul.msk.f32.gmra.mxu3 %vm3598_vm0, %v6430_v27  ;;  %v5294_v27 = vmul.f32 %v16175_v44, %v16175_v44  ;;  %v6594_v39 = vpop.f32.mrf.mxu3  ;;  %v5682_v26 = vmul.f32 %v16204_v10, %v16162_v2  ;;  %vm5840_vm6 = vcmp.ge.f32.partialorder %v5808_v43, 0.0  ;;  %v5738_v33 = vmul.f32 %v5670_v60, %v5354_v38  ;;  %vm16258_vm9 = vmor %vm5677_vm8, %vm5678_vm7  ;;  %v6435_v2 = vld [vmem:[%s14258_s8 + $0xe8] sm:$0xff] }
 0x4a3   : > { %v5675_v11 = vsub.f32 1.5, %v5674_v15  ;;  %vm5688_vm12 = vweird.f32 %v16204_v10  ;;  %v5356_v38 = vsub.f32 %v15513_v1, %v16116_v36 }
 0x4a4   : > { %v5326_v34 = vsub.f32 %v5262_v30, %v5294_v27  ;;  %v5683_v63 = vmul.f32 %v16204_v10, %v5682_v26  ;;  %v5774_v58 = vmul.f32 %v16107_v32, %v5738_v33  ;;  %vm5689_vm2 = vmor %vm5687_vm13, %vm5688_vm12 }
 0x4a5   : > { %v5676_v21 = vmul.f32 %v16160_v56, %v5675_v11 }
 0x4a6   : > { %9183 = vmatmul.msk.f32.gmra.mxu2 %vm3808_vm3, %v5903_v5  ;;  %v16230_v37 = vadd.f32 1e-05, %v5326_v34  ;;  %v5773_v5 = vmul.f32 %v16107_v32, %v5737_v8  ;;  %v16239_v19 = vpop.eup %9939  ;;  %v5684_v54 = vmul.f32 0.5, %v5683_v63  ;;  %v5810_v26 = vadd.f32 %v16126_v48, %v5774_v58  ;;  %v6437_v58 = vld [vmem:[%s14258_s8 + $0xf8] sm:$0xff] }
 0x4a7   : > { %v5692_v52 = vmul.f32 %v16239_v19, %v16197_v61  ;;  %v5680_v8 = vsel %vm16258_vm9, %v16160_v56, %v5676_v21  ;;  %vm5698_vm15 = vweird.f32 %v16239_v19 }
 0x4a8   : > { %9326 = vmatmul.msk.f32.gmra.mxu0 %vm7426_vm5, %v7394_v9  ;;  %v16207_v17 = vpop.f32.mrf.mxu0  ;;  %9941 = vrsqrt.f32 %v16230_v37  ;;  %v5809_v0 = vadd.f32 %v16126_v48, %v5773_v5  ;;  %v5685_v42 = vsub.f32 1.5, %v5684_v54  ;;  %v5875_v60 = vmul.f32 %v14261_v59, %v5810_v26 }
 0x4a9   : > { %v5693_v15 = vmul.f32 %v16239_v19, %v5692_v52  ;;  %vm5842_vm14 = vcmp.ge.f32.partialorder %v5810_v26, 0.0  ;;  %v5357_v54 = vsub.f32 %v15532_v13, %v16147_v18  ;;  %v6436_v52 = vld [vmem:[%s14258_s8 + $0xf0] sm:$0xff]  ;;  %vm5707_vm9 = vweird.f32 %v16230_v37 }
 0x4aa   : > { %9249 = vmatmul.msk.f32.gmra.mxu3 %vm3598_vm0, %v6431_v49  ;;  %v5873_v49 = vmul.f32 %v14261_v59, %v5808_v43  ;;  %vm5841_vm1 = vcmp.ge.f32.partialorder %v5809_v0, 0.0  ;;  %v5907_v33 = vsel %vm5842_vm14, %v5810_v26, %v5875_v60 }
 0x4ac   : > { %v5905_v3 = vsel %vm5840_vm6, %v5808_v43, %v5873_v49 }
 0x4ae   : > { %9184 = vmatmul.msk.f32.gmra.mxu2 %vm3808_vm3, %v5904_v4  ;;  %v6434_v4 = vld [vmem:[%s14258_s8 + $0xe0] sm:$0xff]  ;;  %s17886_s8 = sld [smem:[#allocation30_spill]] }
 0x4b0   : > { %9327 = vmatmul.msk.f32.gmra.mxu0 %vm7426_vm5, %v7395_v6  ;;  %v16241_v50 = vpop.f32.mrf.mxu0  ;;  %v6597_v30 = vpop.f32.mrf.mxu3 }
 0x4b2   : > { %v6104_v57 = vpop.f32.mrf.mxu2  ;;  %9250 = vmatmul.msk.f32.gmra.mxu3 %vm3598_vm0, %v6432_v7 }
 0x4b3   : > { %v6314_v9 = vadd.f32 %v15702_v16, %v6104_v57  ;;  %v5686_v16 = vmul.f32 %v16204_v10, %v5685_v42 }
 0x4b5   : > { %v6387_v55 = vadd.f32 %v15737_v35, %v6314_v9  ;;  %v5690_v49 = vsel %vm5689_vm2, %v16204_v10, %v5686_v16 }
 0x4b6   : > { %9185 = vmatmul.msk.f32.gmra.mxu2 %vm3808_vm3, %v5905_v3  ;;  %v7399_v3 = vld [vmem:[%s15898_s5 + $0x58] sm:$0xff] }
 0x4b7   : > { %v6664_v29 = vadd.f32 %v6594_v39, %v6387_v55  ;;  %v16270_v39 = vpop.eup %9941 }
 0x4b8   : > { %9328 = vmatmul.msk.f32.gmra.mxu0 %vm7426_vm5, %v7396_v22  ;;  %v16274_v7 = vpop.f32.mrf.mxu0  ;;  %v5694_v22 = vmul.f32 0.5, %v5693_v15  ;;  %vm5708_vm8 = vweird.f32 %v16270_v39 }
 0x4b9   : > { %v6729_v20 = vmul.f32 %v15276_v12, %v6664_v29  ;;  %vm6696_vm4 = vcmp.ge.f32.partialorder %v6664_v29, 0.0 }
 0x4ba   : > { %9251 = vmatmul.msk.f32.gmra.mxu3 %vm3598_vm0, %v6433_v53 }
 0x4bb   : > { %v6761_v6 = vsel %vm6696_vm4, %v6664_v29, %v6729_v20  ;;  %v5702_v29 = vmul.f32 %v16270_v39, %v16230_v37  ;;  %v5695_v20 = vsub.f32 1.5, %v5694_v22  ;;  %vm5697_vm4 = vweird.f32 %v16197_v61 }
 0x4bc   : > { %9269 = vmatmul.msk.f32.gmra.mxu1 %vm6792_vm10, %v6761_v6  ;;  %v5740_v6 = vmul.f32 %v5690_v49, %v5356_v38  ;;  %vm5699_vm6 = vmor %vm5697_vm4, %vm5698_vm15 }
 0x4bd   : > { %v5703_v5 = vmul.f32 %v16270_v39, %v5702_v29  ;;  %v5696_v21 = vmul.f32 %v16239_v19, %v5695_v20  ;;  %v16343_v29 = vld [vmem:[%s17834_s9] ss:$0 sm:$0xff]  ;;  %s9031_s9 = sld [smem:[#allocation2 + $0x7]] }
 0x4be   : > { %v5776_v36 = vmul.f32 %v16107_v32, %v5740_v6 }
 0x4bf   : > { %v6107_v27 = vpop.f32.mrf.mxu2  ;;  %v5704_v10 = vmul.f32 0.5, %v5703_v5  ;;  %v16351_v5 = vpop.f32.mrf.mxu1 }
 0x4c0   : > { %v6317_v45 = vadd.f32 %v15752_v24, %v6107_v27  ;;  %v5874_v24 = vmul.f32 %v14261_v59, %v5809_v0  ;;  %9329 = vmatmul.msk.f32.gmra.mxu0 %vm7426_vm5, %v7397_v41  ;;  %v16295_v63 = vpop.f32.mrf.mxu0 }
 0x4c1   : > { %v5705_v27 = vsub.f32 1.5, %v5704_v10 }
 0x4c2   : > { %v6388_v9 = vadd.f32 %v15737_v35, %v6317_v45  ;;  %v5355_v35 = vsub.f32 %v15482_v23, %v16048_v62  ;;  %v5906_v55 = vsel %vm5841_vm1, %v5809_v0, %v5874_v24  ;;  %v7398_v62 = vld [vmem:[%s15898_s5 + $0x50] sm:$0xff]  ;;  %9252 = vmatmul.msk.f32.gmra.mxu3 %vm3598_vm0, %v6434_v4  ;;  %v5700_v0 = vsel %vm5699_vm6, %v16239_v19, %v5696_v21  ;;  %v7400_v19 = vld [vmem:[%s15898_s5 + $0x60] sm:$0xff]  ;;  %vm5709_vm1 = vmor %vm5707_vm9, %vm5708_vm8 }
 0x4c3   : > { %9186 = vmatmul.msk.f32.gmra.mxu2 %vm3808_vm3, %v5906_v55  ;;  %v5741_v45 = vmul.f32 %v5700_v0, %v5357_v54  ;;  %v5706_v57 = vmul.f32 %v16270_v39, %v5705_v27  ;;  %v16363_v21 = vld [vmem:[%s17886_s8] ss:$0 sm:$0xff] }
 0x4c4   : > { %v6665_v34 = vadd.f32 %v6597_v30, %v6388_v9  ;;  %v5739_v43 = vmul.f32 %v5680_v8, %v5355_v35  ;;  %v5812_v30 = vadd.f32 %v16126_v48, %v5776_v36  ;;  %v17884_v8 = vld [vmem:[#allocation78_spill] sm:$0xff]  ;;  %v7401_v35 = vld [vmem:[%s15898_s5 + $0x68] sm:$0xff]  ;;  %v7404_v0 = vld [vmem:[%s15898_s5 + $0x80] sm:$0xff] }
 0x4c5   : > { %v5777_v18 = vmul.f32 %v16107_v32, %v5741_v45  ;;  %v5710_v9 = vsel %vm5709_vm1, %v16270_v39, %v5706_v57  ;;  %v5358_v24 = vsub.f32 %v17884_v8, %v16175_v44 }
 0x4c6   : > { %v6730_v56 = vmul.f32 %v15276_v12, %v6665_v34  ;;  %vm6697_vm11 = vcmp.ge.f32.partialorder %v6665_v34, 0.0  ;;  %v5775_v11 = vmul.f32 %v16107_v32, %v5739_v43  ;;  %v5877_v13 = vmul.f32 %v14261_v59, %v5812_v30  ;;  %v17885_v43 = vld [vmem:[#allocation54_spill] sm:$0xff] }
 0x4c7   : > { %v5742_v42 = vmul.f32 %v5710_v9, %v5358_v24  ;;  %v5813_v37 = vadd.f32 %v16126_v48, %v5777_v18  ;;  %v16370_v27 = vpop.f32.mrf.mxu1  ;;  %v7405_v9 = vld [vmem:[%s15898_s5 + $0x88] sm:$0xff] }
 0x4c8   : > { %v6762_v23 = vsel %vm6697_vm11, %v6665_v34, %v6730_v56  ;;  %9330 = vmatmul.msk.f32.gmra.mxu0 %vm7426_vm5, %v7398_v62  ;;  %v5811_v53 = vadd.f32 %v16126_v48, %v5775_v11  ;;  %v16312_v41 = vpop.f32.mrf.mxu0  ;;  %vm5844_vm11 = vcmp.ge.f32.partialorder %v5812_v30, 0.0  ;;  %v7402_v62 = vld [vmem:[%s15898_s5 + $0x70] sm:$0xff] }
 0x4c9   : > { %9270 = vmatmul.msk.f32.gmra.mxu1 %vm6792_vm10, %v6762_v23  ;;  %v5909_v34 = vsel %vm5844_vm11, %v5812_v30, %v5877_v13  ;;  %v5878_v39 = vmul.f32 %v14261_v59, %v5813_v37  ;;  %v5778_v4 = vmul.f32 %v16107_v32, %v5742_v42  ;;  %vm5845_vm12 = vcmp.ge.f32.partialorder %v5813_v37, 0.0 }
 0x4ca   : > { %9253 = vmatmul.msk.f32.gmra.mxu3 %vm3598_vm0, %v6435_v2  ;;  %v5876_v1 = vmul.f32 %v14261_v59, %v5811_v53  ;;  %vm5843_vm7 = vcmp.ge.f32.partialorder %v5811_v53, 0.0  ;;  %v7403_v2 = vld [vmem:[%s15898_s5 + $0x78] sm:$0xff] }
 0x4cb   : > { %9187 = vmatmul.msk.f32.gmra.mxu2 %vm3808_vm3, %v5907_v33  ;;  %v5910_v26 = vsel %vm5845_vm12, %v5813_v37, %v5878_v39  ;;  %v5814_v22 = vadd.f32 %v16126_v48, %v5778_v4  ;;  %v7406_v4 = vld [vmem:[%s15898_s5 + $0x90] sm:$0xff] }
 0x4cc   : > { %v5908_v61 = vsel %vm5843_vm7, %v5811_v53, %v5876_v1  ;;  %v16366_v1 = vstv %s9030_s11  ;;  %s17888_s11 = smov %s17887_s2 }
 0x4cd   : > { %v5879_v11 = vmul.f32 %v14261_v59, %v5814_v22  ;;  %v16358_v59 = vld [vmem:[%s10349_s19] sm:$0xff]  }
 0x4ce   : > { %v9549_v6 = vunpack.c.h.bf16 %v16358_v59 }
 0x4d0   : > { %9331 = vmatmul.msk.f32.gmra.mxu0 %vm7426_vm5, %v7399_v3  ;;  %v16328_v15 = vpop.f32.mrf.mxu0  ;;  %8173 = vmatpush.msra.mxu1 %v9549_v6 }
 0x4d2   : > { %9254 = vmatmul.msk.f32.gmra.mxu3 %vm3598_vm0, %v6436_v52 }
 0x4d3   : > { %9188 = vmatmul.msk.f32.gmra.mxu2 %vm3808_vm3, %v5908_v61 }
 0x4d8   : > { %9332 = vmatmul.msk.f32.gmra.mxu0 %vm7426_vm5, %v7400_v19 }
 0x4da   : > { %v6600_v56 = vpop.f32.mrf.mxu3  ;;  %9255 = vmatmul.msk.f32.gmra.mxu3 %vm3598_vm0, %v6437_v58  ;;  %vm5846_vm0 = vcmp.ge.f32.partialorder %v5814_v22, 0.0  ;;  %v16382_v58 = vpop.f32.mrf.mxu1 }
 0x4db   : > { %9189 = vmatmul.msk.f32.gmra.mxu2 %vm3808_vm3, %v5909_v34  ;;  %v5911_v20 = vsel %vm5846_vm0, %v5814_v22, %v5879_v11 }
 0x4e0   : > { %9333 = vmatmul.msk.f32.gmra.mxu0 %vm7426_vm5, %v7401_v35 }
 0x4e2   : > { %v6110_v44 = vpop.f32.mrf.mxu2 }
 0x4e3   : > { %v6320_v55 = vadd.f32 %v17885_v43, %v6110_v44  ;;  %v16338_v16 = vpop.f32.mrf.mxu0  ;;  %9190 = vmatmul.msk.f32.gmra.mxu2 %vm3808_vm3, %v5910_v26 }
 0x4e5   : > { %v6389_v23 = vadd.f32 %v16343_v29, %v6320_v55  ;;  %v6603_v32 = vpop.f32.mrf.mxu3 }
 0x4e7   : > { %v6666_v60 = vadd.f32 %v6600_v56, %v6389_v23 }
 0x4e8   : > { %9334 = vmatmul.msk.f32.gmra.mxu0 %vm7426_vm5, %v7402_v62  ;;  %v16395_v62 = vpop.f32.mrf.mxu1 }
 0x4e9   : > { %v6731_v49 = vmul.f32 %v15276_v12, %v6666_v60  ;;  %vm6698_vm13 = vcmp.ge.f32.partialorder %v6666_v60, 0.0 }
 0x4eb   : > { %v6763_v48 = vsel %vm6698_vm13, %v6666_v60, %v6731_v49  ;;  %9191 = vmatmul.msk.f32.gmra.mxu2 %vm3808_vm3, %v5911_v20 }
 0x4ec   : > { %9271 = vmatmul.msk.f32.gmra.mxu1 %vm6792_vm10, %v6763_v48  ;;  %v7407_v48 = vld [vmem:[%s15898_s5 + $0x98] sm:$0xff] }
 0x4ed   : > { %v16354_v38 = vpop.f32.mrf.mxu0  ;;  %v6606_v33 = vpop.f32.mrf.mxu3 }
 0x4f0   : > { %9335 = vmatmul.msk.f32.gmra.mxu0 %vm7426_vm5, %v7403_v2 }
 0x4f1   : > { %v6113_v53 = vpop.f32.mrf.mxu2 }
 0x4f2   : > { %v6323_v10 = vadd.f32 %v15839_v51, %v6113_v53 }
 0x4f4   : > { %v6390_v36 = vadd.f32 %v16343_v29, %v6323_v10 }
 0x4f5   : > { %v7540_v3 = vpop.f32.mrf.mxu0  ;;  %v6609_v45 = vpop.f32.mrf.mxu3 }
 0x4f6   : > { %v7541_v54 = vadd.f32 %v16363_v21, %v7540_v3  ;;  %v6667_v52 = vadd.f32 %v6603_v32, %v6390_v36  ;;  %v16406_v3 = vpop.f32.mrf.mxu1 }
 0x4f8   : > { %vm7636_vm3 = vcmp.ge.f32.partialorder %v7541_v54, 0.0  ;;  %v7669_v61 = vmul.f32 %v16366_v1, %v7541_v54  ;;  %9336 = vmatmul.msk.f32.gmra.mxu0 %vm7426_vm5, %v7404_v0  ;;  %v6732_v51 = vmul.f32 %v15276_v12, %v6667_v52  ;;  %vm6699_vm2 = vcmp.ge.f32.partialorder %v6667_v52, 0.0 }
 0x4f9   : > { %v6116_v19 = vpop.f32.mrf.mxu2 }
 0x4fa   : > { %v7701_v30 = vsel %vm7636_vm3, %v7541_v54, %v7669_v61  ;;  %v6764_v57 = vsel %vm6699_vm2, %v6667_v52, %v6732_v51  ;;  %v6326_v13 = vadd.f32 %v15885_v31, %v6116_v19  ;;  %v7408_v52 = vld [vmem:[%s15898_s5 + $0xa0] sm:$0xff] }
 0x4fb   : > { %9352 = vmatmul.msk.f32.vlgmr.msra.gmra.mxu3 %vm6792_vm10, %v7701_v30  ;;  %9272 = vmatmul.msk.f32.gmra.mxu1 %vm6792_vm10, %v6764_v57 }
 0x4fc   : > { %v6391_v24 = vadd.f32 %v16343_v29, %v6326_v13 }
 0x4fd   : > { %v7543_v18 = vpop.f32.mrf.mxu0  ;;  %v6612_v34 = vpop.f32.mrf.mxu3 }
 0x4fe   : > { %v7544_v8 = vadd.f32 %v16363_v21, %v7543_v18  ;;  %v6668_v37 = vadd.f32 %v6606_v33, %v6391_v24 }
 0x500   : > { %v7670_v42 = vmul.f32 %v16366_v1, %v7544_v8  ;;  %9337 = vmatmul.msk.f32.gmra.mxu0 %vm7426_vm5, %v7405_v9  ;;  %vm7637_vm14 = vcmp.ge.f32.partialorder %v7544_v8, 0.0  ;;  %v6733_v56 = vmul.f32 %v15276_v12, %v6668_v37  ;;  %vm6700_vm15 = vcmp.ge.f32.partialorder %v6668_v37, 0.0  ;;  %v16418_v9 = vpop.f32.mrf.mxu1 }
 0x501   : > { %v6119_v44 = vpop.f32.mrf.mxu2 }
 0x502   : > { %v7702_v35 = vsel %vm7637_vm14, %v7544_v8, %v7670_v42  ;;  %v6765_v31 = vsel %vm6700_vm15, %v6668_v37, %v6733_v56  ;;  %v6329_v55 = vadd.f32 %v15938_v14, %v6119_v44  ;;  %v7409_v42 = vld [vmem:[%s15898_s5 + $0xa8] sm:$0xff] }
 0x503   : > { %9353 = vmatmul.msk.f32.gmra.mxu3 %vm6792_vm10, %v7702_v35  ;;  %9273 = vmatmul.msk.f32.gmra.mxu1 %vm6792_vm10, %v6765_v31 }
 0x504   : > { %v6392_v23 = vadd.f32 %v16343_v29, %v6329_v55 }
 0x505   : > { %v7546_v39 = vpop.f32.mrf.mxu0  ;;  %v6615_v22 = vpop.f32.mrf.mxu3 }
 0x506   : > { %v7547_v43 = vadd.f32 %v16363_v21, %v7546_v39  ;;  %v6669_v60 = vadd.f32 %v6609_v45, %v6392_v23 }
 0x508   : > { %v7671_v26 = vmul.f32 %v16366_v1, %v7547_v43  ;;  %9338 = vmatmul.msk.f32.gmra.mxu0 %vm7426_vm5, %v7406_v4  ;;  %vm7638_vm4 = vcmp.ge.f32.partialorder %v7547_v43, 0.0  ;;  %v6734_v11 = vmul.f32 %v15276_v12, %v6669_v60  ;;  %vm6701_vm6 = vcmp.ge.f32.partialorder %v6669_v60, 0.0 }
 0x509   : > { %v6122_v14 = vpop.f32.mrf.mxu2 }
 0x50a   : > { %v7703_v32 = vsel %vm7638_vm4, %v7547_v43, %v7671_v26  ;;  %v6332_v2 = vadd.f32 %v15992_v40, %v6122_v14  ;;  %v6766_v6 = vsel %vm6701_vm6, %v6669_v60, %v6734_v11  ;;  %v16429_v43 = vpop.f32.mrf.mxu1 }
 0x50b   : > { %9354 = vmatmul.msk.f32.gmra.mxu3 %vm6792_vm10, %v7703_v32  ;;  %9274 = vmatmul.msk.f32.gmra.mxu1 %vm6792_vm10, %v6766_v6 }
 0x50c   : > { %v6393_v10 = vadd.f32 %v16343_v29, %v6332_v2 }
 0x50d   : > { %v7549_v49 = vpop.f32.mrf.mxu0  ;;  %v6618_v53 = vpop.f32.mrf.mxu3 }
 0x50e   : > { %v7550_v20 = vadd.f32 %v16363_v21, %v7549_v49  ;;  %v6670_v0 = vadd.f32 %v6612_v34, %v6393_v10 }
 0x510   : > { %v7672_v33 = vmul.f32 %v16366_v1, %v7550_v20  ;;  %9339 = vmatmul.msk.f32.gmra.mxu0 %vm7426_vm5, %v7407_v48  ;;  %vm7639_vm7 = vcmp.ge.f32.partialorder %v7550_v20, 0.0  ;;  %v6735_v54 = vmul.f32 %v15276_v12, %v6670_v0  ;;  %vm6702_vm8 = vcmp.ge.f32.partialorder %v6670_v0, 0.0 }
 0x511   : > { %v6125_v61 = vpop.f32.mrf.mxu2 }
 0x512   : > { %v7704_v36 = vsel %vm7639_vm7, %v7550_v20, %v7672_v33  ;;  %v6767_v51 = vsel %vm6702_vm8, %v6670_v0, %v6735_v54  ;;  %v6335_v30 = vadd.f32 %v16041_v28, %v6125_v61  ;;  %v7411_v33 = vld [vmem:[%s15898_s5 + $0xb8] sm:$0xff] }
 0x513   : > { %9355 = vmatmul.msk.f32.gmra.mxu3 %vm6792_vm10, %v7704_v36  ;;  %9275 = vmatmul.msk.f32.gmra.mxu1 %vm6792_vm10, %v6767_v51  ;;  %v9548_v36 = vunpack.c.l.bf16 %v16358_v59  ;;  %v7412_v59 = vld [vmem:[%s15898_s5 + $0xc0] sm:$0xff] }
 0x514   : > { %v6394_v13 = vadd.f32 %v16343_v29, %v6335_v30 }
 0x515   : > { %v7552_v40 = vpop.f32.mrf.mxu0  ;;  %v6621_v19 = vpop.f32.mrf.mxu3  ;;  %8174 = vmatpush.msra.mxu1 %v9548_v36 }
 0x516   : > { %v7553_v45 = vadd.f32 %v16363_v21, %v7552_v40  ;;  %v6671_v8 = vadd.f32 %v6615_v22, %v6394_v13  ;;  %v7410_v22 = vld [vmem:[%s15898_s5 + $0xb0] sm:$0xff] }
 0x518   : > { %v7673_v57 = vmul.f32 %v16366_v1, %v7553_v45  ;;  %9340 = vmatmul.msk.f32.gmra.mxu0 %vm7426_vm5, %v7408_v52  ;;  %vm7640_vm9 = vcmp.ge.f32.partialorder %v7553_v45, 0.0  ;;  %v6736_v28 = vmul.f32 %v15276_v12, %v6671_v8  ;;  %vm6703_vm1 = vcmp.ge.f32.partialorder %v6671_v8, 0.0 }
 0x519   : > { %v6128_v37 = vpop.f32.mrf.mxu2 }
 0x51a   : > { %v7705_v18 = vsel %vm7640_vm9, %v7553_v45, %v7673_v57  ;;  %v6338_v35 = vadd.f32 %v16082_v47, %v6128_v37  ;;  %v6768_v56 = vsel %vm6703_vm1, %v6671_v8, %v6736_v28 }
 0x51b   : > { %9356 = vmatmul.msk.f32.gmra.mxu3 %vm6792_vm10, %v7705_v18  ;;  %9276 = vmatmul.msk.f32.gmra.mxu1 %vm6792_vm10, %v6768_v56  ;;  %v7413_v56 = vld [vmem:[%s15898_s5 + $0xc8] sm:$0xff] }
 0x51c   : > { %v6395_v4 = vadd.f32 %v16343_v29, %v6338_v35 }
 0x51d   : > { %v7555_v24 = vpop.f32.mrf.mxu0  ;;  %v6624_v39 = vpop.f32.mrf.mxu3 }
 0x51e   : > { %v7556_v34 = vadd.f32 %v16363_v21, %v7555_v24  ;;  %v6672_v55 = vadd.f32 %v6618_v53, %v6395_v4  ;;  %v16441_v53 = vpop.f32.mrf.mxu1 }
 0x520   : > { %v7674_v31 = vmul.f32 %v16366_v1, %v7556_v34  ;;  %9341 = vmatmul.msk.f32.gmra.mxu0 %vm7426_vm5, %v7409_v42  ;;  %vm7641_vm11 = vcmp.ge.f32.partialorder %v7556_v34, 0.0  ;;  %v6737_v47 = vmul.f32 %v15276_v12, %v6672_v55  ;;  %vm6704_vm12 = vcmp.ge.f32.partialorder %v6672_v55, 0.0 }
 0x521   : > { %v6131_v32 = vpop.f32.mrf.mxu2 }
 0x522   : > { %v7706_v44 = vsel %vm7641_vm11, %v7556_v34, %v7674_v31  ;;  %v6341_v60 = vadd.f32 %v16133_v25, %v6131_v32  ;;  %v6769_v11 = vsel %vm6704_vm12, %v6672_v55, %v6737_v47 }
 0x523   : > { %9357 = vmatmul.msk.f32.gmra.mxu3 %vm6792_vm10, %v7706_v44  ;;  %9277 = vmatmul.msk.f32.gmra.mxu1 %vm6792_vm10, %v6769_v11  ;;  %v7414_v11 = vld [vmem:[%s15898_s5 + $0xd0] sm:$0xff] }
 0x524   : > { %v6396_v48 = vadd.f32 %v16343_v29, %v6341_v60 }
 0x525   : > { %v7558_v26 = vpop.f32.mrf.mxu0  ;;  %v6627_v20 = vpop.f32.mrf.mxu3 }
 0x526   : > { %v7559_v23 = vadd.f32 %v16363_v21, %v7558_v26  ;;  %v6673_v2 = vadd.f32 %v6621_v19, %v6396_v48  ;;  %v16453_v19 = vpop.f32.mrf.mxu1 }
 0x528   : > { %v7675_v49 = vmul.f32 %v16366_v1, %v7559_v23  ;;  %9342 = vmatmul.msk.f32.gmra.mxu0 %vm7426_vm5, %v7410_v22  ;;  %vm7642_vm0 = vcmp.ge.f32.partialorder %v7559_v23, 0.0  ;;  %v6738_v25 = vmul.f32 %v15276_v12, %v6673_v2  ;;  %vm6705_vm13 = vcmp.ge.f32.partialorder %v6673_v2, 0.0 }
 0x529   : > { %v6134_v0 = vpop.f32.mrf.mxu2 }
 0x52a   : > { %v7707_v14 = vsel %vm7642_vm0, %v7559_v23, %v7675_v49  ;;  %v6344_v54 = vadd.f32 %v16170_v46, %v6134_v0  ;;  %v6770_v40 = vsel %vm6705_vm13, %v6673_v2, %v6738_v25 }
 0x52b   : > { %9358 = vmatmul.msk.f32.gmra.mxu3 %vm6792_vm10, %v7707_v14  ;;  %9278 = vmatmul.msk.f32.gmra.mxu1 %vm6792_vm10, %v6770_v40 }
 0x52c   : > { %v6397_v45 = vadd.f32 %v16343_v29, %v6344_v54  ;;  %v7415_v54 = vld [vmem:[%s15898_s5 + $0xd8] sm:$0xff] }
 0x52d   : > { %v7561_v6 = vpop.f32.mrf.mxu0  ;;  %v6630_v57 = vpop.f32.mrf.mxu3 }
 0x52e   : > { %v7562_v10 = vadd.f32 %v16363_v21, %v7561_v6  ;;  %v6674_v51 = vadd.f32 %v6624_v39, %v6397_v45  ;;  %v16464_v31 = vpop.f32.mrf.mxu1 }
 0x530   : > { %v7676_v52 = vmul.f32 %v16366_v1, %v7562_v10  ;;  %9343 = vmatmul.msk.f32.gmra.mxu0 %vm7426_vm5, %v7411_v33  ;;  %vm7643_vm3 = vcmp.ge.f32.partialorder %v7562_v10, 0.0  ;;  %v6739_v46 = vmul.f32 %v15276_v12, %v6674_v51  ;;  %vm6706_vm2 = vcmp.ge.f32.partialorder %v6674_v51, 0.0 }
 0x531   : > { %v6137_v18 = vpop.f32.mrf.mxu2 }
 0x532   : > { %v7708_v61 = vsel %vm7643_vm3, %v7562_v10, %v7676_v52  ;;  %v6347_v8 = vadd.f32 %v16207_v17, %v6137_v18  ;;  %v6771_v24 = vsel %vm6706_vm2, %v6674_v51, %v6739_v46 }
 0x533   : > { %9359 = vmatmul.msk.f32.gmra.mxu3 %vm6792_vm10, %v7708_v61  ;;  %9279 = vmatmul.msk.f32.gmra.mxu1 %vm6792_vm10, %v6771_v24 }
 0x534   : > { %v6398_v28 = vadd.f32 %v16343_v29, %v6347_v8  ;;  %v7416_v8 = vld [vmem:[%s15898_s5 + $0xe0] sm:$0xff] }
 0x535   : > { %v7564_v30 = vpop.f32.mrf.mxu0  ;;  %v6633_v44 = vpop.f32.mrf.mxu3 }
 0x536   : > { %v7565_v13 = vadd.f32 %v16363_v21, %v7564_v30  ;;  %v6675_v37 = vadd.f32 %v6627_v20, %v6398_v28  ;;  %v16477_v48 = vpop.f32.mrf.mxu1 }
 0x538   : > { %vm7644_vm14 = vcmp.ge.f32.partialorder %v7565_v13, 0.0  ;;  %v7677_v42 = vmul.f32 %v16366_v1, %v7565_v13  ;;  %9344 = vmatmul.msk.f32.gmra.mxu0 %vm7426_vm5, %v7412_v59  ;;  %v6740_v17 = vmul.f32 %v15276_v12, %v6675_v37  ;;  %vm6707_vm15 = vcmp.ge.f32.partialorder %v6675_v37, 0.0 }
 0x539   : > { %v6140_v4 = vpop.f32.mrf.mxu2 }
 0x53a   : > { %v7709_v34 = vsel %vm7644_vm14, %v7565_v13, %v7677_v42  ;;  %v6350_v55 = vadd.f32 %v16241_v50, %v6140_v4  ;;  %v6772_v26 = vsel %vm6707_vm15, %v6675_v37, %v6740_v17  ;;  %v9531_v17 = vld [vmem:[%s17888_s11] sm:$0xff]  }
 0x53b   : > { %9360 = vmatmul.msk.f32.gmra.mxu3 %vm6792_vm10, %v7709_v34  ;;  %9280 = vmatmul.msk.f32.gmra.mxu1 %vm6792_vm10, %v6772_v26 }
 0x53c   : > { %v6399_v47 = vadd.f32 %v16343_v29, %v6350_v55 }
 0x53d   : > { %v7567_v35 = vpop.f32.mrf.mxu0  ;;  %v6636_v33 = vpop.f32.mrf.mxu3 }
 0x53e   : > { %v7568_v39 = vadd.f32 %v16363_v21, %v7567_v35  ;;  %v6676_v32 = vadd.f32 %v6630_v57, %v6399_v47  ;;  %v16488_v52 = vpop.f32.mrf.mxu1 }
 0x540   : > { %vm7645_vm4 = vcmp.ge.f32.partialorder %v7568_v39, 0.0  ;;  %v7678_v22 = vmul.f32 %v16366_v1, %v7568_v39  ;;  %9345 = vmatmul.msk.f32.gmra.mxu0 %vm7426_vm5, %v7413_v56  ;;  %v6741_v49 = vmul.f32 %v15276_v12, %v6676_v32  ;;  %vm6708_vm6 = vcmp.ge.f32.partialorder %v6676_v32, 0.0  ;;  %v9573_v56 = vld [vmem:[%s17887_s2 + $0x8] sm:$0xff]   ;;  %s17889_s2 = sld [smem:[#allocation25_spill]] }
 0x541   : > { %v9536_v55 = vunpack.c.l.bf16 %v9573_v56 }
 0x542   : > { %v7710_v23 = vsel %vm7645_vm4, %v7568_v39, %v7678_v22  ;;  %v6773_v2 = vsel %vm6708_vm6, %v6676_v32, %v6741_v49 }
 0x543   : > { %9361 = vmatmul.msk.f32.gmra.mxu3 %vm6792_vm10, %v7710_v23  ;;  %9281 = vmatmul.msk.f32.gmra.mxu1 %vm6792_vm10, %v6773_v2  ;;  %v7417_v23 = vld [vmem:[%s15898_s5 + $0xe8] sm:$0xff] }
 0x545   : > { %v7570_v60 = vpop.f32.mrf.mxu0  ;;  %v6639_v46 = vpop.f32.mrf.mxu3 }
 0x546   : > { %v7571_v50 = vadd.f32 %v16363_v21, %v7570_v60  ;;  %v6143_v14 = vpop.f32.mrf.mxu2  ;;  %v16499_v42 = vpop.f32.mrf.mxu1  ;;  %s17890_s3 = smov %s17889_s2 }
 0x547   : > { %v6353_v20 = vadd.f32 %v16274_v7, %v6143_v14 }
 0x548   : > { %vm7646_vm7 = vcmp.ge.f32.partialorder %v7571_v50, 0.0  ;;  %v7679_v6 = vmul.f32 %v16366_v1, %v7571_v50  ;;  %9346 = vmatmul.msk.f32.gmra.mxu0 %vm7426_vm5, %v7414_v11  ;;  %v9532_v11 = vunpack.c.l.bf16 %v9531_v17 }
 0x549   : > { %v6400_v25 = vadd.f32 %v16343_v29, %v6353_v20 }
 0x54a   : > { %v7711_v10 = vsel %vm7646_vm7, %v7571_v50, %v7679_v6 }
 0x54b   : > { %9362 = vmatmul.msk.f32.gmra.mxu3 %vm6792_vm10, %v7711_v10  ;;  %v6677_v36 = vadd.f32 %v6633_v44, %v6400_v25  ;;  %v9537_v44 = vunpack.c.h.bf16 %v9573_v56 }
 0x54d   : > { %v7573_v0 = vpop.f32.mrf.mxu0  ;;  %v6742_v40 = vmul.f32 %v15276_v12, %v6677_v36  ;;  %vm6709_vm8 = vcmp.ge.f32.partialorder %v6677_v36, 0.0  ;;  %7215 = vmatpush.msrb.mxu2 %v9537_v44  ;;  %v6642_v47 = vpop.f32.mrf.mxu3 }
 0x54e   : > { %v7574_v7 = vadd.f32 %v16363_v21, %v7573_v0  ;;  %v6146_v45 = vpop.f32.mrf.mxu2  ;;  %v16512_v49 = vpop.f32.mrf.mxu1 }
 0x54f   : > { %v6356_v61 = vadd.f32 %v16295_v63, %v6146_v45  ;;  %v6774_v51 = vsel %vm6709_vm8, %v6677_v36, %v6742_v40  ;;  %7216 = vmatpush.msrb.mxu2 %v9536_v55  ;;  %v7418_v36 = vld [vmem:[%s15898_s5 + $0xf0] sm:$0xff] }
 0x550   : > { %vm7647_vm9 = vcmp.ge.f32.partialorder %v7574_v7, 0.0  ;;  %v7680_v30 = vmul.f32 %v16366_v1, %v7574_v7  ;;  %9347 = vmatmul.msk.f32.gmra.mxu0 %vm7426_vm5, %v7415_v54  ;;  %9282 = vmatmul.msk.f32.gmra.mxu1 %vm6792_vm10, %v6774_v51 }
 0x551   : > { %v6401_v59 = vadd.f32 %v16343_v29, %v6356_v61 }
 0x552   : > { %v7712_v57 = vsel %vm7647_vm9, %v7574_v7, %v7680_v30 }
 0x553   : > { %9363 = vmatmul.msk.f32.gmra.mxu3 %vm6792_vm10, %v7712_v57  ;;  %v6678_v13 = vadd.f32 %v6636_v33, %v6401_v59 }
 0x555   : > { %v7576_v18 = vpop.f32.mrf.mxu0  ;;  %v6743_v63 = vmul.f32 %v15276_v12, %v6678_v13  ;;  %vm6710_vm1 = vcmp.ge.f32.partialorder %v6678_v13, 0.0  ;;  %v6645_v40 = vpop.f32.mrf.mxu3 }
 0x556   : > { %v7577_v24 = vadd.f32 %v16363_v21, %v7576_v18  ;;  %v6149_v28 = vpop.f32.mrf.mxu2  ;;  %v16526_v51 = vpop.f32.mrf.mxu1 }
 0x557   : > { %v6359_v34 = vadd.f32 %v16312_v41, %v6149_v28  ;;  %v6775_v37 = vsel %vm6710_vm1, %v6678_v13, %v6743_v63  ;;  %v9533_v41 = vunpack.c.h.bf16 %v9531_v17  ;;  %v7419_v13 = vld [vmem:[%s15898_s5 + $0xf8] sm:$0xff]  ;;  %v16543_v17 = vld [vmem:[%s17889_s2] ss:$0 sm:$0xff]  ;;  %s17891_s5 = sld [smem:[#allocation32_spill]]  ;;  %s17372_s2 = sand.u32 1, %s10127_s1  }
 0x558   : > { %vm7648_vm11 = vcmp.ge.f32.partialorder %v7577_v24, 0.0  ;;  %v7681_v35 = vmul.f32 %v16366_v1, %v7577_v24  ;;  %9348 = vmatmul.msk.f32.gmra.mxu0 %vm7426_vm5, %v7416_v8  ;;  %9283 = vmatmul.msk.f32.gmra.mxu1 %vm6792_vm10, %v6775_v37  ;;  %v6907_v55 = vadd.f32 %v16543_v17, %v16351_v5 }
 0x559   : > { %v6402_v39 = vadd.f32 %v16343_v29, %v6359_v34  ;;  %7217 = vmatpush.msrb.mxu2 %v9533_v41  ;;  %v16550_v41 = vstv %s9029_s6  ;;  %s17893_s6 = sld [smem:[#allocation28_spill]] }
 0x55a   : > { %v7713_v4 = vsel %vm7648_vm11, %v7577_v24, %v7681_v35  ;;  %vm7002_vm4 = vcmp.ge.f32.partialorder %v6907_v55, 0.0 }
 0x55b   : > { %9364 = vmatmul.msk.f32.gmra.mxu3 %vm6792_vm10, %v7713_v4  ;;  %v6679_v26 = vadd.f32 %v6639_v46, %v6402_v39  ;;  %7218 = vmatpush.msrb.mxu2 %v9532_v11  ;;  %v16561_v11 = vstv %s9031_s9  ;;  %s17892_s9 = sld [smem:[#allocation27_spill]] }
 0x55d   : > { %v7579_v22 = vpop.f32.mrf.mxu0  ;;  %v6744_v32 = vmul.f32 %v15276_v12, %v6679_v26  ;;  %vm6711_vm12 = vcmp.ge.f32.partialorder %v6679_v26, 0.0  ;;  %v6648_v37 = vpop.f32.mrf.mxu3 }
 0x55e   : > { %v7580_v60 = vadd.f32 %v16363_v21, %v7579_v22  ;;  %v6152_v50 = vpop.f32.mrf.mxu2 }
 0x55f   : > { %v6362_v14 = vadd.f32 %v16328_v15, %v6152_v50  ;;  %v6776_v20 = vsel %vm6711_vm12, %v6679_v26, %v6744_v32 }
 0x560   : > { %vm7649_vm0 = vcmp.ge.f32.partialorder %v7580_v60, 0.0  ;;  %v7682_v2 = vmul.f32 %v16366_v1, %v7580_v60  ;;  %9349 = vmatmul.msk.f32.gmra.mxu0 %vm7426_vm5, %v7417_v23  ;;  %9284 = vmatmul.msk.f32.gmra.mxu1 %vm6792_vm10, %v6776_v20  ;;  %v7035_v23 = vmul.f32 %v16550_v41, %v6907_v55  ;;  %v6910_v20 = vadd.f32 %v16543_v17, %v16370_v27 }
 0x561   : > { %v6403_v6 = vadd.f32 %v16343_v29, %v6362_v14 }
 0x562   : > { %v7714_v33 = vsel %vm7649_vm0, %v7580_v60, %v7682_v2  ;;  %v7067_v14 = vsel %vm7002_vm4, %v6907_v55, %v7035_v23  ;;  %vm7003_vm8 = vcmp.ge.f32.partialorder %v6910_v20, 0.0  ;;  %v6919_v55 = vadd.f32 %v16543_v17, %v16406_v3 }
 0x563   : > { %9365 = vmatmul.msk.f32.gmra.mxu3 %vm6792_vm10, %v7714_v33  ;;  %v6680_v25 = vadd.f32 %v6642_v47, %v6403_v6 }
 0x565   : > { %v7582_v10 = vpop.f32.mrf.mxu0  ;;  %v6745_v15 = vmul.f32 %v15276_v12, %v6680_v25  ;;  %vm6712_vm13 = vcmp.ge.f32.partialorder %v6680_v25, 0.0 }
 0x566   : > { %v7583_v0 = vadd.f32 %v16363_v21, %v7582_v10  ;;  %v6155_v54 = vpop.f32.mrf.mxu2 }
 0x567   : > { %v6365_v7 = vadd.f32 %v16338_v16, %v6155_v54  ;;  %v6777_v45 = vsel %vm6712_vm13, %v6680_v25, %v6745_v15 }
 0x568   : > { %vm7650_vm3 = vcmp.ge.f32.partialorder %v7583_v0, 0.0  ;;  %v7683_v61 = vmul.f32 %v16366_v1, %v7583_v0  ;;  %9350 = vmatmul.msk.f32.gmra.mxu0 %vm7426_vm5, %v7418_v36  ;;  %9285 = vmatmul.msk.f32.gmra.mxu1 %vm6792_vm10, %v6777_v45  ;;  %v7036_v36 = vmul.f32 %v16550_v41, %v6910_v20 }
 0x569   : > { %v6404_v30 = vadd.f32 %v16343_v29, %v6365_v7  ;;  %v16537_v34 = vpop.f32.mrf.mxu1 }
 0x56a   : > { %v7715_v59 = vsel %vm7650_vm3, %v7583_v0, %v7683_v61  ;;  %v7068_v7 = vsel %vm7003_vm8, %v6910_v20, %v7036_v36 }
 0x56b   : > { %9366 = vmatmul.msk.f32.gmra.mxu3 %vm6792_vm10, %v7715_v59  ;;  %v6681_v57 = vadd.f32 %v6645_v40, %v6404_v30  ;;  %v6913_v40 = vadd.f32 %v16543_v17, %v16382_v58 }
 0x56d   : > { %v7585_v46 = vpop.f32.mrf.mxu0  ;;  %v6746_v16 = vmul.f32 %v15276_v12, %v6681_v57  ;;  %vm6713_vm2 = vcmp.ge.f32.partialorder %v6681_v57, 0.0  ;;  %vm7004_vm11 = vcmp.ge.f32.partialorder %v6913_v40, 0.0 }
 0x56e   : > { %v7586_v18 = vadd.f32 %v16363_v21, %v7585_v46  ;;  %v6158_v8 = vpop.f32.mrf.mxu2 }
 0x56f   : > { %v6368_v63 = vadd.f32 %v16354_v38, %v6158_v8  ;;  %v6778_v24 = vsel %vm6713_vm2, %v6681_v57, %v6746_v16  ;;  %v7037_v57 = vmul.f32 %v16550_v41, %v6913_v40  ;;  %v6916_v8 = vadd.f32 %v16543_v17, %v16395_v62 }
 0x570   : > { %vm7651_vm14 = vcmp.ge.f32.partialorder %v7586_v18, 0.0  ;;  %v7684_v28 = vmul.f32 %v16366_v1, %v7586_v18  ;;  %9351 = vmatmul.msk.f32.gmra.mxu0 %vm7426_vm5, %v7419_v13  ;;  %9286 = vmatmul.msk.f32.gmra.mxu1 %vm6792_vm10, %v6778_v24 }
 0x571   : > { %v6405_v35 = vadd.f32 %v16343_v29, %v6368_v63  ;;  %v7069_v63 = vsel %vm7004_vm11, %v6913_v40, %v7037_v57  ;;  %vm7005_vm13 = vcmp.ge.f32.partialorder %v6916_v8, 0.0 }
 0x572   : > { %v7716_v56 = vsel %vm7651_vm14, %v7586_v18, %v7684_v28  ;;  %vm7006_vm14 = vcmp.ge.f32.partialorder %v6919_v55, 0.0 }
 0x573   : > { %9367 = vmatmul.msk.f32.gmra.mxu3 %vm6792_vm10, %v7716_v56  ;;  %v6682_v38 = vadd.f32 %v6648_v37, %v6405_v35  ;;  %v7038_v56 = vmul.f32 %v16550_v41, %v6916_v8 }
 0x575   : > { %v7588_v39 = vpop.f32.mrf.mxu0  ;;  %vm6714_vm15 = vcmp.ge.f32.partialorder %v6682_v38, 0.0  ;;  %v6747_v4 = vmul.f32 %v15276_v12, %v6682_v38  ;;  %v16557_v12 = vld [vmem:[%s17891_s5] ss:$0 sm:$0xff] }
 0x576   : > { %v7589_v44 = vadd.f32 %v16363_v21, %v7588_v39 }
 0x577   : > { %v6779_v26 = vsel %vm6714_vm15, %v6682_v38, %v6747_v4 }
 0x578   : > { %vm7652_vm5 = vcmp.ge.f32.partialorder %v7589_v44, 0.0  ;;  %v7685_v29 = vmul.f32 %v16366_v1, %v7589_v44  ;;  %9287 = vmatmul.msk.f32.vlgmr.msra.gmra.mxu2 %vm6792_vm10, %v6779_v26  ;;  %v16553_v22 = vpop.f32.mrf.mxu1  ;;  %v7070_v26 = vsel %vm7005_vm13, %v6916_v8, %v7038_v56 }
 0x57a   : > { %v7717_v47 = vsel %vm7652_vm5, %v7589_v44, %v7685_v29 }
 0x57b   : > { %9368 = vmatmul.msk.f32.gmra.mxu3 %vm6792_vm10, %v7717_v47 }
 0x57d   : > { %v7591_v32 = vpop.f32.mrf.mxu0 }
 0x57e   : > { %v7592_v5 = vadd.f32 %v16363_v21, %v7591_v32  ;;  %v7858_v60 = vpop.f32.mrf.mxu3 }
 0x57f   : > { %v7859_v50 = vadd.f32 %v16557_v12, %v7858_v60 }
 0x580   : > { %vm7653_vm6 = vcmp.ge.f32.partialorder %v7592_v5, 0.0  ;;  %v7686_v2 = vmul.f32 %v16366_v1, %v7592_v5  ;;  %9288 = vmatmul.msk.f32.vlgmr.msrb.gmra.mxu2 %vm6792_vm10, %v7067_v14  ;;  %v16569_v10 = vpop.f32.mrf.mxu1 }
 0x581   : > { %vm7954_vm7 = vcmp.ge.f32.partialorder %v7859_v50, 0.0  ;;  %v7987_v6 = vmul.f32 %v16561_v11, %v7859_v50 }
 0x582   : > { %v7718_v33 = vsel %vm7653_vm6, %v7592_v5, %v7686_v2  ;;  %v7039_v5 = vmul.f32 %v16550_v41, %v6919_v55  ;;  %v6922_v2 = vadd.f32 %v16543_v17, %v16418_v9 }
 0x583   : > { %v8019_v25 = vsel %vm7954_vm7, %v7859_v50, %v7987_v6  ;;  %9369 = vmatmul.msk.f32.gmra.mxu3 %vm6792_vm10, %v7718_v33 }
 0x584   : > { %9384 = vmatmul.msk.f32.vlgmr.msra.gmra.mxu1 %vm6792_vm10, %v8019_v25  ;;  %v7071_v6 = vsel %vm7006_vm14, %v6919_v55, %v7039_v5  ;;  %vm7007_vm4 = vcmp.ge.f32.partialorder %v6922_v2, 0.0 }
 0x585   : > { %v7594_v27 = vpop.f32.mrf.mxu0 }
 0x586   : > { %v7595_v15 = vadd.f32 %v16363_v21, %v7594_v27  ;;  %v7861_v0 = vpop.f32.mrf.mxu3 }
 0x587   : > { %v7862_v54 = vadd.f32 %v16557_v12, %v7861_v0 }
 0x588   : > { %vm7654_vm9 = vcmp.ge.f32.partialorder %v7595_v15, 0.0  ;;  %v7687_v45 = vmul.f32 %v16366_v1, %v7595_v15  ;;  %9289 = vmatmul.msk.f32.gmra.mxu2 %vm6792_vm10, %v7068_v7  ;;  %v16584_v46 = vpop.f32.mrf.mxu1 }
 0x589   : > { %v7988_v61 = vmul.f32 %v16561_v11, %v7862_v54  ;;  %vm7955_vm1 = vcmp.ge.f32.partialorder %v7862_v54, 0.0 }
 0x58a   : > { %v7719_v30 = vsel %vm7654_vm9, %v7595_v15, %v7687_v45  ;;  %v7040_v15 = vmul.f32 %v16550_v41, %v6922_v2  ;;  %v6925_v45 = vadd.f32 %v16543_v17, %v16429_v43 }
 0x58b   : > { %9370 = vmatmul.msk.f32.gmra.mxu3 %vm6792_vm10, %v7719_v30  ;;  %v8020_v59 = vsel %vm7955_vm1, %v7862_v54, %v7988_v61 }
 0x58c   : > { %9385 = vmatmul.msk.f32.gmra.mxu1 %vm6792_vm10, %v8020_v59  ;;  %v7072_v61 = vsel %vm7007_vm4, %v6922_v2, %v7040_v15  ;;  %vm7008_vm8 = vcmp.ge.f32.partialorder %v6925_v45, 0.0 }
 0x58d   : > { %v7597_v58 = vpop.f32.mrf.mxu0 }
 0x58e   : > { %v7598_v13 = vadd.f32 %v16363_v21, %v7597_v58  ;;  %v7864_v16 = vpop.f32.mrf.mxu3 }
 0x58f   : > { %v7865_v18 = vadd.f32 %v16557_v12, %v7864_v16 }
 0x590   : > { %vm7655_vm12 = vcmp.ge.f32.partialorder %v7598_v13, 0.0  ;;  %v7688_v24 = vmul.f32 %v16366_v1, %v7598_v13  ;;  %9290 = vmatmul.msk.f32.gmra.mxu2 %vm6792_vm10, %v7069_v63  ;;  %v16596_v38 = vpop.f32.mrf.mxu1 }
 0x591   : > { %v7989_v28 = vmul.f32 %v16561_v11, %v7865_v18  ;;  %vm7956_vm0 = vcmp.ge.f32.partialorder %v7865_v18, 0.0 }
 0x592   : > { %v7720_v37 = vsel %vm7655_vm12, %v7598_v13, %v7688_v24  ;;  %v7041_v13 = vmul.f32 %v16550_v41, %v6925_v45  ;;  %v6928_v24 = vadd.f32 %v16543_v17, %v16441_v53 }
 0x593   : > { %9371 = vmatmul.msk.f32.gmra.mxu3 %vm6792_vm10, %v7720_v37  ;;  %v8021_v35 = vsel %vm7956_vm0, %v7865_v18, %v7989_v28 }
 0x594   : > { %9386 = vmatmul.msk.f32.gmra.mxu1 %vm6792_vm10, %v8021_v35  ;;  %v7073_v28 = vsel %vm7008_vm8, %v6925_v45, %v7041_v13  ;;  %vm7009_vm11 = vcmp.ge.f32.partialorder %v6928_v24, 0.0 }
 0x595   : > { %v7600_v62 = vpop.f32.mrf.mxu0 }
 0x596   : > { %v7601_v39 = vadd.f32 %v16363_v21, %v7600_v62  ;;  %v7867_v4 = vpop.f32.mrf.mxu3 }
 0x597   : > { %v7868_v44 = vadd.f32 %v16557_v12, %v7867_v4 }
 0x598   : > { %vm7656_vm3 = vcmp.ge.f32.partialorder %v7601_v39, 0.0  ;;  %v7689_v29 = vmul.f32 %v16366_v1, %v7601_v39  ;;  %9291 = vmatmul.msk.f32.gmra.mxu2 %vm6792_vm10, %v7070_v26  ;;  %v16608_v3 = vpop.f32.mrf.mxu1 }
 0x599   : > { %v7990_v47 = vmul.f32 %v16561_v11, %v7868_v44  ;;  %vm7957_vm2 = vcmp.ge.f32.partialorder %v7868_v44, 0.0 }
 0x59a   : > { %v7721_v23 = vsel %vm7656_vm3, %v7601_v39, %v7689_v29  ;;  %v7042_v39 = vmul.f32 %v16550_v41, %v6928_v24  ;;  %v6931_v29 = vadd.f32 %v16543_v17, %v16453_v19 }
 0x59b   : > { %9372 = vmatmul.msk.f32.gmra.mxu3 %vm6792_vm10, %v7721_v23  ;;  %v8022_v32 = vsel %vm7957_vm2, %v7868_v44, %v7990_v47 }
 0x59c   : > { %9387 = vmatmul.msk.f32.gmra.mxu1 %vm6792_vm10, %v8022_v32  ;;  %v7074_v47 = vsel %vm7009_vm11, %v6928_v24, %v7042_v39  ;;  %vm7010_vm13 = vcmp.ge.f32.partialorder %v6931_v29, 0.0 }
 0x59d   : > { %v7603_v60 = vpop.f32.mrf.mxu0 }
 0x59e   : > { %v7604_v50 = vadd.f32 %v16363_v21, %v7603_v60  ;;  %v7870_v14 = vpop.f32.mrf.mxu3 }
 0x59f   : > { %v7871_v20 = vadd.f32 %v16557_v12, %v7870_v14 }
 0x5a0   : > { %vm7657_vm15 = vcmp.ge.f32.partialorder %v7604_v50, 0.0  ;;  %v7690_v33 = vmul.f32 %v16366_v1, %v7604_v50  ;;  %9292 = vmatmul.msk.f32.gmra.mxu2 %vm6792_vm10, %v7071_v6  ;;  %v16620_v9 = vpop.f32.mrf.mxu1 }
 0x5a1   : > { %v7991_v25 = vmul.f32 %v16561_v11, %v7871_v20  ;;  %vm7958_vm5 = vcmp.ge.f32.partialorder %v7871_v20, 0.0 }
 0x5a2   : > { %v7722_v36 = vsel %vm7657_vm15, %v7604_v50, %v7690_v33  ;;  %v7043_v50 = vmul.f32 %v16550_v41, %v6931_v29  ;;  %v6934_v33 = vadd.f32 %v16543_v17, %v16464_v31 }
 0x5a3   : > { %9373 = vmatmul.msk.f32.gmra.mxu3 %vm6792_vm10, %v7722_v36  ;;  %v8023_v27 = vsel %vm7958_vm5, %v7871_v20, %v7991_v25 }
 0x5a4   : > { %9388 = vmatmul.msk.f32.gmra.mxu1 %vm6792_vm10, %v8023_v27  ;;  %v7075_v25 = vsel %vm7010_vm13, %v6931_v29, %v7043_v50  ;;  %vm7011_vm14 = vcmp.ge.f32.partialorder %v6934_v33, 0.0 }
 0x5a5   : > { %v7606_v0 = vpop.f32.mrf.mxu0 }
 0x5a6   : > { %v7607_v54 = vadd.f32 %v16363_v21, %v7606_v0  ;;  %v7873_v40 = vpop.f32.mrf.mxu3 }
 0x5a7   : > { %v7874_v7 = vadd.f32 %v16557_v12, %v7873_v40 }
 0x5a8   : > { %vm7658_vm6 = vcmp.ge.f32.partialorder %v7607_v54, 0.0  ;;  %v7691_v30 = vmul.f32 %v16366_v1, %v7607_v54  ;;  %9293 = vmatmul.msk.f32.gmra.mxu2 %vm6792_vm10, %v7072_v61  ;;  %v16632_v43 = vpop.f32.mrf.mxu1 }
 0x5a9   : > { %v7992_v59 = vmul.f32 %v16561_v11, %v7874_v7  ;;  %vm7959_vm7 = vcmp.ge.f32.partialorder %v7874_v7, 0.0 }
 0x5aa   : > { %v7723_v57 = vsel %vm7658_vm6, %v7607_v54, %v7691_v30  ;;  %v7044_v54 = vmul.f32 %v16550_v41, %v6934_v33  ;;  %v6937_v30 = vadd.f32 %v16543_v17, %v16477_v48 }
 0x5ab   : > { %9374 = vmatmul.msk.f32.gmra.mxu3 %vm6792_vm10, %v7723_v57  ;;  %v8024_v58 = vsel %vm7959_vm7, %v7874_v7, %v7992_v59 }
 0x5ac   : > { %9389 = vmatmul.msk.f32.gmra.mxu1 %vm6792_vm10, %v8024_v58  ;;  %v7076_v59 = vsel %vm7011_vm14, %v6934_v33, %v7044_v54  ;;  %vm7012_vm4 = vcmp.ge.f32.partialorder %v6937_v30, 0.0 }
 0x5ad   : > { %v7609_v16 = vpop.f32.mrf.mxu0 }
 0x5ae   : > { %v7610_v18 = vadd.f32 %v16363_v21, %v7609_v16  ;;  %v7876_v8 = vpop.f32.mrf.mxu3 }
 0x5af   : > { %v7877_v63 = vadd.f32 %v16557_v12, %v7876_v8 }
 0x5b0   : > { %vm7659_vm9 = vcmp.ge.f32.partialorder %v7610_v18, 0.0  ;;  %v7692_v37 = vmul.f32 %v16366_v1, %v7610_v18  ;;  %9294 = vmatmul.msk.f32.gmra.mxu2 %vm6792_vm10, %v7073_v28  ;;  %v16644_v53 = vpop.f32.mrf.mxu1  ;;  %v6940_v28 = vadd.f32 %v16543_v17, %v16488_v52 }
 0x5b1   : > { %v7993_v35 = vmul.f32 %v16561_v11, %v7877_v63  ;;  %vm7960_vm1 = vcmp.ge.f32.partialorder %v7877_v63, 0.0 }
 0x5b2   : > { %v7724_v56 = vsel %vm7659_vm9, %v7610_v18, %v7692_v37  ;;  %v7045_v18 = vmul.f32 %v16550_v41, %v6937_v30  ;;  %vm7013_vm8 = vcmp.ge.f32.partialorder %v6940_v28, 0.0 }
 0x5b3   : > { %9375 = vmatmul.msk.f32.gmra.mxu3 %vm6792_vm10, %v7724_v56  ;;  %v8025_v62 = vsel %vm7960_vm1, %v7877_v63, %v7993_v35 }
 0x5b4   : > { %9390 = vmatmul.msk.f32.gmra.mxu1 %vm6792_vm10, %v8025_v62  ;;  %v7077_v37 = vsel %vm7012_vm4, %v6937_v30, %v7045_v18 }
 0x5b5   : > { %v7612_v4 = vpop.f32.mrf.mxu0 }
 0x5b6   : > { %v7613_v44 = vadd.f32 %v16363_v21, %v7612_v4  ;;  %v7879_v55 = vpop.f32.mrf.mxu3  ;;  %v7046_v4 = vmul.f32 %v16550_v41, %v6940_v28 }
 0x5b7   : > { %v7880_v26 = vadd.f32 %v16557_v12, %v7879_v55 }
 0x5b8   : > { %vm7660_vm12 = vcmp.ge.f32.partialorder %v7613_v44, 0.0  ;;  %v7693_v23 = vmul.f32 %v16366_v1, %v7613_v44  ;;  %9295 = vmatmul.msk.f32.gmra.mxu2 %vm6792_vm10, %v7074_v47  ;;  %v16656_v19 = vpop.f32.mrf.mxu1  ;;  %v6943_v47 = vadd.f32 %v16543_v17, %v16499_v42 }
 0x5b9   : > { %v7994_v32 = vmul.f32 %v16561_v11, %v7880_v26  ;;  %vm7961_vm0 = vcmp.ge.f32.partialorder %v7880_v26, 0.0 }
 0x5ba   : > { %v7725_v5 = vsel %vm7660_vm12, %v7613_v44, %v7693_v23  ;;  %v10048_v44 = vld [vmem:[%s17886_s8] ss:$0 sm:$0xff]  ;;  %v7078_v23 = vsel %vm7013_vm8, %v6940_v28, %v7046_v4  ;;  %vm7014_vm11 = vcmp.ge.f32.partialorder %v6943_v47, 0.0 }
 0x5bb   : > { %9376 = vmatmul.msk.f32.gmra.mxu3 %vm6792_vm10, %v7725_v5  ;;  %v8026_v60 = vsel %vm7961_vm0, %v7880_v26, %v7994_v32 }
 0x5bc   : > { %9391 = vmatmul.msk.f32.gmra.mxu1 %vm6792_vm10, %v8026_v60 }
 0x5bd   : > { %v7615_v14 = vpop.f32.mrf.mxu0 }
 0x5be   : > { %v7616_v20 = vadd.f32 %v16363_v21, %v7615_v14  ;;  %v7882_v2 = vpop.f32.mrf.mxu3 }
 0x5bf   : > { %v7883_v6 = vadd.f32 %v16557_v12, %v7882_v2 }
 0x5c0   : > { %vm7661_vm3 = vcmp.ge.f32.partialorder %v7616_v20, 0.0  ;;  %v7694_v36 = vmul.f32 %v16366_v1, %v7616_v20  ;;  %9296 = vmatmul.msk.f32.gmra.mxu2 %vm6792_vm10, %v7075_v25  ;;  %v16669_v45 = vpop.f32.mrf.mxu1  ;;  %v6946_v25 = vadd.f32 %v16543_v17, %v16512_v49 }
 0x5c1   : > { %vm7962_vm2 = vcmp.ge.f32.partialorder %v7883_v6, 0.0  ;;  %v7995_v27 = vmul.f32 %v16561_v11, %v7883_v6 }
 0x5c2   : > { %v7726_v15 = vsel %vm7661_vm3, %v7616_v20, %v7694_v36  ;;  %v7047_v20 = vmul.f32 %v16550_v41, %v6943_v47  ;;  %vm7015_vm13 = vcmp.ge.f32.partialorder %v6946_v25, 0.0 }
 0x5c3   : > { %9377 = vmatmul.msk.f32.gmra.mxu3 %vm6792_vm10, %v7726_v15  ;;  %v8027_v0 = vsel %vm7962_vm2, %v7883_v6, %v7995_v27 }
 0x5c4   : > { %9392 = vmatmul.msk.f32.gmra.mxu1 %vm6792_vm10, %v8027_v0  ;;  %v7079_v36 = vsel %vm7014_vm11, %v6943_v47, %v7047_v20 }
 0x5c5   : > { %v7618_v40 = vpop.f32.mrf.mxu0 }
 0x5c6   : > { %v7619_v31 = vadd.f32 %v16363_v21, %v7618_v40  ;;  %v7885_v7 = vpop.f32.mrf.mxu3  ;;  %v7048_v40 = vmul.f32 %v16550_v41, %v6946_v25 }
 0x5c7   : > { %v7886_v61 = vadd.f32 %v16557_v12, %v7885_v7 }
 0x5c8   : > { %vm7662_vm15 = vcmp.ge.f32.partialorder %v7619_v31, 0.0  ;;  %v7695_v57 = vmul.f32 %v16366_v1, %v7619_v31  ;;  %9297 = vmatmul.msk.f32.gmra.mxu2 %vm6792_vm10, %v7076_v59  ;;  %v6949_v59 = vadd.f32 %v16543_v17, %v16526_v51 }
 0x5c9   : > { %vm7963_vm5 = vcmp.ge.f32.partialorder %v7886_v61, 0.0  ;;  %v7996_v58 = vmul.f32 %v16561_v11, %v7886_v61 }
 0x5ca   : > { %v7727_v13 = vsel %vm7662_vm15, %v7619_v31, %v7695_v57  ;;  %v7080_v57 = vsel %vm7015_vm13, %v6946_v25, %v7048_v40  ;;  %vm7016_vm14 = vcmp.ge.f32.partialorder %v6949_v59, 0.0 }
 0x5cb   : > { %9378 = vmatmul.msk.f32.gmra.mxu3 %vm6792_vm10, %v7727_v13  ;;  %v8028_v16 = vsel %vm7963_vm5, %v7886_v61, %v7996_v58 }
 0x5cc   : > { %9393 = vmatmul.msk.f32.gmra.mxu1 %vm6792_vm10, %v8028_v16 }
 0x5cd   : > { %v7621_v8 = vpop.f32.mrf.mxu0  ;;  %v16685_v56 = vpop.f32.mrf.mxu1 }
 0x5ce   : > { %v7622_v48 = vadd.f32 %v16363_v21, %v7621_v8  ;;  %v7888_v63 = vpop.f32.mrf.mxu3  ;;  %v7049_v8 = vmul.f32 %v16550_v41, %v6949_v59 }
 0x5cf   : > { %v7889_v24 = vadd.f32 %v16557_v12, %v7888_v63 }
 0x5d0   : > { %vm7663_vm6 = vcmp.ge.f32.partialorder %v7622_v48, 0.0  ;;  %v7696_v35 = vmul.f32 %v16366_v1, %v7622_v48  ;;  %9298 = vmatmul.msk.f32.gmra.mxu2 %vm6792_vm10, %v7077_v37  ;;  %v6952_v37 = vadd.f32 %v16543_v17, %v16537_v34 }
 0x5d1   : > { %vm7964_vm7 = vcmp.ge.f32.partialorder %v7889_v24, 0.0  ;;  %v7997_v62 = vmul.f32 %v16561_v11, %v7889_v24 }
 0x5d2   : > { %v7728_v39 = vsel %vm7663_vm6, %v7622_v48, %v7696_v35  ;;  %v7081_v35 = vsel %vm7016_vm14, %v6949_v59, %v7049_v8  ;;  %vm7017_vm4 = vcmp.ge.f32.partialorder %v6952_v37, 0.0 }
 0x5d3   : > { %9379 = vmatmul.msk.f32.gmra.mxu3 %vm6792_vm10, %v7728_v39  ;;  %v8029_v21 = vsel %vm7964_vm7, %v7889_v24, %v7997_v62 }
 0x5d4   : > { %9394 = vmatmul.msk.f32.gmra.mxu1 %vm6792_vm10, %v8029_v21 }
 0x5d5   : > { %v7624_v52 = vpop.f32.mrf.mxu0  ;;  %v16699_v50 = vpop.f32.mrf.mxu1 }
 0x5d6   : > { %v7625_v55 = vadd.f32 %v10048_v44, %v7624_v52  ;;  %v7891_v26 = vpop.f32.mrf.mxu3  ;;  %v7050_v52 = vmul.f32 %v16550_v41, %v6952_v37 }
 0x5d7   : > { %v7892_v29 = vadd.f32 %v16557_v12, %v7891_v26 }
 0x5d8   : > { %vm7664_vm9 = vcmp.ge.f32.partialorder %v7625_v55, 0.0  ;;  %v7697_v32 = vmul.f32 %v16366_v1, %v7625_v55  ;;  %9299 = vmatmul.msk.f32.gmra.mxu2 %vm6792_vm10, %v7078_v23 }
 0x5d9   : > { %vm7965_vm1 = vcmp.ge.f32.partialorder %v7892_v29, 0.0  ;;  %v7998_v5 = vmul.f32 %v16561_v11, %v7892_v29 }
 0x5da   : > { %v7729_v60 = vsel %vm7664_vm9, %v7625_v55, %v7697_v32  ;;  %v7082_v55 = vsel %vm7017_vm4, %v6952_v37, %v7050_v52 }
 0x5db   : > { %9380 = vmatmul.msk.f32.gmra.mxu3 %vm6792_vm10, %v7729_v60  ;;  %v8030_v14 = vsel %vm7965_vm1, %v7892_v29, %v7998_v5  ;;  %v6958_v60 = vadd.f32 %v16543_v17, %v16569_v10 }
 0x5dc   : > { %9395 = vmatmul.msk.f32.gmra.mxu1 %vm6792_vm10, %v8030_v14 }
 0x5dd   : > { %v7627_v42 = vpop.f32.mrf.mxu0  ;;  %v16713_v31 = vpop.f32.mrf.mxu1  ;;  %vm7019_vm9 = vcmp.ge.f32.partialorder %v6958_v60, 0.0 }
 0x5de   : > { %v7628_v2 = vadd.f32 %v10048_v44, %v7627_v42  ;;  %v7894_v6 = vpop.f32.mrf.mxu3  ;;  %v16752_v42 = vld [vmem:[%s17892_s9] ss:$0 sm:$0xff] }
 0x5df   : > { %v7895_v33 = vadd.f32 %v16557_v12, %v7894_v6 }
 0x5e0   : > { %vm7665_vm12 = vcmp.ge.f32.partialorder %v7628_v2, 0.0  ;;  %v7698_v27 = vmul.f32 %v16366_v1, %v7628_v2  ;;  %9300 = vmatmul.msk.f32.gmra.mxu2 %vm6792_vm10, %v7079_v36  ;;  %v7052_v36 = vmul.f32 %v16550_v41, %v6958_v60 }
 0x5e1   : > { %vm7966_vm0 = vcmp.ge.f32.partialorder %v7895_v33, 0.0  ;;  %v7999_v15 = vmul.f32 %v16561_v11, %v7895_v33 }
 0x5e2   : > { %v7730_v0 = vsel %vm7665_vm12, %v7628_v2, %v7698_v27  ;;  %v16755_v2 = vld [vmem:[%s10354_s17] ss:$0 sm:$0xff] }
 0x5e3   : > { %9381 = vmatmul.msk.f32.gmra.mxu3 %vm6792_vm10, %v7730_v0  ;;  %v8031_v54 = vsel %vm7966_vm0, %v7895_v33, %v7999_v15  ;;  %v16758_v33 = vld [vmem:[%s17893_s6] ss:$0 sm:$0xff] }
 0x5e4   : > { %9396 = vmatmul.msk.f32.gmra.mxu1 %vm6792_vm10, %v8031_v54 }
 0x5e5   : > { %v7630_v49 = vpop.f32.mrf.mxu0  ;;  %v16724_v24 = vpop.f32.mrf.mxu1 }
 0x5e6   : > { %v7631_v7 = vadd.f32 %v10048_v44, %v7630_v49  ;;  %v7897_v61 = vpop.f32.mrf.mxu3  ;;  %v6961_v49 = vadd.f32 %v16543_v17, %v16584_v46 }
 0x5e7   : > { %v7898_v30 = vadd.f32 %v16557_v12, %v7897_v61 }
 0x5e8   : > { %vm7666_vm3 = vcmp.ge.f32.partialorder %v7631_v7, 0.0  ;;  %v7699_v58 = vmul.f32 %v16366_v1, %v7631_v7  ;;  %9301 = vmatmul.msk.f32.gmra.mxu2 %vm6792_vm10, %v7080_v57  ;;  %vm7020_vm11 = vcmp.ge.f32.partialorder %v6961_v49, 0.0 }
 0x5e9   : > { %vm7967_vm2 = vcmp.ge.f32.partialorder %v7898_v30, 0.0  ;;  %v8000_v13 = vmul.f32 %v16561_v11, %v7898_v30 }
 0x5ea   : > { %v7731_v16 = vsel %vm7666_vm3, %v7631_v7, %v7699_v58  ;;  %v7084_v7 = vsel %vm7019_vm9, %v6958_v60, %v7052_v36 }
 0x5eb   : > { %9382 = vmatmul.msk.f32.gmra.mxu3 %vm6792_vm10, %v7731_v16  ;;  %v8032_v18 = vsel %vm7967_vm2, %v7898_v30, %v8000_v13  ;;  %v7053_v13 = vmul.f32 %v16550_v41, %v6961_v49 }
 0x5ec   : > { %9397 = vmatmul.msk.f32.gmra.mxu1 %vm6792_vm10, %v8032_v18 }
 0x5ed   : > { %v7633_v48 = vpop.f32.mrf.mxu0  ;;  %v16738_v26 = vpop.f32.mrf.mxu1 }
 0x5ee   : > { %v7634_v51 = vadd.f32 %v10048_v44, %v7633_v48  ;;  %v7900_v63 = vpop.f32.mrf.mxu3 }
 0x5ef   : > { %v7901_v28 = vadd.f32 %v16557_v12, %v7900_v63  ;;  %v6964_v63 = vadd.f32 %v16543_v17, %v16596_v38 }
 0x5f0   : > { %vm7667_vm15 = vcmp.ge.f32.partialorder %v7634_v51, 0.0  ;;  %v7700_v62 = vmul.f32 %v16366_v1, %v7634_v51  ;;  %9302 = vmatmul.msk.f32.gmra.mxu2 %vm6792_vm10, %v7081_v35  ;;  %v6955_v1 = vadd.f32 %v16543_v17, %v16553_v22 }
 0x5f1   : > { %vm7968_vm5 = vcmp.ge.f32.partialorder %v7901_v28, 0.0  ;;  %v8001_v39 = vmul.f32 %v16561_v11, %v7901_v28  ;;  %vm7021_vm0 = vcmp.ge.f32.partialorder %v6964_v63, 0.0 }
 0x5f2   : > { %v7732_v21 = vsel %vm7667_vm15, %v7634_v51, %v7700_v62  ;;  %v7051_v23 = vmul.f32 %v16550_v41, %v6955_v1  ;;  %vm7018_vm7 = vcmp.ge.f32.partialorder %v6955_v1, 0.0 }
 0x5f3   : > { %9383 = vmatmul.msk.f32.gmra.mxu3 %vm6792_vm10, %v7732_v21  ;;  %v8033_v4 = vsel %vm7968_vm5, %v7901_v28, %v8001_v39  ;;  %v7085_v28 = vsel %vm7020_vm11, %v6961_v49, %v7053_v13 }
 0x5f4   : > { %9398 = vmatmul.msk.f32.gmra.mxu1 %vm6792_vm10, %v8033_v4  ;;  %v7083_v14 = vsel %vm7018_vm7, %v6955_v1, %v7051_v23  ;;  %v7054_v4 = vmul.f32 %v16550_v41, %v6964_v63 }
 0x5f6   : > { %v7903_v44 = vpop.f32.mrf.mxu3 }
 0x5f7   : > { %v7904_v34 = vadd.f32 %v16557_v12, %v7903_v44 }
 0x5f8   : > { %9303 = vmatmul.msk.f32.gmra.mxu2 %vm6792_vm10, %v7082_v55 }
 0x5f9   : > { %vm7969_vm6 = vcmp.ge.f32.partialorder %v7904_v34, 0.0  ;;  %v8002_v29 = vmul.f32 %v16561_v11, %v7904_v34 }
 0x5fb   : > { %v8034_v47 = vsel %vm7969_vm6, %v7904_v34, %v8002_v29  ;;  %v16743_v32 = vpop.f32.mrf.mxu2  ;;  %v6967_v29 = vadd.f32 %v16543_v17, %v16608_v3 }
 0x5fc   : > { %9399 = vmatmul.msk.f32.gmra.mxu1 %vm6792_vm10, %v8034_v47  ;;  %v7086_v47 = vsel %vm7021_vm0, %v6964_v63, %v7054_v4 }
 0x5fd   : > { %vm7022_vm3 = vcmp.ge.f32.partialorder %v6967_v29, 0.0 }
 0x5fe   : > { %v7906_v22 = vpop.f32.mrf.mxu3 }
 0x5ff   : > { %v7907_v5 = vadd.f32 %v16557_v12, %v7906_v22 }
 0x600   : > { %9304 = vmatmul.msk.f32.gmra.mxu2 %vm6792_vm10, %v7083_v14 }
 0x601   : > { %vm7970_vm8 = vcmp.ge.f32.partialorder %v7907_v5, 0.0  ;;  %v8003_v20 = vmul.f32 %v16561_v11, %v7907_v5  ;;  %v8176_v6 = vpop.f32.mrf.mxu1 }
 0x602   : > { %v8177_v15 = vadd.f32 %v16755_v2, %v8176_v6 }
 0x603   : > { %v8035_v25 = vsel %vm7970_vm8, %v7907_v5, %v8003_v20  ;;  %v7220_v27 = vpop.f32.mrf.mxu2  ;;  %v7055_v20 = vmul.f32 %v16550_v41, %v6967_v29 }
 0x604   : > { %9400 = vmatmul.msk.f32.gmra.mxu1 %vm6792_vm10, %v8035_v25  ;;  %v7320_v10 = vmul.f32 %v16752_v42, %v7220_v27 }
 0x606   : > { %v7909_v0 = vpop.f32.mrf.mxu3  ;;  %v7356_v54 = vadd.f32 %v16758_v33, %v7320_v10 }
 0x607   : > { %v7910_v40 = vadd.f32 %v16557_v12, %v7909_v0  ;;  %v7087_v0 = vsel %vm7022_vm3, %v6967_v29, %v7055_v20 }
 0x608   : > { %v16768_v61 = vadd.f32 %v8177_v15, %v7356_v54  ;;  %9305 = vmatmul.msk.f32.gmra.mxu2 %vm6792_vm10, %v7084_v7  ;;  %v6970_v15 = vadd.f32 %v16543_v17, %v16620_v9 }
 0x609   : > { %vm7971_vm1 = vcmp.ge.f32.partialorder %v7910_v40, 0.0  ;;  %v8004_v30 = vmul.f32 %v16561_v11, %v7910_v40  ;;  %v8179_v59 = vpop.f32.mrf.mxu1 }
 0x60a   : > { %v8304_v57 = vmul.f32 %v16768_v61, %v16768_v61  ;;  %v8180_v18 = vadd.f32 %v16755_v2, %v8179_v59  ;;  %v7056_v59 = vmul.f32 %v16550_v41, %v6970_v15  ;;  %vm7023_vm14 = vcmp.ge.f32.partialorder %v6970_v15, 0.0 }
 0x60b   : > { %v8036_v58 = vsel %vm7971_vm1, %v7910_v40, %v8004_v30  ;;  %v7223_v16 = vpop.f32.mrf.mxu2 }
 0x60c   : > { %9401 = vmatmul.msk.f32.gmra.mxu1 %vm6792_vm10, %v8036_v58  ;;  %v7321_v46 = vmul.f32 %v16752_v42, %v7223_v16  ;;  %8336 = vadd.xlane.f32.xlu1 %v8304_v57 }
 0x60e   : > { %v7912_v8 = vpop.f32.mrf.mxu3  ;;  %v7357_v48 = vadd.f32 %v16758_v33, %v7321_v46 }
 0x60f   : > { %v7913_v51 = vadd.f32 %v16557_v12, %v7912_v8  ;;  %v7088_v8 = vsel %vm7023_vm14, %v6970_v15, %v7056_v59 }
 0x610   : > { %v16782_v37 = vadd.f32 %v8180_v18, %v7357_v48  ;;  %9306 = vmatmul.msk.f32.gmra.mxu2 %vm6792_vm10, %v7085_v28  ;;  %v6973_v18 = vadd.f32 %v16543_v17, %v16632_v43 }
 0x611   : > { %vm7972_vm12 = vcmp.ge.f32.partialorder %v7913_v51, 0.0  ;;  %v8005_v35 = vmul.f32 %v16561_v11, %v7913_v51  ;;  %v8182_v62 = vpop.f32.mrf.mxu1 }
 0x612   : > { %v8305_v39 = vmul.f32 %v16782_v37, %v16782_v37  ;;  %v8183_v44 = vadd.f32 %v16755_v2, %v8182_v62  ;;  %v7057_v62 = vmul.f32 %v16550_v41, %v6973_v18  ;;  %vm7024_vm5 = vcmp.ge.f32.partialorder %v6973_v18, 0.0 }
 0x613   : > { %v8037_v21 = vsel %vm7972_vm12, %v7913_v51, %v8005_v35  ;;  %v7226_v52 = vpop.f32.mrf.mxu2 }
 0x614   : > { %9402 = vmatmul.msk.f32.gmra.mxu1 %vm6792_vm10, %v8037_v21  ;;  %v7322_v38 = vmul.f32 %v16752_v42, %v7226_v52  ;;  %8338 = vadd.xlane.f32.xlu2 %v8305_v39 }
 0x616   : > { %v7915_v34 = vpop.f32.mrf.mxu3  ;;  %v7358_v1 = vadd.f32 %v16758_v33, %v7322_v38 }
 0x617   : > { %v7916_v55 = vadd.f32 %v16557_v12, %v7915_v34  ;;  %v7089_v34 = vsel %vm7024_vm5, %v6973_v18, %v7057_v62 }
 0x618   : > { %v16796_v23 = vadd.f32 %v8183_v44, %v7358_v1  ;;  %9307 = vmatmul.msk.f32.gmra.mxu2 %vm6792_vm10, %v7086_v47  ;;  %v6976_v44 = vadd.f32 %v16543_v17, %v16644_v53 }
 0x619   : > { %vm7973_vm13 = vcmp.ge.f32.partialorder %v7916_v55, 0.0  ;;  %v8006_v22 = vmul.f32 %v16561_v11, %v7916_v55  ;;  %v8185_v5 = vpop.f32.mrf.mxu1 }
 0x61a   : > { %v8306_v60 = vmul.f32 %v16796_v23, %v16796_v23  ;;  %v8186_v25 = vadd.f32 %v16755_v2, %v8185_v5  ;;  %v7058_v5 = vmul.f32 %v16550_v41, %v6976_v44  ;;  %vm7025_vm6 = vcmp.ge.f32.partialorder %v6976_v44, 0.0 }
 0x61b   : > { %v8038_v14 = vsel %vm7973_vm13, %v7916_v55, %v8006_v22  ;;  %v7229_v6 = vpop.f32.mrf.mxu2 }
 0x61c   : > { %9403 = vmatmul.msk.f32.gmra.mxu1 %vm6792_vm10, %v8038_v14  ;;  %v7323_v3 = vmul.f32 %v16752_v42, %v7229_v6  ;;  %8340 = vadd.xlane.f32.xlu0 %v8306_v60 }
 0x61e   : > { %v7918_v36 = vpop.f32.mrf.mxu3  ;;  %v7359_v27 = vadd.f32 %v16758_v33, %v7323_v3 }
 0x61f   : > { %v7919_v10 = vadd.f32 %v16557_v12, %v7918_v36  ;;  %v7090_v36 = vsel %vm7025_vm6, %v6976_v44, %v7058_v5 }
 0x620   : > { %v16810_v54 = vadd.f32 %v8186_v25, %v7359_v27  ;;  %9308 = vmatmul.msk.f32.gmra.mxu2 %vm6792_vm10, %v7087_v0  ;;  %v6979_v25 = vadd.f32 %v16543_v17, %v16656_v19 }
 0x621   : > { %vm7974_vm2 = vcmp.ge.f32.partialorder %v7919_v10, 0.0  ;;  %v8007_v40 = vmul.f32 %v16561_v11, %v7919_v10  ;;  %v8188_v49 = vpop.f32.mrf.mxu1 }
 0x622   : > { %v8307_v7 = vmul.f32 %v16810_v54, %v16810_v54  ;;  %v8189_v58 = vadd.f32 %v16755_v2, %v8188_v49  ;;  %v7059_v49 = vmul.f32 %v16550_v41, %v6979_v25  ;;  %vm7026_vm8 = vcmp.ge.f32.partialorder %v6979_v25, 0.0 }
 0x623   : > { %v8039_v30 = vsel %vm7974_vm2, %v7919_v10, %v8007_v40  ;;  %v7232_v57 = vpop.f32.mrf.mxu2 }
 0x624   : > { %9404 = vmatmul.msk.f32.gmra.mxu1 %vm6792_vm10, %v8039_v30  ;;  %v7324_v9 = vmul.f32 %v16752_v42, %v7232_v57  ;;  %8342 = vadd.xlane.f32.xlu1 %v8307_v7 }
 0x626   : > { %v7921_v13 = vpop.f32.mrf.mxu3  ;;  %v7360_v16 = vadd.f32 %v16758_v33, %v7324_v9 }
 0x627   : > { %v7922_v46 = vadd.f32 %v16557_v12, %v7921_v13  ;;  %v7091_v13 = vsel %vm7026_vm8, %v6979_v25, %v7059_v49 }
 0x628   : > { %v16824_v48 = vadd.f32 %v8189_v58, %v7360_v16  ;;  %9309 = vmatmul.msk.f32.gmra.mxu2 %vm6792_vm10, %v7088_v8  ;;  %v6982_v58 = vadd.f32 %v16543_v17, %v16669_v45 }
 0x629   : > { %vm7975_vm15 = vcmp.ge.f32.partialorder %v7922_v46, 0.0  ;;  %v8008_v51 = vmul.f32 %v16561_v11, %v7922_v46  ;;  %v8191_v63 = vpop.f32.mrf.mxu1 }
 0x62a   : > { %v8308_v28 = vmul.f32 %v16824_v48, %v16824_v48  ;;  %v8192_v21 = vadd.f32 %v16755_v2, %v8191_v63  ;;  %v7060_v63 = vmul.f32 %v16550_v41, %v6982_v58  ;;  %vm7027_vm1 = vcmp.ge.f32.partialorder %v6982_v58, 0.0 }
 0x62b   : > { %v8040_v35 = vsel %vm7975_vm15, %v7922_v46, %v8008_v51  ;;  %v7235_v39 = vpop.f32.mrf.mxu2 }
 0x62c   : > { %9405 = vmatmul.msk.f32.gmra.mxu1 %vm6792_vm10, %v8040_v35  ;;  %v7325_v43 = vmul.f32 %v16752_v42, %v7235_v39  ;;  %8344 = vadd.xlane.f32.xlu2 %v8308_v28 }
 0x62e   : > { %v7924_v4 = vpop.f32.mrf.mxu3  ;;  %v7361_v52 = vadd.f32 %v16758_v33, %v7325_v43 }
 0x62f   : > { %v7925_v38 = vadd.f32 %v16557_v12, %v7924_v4  ;;  %v7092_v4 = vsel %vm7027_vm1, %v6982_v58, %v7060_v63 }
 0x630   : > { %v16838_v1 = vadd.f32 %v8192_v21, %v7361_v52  ;;  %9310 = vmatmul.msk.f32.gmra.mxu2 %vm6792_vm10, %v7089_v34  ;;  %v6985_v21 = vadd.f32 %v16543_v17, %v16685_v56 }
 0x631   : > { %vm7976_vm4 = vcmp.ge.f32.partialorder %v7925_v38, 0.0  ;;  %v8009_v55 = vmul.f32 %v16561_v11, %v7925_v38  ;;  %v8194_v29 = vpop.f32.mrf.mxu1 }
 0x632   : > { %v8309_v47 = vmul.f32 %v16838_v1, %v16838_v1  ;;  %v8195_v14 = vadd.f32 %v16755_v2, %v8194_v29  ;;  %v7061_v29 = vmul.f32 %v16550_v41, %v6985_v21  ;;  %vm7028_vm12 = vcmp.ge.f32.partialorder %v6985_v21, 0.0 }
 0x633   : > { %v8041_v22 = vsel %vm7976_vm4, %v7925_v38, %v8009_v55  ;;  %v7238_v60 = vpop.f32.mrf.mxu2 }
 0x634   : > { %9406 = vmatmul.msk.f32.gmra.mxu1 %vm6792_vm10, %v8041_v22  ;;  %v7326_v53 = vmul.f32 %v16752_v42, %v7238_v60  ;;  %8346 = vadd.xlane.f32.xlu0 %v8309_v47 }
 0x636   : > { %v7927_v20 = vpop.f32.mrf.mxu3  ;;  %v7362_v6 = vadd.f32 %v16758_v33, %v7326_v53 }
 0x637   : > { %v7928_v3 = vadd.f32 %v16557_v12, %v7927_v20  ;;  %v7093_v20 = vsel %vm7028_vm12, %v6985_v21, %v7061_v29 }
 0x638   : > { %v16852_v27 = vadd.f32 %v8195_v14, %v7362_v6  ;;  %9311 = vmatmul.msk.f32.gmra.mxu2 %vm6792_vm10, %v7090_v36  ;;  %v6988_v14 = vadd.f32 %v16543_v17, %v16699_v50 }
 0x639   : > { %vm7977_vm7 = vcmp.ge.f32.partialorder %v7928_v3, 0.0  ;;  %v8010_v10 = vmul.f32 %v16561_v11, %v7928_v3  ;;  %v8197_v15 = vpop.f32.mrf.mxu1 }
 0x63a   : > { %v8310_v0 = vmul.f32 %v16852_v27, %v16852_v27  ;;  %v8198_v30 = vadd.f32 %v16755_v2, %v8197_v15  ;;  %v7062_v15 = vmul.f32 %v16550_v41, %v6988_v14  ;;  %vm7029_vm13 = vcmp.ge.f32.partialorder %v6988_v14, 0.0 }
 0x63b   : > { %v8042_v40 = vsel %vm7977_vm7, %v7928_v3, %v8010_v10  ;;  %v7241_v7 = vpop.f32.mrf.mxu2 }
 0x63c   : > { %9407 = vmatmul.msk.f32.gmra.mxu1 %vm6792_vm10, %v8042_v40  ;;  %v7327_v19 = vmul.f32 %v16752_v42, %v7241_v7  ;;  %8348 = vadd.xlane.f32.xlu1 %v8310_v0 }
 0x63e   : > { %v7930_v59 = vpop.f32.mrf.mxu3  ;;  %v7363_v57 = vadd.f32 %v16758_v33, %v7327_v19  ;;  %v10049_v19 = vld [vmem:[%s17890_s3] ss:$0 sm:$0xff]  ;;  %s9016_s3 = sshll.u32 %s17372_s2, 8 }
 0x63f   : > { %v7931_v9 = vadd.f32 %v16557_v12, %v7930_v59  ;;  %v7094_v59 = vsel %vm7029_vm13, %v6988_v14, %v7062_v15  ;;  %s16990_s2 = scalar_lea.vmem [#allocation5], %s9016_s3  ;;  %s9421_s3 = sshll.u32 %s10387_s0, 8 }
 0x640   : > { %v16866_v16 = vadd.f32 %v8198_v30, %v7363_v57  ;;  %9312 = vmatmul.msk.f32.gmra.mxu2 %vm6792_vm10, %v7091_v13  ;;  %v6991_v30 = vadd.f32 %v10049_v19, %v16713_v31  ;;  %s17894_s0 = sand.u32 1, %s10127_s1  }
 0x641   : > { %vm7978_vm9 = vcmp.ge.f32.partialorder %v7931_v9, 0.0  ;;  %v8011_v46 = vmul.f32 %v16561_v11, %v7931_v9  ;;  %v8200_v18 = vpop.f32.mrf.mxu1 }
 0x642   : > { %v8311_v8 = vmul.f32 %v16866_v16, %v16866_v16  ;;  %v8201_v35 = vadd.f32 %v16755_v2, %v8200_v18  ;;  %v7063_v18 = vmul.f32 %v16550_v41, %v6991_v30  ;;  %vm7030_vm2 = vcmp.ge.f32.partialorder %v6991_v30, 0.0 }
 0x643   : > { %v8043_v51 = vsel %vm7978_vm9, %v7931_v9, %v8011_v46  ;;  %v7244_v28 = vpop.f32.mrf.mxu2 }
 0x644   : > { %9408 = vmatmul.msk.f32.gmra.mxu1 %vm6792_vm10, %v8043_v51  ;;  %v7328_v45 = vmul.f32 %v16752_v42, %v7244_v28  ;;  %8350 = vadd.xlane.f32.xlu2 %v8311_v8  ;;  %v10050_v28 = vld [vmem:[%s17891_s5] ss:$0 sm:$0xff]  ;;  %s8860_s5 = scalar_lea.hbm %s10364_s4, %s9421_s3  ;;  %s8849_s3 = scalar_lea.sflag [#allocation3], %s17894_s0 }
 0x645   : > { %s8863_s8 = sshll.u32 %s8860_s5, 4  ;;  %s10089_s5 = scalar_lea.hbm %s10364_s4, 512  ;;  %s8864_s8 = int_to_ptr.hbm [resolvable:$true] %s8863_s8 }
 0x646   : > { %v7933_v62 = vpop.f32.mrf.mxu3  ;;  %v7364_v39 = vadd.f32 %v16758_v33, %v7328_v45 }
 0x647   : > { %v7934_v43 = vadd.f32 %v16557_v12, %v7933_v62  ;;  %v7095_v62 = vsel %vm7030_vm2, %v6991_v30, %v7063_v18 }
 0x648   : > { %v16880_v52 = vadd.f32 %v8201_v35, %v7364_v39  ;;  %9313 = vmatmul.msk.f32.gmra.mxu2 %vm6792_vm10, %v7092_v4  ;;  %v6994_v35 = vadd.f32 %v10049_v19, %v16724_v24 }
 0x649   : > { %vm7979_vm11 = vcmp.ge.f32.partialorder %v7934_v43, 0.0  ;;  %v8012_v38 = vmul.f32 %v16561_v11, %v7934_v43  ;;  %v8203_v44 = vpop.f32.mrf.mxu1 }
 0x64a   : > { %v8312_v34 = vmul.f32 %v16880_v52, %v16880_v52  ;;  %v8204_v22 = vadd.f32 %v16755_v2, %v8203_v44  ;;  %v7064_v44 = vmul.f32 %v16550_v41, %v6994_v35  ;;  %vm7031_vm15 = vcmp.ge.f32.partialorder %v6994_v35, 0.0 }
 0x64b   : > { %v8044_v55 = vsel %vm7979_vm11, %v7934_v43, %v8012_v38  ;;  %v7247_v47 = vpop.f32.mrf.mxu2 }
 0x64c   : > { %9409 = vmatmul.msk.f32.gmra.mxu1 %vm6792_vm10, %v8044_v55  ;;  %v7329_v56 = vmul.f32 %v16752_v42, %v7247_v47  ;;  %8352 = vadd.xlane.f32.xlu0 %v8312_v34 }
 0x64e   : > { %v7936_v5 = vpop.f32.mrf.mxu3  ;;  %v7365_v60 = vadd.f32 %v16758_v33, %v7329_v56 }
 0x64f   : > { %v7937_v53 = vadd.f32 %v16557_v12, %v7936_v5  ;;  %v7096_v5 = vsel %vm7031_vm15, %v6994_v35, %v7064_v44 }
 0x650   : > { %v16894_v6 = vadd.f32 %v8204_v22, %v7365_v60  ;;  %9314 = vmatmul.msk.f32.gmra.mxu2 %vm6792_vm10, %v7093_v20  ;;  %v6997_v22 = vadd.f32 %v10049_v19, %v16738_v26 }
 0x651   : > { %vm7980_vm0 = vcmp.ge.f32.partialorder %v7937_v53, 0.0  ;;  %v8013_v3 = vmul.f32 %v16561_v11, %v7937_v53  ;;  %v8206_v25 = vpop.f32.mrf.mxu1 }
 0x652   : > { %v8313_v36 = vmul.f32 %v16894_v6, %v16894_v6  ;;  %v8207_v50 = vadd.f32 %v16755_v2, %v8206_v25  ;;  %v7065_v25 = vmul.f32 %v16550_v41, %v6997_v22  ;;  %vm7032_vm4 = vcmp.ge.f32.partialorder %v6997_v22, 0.0 }
 0x653   : > { %v8045_v10 = vsel %vm7980_vm0, %v7937_v53, %v8013_v3  ;;  %v7250_v0 = vpop.f32.mrf.mxu2 }
 0x654   : > { %9410 = vmatmul.msk.f32.gmra.mxu1 %vm6792_vm10, %v8045_v10  ;;  %v7330_v17 = vmul.f32 %v16752_v42, %v7250_v0  ;;  %8354 = vadd.xlane.f32.xlu1 %v8313_v36 }
 0x656   : > { %v7939_v40 = vpop.f32.mrf.mxu3  ;;  %v7366_v49 = vadd.f32 %v16758_v33, %v7330_v17 }
 0x657   : > { %v7940_v7 = vadd.f32 %v16557_v12, %v7939_v40  ;;  %v7097_v40 = vsel %vm7032_vm4, %v6997_v22, %v7065_v25 }
 0x658   : > { %v16908_v57 = vadd.f32 %v8207_v50, %v7366_v49  ;;  %9315 = vmatmul.msk.f32.gmra.mxu2 %vm6792_vm10, %v7094_v59  ;;  %v7000_v50 = vadd.f32 %v10049_v19, %v16743_v32 }
 0x659   : > { %vm7981_vm3 = vcmp.ge.f32.partialorder %v7940_v7, 0.0  ;;  %v8014_v9 = vmul.f32 %v16561_v11, %v7940_v7  ;;  %v8209_v58 = vpop.f32.mrf.mxu1 }
 0x65a   : > { %v8314_v13 = vmul.f32 %v16908_v57, %v16908_v57  ;;  %v8210_v8 = vadd.f32 %v16755_v2, %v8209_v58  ;;  %v7066_v58 = vmul.f32 %v16550_v41, %v7000_v50  ;;  %vm7033_vm7 = vcmp.ge.f32.partialorder %v7000_v50, 0.0 }
 0x65b   : > { %v8046_v46 = vsel %vm7981_vm3, %v7940_v7, %v8014_v9  ;;  %v7253_v12 = vpop.f32.mrf.mxu2 }
 0x65c   : > { %9411 = vmatmul.msk.f32.gmra.mxu1 %vm6792_vm10, %v8046_v46  ;;  %v7331_v31 = vmul.f32 %v16752_v42, %v7253_v12  ;;  %8356 = vadd.xlane.f32.xlu2 %v8314_v13 }
 0x65e   : > { %v7942_v51 = vpop.f32.mrf.mxu3  ;;  %v7367_v63 = vadd.f32 %v16758_v33, %v7331_v31  ;;  %v7098_v31 = vsel %vm7033_vm7, %v7000_v50, %v7066_v58 }
 0x65f   : > { %v7943_v45 = vadd.f32 %v10050_v28, %v7942_v51 }
 0x660   : > { %v16921_v39 = vadd.f32 %v8210_v8, %v7367_v63  ;;  %9316 = vmatmul.msk.f32.gmra.mxu2 %vm6792_vm10, %v7095_v62 }
 0x661   : > { %vm7982_vm14 = vcmp.ge.f32.partialorder %v7943_v45, 0.0  ;;  %v8015_v43 = vmul.f32 %v16561_v11, %v7943_v45  ;;  %v8212_v21 = vpop.f32.mrf.mxu1 }
 0x662   : > { %v8315_v4 = vmul.f32 %v16921_v39, %v16921_v39  ;;  %v8213_v55 = vadd.f32 %v16755_v2, %v8212_v21 }
 0x663   : > { %v8047_v38 = vsel %vm7982_vm14, %v7943_v45, %v8015_v43  ;;  %v7256_v34 = vpop.f32.mrf.mxu2 }
 0x664   : > { %9412 = vmatmul.msk.f32.gmra.mxu1 %vm6792_vm10, %v8047_v38  ;;  %v7332_v24 = vmul.f32 %v16752_v42, %v7256_v34  ;;  %8358 = vadd.xlane.f32.xlu0 %v8315_v4 }
 0x666   : > { %v7945_v29 = vpop.f32.mrf.mxu3  ;;  %v7368_v47 = vadd.f32 %v16758_v33, %v7332_v24 }
 0x667   : > { %v7946_v56 = vadd.f32 %v10050_v28, %v7945_v29 }
 0x668   : > { %v16933_v60 = vadd.f32 %v8213_v55, %v7368_v47  ;;  %9317 = vmatmul.msk.f32.gmra.mxu2 %vm6792_vm10, %v7096_v5 }
 0x669   : > { %vm7983_vm5 = vcmp.ge.f32.partialorder %v7946_v56, 0.0  ;;  %v8016_v53 = vmul.f32 %v16561_v11, %v7946_v56  ;;  %v8215_v14 = vpop.f32.mrf.mxu1 }
 0x66a   : > { %v8316_v20 = vmul.f32 %v16933_v60, %v16933_v60  ;;  %v8216_v10 = vadd.f32 %v16755_v2, %v8215_v14 }
 0x66b   : > { %v8048_v3 = vsel %vm7983_vm5, %v7946_v56, %v8016_v53  ;;  %v7259_v36 = vpop.f32.mrf.mxu2 }
 0x66c   : > { %9413 = vmatmul.msk.f32.gmra.mxu1 %vm6792_vm10, %v8048_v3  ;;  %v7333_v26 = vmul.f32 %v16752_v42, %v7259_v36  ;;  %8360 = vadd.xlane.f32.xlu1 %v8316_v20 }
 0x66e   : > { %v7948_v15 = vpop.f32.mrf.mxu3  ;;  %v7369_v0 = vadd.f32 %v16758_v33, %v7333_v26 }
 0x66f   : > { %v7949_v17 = vadd.f32 %v10050_v28, %v7948_v15 }
 0x670   : > { %v16945_v49 = vadd.f32 %v8216_v10, %v7369_v0  ;;  %9318 = vmatmul.msk.f32.gmra.mxu2 %vm6792_vm10, %v7097_v40 }
 0x671   : > { %vm7984_vm6 = vcmp.ge.f32.partialorder %v7949_v17, 0.0  ;;  %v8017_v7 = vmul.f32 %v16561_v11, %v7949_v17  ;;  %v8218_v30 = vpop.f32.mrf.mxu1 }
 0x672   : > { %v8317_v59 = vmul.f32 %v16945_v49, %v16945_v49  ;;  %v8219_v19 = vadd.f32 %v16755_v2, %v8218_v30 }
 0x673   : > { %v8049_v9 = vsel %vm7984_vm6, %v7949_v17, %v8017_v7  ;;  %v7262_v13 = vpop.f32.mrf.mxu2 }
 0x674   : > { %9414 = vmatmul.msk.f32.gmra.mxu1 %vm6792_vm10, %v8049_v9  ;;  %v7334_v32 = vmul.f32 %v16752_v42, %v7262_v13  ;;  %8362 = vadd.xlane.f32.xlu2 %v8317_v59 }
 0x676   : > { %v7951_v46 = vpop.f32.mrf.mxu3  ;;  %v7370_v18 = vadd.f32 %v16758_v33, %v7334_v32 }
 0x677   : > { %v7952_v12 = vadd.f32 %v10050_v28, %v7951_v46 }
 0x678   : > { %v16956_v8 = vadd.f32 %v8219_v19, %v7370_v18  ;;  %9319 = vmatmul.msk.f32.gmra.mxu2 %vm6792_vm10, %v7098_v31 }
 0x679   : > { %vm7985_vm8 = vcmp.ge.f32.partialorder %v7952_v12, 0.0  ;;  %v8018_v41 = vmul.f32 %v16561_v11, %v7952_v12  ;;  %v8221_v51 = vpop.f32.mrf.mxu1 }
 0x67a   : > { %v8318_v63 = vmul.f32 %v16956_v8, %v16956_v8  ;;  %v8222_v28 = vadd.f32 %v16755_v2, %v8221_v51 }
 0x67b   : > { %v8050_v45 = vsel %vm7985_vm8, %v7952_v12, %v8018_v41  ;;  %v7265_v35 = vpop.f32.mrf.mxu2 }
 0x67c   : > { %9415 = vmatmul.msk.f32.gmra.mxu1 %vm6792_vm10, %v8050_v45  ;;  %v7335_v62 = vmul.f32 %v16752_v42, %v7265_v35  ;;  %8364 = vadd.xlane.f32.xlu0 %v8318_v63 }
 0x67e   : > { %v7371_v43 = vadd.f32 %v16758_v33, %v7335_v62 }
 0x67f   : > { %v8337_v21 = vpop.xlane.xlu1 %8336 }
 0x680   : > { %v16966_v4 = vadd.f32 %v8222_v28, %v7371_v43  ;;  %9943 = vrsqrt.f32 %v8337_v21  ;;  %vm8438_vm9 = vweird.f32 %v8337_v21  ;;  %vm8400_vm11 = vcmp.gt.f32.partialorder %v8337_v21, 1.0 }
 0x681   : > { %v8224_v11 = vpop.f32.mrf.mxu1 }
 0x682   : > { %v8319_v38 = vmul.f32 %v16966_v4, %v16966_v4  ;;  %v8225_v24 = vadd.f32 %v16755_v2, %v8224_v11 }
 0x683   : > { %v7268_v44 = vpop.f32.mrf.mxu2 }
 0x684   : > { %v7336_v34 = vmul.f32 %v16752_v42, %v7268_v44  ;;  %8366 = vadd.xlane.f32.xlu1 %v8319_v38 }
 0x686   : > { %v9944_v55 = vpop.eup %9943  ;;  %v7372_v29 = vadd.f32 %v16758_v33, %v7336_v34 }
 0x687   : > { %v8433_v47 = vmul.f32 %v9944_v55, %v8337_v21  ;;  %v8339_v56 = vpop.xlane.xlu2 %8338  ;;  %vm8439_vm10 = vweird.f32 %v9944_v55 }
 0x688   : > { %v16973_v22 = vadd.f32 %v8225_v24, %v7372_v29  ;;  %9945 = vrsqrt.f32 %v8339_v56  ;;  %vm8440_vm1 = vmor %vm8438_vm9, %vm8439_vm10  ;;  %vm8448_vm0 = vweird.f32 %v8339_v56  ;;  %vm8401_vm3 = vcmp.gt.f32.partialorder %v8339_v56, 1.0 }
 0x689   : > { %v8227_v5 = vpop.f32.mrf.mxu1  ;;  %v8434_v53 = vmul.f32 %v9944_v55, %v8433_v47 }
 0x68a   : > { %v8320_v14 = vmul.f32 %v16973_v22, %v16973_v22  ;;  %v8228_v36 = vadd.f32 %v16755_v2, %v8227_v5 }
 0x68b   : > { %v8435_v20 = vmul.f32 0.5, %v8434_v53  ;;  %v7271_v3 = vpop.f32.mrf.mxu2 }
 0x68c   : > { %v7337_v25 = vmul.f32 %v16752_v42, %v7271_v3  ;;  %8368 = vadd.xlane.f32.xlu2 %v8320_v14 }
 0x68d   : > { %v8436_v26 = vsub.f32 1.5, %v8435_v20 }
 0x68e   : > { %v9946_v10 = vpop.eup %9945  ;;  %v7373_v15 = vadd.f32 %v16758_v33, %v7337_v25 }
 0x68f   : > { %v8437_v0 = vmul.f32 %v9944_v55, %v8436_v26  ;;  %v8443_v17 = vmul.f32 %v9946_v10, %v8339_v56  ;;  %v8341_v50 = vpop.xlane.xlu0 %8340  ;;  %vm8449_vm12 = vweird.f32 %v9946_v10 }
 0x690   : > { %v16983_v40 = vadd.f32 %v8228_v36, %v7373_v15  ;;  %9947 = vrsqrt.f32 %v8341_v50  ;;  %vm8450_vm13 = vmor %vm8448_vm0, %vm8449_vm12  ;;  %vm8458_vm14 = vweird.f32 %v8341_v50  ;;  %vm8402_vm5 = vcmp.gt.f32.partialorder %v8341_v50, 1.0 }
 0x691   : > { %v8230_v7 = vpop.f32.mrf.mxu1  ;;  %v8441_v30 = vsel %vm8440_vm1, %v9944_v55, %v8437_v0  ;;  %v8444_v59 = vmul.f32 %v9946_v10, %v8443_v17 }
 0x692   : > { %v8752_v9 = vsel %vm8400_vm11, %v8441_v30, 1.0  ;;  %v8321_v58 = vmul.f32 %v16983_v40, %v16983_v40  ;;  %v8231_v18 = vadd.f32 %v16755_v2, %v8230_v7 }
 0x693   : > { %v8784_v13 = vmul.f32 %v8752_v9, %v16768_v61  ;;  %v8445_v32 = vmul.f32 0.5, %v8444_v59  ;;  %v7274_v19 = vpop.f32.mrf.mxu2 }
 0x694   : > { %v7338_v46 = vmul.f32 %v16752_v42, %v7274_v19  ;;  %8370 = vadd.xlane.f32.xlu0 %v8321_v58 }
 0x695   : > { %8816 = vst [vmem:[%s16990_s2] sm:$0xff] %v8784_v13  ;;  %v8446_v12 = vsub.f32 1.5, %v8445_v32 }
 0x696   : > { %v9948_v31 = vpop.eup %9947  ;;  %v7374_v41 = vadd.f32 %v16758_v33, %v7338_v46 }
 0x697   : > { %v8447_v51 = vmul.f32 %v9946_v10, %v8446_v12  ;;  %v8453_v63 = vmul.f32 %v9948_v31, %v8341_v50  ;;  %v8343_v61 = vpop.xlane.xlu1 %8342  ;;  %vm8459_vm2 = vweird.f32 %v9948_v31 }
 0x698   : > { %v16994_v45 = vadd.f32 %v8231_v18, %v7374_v41  ;;  %9949 = vrsqrt.f32 %v8343_v61  ;;  %vm8460_vm15 = vmor %vm8458_vm14, %vm8459_vm2  ;;  %vm8468_vm6 = vweird.f32 %v8343_v61  ;;  %vm8403_vm8 = vcmp.gt.f32.partialorder %v8343_v61, 1.0 }
 0x699   : > { %v8233_v35 = vpop.f32.mrf.mxu1  ;;  %v8451_v62 = vsel %vm8450_vm13, %v9946_v10, %v8447_v51  ;;  %v8454_v28 = vmul.f32 %v9948_v31, %v8453_v63 }
 0x69a   : > { %v8753_v43 = vsel %vm8401_vm3, %v8451_v62, 1.0  ;;  %v8322_v21 = vmul.f32 %v16994_v45, %v16994_v45  ;;  %v8234_v24 = vadd.f32 %v16755_v2, %v8233_v35 }
 0x69b   : > { %v8785_v11 = vmul.f32 %v8753_v43, %v16782_v37  ;;  %v8455_v38 = vmul.f32 0.5, %v8454_v28  ;;  %v7277_v44 = vpop.f32.mrf.mxu2 }
 0x69c   : > { %v7339_v34 = vmul.f32 %v16752_v42, %v7277_v44  ;;  %8372 = vadd.xlane.f32.xlu1 %v8322_v21 }
 0x69d   : > { %8817 = vst [vmem:[%s16990_s2 + $0x8] sm:$0xff] %v8785_v11  ;;  %v8456_v55 = vsub.f32 1.5, %v8455_v38 }
 0x69e   : > { %v9950_v29 = vpop.eup %9949  ;;  %v7375_v47 = vadd.f32 %v16758_v33, %v7339_v34 }
 0x69f   : > { %v8457_v56 = vmul.f32 %v9948_v31, %v8456_v55  ;;  %v8463_v5 = vmul.f32 %v9950_v29, %v8343_v61  ;;  %v8345_v53 = vpop.xlane.xlu2 %8344  ;;  %vm8469_vm4 = vweird.f32 %v9950_v29 }
 0x6a0   : > { %v17003_v37 = vadd.f32 %v8234_v24, %v7375_v47  ;;  %9951 = vrsqrt.f32 %v8345_v53  ;;  %vm8470_vm7 = vmor %vm8468_vm6, %vm8469_vm4  ;;  %vm8478_vm9 = vweird.f32 %v8345_v53  ;;  %vm8404_vm11 = vcmp.gt.f32.partialorder %v8345_v53, 1.0 }
 0x6a1   : > { %v8236_v14 = vpop.f32.mrf.mxu1  ;;  %v8461_v20 = vsel %vm8460_vm15, %v9948_v31, %v8457_v56  ;;  %v8464_v3 = vmul.f32 %v9950_v29, %v8463_v5 }
 0x6a2   : > { %v8754_v25 = vsel %vm8402_vm5, %v8461_v20, 1.0  ;;  %v8323_v36 = vmul.f32 %v17003_v37, %v17003_v37  ;;  %v8237_v17 = vadd.f32 %v16755_v2, %v8236_v14 }
 0x6a3   : > { %v8786_v26 = vmul.f32 %v8754_v25, %v16796_v23  ;;  %v8465_v10 = vmul.f32 0.5, %v8464_v3  ;;  %v7280_v15 = vpop.f32.mrf.mxu2 }
 0x6a4   : > { %v7340_v0 = vmul.f32 %v16752_v42, %v7280_v15  ;;  %8374 = vadd.xlane.f32.xlu2 %v8323_v36 }
 0x6a5   : > { %8818 = vst [vmem:[%s16990_s2 + $0x10] sm:$0xff] %v8786_v26  ;;  %v8466_v7 = vsub.f32 1.5, %v8465_v10 }
 0x6a6   : > { %v9952_v30 = vpop.eup %9951  ;;  %v7376_v50 = vadd.f32 %v16758_v33, %v7340_v0 }
 0x6a7   : > { %v8467_v59 = vmul.f32 %v9950_v29, %v8466_v7  ;;  %v8473_v9 = vmul.f32 %v9952_v30, %v8345_v53  ;;  %v8347_v58 = vpop.xlane.xlu0 %8346  ;;  %vm8479_vm10 = vweird.f32 %v9952_v30 }
 0x6a8   : > { %v17012_v23 = vadd.f32 %v8237_v17, %v7376_v50  ;;  %9953 = vrsqrt.f32 %v8347_v58  ;;  %vm8480_vm1 = vmor %vm8478_vm9, %vm8479_vm10  ;;  %vm8488_vm0 = vweird.f32 %v8347_v58  ;;  %vm8405_vm3 = vcmp.gt.f32.partialorder %v8347_v58, 1.0 }
 0x6a9   : > { %v8239_v13 = vpop.f32.mrf.mxu1  ;;  %v8471_v32 = vsel %vm8470_vm7, %v9950_v29, %v8467_v59  ;;  %v8474_v19 = vmul.f32 %v9952_v30, %v8473_v9 }
 0x6aa   : > { %v8755_v46 = vsel %vm8403_vm8, %v8471_v32, 1.0  ;;  %v8324_v18 = vmul.f32 %v17012_v23, %v17012_v23  ;;  %v8240_v63 = vadd.f32 %v16755_v2, %v8239_v13 }
 0x6ab   : > { %v8787_v12 = vmul.f32 %v8755_v46, %v16810_v54  ;;  %v8475_v31 = vmul.f32 0.5, %v8474_v19  ;;  %v7283_v41 = vpop.f32.mrf.mxu2 }
 0x6ac   : > { %v7341_v51 = vmul.f32 %v16752_v42, %v7283_v41  ;;  %8376 = vadd.xlane.f32.xlu0 %v8324_v18 }
 0x6ad   : > { %8819 = vst [vmem:[%s16990_s2 + $0x18] sm:$0xff] %v8787_v12  ;;  %v8476_v35 = vsub.f32 1.5, %v8475_v31 }
 0x6ae   : > { %v9954_v62 = vpop.eup %9953  ;;  %v7377_v61 = vadd.f32 %v16758_v33, %v7341_v51 }
 0x6af   : > { %v8477_v28 = vmul.f32 %v9952_v30, %v8476_v35  ;;  %v8483_v43 = vmul.f32 %v9954_v62, %v8347_v58  ;;  %v8349_v21 = vpop.xlane.xlu1 %8348  ;;  %vm8489_vm12 = vweird.f32 %v9954_v62 }
 0x6b0   : > { %v17021_v54 = vadd.f32 %v8240_v63, %v7377_v61  ;;  %9955 = vrsqrt.f32 %v8349_v21  ;;  %vm8490_vm13 = vmor %vm8488_vm0, %vm8489_vm12  ;;  %vm8498_vm14 = vweird.f32 %v8349_v21  ;;  %vm8406_vm5 = vcmp.gt.f32.partialorder %v8349_v21, 1.0 }
 0x6b1   : > { %v8242_v11 = vpop.f32.mrf.mxu1  ;;  %v8481_v38 = vsel %vm8480_vm1, %v9952_v30, %v8477_v28  ;;  %v8484_v44 = vmul.f32 %v9954_v62, %v8483_v43 }
 0x6b2   : > { %v8756_v34 = vsel %vm8404_vm11, %v8481_v38, 1.0  ;;  %v8325_v24 = vmul.f32 %v17021_v54, %v17021_v54  ;;  %v8243_v5 = vadd.f32 %v16755_v2, %v8242_v11 }
 0x6b3   : > { %v8788_v55 = vmul.f32 %v8756_v34, %v16824_v48  ;;  %v8485_v29 = vmul.f32 0.5, %v8484_v44  ;;  %v7286_v47 = vpop.f32.mrf.mxu2 }
 0x6b4   : > { %v7342_v56 = vmul.f32 %v16752_v42, %v7286_v47  ;;  %8378 = vadd.xlane.f32.xlu1 %v8325_v24 }
 0x6b5   : > { %8820 = vst [vmem:[%s16990_s2 + $0x20] sm:$0xff] %v8788_v55  ;;  %v8486_v14 = vsub.f32 1.5, %v8485_v29 }
 0x6b6   : > { %v9956_v20 = vpop.eup %9955  ;;  %v7378_v53 = vadd.f32 %v16758_v33, %v7342_v56 }
 0x6b7   : > { %v8487_v3 = vmul.f32 %v9954_v62, %v8486_v14  ;;  %v8493_v25 = vmul.f32 %v9956_v20, %v8349_v21  ;;  %v8351_v36 = vpop.xlane.xlu2 %8350  ;;  %vm8499_vm2 = vweird.f32 %v9956_v20 }
 0x6b8   : > { %v17030_v48 = vadd.f32 %v8243_v5, %v7378_v53  ;;  %9957 = vrsqrt.f32 %v8351_v36  ;;  %vm8500_vm15 = vmor %vm8498_vm14, %vm8499_vm2  ;;  %vm8508_vm6 = vweird.f32 %v8351_v36  ;;  %vm8407_vm8 = vcmp.gt.f32.partialorder %v8351_v36, 1.0 }
 0x6b9   : > { %v8245_v26 = vpop.f32.mrf.mxu1  ;;  %v8491_v10 = vsel %vm8490_vm13, %v9954_v62, %v8487_v3  ;;  %v8494_v15 = vmul.f32 %v9956_v20, %v8493_v25 }
 0x6ba   : > { %v8757_v0 = vsel %vm8405_vm3, %v8491_v10, 1.0  ;;  %v8326_v17 = vmul.f32 %v17030_v48, %v17030_v48  ;;  %v8246_v9 = vadd.f32 %v16755_v2, %v8245_v26 }
 0x6bb   : > { %v8789_v7 = vmul.f32 %v8757_v0, %v16838_v1  ;;  %v8495_v30 = vmul.f32 0.5, %v8494_v15  ;;  %v7289_v50 = vpop.f32.mrf.mxu2 }
 0x6bc   : > { %v7343_v59 = vmul.f32 %v16752_v42, %v7289_v50  ;;  %8380 = vadd.xlane.f32.xlu2 %v8326_v17 }
 0x6bd   : > { %8821 = vst [vmem:[%s16990_s2 + $0x28] sm:$0xff] %v8789_v7  ;;  %v8496_v13 = vsub.f32 1.5, %v8495_v30 }
 0x6be   : > { %v9958_v32 = vpop.eup %9957  ;;  %v7379_v58 = vadd.f32 %v16758_v33, %v7343_v59 }
 0x6bf   : > { %v8497_v19 = vmul.f32 %v9956_v20, %v8496_v13  ;;  %v8503_v46 = vmul.f32 %v9958_v32, %v8351_v36  ;;  %v8353_v18 = vpop.xlane.xlu0 %8352  ;;  %vm8509_vm4 = vweird.f32 %v9958_v32  ;;  %v17057_v36 = vld [vmem:[%s17893_s6] ss:$0 sm:$0xff]  ;;  %s8861_s6 = sshll.u32 %s16990_s2, 4  ;;  %s8862_s6 = int_to_ptr.vmem [resolvable:$true] %s8861_s6 }
 0x6c0   : > { %v17039_v1 = vadd.f32 %v8246_v9, %v7379_v58  ;;  %9959 = vrsqrt.f32 %v8353_v18  ;;  %vm8510_vm7 = vmor %vm8508_vm6, %vm8509_vm4  ;;  %vm8518_vm9 = vweird.f32 %v8353_v18  ;;  %vm8408_vm11 = vcmp.gt.f32.partialorder %v8353_v18, 1.0 }
 0x6c1   : > { %v8248_v12 = vpop.f32.mrf.mxu1  ;;  %v8501_v31 = vsel %vm8500_vm15, %v9956_v20, %v8497_v19  ;;  %v8504_v41 = vmul.f32 %v9958_v32, %v8503_v46  ;;  %v17070_v19 = vld [vmem:[%s10354_s17] ss:$0 sm:$0xff] }
 0x6c2   : > { %v8758_v51 = vsel %vm8406_vm5, %v8501_v31, 1.0  ;;  %v8327_v63 = vmul.f32 %v17039_v1, %v17039_v1  ;;  %v8249_v43 = vadd.f32 %v16755_v2, %v8248_v12 }
 0x6c3   : > { %v8790_v35 = vmul.f32 %v8758_v51, %v16852_v27  ;;  %v8505_v62 = vmul.f32 0.5, %v8504_v41  ;;  %v7292_v61 = vpop.f32.mrf.mxu2 }
 0x6c4   : > { %v7344_v28 = vmul.f32 %v16752_v42, %v7292_v61  ;;  %8382 = vadd.xlane.f32.xlu0 %v8327_v63 }
 0x6c5   : > { %8822 = vst [vmem:[%s16990_s2 + $0x30] sm:$0xff] %v8790_v35  ;;  %v8506_v11 = vsub.f32 1.5, %v8505_v62 }
 0x6c6   : > { %v9960_v38 = vpop.eup %9959  ;;  %v7380_v21 = vadd.f32 %v16758_v33, %v7344_v28 }
 0x6c7   : > { %v8507_v44 = vmul.f32 %v9958_v32, %v8506_v11  ;;  %v8513_v34 = vmul.f32 %v9960_v38, %v8353_v18  ;;  %v8355_v24 = vpop.xlane.xlu1 %8354  ;;  %vm8519_vm10 = vweird.f32 %v9960_v38 }
 0x6c8   : > { %v17048_v27 = vadd.f32 %v8249_v43, %v7380_v21  ;;  %9961 = vrsqrt.f32 %v8355_v24  ;;  %vm8520_vm1 = vmor %vm8518_vm9, %vm8519_vm10  ;;  %vm8528_vm0 = vweird.f32 %v8355_v24  ;;  %vm8409_vm3 = vcmp.gt.f32.partialorder %v8355_v24, 1.0 }
 0x6c9   : > { %v8251_v55 = vpop.f32.mrf.mxu1  ;;  %v8511_v29 = vsel %vm8510_vm7, %v9958_v32, %v8507_v44  ;;  %v8514_v47 = vmul.f32 %v9960_v38, %v8513_v34  ;;  %v17066_v32 = vld [vmem:[%s17892_s9] ss:$0 sm:$0xff]  ;;  %s10083_s9 = sshra.s32 %s8864_s8, 4  ;;  %s10084_s9 = int_to_ptr.hbm [resolvable:$true] %s10083_s9 }
 0x6ca   : > { %v8759_v56 = vsel %vm8407_vm8, %v8511_v29, 1.0  ;;  %v8328_v5 = vmul.f32 %v17048_v27, %v17048_v27  ;;  %v8252_v3 = vadd.f32 %v16755_v2, %v8251_v55  ;;  %s10085_s10 = scalar_lea.hbm %s10084_s9, 256  ;;  %p10090_p13 = scmp.lt.s32.totalorder %s10084_s9, %s10364_s4 }
 0x6cb   : > { %v8791_v33 = vmul.f32 %v8759_v56, %v16866_v16  ;;  %v8515_v14 = vmul.f32 0.5, %v8514_v47  ;;  %v7295_v20 = vpop.f32.mrf.mxu2  ;;  %p10086_p9 = scmp.ne.s32.totalorder %s10084_s9, %s10085_s10  ;;  %p10091_p0 = scmp.lt.s32.totalorder %s10089_s5, %s10085_s10 }
 0x6cc   : > { %v7345_v53 = vmul.f32 %v16752_v42, %v7295_v20  ;;  %8384 = vadd.xlane.f32.xlu1 %v8328_v5 }
 0x6cd   : > { %8823 = vst [vmem:[%s16990_s2 + $0x38] sm:$0xff] %v8791_v33  ;;  %v8516_v25 = vsub.f32 1.5, %v8515_v14  ;;  %p10087_p11 = pnand %p10086_p9, %p10404_p5  ;;  %p10092_p1 = por %p10091_p0, %p10090_p13 }
 0x6ce   : > { %v9962_v26 = vpop.eup %9961  ;;  %v7381_v10 = vadd.f32 %v17057_v36, %v7345_v53 }
 0x6cf   : > { %v8517_v15 = vmul.f32 %v9960_v38, %v8516_v25  ;;  %v8523_v0 = vmul.f32 %v9962_v26, %v8355_v24  ;;  %v8357_v16 = vpop.xlane.xlu2 %8356  ;;  %vm8529_vm12 = vweird.f32 %v9962_v26  ;;  %p10088_p12 = pneg %p10087_p11 }
 0x6d0   : > { %v17060_v17 = vadd.f32 %v8252_v3, %v7381_v10  ;;  %9963 = vrsqrt.f32 %v8357_v16  ;;  %vm8530_vm13 = vmor %vm8528_vm0, %vm8529_vm12  ;;  %vm8538_vm14 = vweird.f32 %v8357_v16  ;;  %vm8410_vm5 = vcmp.gt.f32.partialorder %v8357_v16, 1.0 }
 0x6d1   : > { %v8254_v42 = vpop.f32.mrf.mxu1  ;;  %v8521_v2 = vsel %vm8520_vm1, %v9960_v38, %v8517_v15  ;;  %v8524_v7 = vmul.f32 %v9962_v26, %v8523_v0  ;;  %p10093_p2 = pnand %p10092_p1, %p10088_p12 }
 0x6d2   : > { %v8760_v30 = vsel %vm8408_vm11, %v8521_v2, 1.0  ;;  %v8329_v50 = vmul.f32 %v17060_v17, %v17060_v17  ;;  %v8255_v46 = vadd.f32 %v17070_v19, %v8254_v42 }
 0x6d3   : > { %v8792_v59 = vmul.f32 %v8760_v30, %v16880_v52  ;;  %v8525_v9 = vmul.f32 0.5, %v8524_v7  ;;  %v7298_v13 = vpop.f32.mrf.mxu2 }
 0x6d4   : > { %v7346_v58 = vmul.f32 %v17066_v32, %v7298_v13  ;;  %8386 = vadd.xlane.f32.xlu2 %v8329_v50 }
 0x6d5   : > { %8824 = vst [vmem:[%s16990_s2 + $0x40] sm:$0xff] %v8792_v59  ;;  %v8526_v18 = vsub.f32 1.5, %v8525_v9 }
 0x6d6   : > { %v9964_v12 = vpop.eup %9963  ;;  %v7382_v31 = vadd.f32 %v17057_v36, %v7346_v58 }
 0x6d7   : > { %v8527_v41 = vmul.f32 %v9962_v26, %v8526_v18  ;;  %v8533_v52 = vmul.f32 %v9964_v12, %v8357_v16  ;;  %v8359_v51 = vpop.xlane.xlu0 %8358  ;;  %vm8539_vm2 = vweird.f32 %v9964_v12 }
 0x6d8   : > { %v17075_v63 = vadd.f32 %v8255_v46, %v7382_v31  ;;  %9965 = vrsqrt.f32 %v8359_v51  ;;  %vm8540_vm15 = vmor %vm8538_vm14, %vm8539_vm2  ;;  %vm8548_vm6 = vweird.f32 %v8359_v51  ;;  %vm8411_vm8 = vcmp.gt.f32.partialorder %v8359_v51, 1.0 }
 0x6d9   : > { %v8257_v35 = vpop.f32.mrf.mxu1  ;;  %v8531_v62 = vsel %vm8530_vm13, %v9962_v26, %v8527_v41  ;;  %v8534_v61 = vmul.f32 %v9964_v12, %v8533_v52 }
 0x6da   : > { %v8761_v28 = vsel %vm8409_vm3, %v8531_v62, 1.0  ;;  %v8330_v43 = vmul.f32 %v17075_v63, %v17075_v63  ;;  %v8258_v34 = vadd.f32 %v17070_v19, %v8257_v35 }
 0x6db   : > { %v8793_v11 = vmul.f32 %v8761_v28, %v16894_v6  ;;  %v8535_v38 = vmul.f32 0.5, %v8534_v61  ;;  %v7301_v21 = vpop.f32.mrf.mxu2 }
 0x6dc   : > { %v7347_v44 = vmul.f32 %v17066_v32, %v7301_v21  ;;  %8388 = vadd.xlane.f32.xlu0 %v8330_v43 }
 0x6dd   : > { %8825 = vst [vmem:[%s16990_s2 + $0x48] sm:$0xff] %v8793_v11  ;;  %v8536_v55 = vsub.f32 1.5, %v8535_v38 }
 0x6de   : > { %v9966_v29 = vpop.eup %9965  ;;  %v7383_v24 = vadd.f32 %v17057_v36, %v7347_v44 }
 0x6df   : > { %v8537_v47 = vmul.f32 %v9964_v12, %v8536_v55  ;;  %v8543_v56 = vmul.f32 %v9966_v29, %v8359_v51  ;;  %v8361_v5 = vpop.xlane.xlu1 %8360  ;;  %vm8549_vm4 = vweird.f32 %v9966_v29 }
 0x6e0   : > { %v17084_v6 = vadd.f32 %v8258_v34, %v7383_v24  ;;  %9967 = vrsqrt.f32 %v8361_v5  ;;  %vm8550_vm7 = vmor %vm8548_vm6, %vm8549_vm4  ;;  %vm8558_vm9 = vweird.f32 %v8361_v5  ;;  %vm8412_vm11 = vcmp.gt.f32.partialorder %v8361_v5, 1.0 }
 0x6e1   : > { %v8260_v33 = vpop.f32.mrf.mxu1  ;;  %v8541_v14 = vsel %vm8540_vm15, %v9964_v12, %v8537_v47  ;;  %v8544_v20 = vmul.f32 %v9966_v29, %v8543_v56 }
 0x6e2   : > { %v8762_v53 = vsel %vm8410_vm5, %v8541_v14, 1.0  ;;  %v8331_v3 = vmul.f32 %v17084_v6, %v17084_v6  ;;  %v8261_v0 = vadd.f32 %v17070_v19, %v8260_v33 }
 0x6e3   : > { %v8794_v25 = vmul.f32 %v8762_v53, %v16908_v57  ;;  %v8545_v26 = vmul.f32 0.5, %v8544_v20  ;;  %v7304_v10 = vpop.f32.mrf.mxu2 }
 0x6e4   : > { %v7348_v15 = vmul.f32 %v17066_v32, %v7304_v10  ;;  %8390 = vadd.xlane.f32.xlu1 %v8331_v3 }
 0x6e5   : > { %8826 = vst [vmem:[%s16990_s2 + $0x50] sm:$0xff] %v8794_v25  ;;  %v8546_v42 = vsub.f32 1.5, %v8545_v26 }
 0x6e6   : > { %v9968_v2 = vpop.eup %9967  ;;  %v7384_v16 = vadd.f32 %v17057_v36, %v7348_v15 }
 0x6e7   : > { %v8547_v7 = vmul.f32 %v9966_v29, %v8546_v42  ;;  %v8553_v30 = vmul.f32 %v9968_v2, %v8361_v5  ;;  %v8363_v50 = vpop.xlane.xlu2 %8362  ;;  %vm8559_vm10 = vweird.f32 %v9968_v2 }
 0x6e8   : > { %v17093_v57 = vadd.f32 %v8261_v0, %v7384_v16  ;;  %9969 = vrsqrt.f32 %v8363_v50  ;;  %vm8560_vm1 = vmor %vm8558_vm9, %vm8559_vm10  ;;  %vm8568_vm0 = vweird.f32 %v8363_v50  ;;  %vm8413_vm3 = vcmp.gt.f32.partialorder %v8363_v50, 1.0 }
 0x6e9   : > { %v8263_v59 = vpop.f32.mrf.mxu1  ;;  %v8551_v9 = vsel %vm8550_vm7, %v9966_v29, %v8547_v7  ;;  %v8554_v13 = vmul.f32 %v9968_v2, %v8553_v30 }
 0x6ea   : > { %v8763_v58 = vsel %vm8411_vm8, %v8551_v9, 1.0  ;;  %v8332_v46 = vmul.f32 %v17093_v57, %v17093_v57  ;;  %v8264_v52 = vadd.f32 %v17070_v19, %v8263_v59 }
 0x6eb   : > { %v8795_v18 = vmul.f32 %v8763_v58, %v16921_v39  ;;  %v8555_v12 = vmul.f32 0.5, %v8554_v13  ;;  %v7307_v31 = vpop.f32.mrf.mxu2 }
 0x6ec   : > { %v7349_v41 = vmul.f32 %v17066_v32, %v7307_v31  ;;  %8392 = vadd.xlane.f32.xlu2 %v8332_v46 }
 0x6ed   : > { %8827 = vst [vmem:[%s16990_s2 + $0x58] sm:$0xff] %v8795_v18  ;;  %v8556_v35 = vsub.f32 1.5, %v8555_v12 }
 0x6ee   : > { %v9970_v62 = vpop.eup %9969  ;;  %v7385_v51 = vadd.f32 %v17057_v36, %v7349_v41 }
 0x6ef   : > { %v8557_v61 = vmul.f32 %v9968_v2, %v8556_v35  ;;  %v8563_v28 = vmul.f32 %v9970_v62, %v8363_v50  ;;  %v8365_v43 = vpop.xlane.xlu0 %8364  ;;  %vm8569_vm12 = vweird.f32 %v9970_v62 }
 0x6f0   : > { %v17102_v39 = vadd.f32 %v8264_v52, %v7385_v51  ;;  %9971 = vrsqrt.f32 %v8365_v43  ;;  %vm8570_vm13 = vmor %vm8568_vm0, %vm8569_vm12  ;;  %vm8578_vm14 = vweird.f32 %v8365_v43  ;;  %vm8414_vm5 = vcmp.gt.f32.partialorder %v8365_v43, 1.0 }
 0x6f1   : > { %v8266_v11 = vpop.f32.mrf.mxu1  ;;  %v8561_v38 = vsel %vm8560_vm1, %v9968_v2, %v8557_v61  ;;  %v8564_v21 = vmul.f32 %v9970_v62, %v8563_v28 }
 0x6f2   : > { %v8764_v44 = vsel %vm8412_vm11, %v8561_v38, 1.0  ;;  %v8333_v34 = vmul.f32 %v17102_v39, %v17102_v39  ;;  %v8267_v56 = vadd.f32 %v17070_v19, %v8266_v11 }
 0x6f3   : > { %v8796_v55 = vmul.f32 %v8764_v44, %v16933_v60  ;;  %v8565_v29 = vmul.f32 0.5, %v8564_v21  ;;  %v7310_v24 = vpop.f32.mrf.mxu2 }
 0x6f4   : > { %v7350_v47 = vmul.f32 %v17066_v32, %v7310_v24  ;;  %8394 = vadd.xlane.f32.xlu0 %v8333_v34 }
 0x6f5   : > { %8828 = vst [vmem:[%s16990_s2 + $0x60] sm:$0xff] %v8796_v55  ;;  %v8566_v33 = vsub.f32 1.5, %v8565_v29 }
 0x6f6   : > { %v9972_v14 = vpop.eup %9971  ;;  %v7386_v5 = vadd.f32 %v17057_v36, %v7350_v47 }
 0x6f7   : > { %v8567_v20 = vmul.f32 %v9970_v62, %v8566_v33  ;;  %v8573_v53 = vmul.f32 %v9972_v14, %v8365_v43  ;;  %v8367_v3 = vpop.xlane.xlu1 %8366  ;;  %vm8579_vm2 = vweird.f32 %v9972_v14 }
 0x6f8   : > { %v17111_v60 = vadd.f32 %v8267_v56, %v7386_v5  ;;  %9973 = vrsqrt.f32 %v8367_v3  ;;  %vm8580_vm15 = vmor %vm8578_vm14, %vm8579_vm2  ;;  %vm8588_vm6 = vweird.f32 %v8367_v3  ;;  %vm8415_vm8 = vcmp.gt.f32.partialorder %v8367_v3, 1.0 }
 0x6f9   : > { %v8571_v25 = vsel %vm8570_vm13, %v9970_v62, %v8567_v20  ;;  %v8574_v26 = vmul.f32 %v9972_v14, %v8573_v53  ;;  %v8269_v10 = vpop.f32.mrf.mxu1 }
 0x6fa   : > { %v8765_v15 = vsel %vm8413_vm3, %v8571_v25, 1.0  ;;  %v8334_v0 = vmul.f32 %v17111_v60, %v17111_v60  ;;  %v8270_v30 = vadd.f32 %v17070_v19, %v8269_v10 }
 0x6fb   : > { %v8797_v42 = vmul.f32 %v8765_v15, %v16945_v49  ;;  %v8575_v2 = vmul.f32 0.5, %v8574_v26  ;;  %v7313_v16 = vpop.f32.mrf.mxu2 }
 0x6fc   : > { %v7351_v7 = vmul.f32 %v17066_v32, %v7313_v16  ;;  %8396 = vadd.xlane.f32.xlu1 %v8334_v0 }
 0x6fd   : > { %8829 = vst [vmem:[%s16990_s2 + $0x68] sm:$0xff] %v8797_v42  ;;  %v8576_v59 = vsub.f32 1.5, %v8575_v2 }
 0x6fe   : > { %v9974_v50 = vpop.eup %9973  ;;  %v7387_v9 = vadd.f32 %v17057_v36, %v7351_v7 }
 0x6ff   : > { %v8577_v13 = vmul.f32 %v9972_v14, %v8576_v59  ;;  %v8583_v58 = vmul.f32 %v9974_v50, %v8367_v3  ;;  %v8369_v46 = vpop.xlane.xlu2 %8368  ;;  %vm8589_vm4 = vweird.f32 %v9974_v50 }
 0x700   : > { %v17120_v49 = vadd.f32 %v8270_v30, %v7387_v9  ;;  %9975 = vrsqrt.f32 %v8369_v46  ;;  %vm8590_vm7 = vmor %vm8588_vm6, %vm8589_vm4  ;;  %vm8598_vm9 = vweird.f32 %v8369_v46  ;;  %vm8416_vm11 = vcmp.gt.f32.partialorder %v8369_v46, 1.0 }
 0x701   : > { %v8581_v32 = vsel %vm8580_vm15, %v9972_v14, %v8577_v13  ;;  %v8584_v18 = vmul.f32 %v9974_v50, %v8583_v58 }
 0x702   : > { %v8766_v19 = vsel %vm8414_vm5, %v8581_v32, 1.0  ;;  %v8335_v12 = vmul.f32 %v17120_v49, %v17120_v49 }
 0x703   : > { %v8798_v31 = vmul.f32 %v8766_v19, %v16956_v8  ;;  %v8585_v41 = vmul.f32 0.5, %v8584_v18 }
 0x704   : > { %8398 = vadd.xlane.f32.xlu2 %v8335_v12 }
 0x705   : > { %8830 = vst [vmem:[%s16990_s2 + $0x70] sm:$0xff] %v8798_v31  ;;  %v8586_v36 = vsub.f32 1.5, %v8585_v41 }
 0x706   : > { %v9976_v52 = vpop.eup %9975 }
 0x707   : > { %v8587_v35 = vmul.f32 %v9974_v50, %v8586_v36  ;;  %v8593_v62 = vmul.f32 %v9976_v52, %v8369_v46  ;;  %v8371_v51 = vpop.xlane.xlu0 %8370  ;;  %vm8599_vm10 = vweird.f32 %v9976_v52 }
 0x708   : > { %9977 = vrsqrt.f32 %v8371_v51  ;;  %vm8600_vm1 = vmor %vm8598_vm9, %vm8599_vm10  ;;  %vm8608_vm0 = vweird.f32 %v8371_v51  ;;  %vm8417_vm3 = vcmp.gt.f32.partialorder %v8371_v51, 1.0 }
 0x709   : > { %v8591_v61 = vsel %vm8590_vm7, %v9974_v50, %v8587_v35  ;;  %v8594_v28 = vmul.f32 %v9976_v52, %v8593_v62 }
 0x70a   : > { %v8767_v43 = vsel %vm8415_vm8, %v8591_v61, 1.0 }
 0x70b   : > { %v8799_v11 = vmul.f32 %v8767_v43, %v16966_v4  ;;  %v8595_v8 = vmul.f32 0.5, %v8594_v28 }
 0x70d   : > { %8831 = vst [vmem:[%s16990_s2 + $0x78] sm:$0xff] %v8799_v11  ;;  %v8596_v38 = vsub.f32 1.5, %v8595_v8 }
 0x70e   : > { %v9978_v21 = vpop.eup %9977 }
 0x70f   : > { %v8597_v44 = vmul.f32 %v9976_v52, %v8596_v38  ;;  %v8603_v34 = vmul.f32 %v9978_v21, %v8371_v51  ;;  %v8373_v55 = vpop.xlane.xlu1 %8372  ;;  %vm8609_vm12 = vweird.f32 %v9978_v21 }
 0x710   : > { %9979 = vrsqrt.f32 %v8373_v55  ;;  %vm8610_vm13 = vmor %vm8608_vm0, %vm8609_vm12  ;;  %vm8618_vm14 = vweird.f32 %v8373_v55  ;;  %vm8418_vm5 = vcmp.gt.f32.partialorder %v8373_v55, 1.0 }
 0x711   : > { %v8601_v29 = vsel %vm8600_vm1, %v9976_v52, %v8597_v44  ;;  %v8604_v24 = vmul.f32 %v9978_v21, %v8603_v34 }
 0x712   : > { %v8768_v47 = vsel %vm8416_vm11, %v8601_v29, 1.0 }
 0x713   : > { %v8800_v56 = vmul.f32 %v8768_v47, %v16973_v22  ;;  %v8605_v33 = vmul.f32 0.5, %v8604_v24 }
 0x715   : > { %8832 = vst [vmem:[%s16990_s2 + $0x80] sm:$0xff] %v8800_v56  ;;  %v8606_v4 = vsub.f32 1.5, %v8605_v33 }
 0x716   : > { %v9980_v14 = vpop.eup %9979 }
 0x717   : > { %v8607_v5 = vmul.f32 %v9978_v21, %v8606_v4  ;;  %v8613_v20 = vmul.f32 %v9980_v14, %v8373_v55  ;;  %v8375_v53 = vpop.xlane.xlu2 %8374  ;;  %vm8619_vm2 = vweird.f32 %v9980_v14 }
 0x718   : > { %9981 = vrsqrt.f32 %v8375_v53  ;;  %vm8620_vm15 = vmor %vm8618_vm14, %vm8619_vm2  ;;  %vm8628_vm6 = vweird.f32 %v8375_v53  ;;  %vm8419_vm8 = vcmp.gt.f32.partialorder %v8375_v53, 1.0 }
 0x719   : > { %v8611_v3 = vsel %vm8610_vm13, %v9978_v21, %v8607_v5  ;;  %v8614_v25 = vmul.f32 %v9980_v14, %v8613_v20 }
 0x71a   : > { %v8769_v26 = vsel %vm8417_vm3, %v8611_v3, 1.0 }
 0x71b   : > { %v8801_v10 = vmul.f32 %v8769_v26, %v16983_v40  ;;  %v8615_v15 = vmul.f32 0.5, %v8614_v25 }
 0x71d   : > { %8833 = vst [vmem:[%s16990_s2 + $0x88] sm:$0xff] %v8801_v10  ;;  %v8616_v22 = vsub.f32 1.5, %v8615_v15 }
 0x71e   : > { %v9982_v0 = vpop.eup %9981 }
 0x71f   : > { %v8617_v42 = vmul.f32 %v9980_v14, %v8616_v22  ;;  %v8623_v2 = vmul.f32 %v9982_v0, %v8375_v53  ;;  %v8377_v16 = vpop.xlane.xlu0 %8376  ;;  %vm8629_vm4 = vweird.f32 %v9982_v0 }
 0x720   : > { %9983 = vrsqrt.f32 %v8377_v16  ;;  %vm8630_vm7 = vmor %vm8628_vm6, %vm8629_vm4  ;;  %vm8638_vm9 = vweird.f32 %v8377_v16  ;;  %vm8420_vm11 = vcmp.gt.f32.partialorder %v8377_v16, 1.0 }
 0x721   : > { %v8621_v7 = vsel %vm8620_vm15, %v9980_v14, %v8617_v42  ;;  %v8624_v30 = vmul.f32 %v9982_v0, %v8623_v2 }
 0x722   : > { %v8770_v59 = vsel %vm8418_vm5, %v8621_v7, 1.0 }
 0x723   : > { %v8802_v50 = vmul.f32 %v8770_v59, %v16994_v45  ;;  %v8625_v9 = vmul.f32 0.5, %v8624_v30 }
 0x725   : > { %8834 = vst [vmem:[%s16990_s2 + $0x90] sm:$0xff] %v8802_v50  ;;  %v8626_v40 = vsub.f32 1.5, %v8625_v9 }
 0x726   : > { %v9984_v13 = vpop.eup %9983 }
 0x727   : > { %v8627_v58 = vmul.f32 %v9982_v0, %v8626_v40  ;;  %v8633_v46 = vmul.f32 %v9984_v13, %v8377_v16  ;;  %v8379_v32 = vpop.xlane.xlu1 %8378  ;;  %vm8639_vm10 = vweird.f32 %v9984_v13 }
 0x728   : > { %9985 = vrsqrt.f32 %v8379_v32  ;;  %vm8640_vm1 = vmor %vm8638_vm9, %vm8639_vm10  ;;  %vm8648_vm0 = vweird.f32 %v8379_v32  ;;  %vm8421_vm3 = vcmp.gt.f32.partialorder %v8379_v32, 1.0 }
 0x729   : > { %v8631_v18 = vsel %vm8630_vm7, %v9982_v0, %v8627_v58  ;;  %v8634_v19 = vmul.f32 %v9984_v13, %v8633_v46 }
 0x72a   : > { %v8771_v12 = vsel %vm8419_vm8, %v8631_v18, 1.0 }
 0x72b   : > { %v8803_v31 = vmul.f32 %v8771_v12, %v17003_v37  ;;  %v8635_v41 = vmul.f32 0.5, %v8634_v19 }
 0x72d   : > { %8835 = vst [vmem:[%s16990_s2 + $0x98] sm:$0xff] %v8803_v31  ;;  %v8636_v45 = vsub.f32 1.5, %v8635_v41 }
 0x72e   : > { %v9986_v36 = vpop.eup %9985 }
 0x72f   : > { %v8637_v52 = vmul.f32 %v9984_v13, %v8636_v45  ;;  %v8643_v35 = vmul.f32 %v9986_v36, %v8379_v32  ;;  %v8381_v62 = vpop.xlane.xlu2 %8380  ;;  %vm8649_vm12 = vweird.f32 %v9986_v36 }
 0x730   : > { %9987 = vrsqrt.f32 %v8381_v62  ;;  %vm8650_vm13 = vmor %vm8648_vm0, %vm8649_vm12  ;;  %vm8658_vm14 = vweird.f32 %v8381_v62  ;;  %vm8422_vm5 = vcmp.gt.f32.partialorder %v8381_v62, 1.0 }
 0x731   : > { %v8641_v51 = vsel %vm8640_vm1, %v9984_v13, %v8637_v52  ;;  %v8644_v61 = vmul.f32 %v9986_v36, %v8643_v35 }
 0x732   : > { %v8772_v28 = vsel %vm8420_vm11, %v8641_v51, 1.0 }
 0x733   : > { %v8804_v43 = vmul.f32 %v8772_v28, %v17012_v23  ;;  %v8645_v11 = vmul.f32 0.5, %v8644_v61 }
 0x735   : > { %8836 = vst [vmem:[%s16990_s2 + $0xa0] sm:$0xff] %v8804_v43  ;;  %v8646_v37 = vsub.f32 1.5, %v8645_v11 }
 0x736   : > { %v9988_v8 = vpop.eup %9987 }
 0x737   : > { %v8647_v38 = vmul.f32 %v9986_v36, %v8646_v37  ;;  %v8653_v21 = vmul.f32 %v9988_v8, %v8381_v62  ;;  %v8383_v44 = vpop.xlane.xlu0 %8382  ;;  %vm8659_vm2 = vweird.f32 %v9988_v8 }
 0x738   : > { %9989 = vrsqrt.f32 %v8383_v44  ;;  %vm8660_vm15 = vmor %vm8658_vm14, %vm8659_vm2  ;;  %vm8668_vm6 = vweird.f32 %v8383_v44  ;;  %vm8423_vm8 = vcmp.gt.f32.partialorder %v8383_v44, 1.0 }
 0x739   : > { %v8651_v34 = vsel %vm8650_vm13, %v9986_v36, %v8647_v38  ;;  %v8654_v55 = vmul.f32 %v9988_v8, %v8653_v21 }
 0x73a   : > { %v8773_v29 = vsel %vm8421_vm3, %v8651_v34, 1.0 }
 0x73b   : > { %v8805_v24 = vmul.f32 %v8773_v29, %v17021_v54  ;;  %v8655_v47 = vmul.f32 0.5, %v8654_v55 }
 0x73d   : > { %8837 = vst [vmem:[%s16990_s2 + $0xa8] sm:$0xff] %v8805_v24  ;;  %v8656_v23 = vsub.f32 1.5, %v8655_v47 }
 0x73e   : > { %v9990_v56 = vpop.eup %9989 }
 0x73f   : > { %v8657_v33 = vmul.f32 %v9988_v8, %v8656_v23  ;;  %v8663_v4 = vmul.f32 %v9990_v56, %v8383_v44  ;;  %v8385_v14 = vpop.xlane.xlu1 %8384  ;;  %vm8669_vm4 = vweird.f32 %v9990_v56 }
 0x740   : > { %9991 = vrsqrt.f32 %v8385_v14  ;;  %vm8670_vm7 = vmor %vm8668_vm6, %vm8669_vm4  ;;  %vm8678_vm9 = vweird.f32 %v8385_v14  ;;  %vm8424_vm11 = vcmp.gt.f32.partialorder %v8385_v14, 1.0 }
 0x741   : > { %v8661_v5 = vsel %vm8660_vm15, %v9988_v8, %v8657_v33  ;;  %v8664_v20 = vmul.f32 %v9990_v56, %v8663_v4 }
 0x742   : > { %v8774_v53 = vsel %vm8422_vm5, %v8661_v5, 1.0 }
 0x743   : > { %v8806_v3 = vmul.f32 %v8774_v53, %v17030_v48  ;;  %v8665_v25 = vmul.f32 0.5, %v8664_v20 }
 0x745   : > { %8838 = vst [vmem:[%s16990_s2 + $0xb0] sm:$0xff] %v8806_v3  ;;  %v8666_v54 = vsub.f32 1.5, %v8665_v25 }
 0x746   : > { %v9992_v26 = vpop.eup %9991 }
 0x747   : > { %v8667_v10 = vmul.f32 %v9990_v56, %v8666_v54  ;;  %v8673_v15 = vmul.f32 %v9992_v26, %v8385_v14  ;;  %v8387_v22 = vpop.xlane.xlu2 %8386  ;;  %vm8679_vm10 = vweird.f32 %v9992_v26 }
 0x748   : > { %9993 = vrsqrt.f32 %v8387_v22  ;;  %vm8680_vm1 = vmor %vm8678_vm9, %vm8679_vm10  ;;  %vm8688_vm0 = vweird.f32 %v8387_v22  ;;  %vm8425_vm3 = vcmp.gt.f32.partialorder %v8387_v22, 1.0 }
 0x749   : > { %v8671_v0 = vsel %vm8670_vm7, %v9990_v56, %v8667_v10  ;;  %v8674_v42 = vmul.f32 %v9992_v26, %v8673_v15 }
 0x74a   : > { %v8775_v2 = vsel %vm8423_vm8, %v8671_v0, 1.0 }
 0x74b   : > { %v8807_v16 = vmul.f32 %v8775_v2, %v17039_v1  ;;  %v8675_v7 = vmul.f32 0.5, %v8674_v42 }
 0x74d   : > { %8839 = vst [vmem:[%s16990_s2 + $0xb8] sm:$0xff] %v8807_v16  ;;  %v8676_v48 = vsub.f32 1.5, %v8675_v7 }
 0x74e   : > { %v9994_v30 = vpop.eup %9993 }
 0x74f   : > { %v8677_v59 = vmul.f32 %v9992_v26, %v8676_v48  ;;  %v8683_v50 = vmul.f32 %v9994_v30, %v8387_v22  ;;  %v8389_v9 = vpop.xlane.xlu0 %8388  ;;  %vm8689_vm12 = vweird.f32 %v9994_v30 }
 0x750   : > { %9995 = vrsqrt.f32 %v8389_v9  ;;  %vm8690_vm13 = vmor %vm8688_vm0, %vm8689_vm12  ;;  %vm8698_vm14 = vweird.f32 %v8389_v9  ;;  %vm8426_vm5 = vcmp.gt.f32.partialorder %v8389_v9, 1.0 }
 0x751   : > { %v8681_v40 = vsel %vm8680_vm1, %v9992_v26, %v8677_v59  ;;  %v8684_v13 = vmul.f32 %v9994_v30, %v8683_v50 }
 0x752   : > { %v8776_v58 = vsel %vm8424_vm11, %v8681_v40, 1.0 }
 0x753   : > { %v8808_v46 = vmul.f32 %v8776_v58, %v17048_v27  ;;  %v8685_v32 = vmul.f32 0.5, %v8684_v13 }
 0x755   : > { %8840 = vst [vmem:[%s16990_s2 + $0xc0] sm:$0xff] %v8808_v46  ;;  %v8686_v1 = vsub.f32 1.5, %v8685_v32 }
 0x756   : > { %v9996_v18 = vpop.eup %9995 }
 0x757   : > { %v8687_v19 = vmul.f32 %v9994_v30, %v8686_v1  ;;  %v8693_v12 = vmul.f32 %v9996_v18, %v8389_v9  ;;  %v8391_v31 = vpop.xlane.xlu1 %8390  ;;  %vm8699_vm2 = vweird.f32 %v9996_v18 }
 0x758   : > { %9997 = vrsqrt.f32 %v8391_v31  ;;  %vm8700_vm15 = vmor %vm8698_vm14, %vm8699_vm2  ;;  %vm8708_vm6 = vweird.f32 %v8391_v31  ;;  %vm8427_vm8 = vcmp.gt.f32.partialorder %v8391_v31, 1.0 }
 0x759   : > { %v8691_v41 = vsel %vm8690_vm13, %v9994_v30, %v8687_v19  ;;  %v8694_v45 = vmul.f32 %v9996_v18, %v8693_v12 }
 0x75a   : > { %v8777_v36 = vsel %vm8425_vm3, %v8691_v41, 1.0 }
 0x75b   : > { %v8809_v52 = vmul.f32 %v8777_v36, %v17060_v17  ;;  %v8695_v35 = vmul.f32 0.5, %v8694_v45 }
 0x75d   : > { %8841 = vst [vmem:[%s16990_s2 + $0xc8] sm:$0xff] %v8809_v52  ;;  %v8696_v27 = vsub.f32 1.5, %v8695_v35 }
 0x75e   : > { %v9998_v62 = vpop.eup %9997 }
 0x75f   : > { %v8697_v51 = vmul.f32 %v9996_v18, %v8696_v27  ;;  %v8703_v61 = vmul.f32 %v9998_v62, %v8391_v31  ;;  %v8393_v28 = vpop.xlane.xlu2 %8392  ;;  %vm8709_vm4 = vweird.f32 %v9998_v62 }
 0x760   : > { %9999 = vrsqrt.f32 %v8393_v28  ;;  %vm8710_vm7 = vmor %vm8708_vm6, %vm8709_vm4  ;;  %vm8718_vm9 = vweird.f32 %v8393_v28  ;;  %vm8428_vm11 = vcmp.gt.f32.partialorder %v8393_v28, 1.0 }
 0x761   : > { %v8701_v43 = vsel %vm8700_vm15, %v9996_v18, %v8697_v51  ;;  %v8704_v11 = vmul.f32 %v9998_v62, %v8703_v61 }
 0x762   : > { %v8778_v37 = vsel %vm8426_vm5, %v8701_v43, 1.0 }
 0x763   : > { %v8810_v8 = vmul.f32 %v8778_v37, %v17075_v63  ;;  %v8705_v38 = vmul.f32 0.5, %v8704_v11 }
 0x765   : > { %8842 = vst [vmem:[%s16990_s2 + $0xd0] sm:$0xff] %v8810_v8  ;;  %v8706_v17 = vsub.f32 1.5, %v8705_v38 }
 0x766   : > { %v10000_v21 = vpop.eup %9999 }
 0x767   : > { %v8707_v44 = vmul.f32 %v9998_v62, %v8706_v17  ;;  %v8713_v34 = vmul.f32 %v10000_v21, %v8393_v28  ;;  %v8395_v55 = vpop.xlane.xlu0 %8394  ;;  %vm8719_vm10 = vweird.f32 %v10000_v21 }
 0x768   : > { %10001 = vrsqrt.f32 %v8395_v55  ;;  %vm8720_vm1 = vmor %vm8718_vm9, %vm8719_vm10  ;;  %vm8728_vm0 = vweird.f32 %v8395_v55  ;;  %vm8429_vm3 = vcmp.gt.f32.partialorder %v8395_v55, 1.0 }
 0x769   : > { %v8711_v29 = vsel %vm8710_vm7, %v9998_v62, %v8707_v44  ;;  %v8714_v24 = vmul.f32 %v10000_v21, %v8713_v34 }
 0x76a   : > { %v8779_v47 = vsel %vm8427_vm8, %v8711_v29, 1.0 }
 0x76b   : > { %v8811_v23 = vmul.f32 %v8779_v47, %v17084_v6  ;;  %v8715_v56 = vmul.f32 0.5, %v8714_v24 }
 0x76d   : > { %8843 = vst [vmem:[%s16990_s2 + $0xd8] sm:$0xff] %v8811_v23  ;;  %v8716_v63 = vsub.f32 1.5, %v8715_v56 }
 0x76e   : > { %v10002_v33 = vpop.eup %10001 }
 0x76f   : > { %v8717_v4 = vmul.f32 %v10000_v21, %v8716_v63  ;;  %v8723_v14 = vmul.f32 %v10002_v33, %v8395_v55  ;;  %v8397_v5 = vpop.xlane.xlu1 %8396  ;;  %vm8729_vm12 = vweird.f32 %v10002_v33 }
 0x770   : > { %10003 = vrsqrt.f32 %v8397_v5  ;;  %vm8730_vm13 = vmor %vm8728_vm0, %vm8729_vm12  ;;  %vm8738_vm14 = vweird.f32 %v8397_v5  ;;  %vm8430_vm5 = vcmp.gt.f32.partialorder %v8397_v5, 1.0 }
 0x771   : > { %v8721_v20 = vsel %vm8720_vm1, %v10000_v21, %v8717_v4  ;;  %v8724_v53 = vmul.f32 %v10002_v33, %v8723_v14 }
 0x772   : > { %v8780_v3 = vsel %vm8428_vm11, %v8721_v20, 1.0 }
 0x773   : > { %v8812_v25 = vmul.f32 %v8780_v3, %v17093_v57  ;;  %v8725_v54 = vmul.f32 0.5, %v8724_v53 }
 0x775   : > { %8844 = vst [vmem:[%s16990_s2 + $0xe0] sm:$0xff] %v8812_v25  ;;  %v8726_v6 = vsub.f32 1.5, %v8725_v54 }
 0x776   : > { %v10004_v26 = vpop.eup %10003 }
 0x777   : > { %v8727_v10 = vmul.f32 %v10002_v33, %v8726_v6  ;;  %v8733_v15 = vmul.f32 %v10004_v26, %v8397_v5  ;;  %v8399_v22 = vpop.xlane.xlu2 %8398  ;;  %vm8739_vm2 = vweird.f32 %v10004_v26 }
 0x778   : > { %10005 = vrsqrt.f32 %v8399_v22  ;;  %vm8740_vm15 = vmor %vm8738_vm14, %vm8739_vm2  ;;  %vm8748_vm6 = vweird.f32 %v8399_v22  ;;  %vm8431_vm8 = vcmp.gt.f32.partialorder %v8399_v22, 1.0 }
 0x779   : > { %v8731_v0 = vsel %vm8730_vm13, %v10002_v33, %v8727_v10  ;;  %v8734_v42 = vmul.f32 %v10004_v26, %v8733_v15 }
 0x77a   : > { %v8781_v2 = vsel %vm8429_vm3, %v8731_v0, 1.0 }
 0x77b   : > { %v8813_v16 = vmul.f32 %v8781_v2, %v17102_v39  ;;  %v8735_v57 = vmul.f32 0.5, %v8734_v42 }
 0x77d   : > { %8845 = vst [vmem:[%s16990_s2 + $0xe8] sm:$0xff] %v8813_v16  ;;  %v8736_v7 = vsub.f32 1.5, %v8735_v57 }
 0x77e   : > { %v10006_v48 = vpop.eup %10005 }
 0x77f   : > { %v8737_v30 = vmul.f32 %v10004_v26, %v8736_v7  ;;  %v8743_v59 = vmul.f32 %v10006_v48, %v8399_v22  ;;  %vm8749_vm4 = vweird.f32 %v10006_v48 }
 0x780   : > { %vm8750_vm7 = vmor %vm8748_vm6, %vm8749_vm4 }
 0x781   : > { %v8741_v50 = vsel %vm8740_vm15, %v10004_v26, %v8737_v30  ;;  %v8744_v9 = vmul.f32 %v10006_v48, %v8743_v59 }
 0x782   : > { %v8782_v40 = vsel %vm8430_vm5, %v8741_v50, 1.0 }
 0x783   : > { %v8814_v13 = vmul.f32 %v8782_v40, %v17111_v60  ;;  %v8745_v39 = vmul.f32 0.5, %v8744_v9 }
 0x785   : > { %8846 = vst [vmem:[%s16990_s2 + $0xf0] sm:$0xff] %v8814_v13  ;;  %v8746_v58 = vsub.f32 1.5, %v8745_v39 }
 0x787   : > { %v8747_v46 = vmul.f32 %v10006_v48, %v8746_v58 }
 0x789   : > { %v8751_v32 = vsel %vm8750_vm7, %v10006_v48, %v8747_v46 }
 0x78a   : > { %v8783_v1 = vsel %vm8431_vm8, %v8751_v32, 1.0 }
 0x78b   : > { %v8815_v60 = vmul.f32 %v8783_v1, %v17120_v49 }
 0x78d   : > { %8847 = vst [vmem:[%s16990_s2 + $0xf8] sm:$0xff] %v8815_v60 }
 0x78e   : > { %10096 = shalt.err (!%p10093_p2)
}
 0x78f   : > { %s10174_s11 = smov 128   ;;  %s10175_s12 = smov 8  }
 0x790   : > { %9584 = dma.vmem_to_hbm [thread:$0]  (%p10404_p5), %s8862_s6, 4096, %s8864_s8, %s8849_s3, %s10174_s11, %s10174_s11, %s10175_s12  }
 0x791 PF: > { %p9596_p3 = scmp.ge.s32.totalorder %s10135_s7, 2  ;;  %s8878_s2 = sand.u32 1, %s10123_s28  }
 0x792   : > { %s8879_s0 = scalar_lea.sflag [#allocation3], %s8878_s2 }
 0x793   : > { %p9591_p4 = pnand %p9596_p3, %p10408_p6 }
 0x795   : > { %p9592_p7 = pneg %p9591_p4 }
 0x797   : > { %10118 = dma.done.wait (%p9592_p7), %s8879_s0, 4096  }
 0x798   : > { %10120 = vsyncadd (%p9592_p7), %s8879_s0, 4294963200  ;;  %s17895_s7 = sld [smem:[#allocation34_spill]]  ;;  %s17898_s28 = smov %s10127_s1 }
 0x799   : > { %s17896_s10 = sld [smem:[#allocation33_spill]] }
 0x79a   : > { %s17897_s2 = sld [smem:[#allocation35_spill]] }
 0x79e   : > { %p84_p8 = scmp.ge.s32.totalorder %s17895_s7, 4  }
 0x79f   : > { %s17899_s1 = smov %s17896_s10 }
 0x7a0   :  { %86 = sbr.rel (!%p84_p8) target bundleno = 67 (0x43), region = 249 }
 0x7a5   :  { %8885 = vsyncpa [#allocation3], 1 }
 0x7a6   :  { %8887 = vsyncpa [#allocation3 + $0x1], 1 }
 0x7a7   :  { %8888 = vsyncpa [#allocation4], 1 }
 0x7a8   :  { %8890 = vsyncpa [#allocation4 + $0x1], 1 }

</bundles_post_ra>
